<compile_context>
chip_gen: v5e
topology: v5e:2x2
jax: 0.10.0
libtpu: 0.0.40
codegen_flags: <defaults>
</compile_context>

<pallas_src>
import functools

import jax
import jax.numpy as jnp
from jax import lax
from jax.experimental import pallas as pl
from jax.experimental.pallas import tpu as pltpu


# ------------------------------ fused Pallas kernel ------------------------------ #

def _fused_fire_kernel(imgs, cols_ref, w1_ref, b1_ref, w2_ref, b2_ref, w3_ref, b3_ref,
                       out_ref, lhs2_ref):
    # cols_ref: (imgs, 1024, 27) bf16; rows per image = widx*256 + hpar*128 + wpar*64 + a*8 + b
    #           (widx = stage-1 pool slot 2*di+dj, (a,b) = coarse 8x8 grid, (hpar,wpar) = parity
    #            of the 16x16 pooled grid position); cols = ci*9 + kh*3 + kw.
    # w1_ref: (27, 64) bf16     b1_ref: (1, 64) f32
    # w2_ref: (576, 128) bf16, rows = (kh*3+kw)*64 + ci      b2_ref: (1, 128) f32
    # w3_ref: (64, 128) f32, rows = h*8+w of the final 8x8 grid, cols = channel
    # b3_ref: (1, 1) f32 scalar in SMEM
    # out_ref: (imgs, 1) f32
    # lhs2_ref: (imgs, 256, 576) bf16 scratch -- fused-K stage-2 im2col,
    #           rows = slot(=2*di+dj)*64 + a*8 + b, cols = (kh*3+kw)*64 + ci.
    f32 = jnp.float32

    # ---------------- stage 1: Conv3x3(3->64) + ReLU + MaxPool2 ----------------
    lhs1 = cols_ref[...].reshape(imgs * 1024, 27)
    y1 = jnp.dot(lhs1, w1_ref[...], preferred_element_type=f32)           # (imgs*1024, 64)
    y1 = y1.reshape(imgs, 4, 256, 64)
    p1 = jnp.maximum(jnp.maximum(y1[:, 0], y1[:, 1]),
                     jnp.maximum(y1[:, 2], y1[:, 3]))                     # pool over 4 slots
    p1 = jnp.maximum(p1 + b1_ref[...], 0.0)                               # (imgs, 256, 64)

    # Parity chunks of the pooled 16x16x64 activation:
    #   chunk[hp][wp][img, a*8+b, c] == p1_grid[img, 2a+hp, 2b+wp, c]
    chunk = [[p1[:, (hp * 2 + wp) * 64:(hp * 2 + wp + 1) * 64, :] for wp in range(2)]
             for hp in range(2)]

    zrow = jnp.zeros((imgs, 8, 64), f32)       # one coarse row of zero halo (8 cells)
    zcol = jnp.zeros((imgs, 8, 1, 64), f32)    # one coarse column of zero halo

    def shift_a(v, d):   # out[a] = v[a+d]; an 8-row (sublane-tile aligned) shift + zero fill
        if d < 0:
            return jnp.concatenate([zrow, v[:, :56, :]], axis=1)
        return jnp.concatenate([v[:, 8:, :], zrow], axis=1)

    def shift_b(v, d):   # out[b] = v[b+d] inside each 8-row group, zero fill at the edge
        v4 = v.reshape(imgs, 8, 8, 64)
        if d < 0:
            v4 = jnp.concatenate([zcol, v4[:, :, :7, :]], axis=2)
        else:
            v4 = jnp.concatenate([v4[:, :, 1:, :], zcol], axis=2)
        return v4.reshape(imgs, 64, 64)

    # slab(s, t)[img, a*8+b, c] == p1_pad[img, 2a+s, 2b+t, c]  (p1_pad = 18x18 'same' padding),
    # decomposed as slab(s,t) = shift_a(shift_b(chunk[hp(s)][wp(t)])).
    HP, DA = (1, 0, 1, 0), (-1, 0, 0, +1)      # s -> row-parity chunk, extra a shift
    bvar = {}                                  # (hp, t) -> column-parity chunk (+ b shift)
    for hp in range(2):
        bvar[(hp, 0)] = shift_b(chunk[hp][1], -1)
        bvar[(hp, 1)] = chunk[hp][0]
        bvar[(hp, 2)] = chunk[hp][1]
        bvar[(hp, 3)] = shift_b(chunk[hp][0], +1)

    # ---- stage 2: build fused-K im2col, then ONE (imgs*256,576)x(576,128) matmul ----
    for s in range(4):
        for t in range(4):
            slab = bvar[(HP[s], t)]
            if DA[s] != 0:
                slab = shift_a(slab, DA[s])
            slab = slab.astype(jnp.bfloat16)
            # this slab feeds every (pool slot, conv tap) with di+kh == s and dj+kw == t
            for di in range(2):
                kh = s - di
                if kh < 0 or kh > 2:
                    continue
                for dj in range(2):
                    kw = t - dj
                    if kw < 0 or kw > 2:
                        continue
                    slot, tap = di * 2 + dj, kh * 3 + kw
                    lhs2_ref[:, slot * 64:(slot + 1) * 64, tap * 64:(tap + 1) * 64] = slab

    y2 = jnp.dot(lhs2_ref[...].reshape(imgs * 256, 576), w2_ref[...],
                 preferred_element_type=f32)                              # (imgs*256, 128)
    y2 = y2.reshape(imgs, 4, 64, 128)
    p2 = jnp.maximum(jnp.maximum(y2[:, 0], y2[:, 1]),
                     jnp.maximum(y2[:, 2], y2[:, 3]))                     # pool over 4 slots
    p2 = jnp.maximum(p2 + b2_ref[...], 0.0)                               # (imgs, 64, 128)

    # ---------------- head: Flatten + Linear(8192 -> 1) + sigmoid ----------------
    prod = p2 * w3_ref[...]
    logit = jnp.sum(jnp.sum(prod, axis=2), axis=1, keepdims=True) + b3_ref[0, 0]
    out_ref[...] = 1.0 / (1.0 + jnp.exp(-logit))


# --------------------------------- JAX-side glue --------------------------------- #

def _im2col_stage1(x_nchw):
    """Stage-1 im2col with 'same' padding (layout glue on the 12 KB input image).

    Row order (per image): pool-window slot (di,dj) major, then pooled cell grouped by parity:
        row = (2*di+dj)*256 + (h%2)*128 + (w%2)*64 + (h//2)*8 + (w//2)
    Column order: ci*9 + kh*3 + kw.
    """
    B, C, H, W = x_nchw.shape
    Hp, Wp = H // 2, W // 2                                    # 16, 16 pooled grid
    xp = jnp.pad(x_nchw, ((0, 0), (0, 0), (1, 1), (1, 1)))
    slot_blocks = []
    for di in range(2):
        for dj in range(2):
            taps = []
            for kh in range(3):
                for kw in range(3):
                    hs, ws = di + kh, dj + kw
                    sub = xp[:, :, hs:hs + 2 * (Hp - 1) + 1:2,
                                    ws:ws + 2 * (Wp - 1) + 1:2]           # (B, C, 16, 16)
                    taps.append(sub)
            patch = jnp.stack(taps, axis=-1)                              # (B, C, 16, 16, 9)
            patch = patch.reshape(B, C, Hp // 2, 2, Wp // 2, 2, 9)        # (B,C,a,hpar,b,wpar,9)
            patch = patch.transpose(0, 3, 5, 2, 4, 1, 6)                  # (B,hpar,wpar,a,b,C,9)
            slot_blocks.append(patch.reshape(B, Hp * Wp, C * 9))          # (B, 256, 27)
    return jnp.concatenate(slot_blocks, axis=1)                           # (B, 1024, 27)


def fire_detector_forward(x, packed_params, imgs_per_step=8):
    w1m, b1r, w2k, b2r, w3m, b3s = packed_params
    B = x.shape[0]
    imgs = max(1, min(imgs_per_step, B))
    bpad = ((B + imgs - 1) // imgs) * imgs
    if bpad != B:
        x = jnp.concatenate([x, jnp.zeros((bpad - B,) + x.shape[1:], x.dtype)], axis=0)
    cols = _im2col_stage1(x).astype(jnp.bfloat16)                         # (bpad, 1024, 27)

    flops = bpad * (2 * 1024 * 27 * 64 + 2 * 256 * 576 * 128 + 2 * 64 * 128)
    bytes_accessed = (cols.size * 2 + w1m.size * 2 + w2k.size * 2
                      + (b1r.size + b2r.size + w3m.size + b3s.size + bpad) * 4)

    out = pl.pallas_call(
        functools.partial(_fused_fire_kernel, imgs),
        out_shape=jax.ShapeDtypeStruct((bpad, 1), jnp.float32),
        grid=(bpad // imgs,),
        in_specs=[
            pl.BlockSpec((imgs, 1024, 27), lambda b: (b, 0, 0)),
            pl.BlockSpec((27, 64), lambda b: (0, 0)),
            pl.BlockSpec((1, 64), lambda b: (0, 0)),
            pl.BlockSpec((576, 128), lambda b: (0, 0)),
            pl.BlockSpec((1, 128), lambda b: (0, 0)),
            pl.BlockSpec((64, 128), lambda b: (0, 0)),
            pl.BlockSpec(memory_space=pltpu.MemorySpace.SMEM),            # head bias scalar
        ],
        out_specs=pl.BlockSpec((imgs, 1), lambda b: (b, 0)),
        scratch_shapes=[pltpu.VMEM((imgs, 256, 576), jnp.bfloat16)],
        compiler_params=pltpu.CompilerParams(dimension_semantics=("parallel",)),
        cost_estimate=pl.CostEstimate(flops=flops, transcendentals=bpad,
                                      bytes_accessed=bytes_accessed),
    )(cols, w1m, b1r, w2k, b2r, w3m, b3s)
    return out[:B]


# ----------------------- parameter init / packing / reference -------------------- #

def init_torch_shaped_params(key):
    ks = jax.random.split(key, 6)
    w1 = jax.random.normal(ks[0], (64, 3, 3, 3), jnp.float32) * (27 ** -0.5)
    b1 = jax.random.normal(ks[1], (64,), jnp.float32) * 0.05
    w2 = jax.random.normal(ks[2], (128, 64, 3, 3), jnp.float32) * (576 ** -0.5)
    b2 = jax.random.normal(ks[3], (128,), jnp.float32) * 0.05
    w3 = jax.random.normal(ks[4], (1, 128 * 8 * 8), jnp.float32) * (8192 ** -0.5)
    b3 = jax.random.normal(ks[5], (1,), jnp.float32) * 0.05
    return w1, b1, w2, b2, w3, b3


def pack_params(w1, b1, w2, b2, w3, b3):
    w1m = w1.reshape(64, 27).T.astype(jnp.bfloat16)                       # (27,64), k=ci*9+kh*3+kw
    w2k = jnp.transpose(w2, (2, 3, 1, 0)).reshape(576, 128).astype(jnp.bfloat16)  # k=(kh*3+kw)*64+ci
    # torch Flatten order is (C, H, W); reorder Linear weight to (H*W, C) to match kernel layout
    w3m = w3.reshape(128, 8, 8).transpose(1, 2, 0).reshape(64, 128)
    return (w1m, b1.reshape(1, 64), w2k, b2.reshape(1, 128), w3m, b3.reshape(1, 1))


def ref_forward(x, torch_params):
    w1, b1, w2, b2, w3, b3 = torch_params
    dn = ('NCHW', 'OIHW', 'NCHW')
    y = lax.conv_general_dilated(x, w1, (1, 1), ((1, 1), (1, 1)),
                                 dimension_numbers=dn, precision=lax.Precision.HIGHEST)
    y = jnp.maximum(y + b1[None, :, None, None], 0.0)
    y = lax.reduce_window(y, -jnp.inf, lax.max, (1, 1, 2, 2), (1, 1, 2, 2), 'VALID')
    y = lax.conv_general_dilated(y, w2, (1, 1), ((1, 1), (1, 1)),
                                 dimension_numbers=dn, precision=lax.Precision.HIGHEST)
    y = jnp.maximum(y + b2[None, :, None, None], 0.0)
    y = lax.reduce_window(y, -jnp.inf, lax.max, (1, 1, 2, 2), (1, 1, 2, 2), 'VALID')
    y = y.reshape(y.shape[0], -1)
    return jax.nn.sigmoid(jnp.dot(y, w3.T, precision=lax.Precision.HIGHEST) + b3)


# -------------------------------------- main ------------------------------------- #

if __name__ == "__main__":
    key = jax.random.PRNGKey(0)
    kx, kp = jax.random.split(key)
    x = jax.random.normal(kx, (2, 3, 32, 32), jnp.float32)   # Linear(128*8*8) implies 32x32 input
    torch_params = init_torch_shaped_params(kp)
    packed = pack_params(*torch_params)

    fwd = jax.jit(fire_detector_forward)
    out = jax.block_until_ready(fwd(x, packed))

    ref = ref_forward(x, torch_params)
    assert out.shape == (2, 1)
    # Kernel matmuls run bf16 passes with f32 accumulation; ref uses Precision.HIGHEST.
    assert bool(jnp.allclose(out, ref, atol=3e-2)), (out, ref)
    print("KERNEL_OK")
</pallas_src>

<mosaic_0001>
module attributes {stable_mosaic.version = 11 : i64} {
  func.func @_fused_fire_kernel(%arg0: i32, %arg1: memref<2x1024x27xbf16, #tpu.memory_space<vmem>>, %arg2: memref<27x64xbf16, #tpu.memory_space<vmem>>, %arg3: memref<1x64xf32, #tpu.memory_space<vmem>>, %arg4: memref<576x128xbf16, #tpu.memory_space<vmem>>, %arg5: memref<1x128xf32, #tpu.memory_space<vmem>>, %arg6: memref<64x128xf32, #tpu.memory_space<vmem>>, %arg7: memref<1x1xf32, #tpu.memory_space<smem>>, %arg8: memref<2x1xf32, #tpu.memory_space<vmem>>, %arg9: memref<2x256x576xbf16, #tpu.memory_space<vmem>>) attributes {dimension_semantics = [#tpu.dimension_semantics<parallel>], iteration_bounds = array<i64: 1>, scalar_prefetch = 0 : i64, scratch_operands = 1 : i64, tpu.core_type = #tpu.core_type<tc>, window_params = [{transform_indices = @transform_0, window_bounds = array<i64: 2, 1024, 27>}, {pipeline_mode = #tpu.pipeline_mode<synchronous>, transform_indices = @transform_1, window_bounds = array<i64: 27, 64>}, {pipeline_mode = #tpu.pipeline_mode<synchronous>, transform_indices = @transform_2, window_bounds = array<i64: 1, 64>}, {pipeline_mode = #tpu.pipeline_mode<synchronous>, transform_indices = @transform_3, window_bounds = array<i64: 576, 128>}, {pipeline_mode = #tpu.pipeline_mode<synchronous>, transform_indices = @transform_4, window_bounds = array<i64: 1, 128>}, {pipeline_mode = #tpu.pipeline_mode<synchronous>, transform_indices = @transform_5, window_bounds = array<i64: 64, 128>}, {transform_indices = @transform_6, window_bounds = array<i64: 1, 1>}, {transform_indices = @transform_7, window_bounds = array<i64: 2, 1>}]} {
    %c0 = arith.constant 0 : index
    %c0_0 = arith.constant 0 : index
    %c0_1 = arith.constant 0 : index
    %0 = vector.load %arg1[%c0, %c0_0, %c0_1] : memref<2x1024x27xbf16, #tpu.memory_space<vmem>>, vector<2x1024x27xbf16>
    %1 = vector.shape_cast %0 : vector<2x1024x27xbf16> to vector<2048x27xbf16>
    %c0_2 = arith.constant 0 : index
    %c0_3 = arith.constant 0 : index
    %2 = vector.load %arg2[%c0_2, %c0_3] : memref<27x64xbf16, #tpu.memory_space<vmem>>, vector<27x64xbf16>
    %cst = arith.constant dense<0.000000e+00> : vector<2048x64xf32>
    %3 = tpu.matmul %1, %2, %cst {dimension_numbers = #tpu.dot_dimension_numbers<[1], [0], [0], [1], [0, 0, 1, 1], [], []>} : vector<2048x27xbf16>, vector<27x64xbf16>, vector<2048x64xf32> -> vector<2048x64xf32>
    %4 = vector.shape_cast %3 : vector<2048x64xf32> to vector<2x4x256x64xf32>
    %5 = vector.extract_strided_slice %4 {offsets = [0, 0, 0, 0], sizes = [2, 1, 256, 64], strides = [1, 1, 1, 1]} : vector<2x4x256x64xf32> to vector<2x1x256x64xf32>
    %6 = vector.shape_cast %5 : vector<2x1x256x64xf32> to vector<2x256x64xf32>
    %7 = vector.extract_strided_slice %4 {offsets = [0, 1, 0, 0], sizes = [2, 1, 256, 64], strides = [1, 1, 1, 1]} : vector<2x4x256x64xf32> to vector<2x1x256x64xf32>
    %8 = vector.shape_cast %7 : vector<2x1x256x64xf32> to vector<2x256x64xf32>
    %9 = arith.maximumf %6, %8 : vector<2x256x64xf32>
    %10 = vector.extract_strided_slice %4 {offsets = [0, 2, 0, 0], sizes = [2, 1, 256, 64], strides = [1, 1, 1, 1]} : vector<2x4x256x64xf32> to vector<2x1x256x64xf32>
    %11 = vector.shape_cast %10 : vector<2x1x256x64xf32> to vector<2x256x64xf32>
    %12 = vector.extract_strided_slice %4 {offsets = [0, 3, 0, 0], sizes = [2, 1, 256, 64], strides = [1, 1, 1, 1]} : vector<2x4x256x64xf32> to vector<2x1x256x64xf32>
    %13 = vector.shape_cast %12 : vector<2x1x256x64xf32> to vector<2x256x64xf32>
    %14 = arith.maximumf %11, %13 : vector<2x256x64xf32>
    %15 = arith.maximumf %9, %14 : vector<2x256x64xf32>
    %c0_4 = arith.constant 0 : index
    %c0_5 = arith.constant 0 : index
    %16 = vector.load %arg3[%c0_4, %c0_5] : memref<1x64xf32, #tpu.memory_space<vmem>>, vector<1x64xf32>
    %17 = vector.shape_cast %16 : vector<1x64xf32> to vector<1x1x64xf32>
    %18 = vector.broadcast %17 : vector<1x1x64xf32> to vector<2x256x64xf32>
    %19 = arith.addf %15, %18 : vector<2x256x64xf32>
    %cst_6 = arith.constant 0.000000e+00 : f32
    %20 = vector.broadcast %cst_6 : f32 to vector<2x256x64xf32>
    %21 = arith.maximumf %19, %20 : vector<2x256x64xf32>
    %22 = vector.extract_strided_slice %21 {offsets = [0, 0, 0], sizes = [2, 64, 64], strides = [1, 1, 1]} : vector<2x256x64xf32> to vector<2x64x64xf32>
    %23 = vector.extract_strided_slice %21 {offsets = [0, 64, 0], sizes = [2, 64, 64], strides = [1, 1, 1]} : vector<2x256x64xf32> to vector<2x64x64xf32>
    %24 = vector.extract_strided_slice %21 {offsets = [0, 128, 0], sizes = [2, 64, 64], strides = [1, 1, 1]} : vector<2x256x64xf32> to vector<2x64x64xf32>
    %25 = vector.extract_strided_slice %21 {offsets = [0, 192, 0], sizes = [2, 64, 64], strides = [1, 1, 1]} : vector<2x256x64xf32> to vector<2x64x64xf32>
    %cst_7 = arith.constant 0.000000e+00 : f32
    %26 = vector.broadcast %cst_7 : f32 to vector<2x8x64xf32>
    %cst_8 = arith.constant 0.000000e+00 : f32
    %27 = vector.broadcast %cst_8 : f32 to vector<2x8x1x64xf32>
    %28 = vector.shape_cast %23 : vector<2x64x64xf32> to vector<2x8x8x64xf32>
    %29 = vector.extract_strided_slice %28 {offsets = [0, 0, 0, 0], sizes = [2, 8, 7, 64], strides = [1, 1, 1, 1]} : vector<2x8x8x64xf32> to vector<2x8x7x64xf32>
    %30 = tpu.concatenate %27, %29 in 2 : vector<2x8x1x64xf32>, vector<2x8x7x64xf32> -> vector<2x8x8x64xf32>
    %31 = vector.shape_cast %30 : vector<2x8x8x64xf32> to vector<2x64x64xf32>
    %32 = vector.shape_cast %22 : vector<2x64x64xf32> to vector<2x8x8x64xf32>
    %33 = vector.extract_strided_slice %32 {offsets = [0, 0, 1, 0], sizes = [2, 8, 7, 64], strides = [1, 1, 1, 1]} : vector<2x8x8x64xf32> to vector<2x8x7x64xf32>
    %34 = tpu.concatenate %33, %27 in 2 : vector<2x8x7x64xf32>, vector<2x8x1x64xf32> -> vector<2x8x8x64xf32>
    %35 = vector.shape_cast %34 : vector<2x8x8x64xf32> to vector<2x64x64xf32>
    %36 = vector.shape_cast %25 : vector<2x64x64xf32> to vector<2x8x8x64xf32>
    %37 = vector.extract_strided_slice %36 {offsets = [0, 0, 0, 0], sizes = [2, 8, 7, 64], strides = [1, 1, 1, 1]} : vector<2x8x8x64xf32> to vector<2x8x7x64xf32>
    %38 = tpu.concatenate %27, %37 in 2 : vector<2x8x1x64xf32>, vector<2x8x7x64xf32> -> vector<2x8x8x64xf32>
    %39 = vector.shape_cast %38 : vector<2x8x8x64xf32> to vector<2x64x64xf32>
    %40 = vector.shape_cast %24 : vector<2x64x64xf32> to vector<2x8x8x64xf32>
    %41 = vector.extract_strided_slice %40 {offsets = [0, 0, 1, 0], sizes = [2, 8, 7, 64], strides = [1, 1, 1, 1]} : vector<2x8x8x64xf32> to vector<2x8x7x64xf32>
    %42 = tpu.concatenate %41, %27 in 2 : vector<2x8x7x64xf32>, vector<2x8x1x64xf32> -> vector<2x8x8x64xf32>
    %43 = vector.shape_cast %42 : vector<2x8x8x64xf32> to vector<2x64x64xf32>
    %44 = vector.extract_strided_slice %39 {offsets = [0, 0, 0], sizes = [2, 56, 64], strides = [1, 1, 1]} : vector<2x64x64xf32> to vector<2x56x64xf32>
    %45 = tpu.concatenate %26, %44 in 1 : vector<2x8x64xf32>, vector<2x56x64xf32> -> vector<2x64x64xf32>
    %46 = arith.truncf %45 : vector<2x64x64xf32> to vector<2x64x64xbf16>
    %c0_9 = arith.constant 0 : index
    %c0_10 = arith.constant 0 : index
    %c0_11 = arith.constant 0 : index
    %47 = vector.load %arg9[%c0_9, %c0_10, %c0_11] : memref<2x256x576xbf16, #tpu.memory_space<vmem>>, vector<2x64x64xbf16>
    tpu.vector_store %arg9[%c0_9, %c0_10, %c0_11], %46 {strides = array<i32>} : memref<2x256x576xbf16, #tpu.memory_space<vmem>>, vector<2x64x64xbf16>,
    %48 = vector.extract_strided_slice %24 {offsets = [0, 0, 0], sizes = [2, 56, 64], strides = [1, 1, 1]} : vector<2x64x64xf32> to vector<2x56x64xf32>
    %49 = tpu.concatenate %26, %48 in 1 : vector<2x8x64xf32>, vector<2x56x64xf32> -> vector<2x64x64xf32>
    %50 = arith.truncf %49 : vector<2x64x64xf32> to vector<2x64x64xbf16>
    %c0_12 = arith.constant 0 : index
    %c0_13 = arith.constant 0 : index
    %c64 = arith.constant 64 : index
    %51 = vector.load %arg9[%c0_12, %c0_13, %c64] : memref<2x256x576xbf16, #tpu.memory_space<vmem>>, vector<2x64x64xbf16>
    tpu.vector_store %arg9[%c0_12, %c0_13, %c64], %50 {strides = array<i32>} : memref<2x256x576xbf16, #tpu.memory_space<vmem>>, vector<2x64x64xbf16>,
    %c0_14 = arith.constant 0 : index
    %c64_15 = arith.constant 64 : index
    %c0_16 = arith.constant 0 : index
    %52 = vector.load %arg9[%c0_14, %c64_15, %c0_16] : memref<2x256x576xbf16, #tpu.memory_space<vmem>>, vector<2x64x64xbf16>
    tpu.vector_store %arg9[%c0_14, %c64_15, %c0_16], %50 {strides = array<i32>} : memref<2x256x576xbf16, #tpu.memory_space<vmem>>, vector<2x64x64xbf16>,
    %53 = vector.extract_strided_slice %25 {offsets = [0, 0, 0], sizes = [2, 56, 64], strides = [1, 1, 1]} : vector<2x64x64xf32> to vector<2x56x64xf32>
    %54 = tpu.concatenate %26, %53 in 1 : vector<2x8x64xf32>, vector<2x56x64xf32> -> vector<2x64x64xf32>
    %55 = arith.truncf %54 : vector<2x64x64xf32> to vector<2x64x64xbf16>
    %c0_17 = arith.constant 0 : index
    %c0_18 = arith.constant 0 : index
    %c128 = arith.constant 128 : index
    %56 = vector.load %arg9[%c0_17, %c0_18, %c128] : memref<2x256x576xbf16, #tpu.memory_space<vmem>>, vector<2x64x64xbf16>
    tpu.vector_store %arg9[%c0_17, %c0_18, %c128], %55 {strides = array<i32>} : memref<2x256x576xbf16, #tpu.memory_space<vmem>>, vector<2x64x64xbf16>,
    %c0_19 = arith.constant 0 : index
    %c64_20 = arith.constant 64 : index
    %c64_21 = arith.constant 64 : index
    %57 = vector.load %arg9[%c0_19, %c64_20, %c64_21] : memref<2x256x576xbf16, #tpu.memory_space<vmem>>, vector<2x64x64xbf16>
    tpu.vector_store %arg9[%c0_19, %c64_20, %c64_21], %55 {strides = array<i32>} : memref<2x256x576xbf16, #tpu.memory_space<vmem>>, vector<2x64x64xbf16>,
    %58 = vector.extract_strided_slice %43 {offsets = [0, 0, 0], sizes = [2, 56, 64], strides = [1, 1, 1]} : vector<2x64x64xf32> to vector<2x56x64xf32>
    %59 = tpu.concatenate %26, %58 in 1 : vector<2x8x64xf32>, vector<2x56x64xf32> -> vector<2x64x64xf32>
    %60 = arith.truncf %59 : vector<2x64x64xf32> to vector<2x64x64xbf16>
    %c0_22 = arith.constant 0 : index
    %c64_23 = arith.constant 64 : index
    %c128_24 = arith.constant 128 : index
    %61 = vector.load %arg9[%c0_22, %c64_23, %c128_24] : memref<2x256x576xbf16, #tpu.memory_space<vmem>>, vector<2x64x64xbf16>
    tpu.vector_store %arg9[%c0_22, %c64_23, %c128_24], %60 {strides = array<i32>} : memref<2x256x576xbf16, #tpu.memory_space<vmem>>, vector<2x64x64xbf16>,
    %62 = arith.truncf %31 : vector<2x64x64xf32> to vector<2x64x64xbf16>
    %c0_25 = arith.constant 0 : index
    %c0_26 = arith.constant 0 : index
    %c192 = arith.constant 192 : index
    %63 = vector.load %arg9[%c0_25, %c0_26, %c192] : memref<2x256x576xbf16, #tpu.memory_space<vmem>>, vector<2x64x64xbf16>
    tpu.vector_store %arg9[%c0_25, %c0_26, %c192], %62 {strides = array<i32>} : memref<2x256x576xbf16, #tpu.memory_space<vmem>>, vector<2x64x64xbf16>,
    %c0_27 = arith.constant 0 : index
    %c128_28 = arith.constant 128 : index
    %c0_29 = arith.constant 0 : index
    %64 = vector.load %arg9[%c0_27, %c128_28, %c0_29] : memref<2x256x576xbf16, #tpu.memory_space<vmem>>, vector<2x64x64xbf16>
    tpu.vector_store %arg9[%c0_27, %c128_28, %c0_29], %62 {strides = array<i32>} : memref<2x256x576xbf16, #tpu.memory_space<vmem>>, vector<2x64x64xbf16>,
    %65 = arith.truncf %22 : vector<2x64x64xf32> to vector<2x64x64xbf16>
    %c0_30 = arith.constant 0 : index
    %c0_31 = arith.constant 0 : index
    %c256 = arith.constant 256 : index
    %66 = vector.load %arg9[%c0_30, %c0_31, %c256] : memref<2x256x576xbf16, #tpu.memory_space<vmem>>, vector<2x64x64xbf16>
    tpu.vector_store %arg9[%c0_30, %c0_31, %c256], %65 {strides = array<i32>} : memref<2x256x576xbf16, #tpu.memory_space<vmem>>, vector<2x64x64xbf16>,
    %c0_32 = arith.constant 0 : index
    %c64_33 = arith.constant 64 : index
    %c192_34 = arith.constant 192 : index
    %67 = vector.load %arg9[%c0_32, %c64_33, %c192_34] : memref<2x256x576xbf16, #tpu.memory_space<vmem>>, vector<2x64x64xbf16>
    tpu.vector_store %arg9[%c0_32, %c64_33, %c192_34], %65 {strides = array<i32>} : memref<2x256x576xbf16, #tpu.memory_space<vmem>>, vector<2x64x64xbf16>,
    %c0_35 = arith.constant 0 : index
    %c128_36 = arith.constant 128 : index
    %c64_37 = arith.constant 64 : index
    %68 = vector.load %arg9[%c0_35, %c128_36, %c64_37] : memref<2x256x576xbf16, #tpu.memory_space<vmem>>, vector<2x64x64xbf16>
    tpu.vector_store %arg9[%c0_35, %c128_36, %c64_37], %65 {strides = array<i32>} : memref<2x256x576xbf16, #tpu.memory_space<vmem>>, vector<2x64x64xbf16>,
    %c0_38 = arith.constant 0 : index
    %c192_39 = arith.constant 192 : index
    %c0_40 = arith.constant 0 : index
    %69 = vector.load %arg9[%c0_38, %c192_39, %c0_40] : memref<2x256x576xbf16, #tpu.memory_space<vmem>>, vector<2x64x64xbf16>
    tpu.vector_store %arg9[%c0_38, %c192_39, %c0_40], %65 {strides = array<i32>} : memref<2x256x576xbf16, #tpu.memory_space<vmem>>, vector<2x64x64xbf16>,
    %70 = arith.truncf %23 : vector<2x64x64xf32> to vector<2x64x64xbf16>
    %c0_41 = arith.constant 0 : index
    %c0_42 = arith.constant 0 : index
    %c320 = arith.constant 320 : index
    %71 = vector.load %arg9[%c0_41, %c0_42, %c320] : memref<2x256x576xbf16, #tpu.memory_space<vmem>>, vector<2x64x64xbf16>
    tpu.vector_store %arg9[%c0_41, %c0_42, %c320], %70 {strides = array<i32>} : memref<2x256x576xbf16, #tpu.memory_space<vmem>>, vector<2x64x64xbf16>,
    %c0_43 = arith.constant 0 : index
    %c64_44 = arith.constant 64 : index
    %c256_45 = arith.constant 256 : index
    %72 = vector.load %arg9[%c0_43, %c64_44, %c256_45] : memref<2x256x576xbf16, #tpu.memory_space<vmem>>, vector<2x64x64xbf16>
    tpu.vector_store %arg9[%c0_43, %c64_44, %c256_45], %70 {strides = array<i32>} : memref<2x256x576xbf16, #tpu.memory_space<vmem>>, vector<2x64x64xbf16>,
    %c0_46 = arith.constant 0 : index
    %c128_47 = arith.constant 128 : index
    %c128_48 = arith.constant 128 : index
    %73 = vector.load %arg9[%c0_46, %c128_47, %c128_48] : memref<2x256x576xbf16, #tpu.memory_space<vmem>>, vector<2x64x64xbf16>
    tpu.vector_store %arg9[%c0_46, %c128_47, %c128_48], %70 {strides = array<i32>} : memref<2x256x576xbf16, #tpu.memory_space<vmem>>, vector<2x64x64xbf16>,
    %c0_49 = arith.constant 0 : index
    %c192_50 = arith.constant 192 : index
    %c64_51 = arith.constant 64 : index
    %74 = vector.load %arg9[%c0_49, %c192_50, %c64_51] : memref<2x256x576xbf16, #tpu.memory_space<vmem>>, vector<2x64x64xbf16>
    tpu.vector_store %arg9[%c0_49, %c192_50, %c64_51], %70 {strides = array<i32>} : memref<2x256x576xbf16, #tpu.memory_space<vmem>>, vector<2x64x64xbf16>,
    %75 = arith.truncf %35 : vector<2x64x64xf32> to vector<2x64x64xbf16>
    %c0_52 = arith.constant 0 : index
    %c64_53 = arith.constant 64 : index
    %c320_54 = arith.constant 320 : index
    %76 = vector.load %arg9[%c0_52, %c64_53, %c320_54] : memref<2x256x576xbf16, #tpu.memory_space<vmem>>, vector<2x64x64xbf16>
    tpu.vector_store %arg9[%c0_52, %c64_53, %c320_54], %75 {strides = array<i32>} : memref<2x256x576xbf16, #tpu.memory_space<vmem>>, vector<2x64x64xbf16>,
    %c0_55 = arith.constant 0 : index
    %c192_56 = arith.constant 192 : index
    %c128_57 = arith.constant 128 : index
    %77 = vector.load %arg9[%c0_55, %c192_56, %c128_57] : memref<2x256x576xbf16, #tpu.memory_space<vmem>>, vector<2x64x64xbf16>
    tpu.vector_store %arg9[%c0_55, %c192_56, %c128_57], %75 {strides = array<i32>} : memref<2x256x576xbf16, #tpu.memory_space<vmem>>, vector<2x64x64xbf16>,
    %78 = arith.truncf %39 : vector<2x64x64xf32> to vector<2x64x64xbf16>
    %c0_58 = arith.constant 0 : index
    %c0_59 = arith.constant 0 : index
    %c384 = arith.constant 384 : index
    %79 = vector.load %arg9[%c0_58, %c0_59, %c384] : memref<2x256x576xbf16, #tpu.memory_space<vmem>>, vector<2x64x64xbf16>
    tpu.vector_store %arg9[%c0_58, %c0_59, %c384], %78 {strides = array<i32>} : memref<2x256x576xbf16, #tpu.memory_space<vmem>>, vector<2x64x64xbf16>,
    %c0_60 = arith.constant 0 : index
    %c128_61 = arith.constant 128 : index
    %c192_62 = arith.constant 192 : index
    %80 = vector.load %arg9[%c0_60, %c128_61, %c192_62] : memref<2x256x576xbf16, #tpu.memory_space<vmem>>, vector<2x64x64xbf16>
    tpu.vector_store %arg9[%c0_60, %c128_61, %c192_62], %78 {strides = array<i32>} : memref<2x256x576xbf16, #tpu.memory_space<vmem>>, vector<2x64x64xbf16>,
    %81 = arith.truncf %24 : vector<2x64x64xf32> to vector<2x64x64xbf16>
    %c0_63 = arith.constant 0 : index
    %c0_64 = arith.constant 0 : index
    %c448 = arith.constant 448 : index
    %82 = vector.load %arg9[%c0_63, %c0_64, %c448] : memref<2x256x576xbf16, #tpu.memory_space<vmem>>, vector<2x64x64xbf16>
    tpu.vector_store %arg9[%c0_63, %c0_64, %c448], %81 {strides = array<i32>} : memref<2x256x576xbf16, #tpu.memory_space<vmem>>, vector<2x64x64xbf16>,
    %c0_65 = arith.constant 0 : index
    %c64_66 = arith.constant 64 : index
    %c384_67 = arith.constant 384 : index
    %83 = vector.load %arg9[%c0_65, %c64_66, %c384_67] : memref<2x256x576xbf16, #tpu.memory_space<vmem>>, vector<2x64x64xbf16>
    tpu.vector_store %arg9[%c0_65, %c64_66, %c384_67], %81 {strides = array<i32>} : memref<2x256x576xbf16, #tpu.memory_space<vmem>>, vector<2x64x64xbf16>,
    %c0_68 = arith.constant 0 : index
    %c128_69 = arith.constant 128 : index
    %c256_70 = arith.constant 256 : index
    %84 = vector.load %arg9[%c0_68, %c128_69, %c256_70] : memref<2x256x576xbf16, #tpu.memory_space<vmem>>, vector<2x64x64xbf16>
    tpu.vector_store %arg9[%c0_68, %c128_69, %c256_70], %81 {strides = array<i32>} : memref<2x256x576xbf16, #tpu.memory_space<vmem>>, vector<2x64x64xbf16>,
    %c0_71 = arith.constant 0 : index
    %c192_72 = arith.constant 192 : index
    %c192_73 = arith.constant 192 : index
    %85 = vector.load %arg9[%c0_71, %c192_72, %c192_73] : memref<2x256x576xbf16, #tpu.memory_space<vmem>>, vector<2x64x64xbf16>
    tpu.vector_store %arg9[%c0_71, %c192_72, %c192_73], %81 {strides = array<i32>} : memref<2x256x576xbf16, #tpu.memory_space<vmem>>, vector<2x64x64xbf16>,
    %86 = arith.truncf %25 : vector<2x64x64xf32> to vector<2x64x64xbf16>
    %c0_74 = arith.constant 0 : index
    %c0_75 = arith.constant 0 : index
    %c512 = arith.constant 512 : index
    %87 = vector.load %arg9[%c0_74, %c0_75, %c512] : memref<2x256x576xbf16, #tpu.memory_space<vmem>>, vector<2x64x64xbf16>
    tpu.vector_store %arg9[%c0_74, %c0_75, %c512], %86 {strides = array<i32>} : memref<2x256x576xbf16, #tpu.memory_space<vmem>>, vector<2x64x64xbf16>,
    %c0_76 = arith.constant 0 : index
    %c64_77 = arith.constant 64 : index
    %c448_78 = arith.constant 448 : index
    %88 = vector.load %arg9[%c0_76, %c64_77, %c448_78] : memref<2x256x576xbf16, #tpu.memory_space<vmem>>, vector<2x64x64xbf16>
    tpu.vector_store %arg9[%c0_76, %c64_77, %c448_78], %86 {strides = array<i32>} : memref<2x256x576xbf16, #tpu.memory_space<vmem>>, vector<2x64x64xbf16>,
    %c0_79 = arith.constant 0 : index
    %c128_80 = arith.constant 128 : index
    %c320_81 = arith.constant 320 : index
    %89 = vector.load %arg9[%c0_79, %c128_80, %c320_81] : memref<2x256x576xbf16, #tpu.memory_space<vmem>>, vector<2x64x64xbf16>
    tpu.vector_store %arg9[%c0_79, %c128_80, %c320_81], %86 {strides = array<i32>} : memref<2x256x576xbf16, #tpu.memory_space<vmem>>, vector<2x64x64xbf16>,
    %c0_82 = arith.constant 0 : index
    %c192_83 = arith.constant 192 : index
    %c256_84 = arith.constant 256 : index
    %90 = vector.load %arg9[%c0_82, %c192_83, %c256_84] : memref<2x256x576xbf16, #tpu.memory_space<vmem>>, vector<2x64x64xbf16>
    tpu.vector_store %arg9[%c0_82, %c192_83, %c256_84], %86 {strides = array<i32>} : memref<2x256x576xbf16, #tpu.memory_space<vmem>>, vector<2x64x64xbf16>,
    %91 = arith.truncf %43 : vector<2x64x64xf32> to vector<2x64x64xbf16>
    %c0_85 = arith.constant 0 : index
    %c64_86 = arith.constant 64 : index
    %c512_87 = arith.constant 512 : index
    %92 = vector.load %arg9[%c0_85, %c64_86, %c512_87] : memref<2x256x576xbf16, #tpu.memory_space<vmem>>, vector<2x64x64xbf16>
    tpu.vector_store %arg9[%c0_85, %c64_86, %c512_87], %91 {strides = array<i32>} : memref<2x256x576xbf16, #tpu.memory_space<vmem>>, vector<2x64x64xbf16>,
    %c0_88 = arith.constant 0 : index
    %c192_89 = arith.constant 192 : index
    %c320_90 = arith.constant 320 : index
    %93 = vector.load %arg9[%c0_88, %c192_89, %c320_90] : memref<2x256x576xbf16, #tpu.memory_space<vmem>>, vector<2x64x64xbf16>
    tpu.vector_store %arg9[%c0_88, %c192_89, %c320_90], %91 {strides = array<i32>} : memref<2x256x576xbf16, #tpu.memory_space<vmem>>, vector<2x64x64xbf16>,
    %94 = vector.extract_strided_slice %31 {offsets = [0, 8, 0], sizes = [2, 56, 64], strides = [1, 1, 1]} : vector<2x64x64xf32> to vector<2x56x64xf32>
    %95 = tpu.concatenate %94, %26 in 1 : vector<2x56x64xf32>, vector<2x8x64xf32> -> vector<2x64x64xf32>
    %96 = arith.truncf %95 : vector<2x64x64xf32> to vector<2x64x64xbf16>
    %c0_91 = arith.constant 0 : index
    %c128_92 = arith.constant 128 : index
    %c384_93 = arith.constant 384 : index
    %97 = vector.load %arg9[%c0_91, %c128_92, %c384_93] : memref<2x256x576xbf16, #tpu.memory_space<vmem>>, vector<2x64x64xbf16>
    tpu.vector_store %arg9[%c0_91, %c128_92, %c384_93], %96 {strides = array<i32>} : memref<2x256x576xbf16, #tpu.memory_space<vmem>>, vector<2x64x64xbf16>,
    %98 = vector.extract_strided_slice %22 {offsets = [0, 8, 0], sizes = [2, 56, 64], strides = [1, 1, 1]} : vector<2x64x64xf32> to vector<2x56x64xf32>
    %99 = tpu.concatenate %98, %26 in 1 : vector<2x56x64xf32>, vector<2x8x64xf32> -> vector<2x64x64xf32>
    %100 = arith.truncf %99 : vector<2x64x64xf32> to vector<2x64x64xbf16>
    %c0_94 = arith.constant 0 : index
    %c128_95 = arith.constant 128 : index
    %c448_96 = arith.constant 448 : index
    %101 = vector.load %arg9[%c0_94, %c128_95, %c448_96] : memref<2x256x576xbf16, #tpu.memory_space<vmem>>, vector<2x64x64xbf16>
    tpu.vector_store %arg9[%c0_94, %c128_95, %c448_96], %100 {strides = array<i32>} : memref<2x256x576xbf16, #tpu.memory_space<vmem>>, vector<2x64x64xbf16>,
    %c0_97 = arith.constant 0 : index
    %c192_98 = arith.constant 192 : index
    %c384_99 = arith.constant 384 : index
    %102 = vector.load %arg9[%c0_97, %c192_98, %c384_99] : memref<2x256x576xbf16, #tpu.memory_space<vmem>>, vector<2x64x64xbf16>
    tpu.vector_store %arg9[%c0_97, %c192_98, %c384_99], %100 {strides = array<i32>} : memref<2x256x576xbf16, #tpu.memory_space<vmem>>, vector<2x64x64xbf16>,
    %103 = vector.extract_strided_slice %23 {offsets = [0, 8, 0], sizes = [2, 56, 64], strides = [1, 1, 1]} : vector<2x64x64xf32> to vector<2x56x64xf32>
    %104 = tpu.concatenate %103, %26 in 1 : vector<2x56x64xf32>, vector<2x8x64xf32> -> vector<2x64x64xf32>
    %105 = arith.truncf %104 : vector<2x64x64xf32> to vector<2x64x64xbf16>
    %c0_100 = arith.constant 0 : index
    %c128_101 = arith.constant 128 : index
    %c512_102 = arith.constant 512 : index
    %106 = vector.load %arg9[%c0_100, %c128_101, %c512_102] : memref<2x256x576xbf16, #tpu.memory_space<vmem>>, vector<2x64x64xbf16>
    tpu.vector_store %arg9[%c0_100, %c128_101, %c512_102], %105 {strides = array<i32>} : memref<2x256x576xbf16, #tpu.memory_space<vmem>>, vector<2x64x64xbf16>,
    %c0_103 = arith.constant 0 : index
    %c192_104 = arith.constant 192 : index
    %c448_105 = arith.constant 448 : index
    %107 = vector.load %arg9[%c0_103, %c192_104, %c448_105] : memref<2x256x576xbf16, #tpu.memory_space<vmem>>, vector<2x64x64xbf16>
    tpu.vector_store %arg9[%c0_103, %c192_104, %c448_105], %105 {strides = array<i32>} : memref<2x256x576xbf16, #tpu.memory_space<vmem>>, vector<2x64x64xbf16>,
    %108 = vector.extract_strided_slice %35 {offsets = [0, 8, 0], sizes = [2, 56, 64], strides = [1, 1, 1]} : vector<2x64x64xf32> to vector<2x56x64xf32>
    %109 = tpu.concatenate %108, %26 in 1 : vector<2x56x64xf32>, vector<2x8x64xf32> -> vector<2x64x64xf32>
    %110 = arith.truncf %109 : vector<2x64x64xf32> to vector<2x64x64xbf16>
    %c0_106 = arith.constant 0 : index
    %c192_107 = arith.constant 192 : index
    %c512_108 = arith.constant 512 : index
    %111 = vector.load %arg9[%c0_106, %c192_107, %c512_108] : memref<2x256x576xbf16, #tpu.memory_space<vmem>>, vector<2x64x64xbf16>
    tpu.vector_store %arg9[%c0_106, %c192_107, %c512_108], %110 {strides = array<i32>} : memref<2x256x576xbf16, #tpu.memory_space<vmem>>, vector<2x64x64xbf16>,
    %c0_109 = arith.constant 0 : index
    %c0_110 = arith.constant 0 : index
    %c0_111 = arith.constant 0 : index
    %112 = vector.load %arg9[%c0_109, %c0_110, %c0_111] : memref<2x256x576xbf16, #tpu.memory_space<vmem>>, vector<2x256x576xbf16>
    %113 = vector.shape_cast %112 : vector<2x256x576xbf16> to vector<512x576xbf16>
    %c0_112 = arith.constant 0 : index
    %c0_113 = arith.constant 0 : index
    %114 = vector.load %arg4[%c0_112, %c0_113] : memref<576x128xbf16, #tpu.memory_space<vmem>>, vector<576x128xbf16>
    %cst_114 = arith.constant dense<0.000000e+00> : vector<512x128xf32>
    %115 = tpu.matmul %113, %114, %cst_114 {dimension_numbers = #tpu.dot_dimension_numbers<[1], [0], [0], [1], [0, 0, 1, 1], [], []>} : vector<512x576xbf16>, vector<576x128xbf16>, vector<512x128xf32> -> vector<512x128xf32>
    %116 = vector.shape_cast %115 : vector<512x128xf32> to vector<2x4x64x128xf32>
    %117 = vector.extract_strided_slice %116 {offsets = [0, 0, 0, 0], sizes = [2, 1, 64, 128], strides = [1, 1, 1, 1]} : vector<2x4x64x128xf32> to vector<2x1x64x128xf32>
    %118 = vector.shape_cast %117 : vector<2x1x64x128xf32> to vector<2x64x128xf32>
    %119 = vector.extract_strided_slice %116 {offsets = [0, 1, 0, 0], sizes = [2, 1, 64, 128], strides = [1, 1, 1, 1]} : vector<2x4x64x128xf32> to vector<2x1x64x128xf32>
    %120 = vector.shape_cast %119 : vector<2x1x64x128xf32> to vector<2x64x128xf32>
    %121 = arith.maximumf %118, %120 : vector<2x64x128xf32>
    %122 = vector.extract_strided_slice %116 {offsets = [0, 2, 0, 0], sizes = [2, 1, 64, 128], strides = [1, 1, 1, 1]} : vector<2x4x64x128xf32> to vector<2x1x64x128xf32>
    %123 = vector.shape_cast %122 : vector<2x1x64x128xf32> to vector<2x64x128xf32>
    %124 = vector.extract_strided_slice %116 {offsets = [0, 3, 0, 0], sizes = [2, 1, 64, 128], strides = [1, 1, 1, 1]} : vector<2x4x64x128xf32> to vector<2x1x64x128xf32>
    %125 = vector.shape_cast %124 : vector<2x1x64x128xf32> to vector<2x64x128xf32>
    %126 = arith.maximumf %123, %125 : vector<2x64x128xf32>
    %127 = arith.maximumf %121, %126 : vector<2x64x128xf32>
    %c0_115 = arith.constant 0 : index
    %c0_116 = arith.constant 0 : index
    %128 = vector.load %arg5[%c0_115, %c0_116] : memref<1x128xf32, #tpu.memory_space<vmem>>, vector<1x128xf32>
    %129 = vector.shape_cast %128 : vector<1x128xf32> to vector<1x1x128xf32>
    %130 = vector.broadcast %129 : vector<1x1x128xf32> to vector<2x64x128xf32>
    %131 = arith.addf %127, %130 : vector<2x64x128xf32>
    %cst_117 = arith.constant 0.000000e+00 : f32
    %132 = vector.broadcast %cst_117 : f32 to vector<2x64x128xf32>
    %133 = arith.maximumf %131, %132 : vector<2x64x128xf32>
    %c0_118 = arith.constant 0 : index
    %c0_119 = arith.constant 0 : index
    %134 = vector.load %arg6[%c0_118, %c0_119] : memref<64x128xf32, #tpu.memory_space<vmem>>, vector<64x128xf32>
    %135 = vector.shape_cast %134 : vector<64x128xf32> to vector<1x64x128xf32>
    %136 = vector.broadcast %135 : vector<1x64x128xf32> to vector<2x64x128xf32>
    %137 = arith.mulf %133, %136 : vector<2x64x128xf32>
    %cst_120 = arith.constant dense<0.000000e+00> : vector<2x64xf32>
    %138 = vector.multi_reduction <add>, %137, %cst_120 [2] : vector<2x64x128xf32> to vector<2x64xf32>
    %cst_121 = arith.constant dense<0.000000e+00> : vector<2xf32>
    %139 = vector.multi_reduction <add>, %138, %cst_121 [1] : vector<2x64xf32> to vector<2xf32>
    %140 = vector.shape_cast %139 : vector<2xf32> to vector<2x1xf32>
    %c0_122 = arith.constant 0 : index
    %c0_123 = arith.constant 0 : index
    %141 = memref.load %arg7[%c0_122, %c0_123] : memref<1x1xf32, #tpu.memory_space<smem>>
    %142 = vector.broadcast %141 : f32 to vector<2x1xf32>
    %143 = arith.addf %140, %142 : vector<2x1xf32>
    %cst_124 = arith.constant 0.000000e+00 : f32
    %144 = vector.broadcast %cst_124 : f32 to vector<2x1xf32>
    %145 = arith.subf %144, %143 : vector<2x1xf32>
    %146 = math.exp %145 : vector<2x1xf32>
    %cst_125 = arith.constant 1.000000e+00 : f32
    %147 = vector.broadcast %cst_125 : f32 to vector<2x1xf32>
    %148 = arith.addf %147, %146 : vector<2x1xf32>
    %cst_126 = arith.constant 1.000000e+00 : f32
    %149 = vector.broadcast %cst_126 : f32 to vector<2x1xf32>
    %150 = arith.divf %149, %148 : vector<2x1xf32>
    %c0_127 = arith.constant 0 : index
    %c0_128 = arith.constant 0 : index
    %151 = vector.load %arg8[%c0_127, %c0_128] : memref<2x1xf32, #tpu.memory_space<vmem>>, vector<2x1xf32>
    tpu.vector_store %arg8[%c0_127, %c0_128], %150 {strides = array<i32>} : memref<2x1xf32, #tpu.memory_space<vmem>>, vector<2x1xf32>,
    return
  }
  func.func @transform_0(%arg0: i32) -> (i32, i32, i32) {
    %c0_i32 = arith.constant 0 : i32
    %c0_i32_0 = arith.constant 0 : i32
    %c0_i32_1 = arith.constant 0 : i32
    return %arg0, %c0_i32, %c0_i32_0 : i32, i32, i32
  }
  func.func @transform_1(%arg0: i32) -> (i32, i32) {
    %c0_i32 = arith.constant 0 : i32
    %c0_i32_0 = arith.constant 0 : i32
    %c0_i32_1 = arith.constant 0 : i32
    return %c0_i32, %c0_i32_0 : i32, i32
  }
  func.func @transform_2(%arg0: i32) -> (i32, i32) {
    %c0_i32 = arith.constant 0 : i32
    %c0_i32_0 = arith.constant 0 : i32
    %c0_i32_1 = arith.constant 0 : i32
    return %c0_i32, %c0_i32_0 : i32, i32
  }
  func.func @transform_3(%arg0: i32) -> (i32, i32) {
    %c0_i32 = arith.constant 0 : i32
    %c0_i32_0 = arith.constant 0 : i32
    %c0_i32_1 = arith.constant 0 : i32
    return %c0_i32, %c0_i32_0 : i32, i32
  }
  func.func @transform_4(%arg0: i32) -> (i32, i32) {
    %c0_i32 = arith.constant 0 : i32
    %c0_i32_0 = arith.constant 0 : i32
    %c0_i32_1 = arith.constant 0 : i32
    return %c0_i32, %c0_i32_0 : i32, i32
  }
  func.func @transform_5(%arg0: i32) -> (i32, i32) {
    %c0_i32 = arith.constant 0 : i32
    %c0_i32_0 = arith.constant 0 : i32
    %c0_i32_1 = arith.constant 0 : i32
    return %c0_i32, %c0_i32_0 : i32, i32
  }
  func.func @transform_6(%arg0: i32) -> (i32, i32) {
    %c0_i32 = arith.constant 0 : i32
    %c0_i32_0 = arith.constant 0 : i32
    %c0_i32_1 = arith.constant 0 : i32
    return %c0_i32, %c0_i32_0 : i32, i32
  }
  func.func @transform_7(%arg0: i32) -> (i32, i32) {
    %c0_i32 = arith.constant 0 : i32
    %c0_i32_0 = arith.constant 0 : i32
    return %arg0, %c0_i32 : i32, i32
  }
}

</mosaic_0001>

<bundles_post_ra>
// kernel: fire_detector_forward.1
= control target key start
LH: loop header
LB: loop body
LE: loop exit
PB: predicated region body
PF: predicated region fallthrough
CT: control target
= control target key end

     0   :  { %vm1324_vm0 = vcmask 1044480   ;;  %vm1325_vm1 = vcmask 1045504   ;;  %v8051_v2 = vmov 65535   ;;  %vm939_vm2 = vcmask 220160   ;;  %s8053_s30 = smov 64   ;;  %s11415_s1 = inlined_call_operand.vmem [shape: bf16[27,64], index: 1, kind: input, shape index: {}]   ;;  %s11416_s0 = inlined_call_operand.vmem [shape: bf16[2,1024,27], index: 0, kind: input, shape index: {}]   ;;  %s11417_s2 = inlined_call_operand.vmem [shape: f32[1,64], index: 2, kind: input, shape index: {}]   ;;  %s11418_s3 = inlined_call_operand.vmem [shape: bf16[576,128], index: 3, kind: input, shape index: {}]   ;;  %s11419_s4 = inlined_call_operand.vmem [shape: f32[1,128], index: 4, kind: input, shape index: {}]   ;;  %s11420_s5 = inlined_call_operand.vmem [shape: f32[64,128], index: 5, kind: input, shape index: {}]   ;;  %s11421_s6 = inlined_call_operand.<no memory space> [shape: f32[1,1], index: 6, kind: input, shape index: {}]   ;;  %s11422_s7 = inlined_call_operand.vmem [shape: f32[2,1], index: 7, kind: output, shape index: {}]  }
   0x1   :  { %v6762_v0 = vld [vmem:[%s11415_s1 + $0x8] sm:$0xf]  ;;  %v7837_v1 = vld [vmem:[%s11415_s1 + $0x8] sm:$0x30]  ;;  %v1326_v3 = vsel %vm1324_vm0, 4294967295, %v8051_v2  ;;  %v7836_v7 = vld [vmem:[%s11415_s1] sm:$0xff] }
   0x2   :  { %v6763_v4 = vor.u32 %v7837_v1, %v6762_v0  ;;  %v1327_v5 = vsel %vm1325_vm1, %v1326_v3, 0  ;;  %v7708_v8 = vld [vmem:[%s11416_s0] sm:$0xff]  ;;  %v7709_v9 = vld [vmem:[%s11416_s0 + $0x8] sm:$0xff]  ;;  %v7710_v10 = vld [vmem:[%s11416_s0 + $0x10] sm:$0xff]  ;;  %vm2417_vm3 = vcmask 1046528   ;;  %vm2577_vm4 = vcmask 519168  }
   0x3   :  { %v7711_v11 = vld [vmem:[%s11416_s0 + $0x18] sm:$0xff]  ;;  %v7712_v12 = vld [vmem:[%s11416_s0 + $0x20] sm:$0xff]  ;;  %v7713_v14 = vld [vmem:[%s11416_s0 + $0x28] sm:$0xff]  ;;  %vm2352_vm5 = vcmask 1040384   ;;  %vm2668_vm6 = vcmask 1043968   ;;  %vm5065_vm7 = vcmask 523264  }
   0x4   :  { %v1329_v6 = vand.u32 %v6763_v4, %v1327_v5  ;;  %v7795_v13 = vld [vmem:[%s11416_s0 + $0x2b8] sm:$0xff]  ;;  %v7796_v15 = vld [vmem:[%s11416_s0 + $0x2c0] sm:$0xff]  ;;  %v7714_v16 = vld [vmem:[%s11416_s0 + $0x30] sm:$0xff]  ;;  %vm6168_vm8 = vcmask 130112   ;;  %vm6172_vm9 = vcmask 195712   ;;  %vm6176_vm10 = vcmask 261312  }
   0x5   :  { %v7797_v17 = vld [vmem:[%s11416_s0 + $0x2c8] sm:$0xff]  ;;  %v7715_v18 = vld [vmem:[%s11416_s0 + $0x38] sm:$0xff]  ;;  %v7798_v19 = vld [vmem:[%s11416_s0 + $0x2d0] sm:$0xff]  ;;  %vm6180_vm11 = vcmask 326912   ;;  %vm6184_vm12 = vcmask 392512   ;;  %vm6188_vm13 = vcmask 458112  }
   0x6   :  { %1337 = vmatpush.bf16.msra.mxu0 %v1329_v6  ;;  %8036 = vmatpush.bf16.msra.mxu3 %v1329_v6  ;;  %v7716_v20 = vld [vmem:[%s11416_s0 + $0x40] sm:$0xff]  ;;  %v7799_v22 = vld [vmem:[%s11416_s0 + $0x2d8] sm:$0xff]  ;;  %v7717_v24 = vld [vmem:[%s11416_s0 + $0x48] sm:$0xff]  ;;  %vm6192_vm14 = vcmask 523712   ;;  %vm6209_vm15 = vcmask 1041409   ;;  %vm6212_vm0 = vcmask 517120  }
   0x7   :  { %8034 = vmatpush.bf16.msra.mxu1 %v1329_v6  ;;  %8035 = vmatpush.bf16.msra.mxu2 %v1329_v6  ;;  %v7800_v26 = vld [vmem:[%s11416_s0 + $0x2e0] sm:$0xff]  ;;  %v7718_v28 = vld [vmem:[%s11416_s0 + $0x50] sm:$0xff]  ;;  %v7801_v30 = vld [vmem:[%s11416_s0 + $0x2e8] sm:$0xff] }
   0x8   :  { %v7719_v32 = vld [vmem:[%s11416_s0 + $0x58] sm:$0xff]  ;;  %v7802_v34 = vld [vmem:[%s11416_s0 + $0x2f0] sm:$0xff]  ;;  %v7720_v36 = vld [vmem:[%s11416_s0 + $0x60] sm:$0xff] }
   0x9   :  { %v7803_v38 = vld [vmem:[%s11416_s0 + $0x2f8] sm:$0xff]  ;;  %v7721_v41 = vld [vmem:[%s11416_s0 + $0x68] sm:$0xff]  ;;  %v7804_v44 = vld [vmem:[%s11416_s0 + $0x300] sm:$0xff] }
   0xa   :  { %1338 = vmatpush.bf16.msra.mxu0 %v7836_v7  ;;  %8039 = vmatpush.bf16.msra.mxu3 %v7836_v7  ;;  %v7722_v47 = vld [vmem:[%s11416_s0 + $0x70] sm:$0xff]  ;;  %v7805_v50 = vld [vmem:[%s11416_s0 + $0x308] sm:$0xff]  ;;  %v7723_v53 = vld [vmem:[%s11416_s0 + $0x78] sm:$0xff] }
   0xb   :  { %8037 = vmatpush.bf16.msra.mxu1 %v7836_v7  ;;  %8038 = vmatpush.bf16.msra.mxu2 %v7836_v7  ;;  %v7806_v56 = vld [vmem:[%s11416_s0 + $0x310] sm:$0xff]  ;;  %v7724_v59 = vld [vmem:[%s11416_s0 + $0x80] sm:$0xff]  ;;  %v7807_v62 = vld [vmem:[%s11416_s0 + $0x318] sm:$0xff] }
   0xc   :  { %v7725_v1 = vld [vmem:[%s11416_s0 + $0x88] sm:$0xff]  ;;  %v7808_v4 = vld [vmem:[%s11416_s0 + $0x320] sm:$0xff]  ;;  %v7726_v7 = vld [vmem:[%s11416_s0 + $0x90] sm:$0xff] }
   0xd   :  { %6764 = vmatmul.msk.bf16.vlgmr.msra.gmra.mxu0 %vm939_vm2, %v7708_v8  ;;  %6851 = vmatmul.msk.bf16.vlgmr.msra.gmra.mxu3 %vm939_vm2, %v7795_v13  ;;  %v7727_v13 = vld [vmem:[%s11416_s0 + $0x98] sm:$0xff] }
  0x1d   :  { %6765 = vmatmul.msk.bf16.gmra.mxu0 %vm939_vm2, %v7709_v9  ;;  %6852 = vmatmul.msk.bf16.gmra.mxu3 %vm939_vm2, %v7796_v15 }
  0x2d   :  { %6766 = vmatmul.msk.bf16.gmra.mxu0 %vm939_vm2, %v7710_v10  ;;  %6853 = vmatmul.msk.bf16.gmra.mxu3 %vm939_vm2, %v7797_v17  ;;  %v7809_v10 = vld [vmem:[%s11416_s0 + $0x328] sm:$0xff] }
  0x3d   :  { %6767 = vmatmul.msk.bf16.gmra.mxu0 %vm939_vm2, %v7711_v11  ;;  %6854 = vmatmul.msk.bf16.gmra.mxu3 %vm939_vm2, %v7798_v19  ;;  %v7728_v19 = vld [vmem:[%s11416_s0 + $0xa0] sm:$0xff] }
  0x4d   :  { %6768 = vmatmul.msk.bf16.gmra.mxu0 %vm939_vm2, %v7712_v12  ;;  %6855 = vmatmul.msk.bf16.gmra.mxu3 %vm939_vm2, %v7799_v22 }
  0x5d   :  { %6769 = vmatmul.msk.bf16.gmra.mxu0 %vm939_vm2, %v7713_v14  ;;  %6856 = vmatmul.msk.bf16.gmra.mxu3 %vm939_vm2, %v7800_v26 }
  0x6d   :  { %6770 = vmatmul.msk.bf16.gmra.mxu0 %vm939_vm2, %v7714_v16  ;;  %6857 = vmatmul.msk.bf16.gmra.mxu3 %vm939_vm2, %v7801_v30  ;;  %v7810_v16 = vld [vmem:[%s11416_s0 + $0x330] sm:$0xff]  ;;  %v7729_v30 = vld [vmem:[%s11416_s0 + $0xa8] sm:$0xff] }
  0x7d   :  { %6771 = vmatmul.msk.bf16.gmra.mxu0 %vm939_vm2, %v7715_v18  ;;  %6858 = vmatmul.msk.bf16.gmra.mxu3 %vm939_vm2, %v7802_v34 }
  0x8a   :  { %v8154_v21 = vpop.f32.mrf.mxu0 }
  0x8d   :  { %6772 = vmatmul.msk.bf16.gmra.mxu0 %vm939_vm2, %v7716_v20  ;;  %6859 = vmatmul.msk.bf16.gmra.mxu3 %vm939_vm2, %v7803_v38 }
  0x90   :  { %v8211_v40 = vpop.f32.mrf.mxu3 }
  0x91   :  { %11450 = vst [vmem:[#allocation4_spill] sm:$0xff] %v8211_v40 }
  0x92   :  { %v8161_v23 = vpop.f32.mrf.mxu0 }
  0x98   :  { %v8218_v43 = vpop.f32.mrf.mxu3 }
  0x99   :  { %11452 = vst [vmem:[#allocation6_spill] sm:$0xff] %v8218_v43 }
  0x9a   :  { %v8166_v25 = vpop.f32.mrf.mxu0 }
  0x9d   :  { %6773 = vmatmul.msk.bf16.gmra.mxu0 %vm939_vm2, %v7717_v24  ;;  %6860 = vmatmul.msk.bf16.gmra.mxu3 %vm939_vm2, %v7804_v44  ;;  %v7811_v24 = vld [vmem:[%s11416_s0 + $0x338] sm:$0xff]  ;;  %v7730_v44 = vld [vmem:[%s11416_s0 + $0xb0] sm:$0xff] }
  0xa0   :  { %v8227_v46 = vpop.f32.mrf.mxu3 }
  0xa1   :  { %11454 = vst [vmem:[#allocation8_spill] sm:$0xff] %v8227_v46  ;;  %v7734_v46 = vld [vmem:[%s11416_s0 + $0xd0] sm:$0xff] }
  0xa2   :  { %v8173_v27 = vpop.f32.mrf.mxu0 }
  0xa8   :  { %v8234_v49 = vpop.f32.mrf.mxu3 }
  0xa9   :  { %11456 = vst [vmem:[#allocation10_spill] sm:$0xff] %v8234_v49 }
  0xaa   :  { %v8178_v29 = vpop.f32.mrf.mxu0 }
  0xad   :  { %6774 = vmatmul.msk.bf16.gmra.mxu0 %vm939_vm2, %v7718_v28  ;;  %6861 = vmatmul.msk.bf16.gmra.mxu3 %vm939_vm2, %v7805_v50 }
  0xb0   :  { %v8243_v52 = vpop.f32.mrf.mxu3 }
  0xb2   :  { %v8185_v31 = vpop.f32.mrf.mxu0 }
  0xb8   :  { %v8250_v55 = vpop.f32.mrf.mxu3 }
  0xba   :  { %v8190_v33 = vpop.f32.mrf.mxu0 }
  0xbd   :  { %6775 = vmatmul.msk.bf16.gmra.mxu0 %vm939_vm2, %v7719_v32  ;;  %6862 = vmatmul.msk.bf16.gmra.mxu3 %vm939_vm2, %v7806_v56 }
  0xc0   :  { %v8259_v58 = vpop.f32.mrf.mxu3 }
  0xc2   :  { %v8197_v35 = vpop.f32.mrf.mxu0 }
  0xc8   :  { %v8266_v61 = vpop.f32.mrf.mxu3 }
  0xca   :  { %v8202_v37 = vpop.f32.mrf.mxu0 }
  0xcd   :  { %6776 = vmatmul.msk.bf16.gmra.mxu0 %vm939_vm2, %v7720_v36  ;;  %6863 = vmatmul.msk.bf16.gmra.mxu3 %vm939_vm2, %v7807_v62  ;;  %v7812_v36 = vld [vmem:[%s11416_s0 + $0x340] sm:$0xff]  ;;  %v7731_v62 = vld [vmem:[%s11416_s0 + $0xb8] sm:$0xff] }
  0xd0   :  { %v8275_v0 = vpop.f32.mrf.mxu3 }
  0xd2   :  { %v8209_v39 = vpop.f32.mrf.mxu0 }
  0xd8   :  { %v8282_v3 = vpop.f32.mrf.mxu3 }
  0xd9   :  { %11463 = vst [vmem:[#allocation17_spill] sm:$0xff] %v8282_v3  ;;  %v7746_v3 = vld [vmem:[%s11416_s0 + $0x130] sm:$0xff] }
  0xda   :  { %v8216_v42 = vpop.f32.mrf.mxu0 }
  0xdb   :  { %11451 = vst [vmem:[#allocation5_spill] sm:$0xff] %v8216_v42 }
  0xdd   :  { %6777 = vmatmul.msk.bf16.gmra.mxu0 %vm939_vm2, %v7721_v41  ;;  %6864 = vmatmul.msk.bf16.gmra.mxu3 %vm939_vm2, %v7808_v4 }
  0xe0   :  { %v8291_v6 = vpop.f32.mrf.mxu3 }
  0xe2   :  { %v8225_v45 = vpop.f32.mrf.mxu0 }
  0xe3   :  { %11453 = vst [vmem:[#allocation7_spill] sm:$0xff] %v8225_v45 }
  0xe8   :  { %v8298_v9 = vpop.f32.mrf.mxu3 }
  0xea   :  { %v8232_v48 = vpop.f32.mrf.mxu0 }
  0xeb   :  { %11455 = vst [vmem:[#allocation9_spill] sm:$0xff] %v8232_v48 }
  0xed   :  { %6778 = vmatmul.msk.bf16.gmra.mxu0 %vm939_vm2, %v7722_v47  ;;  %6865 = vmatmul.msk.bf16.gmra.mxu3 %vm939_vm2, %v7809_v10 }
  0xf0   :  { %v8307_v12 = vpop.f32.mrf.mxu3 }
  0xf2   :  { %v8241_v51 = vpop.f32.mrf.mxu0 }
  0xf3   :  { %11457 = vst [vmem:[#allocation11_spill] sm:$0xff] %v8241_v51 }
  0xf8   :  { %v8314_v15 = vpop.f32.mrf.mxu3 }
  0xf9   :  { %11468 = vst [vmem:[#allocation22_spill] sm:$0xff] %v8314_v15 }
  0xfa   :  { %v8248_v54 = vpop.f32.mrf.mxu0 }
  0xfb   :  { %11458 = vst [vmem:[#allocation12_spill] sm:$0xff] %v8248_v54 }
  0xfd   :  { %6779 = vmatmul.msk.bf16.gmra.mxu0 %vm939_vm2, %v7723_v53  ;;  %6866 = vmatmul.msk.bf16.gmra.mxu3 %vm939_vm2, %v7810_v16  ;;  %v7813_v53 = vld [vmem:[%s11416_s0 + $0x348] sm:$0xff]  ;;  %v7732_v16 = vld [vmem:[%s11416_s0 + $0xc0] sm:$0xff] }
 0x100   :  { %v8323_v18 = vpop.f32.mrf.mxu3 }
 0x102   :  { %v8257_v57 = vpop.f32.mrf.mxu0 }
 0x103   :  { %11459 = vst [vmem:[#allocation13_spill] sm:$0xff] %v8257_v57 }
 0x108   :  { %v8330_v22 = vpop.f32.mrf.mxu3 }
 0x109   :  { %11471 = vst [vmem:[#allocation25_spill] sm:$0xff] %v8330_v22 }
 0x10a   :  { %v8264_v60 = vpop.f32.mrf.mxu0 }
 0x10b   :  { %11460 = vst [vmem:[#allocation14_spill] sm:$0xff] %v8264_v60 }
 0x10d   :  { %6780 = vmatmul.msk.bf16.gmra.mxu0 %vm939_vm2, %v7724_v59  ;;  %6867 = vmatmul.msk.bf16.gmra.mxu3 %vm939_vm2, %v7811_v24 }
 0x110   :  { %v8339_v28 = vpop.f32.mrf.mxu3 }
 0x112   :  { %v8273_v63 = vpop.f32.mrf.mxu0 }
 0x113   :  { %11461 = vst [vmem:[#allocation15_spill] sm:$0xff] %v8273_v63 }
 0x118   :  { %v8346_v34 = vpop.f32.mrf.mxu3 }
 0x119   :  { %11474 = vst [vmem:[#allocation28_spill] sm:$0xff] %v8346_v34 }
 0x11a   :  { %v8280_v2 = vpop.f32.mrf.mxu0 }
 0x11b   :  { %11462 = vst [vmem:[#allocation16_spill] sm:$0xff] %v8280_v2 }
 0x11d   :  { %6781 = vmatmul.msk.bf16.gmra.mxu0 %vm939_vm2, %v7725_v1  ;;  %6868 = vmatmul.msk.bf16.gmra.mxu3 %vm939_vm2, %v7812_v36 }
 0x120   :  { %v8355_v41 = vpop.f32.mrf.mxu3 }
 0x121   :  { %11476 = vst [vmem:[#allocation30_spill] sm:$0xff] %v8355_v41 }
 0x122   :  { %v8289_v5 = vpop.f32.mrf.mxu0 }
 0x123   :  { %11464 = vst [vmem:[#allocation18_spill] sm:$0xff] %v8289_v5 }
 0x128   :  { %v8362_v50 = vpop.f32.mrf.mxu3 }
 0x129   :  { %11478 = vst [vmem:[#allocation32_spill] sm:$0xff] %v8362_v50 }
 0x12a   :  { %v8296_v8 = vpop.f32.mrf.mxu0 }
 0x12b   :  { %11465 = vst [vmem:[#allocation19_spill] sm:$0xff] %v8296_v8  ;;  %v7742_v8 = vld [vmem:[%s11416_s0 + $0x110] sm:$0xff] }
 0x12d   :  { %6782 = vmatmul.msk.bf16.gmra.mxu0 %vm939_vm2, %v7726_v7  ;;  %6869 = vmatmul.msk.bf16.gmra.mxu3 %vm939_vm2, %v7813_v53  ;;  %v7814_v7 = vld [vmem:[%s11416_s0 + $0x350] sm:$0xff]  ;;  %v7733_v53 = vld [vmem:[%s11416_s0 + $0xc8] sm:$0xff] }
 0x130   :  { %v8371_v59 = vpop.f32.mrf.mxu3 }
 0x131   :  { %11480 = vst [vmem:[#allocation34_spill] sm:$0xff] %v8371_v59 }
 0x132   :  { %v8305_v11 = vpop.f32.mrf.mxu0 }
 0x133   :  { %11466 = vst [vmem:[#allocation20_spill] sm:$0xff] %v8305_v11 }
 0x138   :  { %v8378_v4 = vpop.f32.mrf.mxu3 }
 0x139   :  { %11482 = vst [vmem:[#allocation36_spill] sm:$0xff] %v8378_v4 }
 0x13a   :  { %v8312_v14 = vpop.f32.mrf.mxu0 }
 0x13b   :  { %11467 = vst [vmem:[#allocation21_spill] sm:$0xff] %v8312_v14 }
 0x13d   :  { %6783 = vmatmul.msk.bf16.gmra.mxu0 %vm939_vm2, %v7727_v13  ;;  %6870 = vmatmul.msk.bf16.gmra.mxu3 %vm939_vm2, %v7814_v7 }
 0x140   :  { %v8387_v13 = vpop.f32.mrf.mxu3 }
 0x141   :  { %11484 = vst [vmem:[#allocation38_spill] sm:$0xff] %v8387_v13 }
 0x142   :  { %v8321_v17 = vpop.f32.mrf.mxu0 }
 0x143   :  { %11469 = vst [vmem:[#allocation23_spill] sm:$0xff] %v8321_v17 }
 0x148   :  { %v8394_v24 = vpop.f32.mrf.mxu3 }
 0x149   :  { %11485 = vst [vmem:[#allocation39_spill] sm:$0xff] %v8394_v24 }
 0x14a   :  { %v8328_v20 = vpop.f32.mrf.mxu0 }
 0x14b   :  { %11470 = vst [vmem:[#allocation24_spill] sm:$0xff] %v8328_v20  ;;  %v7741_v20 = vld [vmem:[%s11416_s0 + $0x108] sm:$0xff] }
 0x14d   :  { %6784 = vmatmul.msk.bf16.gmra.mxu0 %vm939_vm2, %v7728_v19 }
 0x152   :  { %v8337_v26 = vpop.f32.mrf.mxu0 }
 0x153   :  { %11472 = vst [vmem:[#allocation26_spill] sm:$0xff] %v8337_v26 }
 0x15a   :  { %v8344_v32 = vpop.f32.mrf.mxu0 }
 0x15b   :  { %11473 = vst [vmem:[#allocation27_spill] sm:$0xff] %v8344_v32 }
 0x15d   :  { %6785 = vmatmul.msk.bf16.gmra.mxu0 %vm939_vm2, %v7729_v30  ;;  %v7815_v30 = vld [vmem:[%s11416_s0 + $0x358] sm:$0xff] }
 0x15e   :  { %6871 = vmatmul.msk.bf16.gmra.mxu3 %vm939_vm2, %v7815_v30 }
 0x162   :  { %v8353_v38 = vpop.f32.mrf.mxu0 }
 0x163   :  { %11475 = vst [vmem:[#allocation29_spill] sm:$0xff] %v8353_v38 }
 0x16a   :  { %v8360_v47 = vpop.f32.mrf.mxu0 }
 0x16b   :  { %11477 = vst [vmem:[#allocation31_spill] sm:$0xff] %v8360_v47  ;;  %v7740_v47 = vld [vmem:[%s11416_s0 + $0x100] sm:$0xff] }
 0x16d   :  { %6786 = vmatmul.msk.bf16.gmra.mxu0 %vm939_vm2, %v7730_v44  ;;  %v8403_v44 = vpop.f32.mrf.mxu3 }
 0x16e   :  { %11486 = vst [vmem:[#allocation40_spill] sm:$0xff] %v8403_v44 }
 0x172   :  { %v8369_v56 = vpop.f32.mrf.mxu0 }
 0x173   :  { %11479 = vst [vmem:[#allocation33_spill] sm:$0xff] %v8369_v56 }
 0x175   :  { %v8410_v7 = vpop.f32.mrf.mxu3 }
 0x176   :  { %11487 = vst [vmem:[#allocation41_spill] sm:$0xff] %v8410_v7 }
 0x17a   :  { %v8376_v1 = vpop.f32.mrf.mxu0 }
 0x17b   :  { %11481 = vst [vmem:[#allocation35_spill] sm:$0xff] %v8376_v1 }
 0x17d   :  { %6787 = vmatmul.msk.bf16.gmra.mxu0 %vm939_vm2, %v7731_v62  ;;  %v8419_v49 = vpop.f32.mrf.mxu3 }
 0x17e   :  { %11488 = vst [vmem:[#allocation42_spill] sm:$0xff] %v8419_v49  ;;  %v7735_v49 = vld [vmem:[%s11416_s0 + $0xd8] sm:$0xff] }
 0x182   :  { %v8385_v10 = vpop.f32.mrf.mxu0 }
 0x183   :  { %11483 = vst [vmem:[#allocation37_spill] sm:$0xff] %v8385_v10 }
 0x185   :  { %v8426_v40 = vpop.f32.mrf.mxu3 }
 0x186   :  { %11489 = vst [vmem:[#allocation43_spill] sm:$0xff] %v8426_v40 }
 0x18a   :  { %v8392_v19 = vpop.f32.mrf.mxu0 }
 0x18d   :  { %6788 = vmatmul.msk.bf16.gmra.mxu0 %vm939_vm2, %v7732_v16  ;;  %v7816_v16 = vld [vmem:[%s11416_s0 + $0x360] sm:$0xff]  ;;  %v8435_v7 = vpop.f32.mrf.mxu3 }
 0x18e   :  { %6872 = vmatmul.msk.bf16.gmra.mxu3 %vm939_vm2, %v7816_v16  ;;  %11490 = vst [vmem:[#allocation44_spill] sm:$0xff] %v8435_v7  ;;  %v7736_v7 = vld [vmem:[%s11416_s0 + $0xe0] sm:$0xff] }
 0x192   :  { %v8401_v36 = vpop.f32.mrf.mxu0 }
 0x195   :  { %v8442_v24 = vpop.f32.mrf.mxu3 }
 0x196   :  { %11491 = vst [vmem:[#allocation45_spill] sm:$0xff] %v8442_v24 }
 0x19a   :  { %v8408_v62 = vpop.f32.mrf.mxu0 }
 0x19d   :  { %6789 = vmatmul.msk.bf16.gmra.mxu0 %vm939_vm2, %v7733_v53  ;;  %v7817_v53 = vld [vmem:[%s11416_s0 + $0x368] sm:$0xff]  ;;  %v8451_v40 = vpop.f32.mrf.mxu3 }
 0x19e   :  { %6873 = vmatmul.msk.bf16.gmra.mxu3 %vm939_vm2, %v7817_v53  ;;  %11492 = vst [vmem:[#allocation46_spill] sm:$0xff] %v8451_v40  ;;  %v7737_v40 = vld [vmem:[%s11416_s0 + $0xe8] sm:$0xff] }
 0x1a2   :  { %v8417_v30 = vpop.f32.mrf.mxu0 }
 0x1a5   :  { %v8458_v4 = vpop.f32.mrf.mxu3 }
 0x1a6   :  { %11493 = vst [vmem:[#allocation47_spill] sm:$0xff] %v8458_v4 }
 0x1aa   :  { %v8424_v43 = vpop.f32.mrf.mxu0 }
 0x1ad   :  { %6790 = vmatmul.msk.bf16.gmra.mxu0 %vm939_vm2, %v7734_v46  ;;  %v7818_v46 = vld [vmem:[%s11416_s0 + $0x370] sm:$0xff]  ;;  %v8467_v24 = vpop.f32.mrf.mxu3 }
 0x1ae   :  { %6874 = vmatmul.msk.bf16.gmra.mxu3 %vm939_vm2, %v7818_v46  ;;  %11494 = vst [vmem:[#allocation48_spill] sm:$0xff] %v8467_v24  ;;  %v7738_v24 = vld [vmem:[%s11416_s0 + $0xf0] sm:$0xff] }
 0x1b2   :  { %v8433_v16 = vpop.f32.mrf.mxu0 }
 0x1b5   :  { %v8474_v50 = vpop.f32.mrf.mxu3 }
 0x1b6   :  { %11496 = vst [vmem:[#allocation50_spill] sm:$0xff] %v8474_v50 }
 0x1ba   :  { %v8440_v44 = vpop.f32.mrf.mxu0 }
 0x1bd   :  { %6791 = vmatmul.msk.bf16.gmra.mxu0 %vm939_vm2, %v7735_v49  ;;  %v7819_v49 = vld [vmem:[%s11416_s0 + $0x378] sm:$0xff]  ;;  %v8483_v4 = vpop.f32.mrf.mxu3 }
 0x1be   :  { %6875 = vmatmul.msk.bf16.gmra.mxu3 %vm939_vm2, %v7819_v49  ;;  %11498 = vst [vmem:[#allocation52_spill] sm:$0xff] %v8483_v4  ;;  %v7739_v4 = vld [vmem:[%s11416_s0 + $0xf8] sm:$0xff] }
 0x1c2   :  { %v8449_v53 = vpop.f32.mrf.mxu0 }
 0x1c5   :  { %v8490_v10 = vpop.f32.mrf.mxu3 }
 0x1c6   :  { %11500 = vst [vmem:[#allocation54_spill] sm:$0xff] %v8490_v10 }
 0x1ca   :  { %v8456_v13 = vpop.f32.mrf.mxu0 }
 0x1cd   :  { %6792 = vmatmul.msk.bf16.gmra.mxu0 %vm939_vm2, %v7736_v7  ;;  %v7820_v7 = vld [vmem:[%s11416_s0 + $0x380] sm:$0xff]  ;;  %v8499_v50 = vpop.f32.mrf.mxu3 }
 0x1ce   :  { %6876 = vmatmul.msk.bf16.gmra.mxu3 %vm939_vm2, %v7820_v7 }
 0x1d2   :  { %v8465_v46 = vpop.f32.mrf.mxu0 }
 0x1d5   :  { %v8506_v56 = vpop.f32.mrf.mxu3 }
 0x1da   :  { %v8472_v59 = vpop.f32.mrf.mxu0 }
 0x1db   :  { %11495 = vst [vmem:[#allocation49_spill] sm:$0xff] %v8472_v59 }
 0x1dd   :  { %6793 = vmatmul.msk.bf16.gmra.mxu0 %vm939_vm2, %v7737_v40  ;;  %v7821_v40 = vld [vmem:[%s11416_s0 + $0x388] sm:$0xff]  ;;  %v8515_v10 = vpop.f32.mrf.mxu3 }
 0x1de   :  { %6877 = vmatmul.msk.bf16.gmra.mxu3 %vm939_vm2, %v7821_v40 }
 0x1e2   :  { %v8481_v49 = vpop.f32.mrf.mxu0 }
 0x1e3   :  { %11497 = vst [vmem:[#allocation51_spill] sm:$0xff] %v8481_v49 }
 0x1e5   :  { %v8522_v32 = vpop.f32.mrf.mxu3 }
 0x1ea   :  { %v8488_v41 = vpop.f32.mrf.mxu0 }
 0x1eb   :  { %11499 = vst [vmem:[#allocation53_spill] sm:$0xff] %v8488_v41 }
 0x1ed   :  { %6794 = vmatmul.msk.bf16.gmra.mxu0 %vm939_vm2, %v7738_v24  ;;  %v7822_v24 = vld [vmem:[%s11416_s0 + $0x390] sm:$0xff]  ;;  %v8531_v26 = vpop.f32.mrf.mxu3 }
 0x1ee   :  { %6878 = vmatmul.msk.bf16.gmra.mxu3 %vm939_vm2, %v7822_v24 }
 0x1f2   :  { %v8497_v7 = vpop.f32.mrf.mxu0 }
 0x1f3   :  { %11501 = vst [vmem:[#allocation55_spill] sm:$0xff] %v8497_v7 }
 0x1f5   :  { %v8538_v14 = vpop.f32.mrf.mxu3 }
 0x1f6   :  { %11507 = vst [vmem:[#allocation61_spill] sm:$0xff] %v8538_v14 }
 0x1fa   :  { %v8504_v1 = vpop.f32.mrf.mxu0 }
 0x1fb   :  { %11502 = vst [vmem:[#allocation56_spill] sm:$0xff] %v8504_v1 }
 0x1fd   :  { %6795 = vmatmul.msk.bf16.gmra.mxu0 %vm939_vm2, %v7739_v4  ;;  %v7823_v4 = vld [vmem:[%s11416_s0 + $0x398] sm:$0xff] }
 0x1fe   :  { %6879 = vmatmul.msk.bf16.gmra.mxu3 %vm939_vm2, %v7823_v4 }
 0x202   :  { %v8513_v40 = vpop.f32.mrf.mxu0 }
 0x203   :  { %11503 = vst [vmem:[#allocation57_spill] sm:$0xff] %v8513_v40 }
 0x20a   :  { %v8520_v38 = vpop.f32.mrf.mxu0 }
 0x20b   :  { %11504 = vst [vmem:[#allocation58_spill] sm:$0xff] %v8520_v38  ;;  %v7745_v38 = vld [vmem:[%s11416_s0 + $0x128] sm:$0xff] }
 0x20d   :  { %6796 = vmatmul.msk.bf16.gmra.mxu0 %vm939_vm2, %v7740_v47  ;;  %v7824_v47 = vld [vmem:[%s11416_s0 + $0x3a0] sm:$0xff] }
 0x20e   :  { %6880 = vmatmul.msk.bf16.gmra.mxu3 %vm939_vm2, %v7824_v47 }
 0x211   :  { %v8547_v11 = vpop.f32.mrf.mxu3 }
 0x212   :  { %v8529_v24 = vpop.f32.mrf.mxu0 }
 0x213   :  { %11505 = vst [vmem:[#allocation59_spill] sm:$0xff] %v8529_v24  ;;  %v7744_v24 = vld [vmem:[%s11416_s0 + $0x120] sm:$0xff] }
 0x219   :  { %v8554_v2 = vpop.f32.mrf.mxu3 }
 0x21a   :  { %v8536_v17 = vpop.f32.mrf.mxu0 }
 0x21b   :  { %11506 = vst [vmem:[#allocation60_spill] sm:$0xff] %v8536_v17  ;;  %v7743_v17 = vld [vmem:[%s11416_s0 + $0x118] sm:$0xff] }
 0x21d   :  { %6797 = vmatmul.msk.bf16.gmra.mxu0 %vm939_vm2, %v7741_v20  ;;  %v7825_v20 = vld [vmem:[%s11416_s0 + $0x3a8] sm:$0xff] }
 0x21e   :  { %6881 = vmatmul.msk.bf16.gmra.mxu3 %vm939_vm2, %v7825_v20 }
 0x222   :  { %v8545_v4 = vpop.f32.mrf.mxu0 }
 0x223   :  { %11508 = vst [vmem:[#allocation62_spill] sm:$0xff] %v8545_v4  ;;  %v8563_v4 = vpop.f32.mrf.mxu3 }
 0x22a   :  { %v8552_v5 = vpop.f32.mrf.mxu0 }
 0x22b   :  { %11509 = vst [vmem:[#allocation63_spill] sm:$0xff] %v8552_v5  ;;  %v8570_v5 = vpop.f32.mrf.mxu3 }
 0x22c   :  { %11512 = vst [vmem:[#allocation66_spill] sm:$0xff] %v8570_v5 }
 0x22d   :  { %6798 = vmatmul.msk.bf16.gmra.mxu0 %vm939_vm2, %v7742_v8  ;;  %v7826_v8 = vld [vmem:[%s11416_s0 + $0x3b0] sm:$0xff] }
 0x22e   :  { %6882 = vmatmul.msk.bf16.gmra.mxu3 %vm939_vm2, %v7826_v8 }
 0x232   :  { %v8561_v47 = vpop.f32.mrf.mxu0 }
 0x233   :  { %11510 = vst [vmem:[#allocation64_spill] sm:$0xff] %v8561_v47  ;;  %v8579_v47 = vpop.f32.mrf.mxu3 }
 0x23a   :  { %v8568_v63 = vpop.f32.mrf.mxu0 }
 0x23b   :  { %11511 = vst [vmem:[#allocation65_spill] sm:$0xff] %v8568_v63  ;;  %v8586_v63 = vpop.f32.mrf.mxu3 }
 0x23c   :  { %11515 = vst [vmem:[#allocation69_spill] sm:$0xff] %v8586_v63 }
 0x23d   :  { %6799 = vmatmul.msk.bf16.gmra.mxu0 %vm939_vm2, %v7743_v17  ;;  %v7827_v17 = vld [vmem:[%s11416_s0 + $0x3b8] sm:$0xff] }
 0x23e   :  { %6883 = vmatmul.msk.bf16.gmra.mxu3 %vm939_vm2, %v7827_v17 }
 0x242   :  { %v8577_v20 = vpop.f32.mrf.mxu0 }
 0x243   :  { %11513 = vst [vmem:[#allocation67_spill] sm:$0xff] %v8577_v20  ;;  %v8595_v20 = vpop.f32.mrf.mxu3 }
 0x24a   :  { %v8584_v60 = vpop.f32.mrf.mxu0 }
 0x24b   :  { %11514 = vst [vmem:[#allocation68_spill] sm:$0xff] %v8584_v60  ;;  %v8602_v60 = vpop.f32.mrf.mxu3 }
 0x24c   :  { %11518 = vst [vmem:[#allocation72_spill] sm:$0xff] %v8602_v60 }
 0x24d   :  { %6800 = vmatmul.msk.bf16.gmra.mxu0 %vm939_vm2, %v7744_v24  ;;  %v7828_v24 = vld [vmem:[%s11416_s0 + $0x3c0] sm:$0xff] }
 0x24e   :  { %6884 = vmatmul.msk.bf16.gmra.mxu3 %vm939_vm2, %v7828_v24 }
 0x252   :  { %v8593_v8 = vpop.f32.mrf.mxu0 }
 0x253   :  { %11516 = vst [vmem:[#allocation70_spill] sm:$0xff] %v8593_v8  ;;  %v8611_v8 = vpop.f32.mrf.mxu3 }
 0x254   :  { %11520 = vst [vmem:[#allocation74_spill] sm:$0xff] %v8611_v8  ;;  %v7781_v8 = vld [vmem:[%s11416_s0 + $0x248] sm:$0xff] }
 0x255   :  { %6837 = vmatmul.msk.bf16.vlgmr.msra.gmra.mxu1 %vm939_vm2, %v7781_v8  ;;  %v7782_v8 = vld [vmem:[%s11416_s0 + $0x250] sm:$0xff] }
 0x25a   :  { %v8600_v14 = vpop.f32.mrf.mxu0 }
 0x25b   :  { %11517 = vst [vmem:[#allocation71_spill] sm:$0xff] %v8600_v14  ;;  %v8618_v14 = vpop.f32.mrf.mxu3 }
 0x25c   :  { %11522 = vst [vmem:[#allocation76_spill] sm:$0xff] %v8618_v14 }
 0x25d   :  { %6801 = vmatmul.msk.bf16.gmra.mxu0 %vm939_vm2, %v7745_v38  ;;  %v7829_v38 = vld [vmem:[%s11416_s0 + $0x3c8] sm:$0xff] }
 0x25e   :  { %6885 = vmatmul.msk.bf16.gmra.mxu3 %vm939_vm2, %v7829_v38  ;;  %v7830_v38 = vld [vmem:[%s11416_s0 + $0x3d0] sm:$0xff] }
 0x262   :  { %v8609_v17 = vpop.f32.mrf.mxu0 }
 0x263   :  { %11519 = vst [vmem:[#allocation73_spill] sm:$0xff] %v8609_v17  ;;  %v8627_v17 = vpop.f32.mrf.mxu3 }
 0x264   :  { %11524 = vst [vmem:[#allocation78_spill] sm:$0xff] %v8627_v17 }
 0x265   :  { %6838 = vmatmul.msk.bf16.gmra.mxu1 %vm939_vm2, %v7782_v8  ;;  %v7783_v8 = vld [vmem:[%s11416_s0 + $0x258] sm:$0xff] }
 0x26a   :  { %v8616_v57 = vpop.f32.mrf.mxu0 }
 0x26b   :  { %11521 = vst [vmem:[#allocation75_spill] sm:$0xff] %v8616_v57  ;;  %v8638_v57 = vpop.f32.mrf.mxu3 }
 0x26c   :  { %11526 = vst [vmem:[#allocation80_spill] sm:$0xff] %v8638_v57 }
 0x26d   :  { %6802 = vmatmul.msk.bf16.gmra.mxu0 %vm939_vm2, %v7746_v3  ;;  %v7747_v3 = vld [vmem:[%s11416_s0 + $0x138] sm:$0xff] }
 0x26e   :  { %6886 = vmatmul.msk.bf16.gmra.mxu3 %vm939_vm2, %v7830_v38  ;;  %v7831_v38 = vld [vmem:[%s11416_s0 + $0x3d8] sm:$0xff] }
 0x272   :  { %v8625_v24 = vpop.f32.mrf.mxu0 }
 0x273   :  { %11523 = vst [vmem:[#allocation77_spill] sm:$0xff] %v8625_v24  ;;  %v8647_v24 = vpop.f32.mrf.mxu3 }
 0x274   :  { %11528 = vst [vmem:[#allocation82_spill] sm:$0xff] %v8647_v24 }
 0x275   :  { %6839 = vmatmul.msk.bf16.gmra.mxu1 %vm939_vm2, %v7783_v8  ;;  %v7784_v8 = vld [vmem:[%s11416_s0 + $0x260] sm:$0xff] }
 0x27a   :  { %v8636_v14 = vpop.f32.mrf.mxu0 }
 0x27b   :  { %11525 = vst [vmem:[#allocation79_spill] sm:$0xff] %v8636_v14  ;;  %v8658_v14 = vpop.f32.mrf.mxu3 }
 0x27c   :  { %11529 = vst [vmem:[#allocation83_spill] sm:$0xff] %v8658_v14 }
 0x27d   :  { %6803 = vmatmul.msk.bf16.gmra.mxu0 %vm939_vm2, %v7747_v3  ;;  %v7748_v3 = vld [vmem:[%s11416_s0 + $0x140] sm:$0xff] }
 0x27e   :  { %6887 = vmatmul.msk.bf16.gmra.mxu3 %vm939_vm2, %v7831_v38  ;;  %v7832_v38 = vld [vmem:[%s11416_s0 + $0x3e0] sm:$0xff] }
 0x282   :  { %v8645_v17 = vpop.f32.mrf.mxu0 }
 0x283   :  { %11527 = vst [vmem:[#allocation81_spill] sm:$0xff] %v8645_v17  ;;  %v8667_v17 = vpop.f32.mrf.mxu3 }
 0x284   :  { %11530 = vst [vmem:[#allocation84_spill] sm:$0xff] %v8667_v17 }
 0x285   :  { %6840 = vmatmul.msk.bf16.gmra.mxu1 %vm939_vm2, %v7784_v8  ;;  %v7785_v8 = vld [vmem:[%s11416_s0 + $0x268] sm:$0xff] }
 0x28a   :  { %v8656_v57 = vpop.f32.mrf.mxu0 }
 0x28b   :  { %v8678_v40 = vpop.f32.mrf.mxu3 }
 0x28c   :  { %11531 = vst [vmem:[#allocation85_spill] sm:$0xff] %v8678_v40 }
 0x28d   :  { %6804 = vmatmul.msk.bf16.gmra.mxu0 %vm939_vm2, %v7748_v3  ;;  %v7749_v3 = vld [vmem:[%s11416_s0 + $0x148] sm:$0xff] }
 0x28e   :  { %6888 = vmatmul.msk.bf16.gmra.mxu3 %vm939_vm2, %v7832_v38  ;;  %v7833_v38 = vld [vmem:[%s11416_s0 + $0x3e8] sm:$0xff] }
 0x292   :  { %v8665_v24 = vpop.f32.mrf.mxu0 }
 0x293   :  { %v8687_v54 = vpop.f32.mrf.mxu3 }
 0x294   :  { %11532 = vst [vmem:[#allocation86_spill] sm:$0xff] %v8687_v54 }
 0x295   :  { %6841 = vmatmul.msk.bf16.gmra.mxu1 %vm939_vm2, %v7785_v8  ;;  %v7786_v8 = vld [vmem:[%s11416_s0 + $0x270] sm:$0xff] }
 0x29a   :  { %v8676_v14 = vpop.f32.mrf.mxu0 }
 0x29b   :  { %v8698_v1 = vpop.f32.mrf.mxu3 }
 0x29c   :  { %11533 = vst [vmem:[#allocation87_spill] sm:$0xff] %v8698_v1 }
 0x29d   :  { %6805 = vmatmul.msk.bf16.gmra.mxu0 %vm939_vm2, %v7749_v3  ;;  %v7750_v3 = vld [vmem:[%s11416_s0 + $0x150] sm:$0xff] }
 0x29e   :  { %6889 = vmatmul.msk.bf16.gmra.mxu3 %vm939_vm2, %v7833_v38  ;;  %v7834_v38 = vld [vmem:[%s11416_s0 + $0x3f0] sm:$0xff] }
 0x2a2   :  { %v8685_v17 = vpop.f32.mrf.mxu0 }
 0x2a3   :  { %v8707_v60 = vpop.f32.mrf.mxu3 }
 0x2a4   :  { %11534 = vst [vmem:[#allocation88_spill] sm:$0xff] %v8707_v60 }
 0x2a5   :  { %6842 = vmatmul.msk.bf16.gmra.mxu1 %vm939_vm2, %v7786_v8  ;;  %v7787_v8 = vld [vmem:[%s11416_s0 + $0x278] sm:$0xff] }
 0x2aa   :  { %v8696_v40 = vpop.f32.mrf.mxu0 }
 0x2ab   :  { %v8718_v34 = vpop.f32.mrf.mxu3 }
 0x2ac   :  { %11535 = vst [vmem:[#allocation89_spill] sm:$0xff] %v8718_v34 }
 0x2ad   :  { %6806 = vmatmul.msk.bf16.gmra.mxu0 %vm939_vm2, %v7750_v3  ;;  %v7751_v3 = vld [vmem:[%s11416_s0 + $0x158] sm:$0xff] }
 0x2ae   :  { %6890 = vmatmul.msk.bf16.gmra.mxu3 %vm939_vm2, %v7834_v38  ;;  %v7835_v38 = vld [vmem:[%s11416_s0 + $0x3f8] sm:$0xff] }
 0x2b2   :  { %v8705_v54 = vpop.f32.mrf.mxu0 }
 0x2b3   :  { %v8727_v51 = vpop.f32.mrf.mxu3 }
 0x2b4   :  { %11536 = vst [vmem:[#allocation90_spill] sm:$0xff] %v8727_v51 }
 0x2b5   :  { %6843 = vmatmul.msk.bf16.gmra.mxu1 %vm939_vm2, %v7787_v8 }
 0x2ba   :  { %v8716_v1 = vpop.f32.mrf.mxu0 }
 0x2bb   :  { %v8738_v7 = vpop.f32.mrf.mxu3 }
 0x2bc   :  { %11537 = vst [vmem:[#allocation91_spill] sm:$0xff] %v8738_v7 }
 0x2bd   :  { %6807 = vmatmul.msk.bf16.gmra.mxu0 %vm939_vm2, %v7751_v3  ;;  %v7752_v3 = vld [vmem:[%s11416_s0 + $0x160] sm:$0xff] }
 0x2be   :  { %6891 = vmatmul.msk.bf16.gmra.mxu3 %vm939_vm2, %v7835_v38 }
 0x2c2   :  { %v8725_v60 = vpop.f32.mrf.mxu0 }
 0x2c3   :  { %v8747_v48 = vpop.f32.mrf.mxu3 }
 0x2c4   :  { %11538 = vst [vmem:[#allocation92_spill] sm:$0xff] %v8747_v48  ;;  %v7754_v48 = vld [vmem:[%s11416_s0 + $0x170] sm:$0xff] }
 0x2ca   :  { %v8736_v34 = vpop.f32.mrf.mxu0 }
 0x2cb   :  { %v8758_v41 = vpop.f32.mrf.mxu3 }
 0x2cc   :  { %11540 = vst [vmem:[#allocation94_spill] sm:$0xff] %v8758_v41 }
 0x2cd   :  { %6808 = vmatmul.msk.bf16.gmra.mxu0 %vm939_vm2, %v7752_v3  ;;  %v7753_v3 = vld [vmem:[%s11416_s0 + $0x168] sm:$0xff] }
 0x2d2   :  { %v8745_v51 = vpop.f32.mrf.mxu0  ;;  %v1705_v49 = vpop.f32.mrf.mxu1 }
 0x2d3   :  { %v8763_v63 = vpop.f32.mrf.mxu3  ;;  %v2030_v41 = vmax.f32 %v1705_v49, %v8243_v52 }
 0x2d4   :  { %11542 = vst [vmem:[#allocation96_spill] sm:$0xff] %v8763_v63  ;;  %v8780_v63 = vld [vmem:[%s11417_s2] ss:$0 sm:$0xff] }
 0x2da   :  { %v8756_v7 = vpop.f32.mrf.mxu0  ;;  %v1707_v42 = vpop.f32.mrf.mxu1 }
 0x2db   :  { %11539 = vst [vmem:[#allocation93_spill] sm:$0xff] %v8756_v7  ;;  %v8770_v8 = vpop.f32.mrf.mxu3 }
 0x2dc   :  { %11544 = vst [vmem:[#allocation98_spill] sm:$0xff] %v8770_v8 }
 0x2dd   :  { %6809 = vmatmul.msk.bf16.gmra.mxu0 %vm939_vm2, %v7753_v3 }
 0x2e2   :  { %v8761_v38 = vpop.f32.mrf.mxu0 }
 0x2e3   :  { %11541 = vst [vmem:[#allocation95_spill] sm:$0xff] %v8761_v38  ;;  %v1945_v3 = vpop.f32.mrf.mxu3 }
 0x2e4   :  { %v2094_v38 = vmax.f32 %v8499_v50, %v1945_v3 }
 0x2e6   :  { %v2158_v7 = vmax.f32 %v2030_v41, %v2094_v38 }
 0x2ea   :  { %v8768_v22 = vpop.f32.mrf.mxu0 }
 0x2eb   :  { %11543 = vst [vmem:[#allocation97_spill] sm:$0xff] %v8768_v22  ;;  %v2226_v22 = vadd.f32 %v8780_v63, %v2158_v7  ;;  %v1947_v52 = vpop.f32.mrf.mxu3 }
 0x2ed   :  { %6810 = vmatmul.msk.bf16.gmra.mxu0 %vm939_vm2, %v7754_v48  ;;  %v7755_v48 = vld [vmem:[%s11416_s0 + $0x178] sm:$0xff] }
 0x2f2   :  { %v8773_v45 = vpop.f32.mrf.mxu0 }
 0x2f3   :  { %11545 = vst [vmem:[#allocation99_spill] sm:$0xff] %v8773_v45  ;;  %v2290_v45 = vmax.f32 %v2226_v22, 0.0  ;;  %v1710_v22 = vpop.f32.mrf.mxu1  ;;  %v1950_v3 = vpop.f32.mrf.mxu3 }
 0x2f4   :  { %v2032_v38 = vmax.f32 %v1710_v22, %v8259_v58  ;;  %v2095_v22 = vmax.f32 %v8506_v56, %v1947_v52 }
 0x2f5   :  { %v2524_v50 = vrot.slane %v2290_v45, 1  ;;  %v8788_v49 = vpack.c.bf16 %v2290_v45, %v2290_v45 }
 0x2f7   :  { %11547 = vst [vmem:[#allocation101_spill] sm:$0xff] %v8788_v49  ;;  %v2556_v41 = vsel %vm2417_vm3, %v2524_v50, 0.0 }
 0x2f8   :  { %2696 = vst.msk [vmem:[#allocation2 + $0x35c] sm:$0xf] %vm2577_vm4, %v8788_v49  ;;  %v8794_v7 = vpack.c.bf16 %v2556_v41, %v2556_v41 }
 0x2f9   :  { %3479 = vst.msk [vmem:[#allocation2 + $0x354] sm:$0xf] %vm2577_vm4, %v8788_v49 }
 0x2fa   :  { %v8786_v8 = vpop.f32.mrf.mxu0  ;;  %11548 = vst [vmem:[#allocation102_spill] sm:$0xff] %v8794_v7 }
 0x2fb   :  { %11546 = vst [vmem:[#allocation100_spill] sm:$0xff] %v8786_v8  ;;  %v1952_v5 = vpop.f32.mrf.mxu3 }
 0x2fc   :  { %3495 = vst.msk [vmem:[#allocation2 + $0x3f0] sm:$0xf] %vm2577_vm4, %v8788_v49  ;;  %v7756_v49 = vld [vmem:[%s11416_s0 + $0x180] sm:$0xff] }
 0x2fd   :  { %6811 = vmatmul.msk.bf16.gmra.mxu0 %vm939_vm2, %v7755_v48  ;;  %3603 = vst.msk [vmem:[#allocation2 + $0x358] sm:$0xf] %vm2577_vm4, %v8794_v7  ;;  %v2096_v48 = vmax.f32 %v8515_v10, %v1950_v3  ;;  %v2031_v10 = vmax.f32 %v1707_v42, %v8250_v55 }
 0x2fe   :  { %2828 = vst.msk [vmem:[#allocation2 + $0x360] sm:$0xf] %vm2577_vm4, %v8794_v7 }
 0x2ff   :  { %v2160_v50 = vmax.f32 %v2032_v38, %v2096_v48  ;;  %v2159_v42 = vmax.f32 %v2031_v10, %v2095_v22 }
 0x301   :  { %v2228_v41 = vadd.f32 %v8780_v63, %v2160_v50  ;;  %v2227_v3 = vadd.f32 %v8780_v63, %v2159_v42  ;;  %v7757_v50 = vld [vmem:[%s11416_s0 + $0x188] sm:$0xff]  ;;  %v2097_v42 = vmax.f32 %v8522_v32, %v1952_v5 }
 0x302   :  { %v8802_v45 = vpop.f32.mrf.mxu0 }
 0x303   :  { %11549 = vst [vmem:[#allocation103_spill] sm:$0xff] %v8802_v45  ;;  %v2292_v59 = vmax.f32 %v2228_v41, 0.0  ;;  %v1712_v45 = vpop.f32.mrf.mxu1  ;;  %v1955_v56 = vpop.f32.mrf.mxu3  ;;  %v8845_v10 = vmax.f32 %v2227_v3, 0.0 }
 0x304   :  { %v2098_v52 = vmax.f32 %v8531_v26, %v1955_v56 }
 0x305   :  { %v2526_v15 = vrot.slane %v2292_v59, 1  ;;  %v8814_v7 = vpack.c.bf16 %v2292_v59, %v2292_v59 }
 0x307   :  { %11550 = vst [vmem:[#allocation104_spill] sm:$0xff] %v8814_v7  ;;  %v2558_v58 = vsel %vm2417_vm3, %v2526_v15, 0.0 }
 0x308   :  { %2698 = vst.msk [vmem:[#allocation2 + $0x384] sm:$0xf] %vm2577_vm4, %v8814_v7  ;;  %v8822_v38 = vpack.c.bf16 %v2558_v58, %v2558_v58 }
 0x309   :  { %3481 = vst.msk [vmem:[#allocation2 + $0x37c] sm:$0xf] %vm2577_vm4, %v8814_v7 }
 0x30a   :  { %v8812_v8 = vpop.f32.mrf.mxu0  ;;  %11551 = vst [vmem:[#allocation105_spill] sm:$0xff] %v8822_v38 }
 0x30b   :  { %3497 = vst.msk [vmem:[#allocation2 + $0x418] sm:$0xf] %vm2577_vm4, %v8814_v7  ;;  %v1715_v15 = vpop.f32.mrf.mxu1 }
 0x30c   :  { %3605 = vst.msk [vmem:[#allocation2 + $0x380] sm:$0xf] %vm2577_vm4, %v8822_v38  ;;  %v2034_v55 = vmax.f32 %v1715_v15, %v8275_v0  ;;  %v8847_v0 = vpop.f32.mrf.mxu3  ;;  %v2033_v15 = vmax.f32 %v1712_v45, %v8266_v61 }
 0x30d   :  { %6812 = vmatmul.msk.bf16.gmra.mxu0 %vm939_vm2, %v7756_v49  ;;  %2830 = vst.msk [vmem:[#allocation2 + $0x388] sm:$0xf] %vm2577_vm4, %v8822_v38 }
 0x30e   :  { %v2162_v49 = vmax.f32 %v2034_v55, %v2098_v52  ;;  %v8863_v52 = vpack.c.bf16 %v8845_v10, %v8845_v10  ;;  %v2161_v61 = vmax.f32 %v2033_v15, %v2097_v42 }
 0x310   :  { %v2230_v48 = vadd.f32 %v8780_v63, %v2162_v49  ;;  %11554 = vst [vmem:[#allocation108_spill] sm:$0xff] %v8863_v52 }
 0x311   :  { %2697 = vst.msk [vmem:[#allocation2 + $0x370] sm:$0xf] %vm2577_vm4, %v8863_v52 }
 0x312   :  { %v8830_v59 = vpop.f32.mrf.mxu0  ;;  %v2294_v58 = vmax.f32 %v2230_v48, 0.0  ;;  %3480 = vst.msk [vmem:[#allocation2 + $0x368] sm:$0xf] %vm2577_vm4, %v8863_v52  ;;  %v2229_v48 = vadd.f32 %v8780_v63, %v2161_v61 }
 0x313   :  { %v8843_v38 = vpop.f32.mrf.mxu1  ;;  %3496 = vst.msk [vmem:[#allocation2 + $0x404] sm:$0xf] %vm2577_vm4, %v8863_v52 }
 0x314   :  { %v2528_v22 = vrot.slane %v2294_v58, 1  ;;  %v8849_v26 = vpack.c.bf16 %v2294_v58, %v2294_v58  ;;  %v1960_v49 = vpop.f32.mrf.mxu3 }
 0x315   :  { %v2100_v3 = vmax.f32 %v8547_v11, %v1960_v49 }
 0x316   :  { %11552 = vst [vmem:[#allocation106_spill] sm:$0xff] %v8849_v26  ;;  %v2560_v55 = vsel %vm2417_vm3, %v2528_v22, 0.0  ;;  %v8883_v22 = vmax.f32 %v2229_v48, 0.0 }
 0x317   :  { %2700 = vst.msk [vmem:[#allocation2 + $0x3ac] sm:$0xf] %vm2577_vm4, %v8849_v26  ;;  %v8857_v56 = vpack.c.bf16 %v2560_v55, %v2560_v55 }
 0x318   :  { %3483 = vst.msk [vmem:[#allocation2 + $0x3a4] sm:$0xf] %vm2577_vm4, %v8849_v26 }
 0x319   :  { %11553 = vst [vmem:[#allocation107_spill] sm:$0xff] %v8857_v56 }
 0x31a   :  { %v8841_v41 = vpop.f32.mrf.mxu0  ;;  %3499 = vst.msk [vmem:[#allocation2 + $0x440] sm:$0xf] %vm2577_vm4, %v8849_v26 }
 0x31b   :  { %3607 = vst.msk [vmem:[#allocation2 + $0x3a8] sm:$0xf] %vm2577_vm4, %v8857_v56  ;;  %v1720_v32 = vpop.f32.mrf.mxu1 }
 0x31c   :  { %2832 = vst.msk [vmem:[#allocation2 + $0x3b0] sm:$0xf] %vm2577_vm4, %v8857_v56  ;;  %v2036_v45 = vmax.f32 %v1720_v32, %v8291_v6  ;;  %v7758_v6 = vld [vmem:[%s11416_s0 + $0x190] sm:$0xff]  ;;  %v8894_v55 = vpop.f32.mrf.mxu3  ;;  %v8903_v32 = vpack.c.bf16 %v8883_v22, %v8883_v22  ;;  %v7759_v56 = vld [vmem:[%s11416_s0 + $0x198] sm:$0xff] }
 0x31d   :  { %6813 = vmatmul.msk.bf16.gmra.mxu0 %vm939_vm2, %v7757_v50 }
 0x31e   :  { %v2164_v50 = vmax.f32 %v2036_v45, %v2100_v3  ;;  %11556 = vst [vmem:[#allocation110_spill] sm:$0xff] %v8903_v32 }
 0x31f   :  { %2699 = vst.msk [vmem:[#allocation2 + $0x398] sm:$0xf] %vm2577_vm4, %v8903_v32 }
 0x320   :  { %v2232_v58 = vadd.f32 %v8780_v63, %v2164_v50  ;;  %3482 = vst.msk [vmem:[#allocation2 + $0x390] sm:$0xf] %vm2577_vm4, %v8903_v32 }
 0x321   :  { %3498 = vst.msk [vmem:[#allocation2 + $0x42c] sm:$0xf] %vm2577_vm4, %v8903_v32 }
 0x322   :  { %v8869_v5 = vpop.f32.mrf.mxu0  ;;  %v8890_v11 = vmax.f32 %v2232_v58, 0.0 }
 0x323   :  { %v8892_v42 = vpop.f32.mrf.mxu1 }
 0x324   :  { %v8898_v61 = vpack.c.bf16 %v8890_v11, %v8890_v11  ;;  %v1965_v48 = vpop.f32.mrf.mxu3 }
 0x325   :  { %v2102_v50 = vmax.f32 %v8563_v4, %v1965_v48 }
 0x326   :  { %11555 = vst [vmem:[#allocation109_spill] sm:$0xff] %v8898_v61 }
 0x327   :  { %3527 = vst.msk [vmem:[#allocation2 + $0x290] sm:$0xf] %vm2577_vm4, %v8898_v61 }
 0x328   :  { %2724 = vst.msk [vmem:[#allocation2 + $0x298] sm:$0xf] %vm2577_vm4, %v8898_v61 }
 0x329   :  { %3583 = vst.msk [vmem:[#allocation2 + $0x468] sm:$0xf] %vm2577_vm4, %v8898_v61 }
 0x32a   :  { %v8888_v15 = vpop.f32.mrf.mxu0 }
 0x32b   :  { %v1725_v49 = vpop.f32.mrf.mxu1 }
 0x32c   :  { %v2038_v3 = vmax.f32 %v1725_v49, %v8307_v12  ;;  %v8929_v52 = vpop.f32.mrf.mxu3 }
 0x32d   :  { %6814 = vmatmul.msk.bf16.gmra.mxu0 %vm939_vm2, %v7758_v6 }
 0x32e   :  { %v2166_v58 = vmax.f32 %v2038_v3, %v2102_v50 }
 0x330   :  { %v2234_v6 = vadd.f32 %v8780_v63, %v2166_v58 }
 0x332   :  { %v8913_v45 = vpop.f32.mrf.mxu0  ;;  %v2298_v26 = vmax.f32 %v2234_v6, 0.0 }
 0x333   :  { %11557 = vst [vmem:[#allocation111_spill] sm:$0xff] %v8913_v45  ;;  %v8927_v7 = vpop.f32.mrf.mxu1 }
 0x334   :  { %v2460_v12 = vrot.slane %v2298_v26, 7  ;;  %v8931_v49 = vpack.c.bf16 %v2298_v26, %v2298_v26  ;;  %v1970_v50 = vpop.f32.mrf.mxu3 }
 0x335   :  { %v2104_v58 = vmax.f32 %v8579_v47, %v1970_v50 }
 0x336   :  { %11559 = vst [vmem:[#allocation113_spill] sm:$0xff] %v8931_v49  ;;  %v2492_v4 = vsel %vm2352_vm5, 0.0, %v2460_v12 }
 0x337   :  { %3529 = vst.msk [vmem:[#allocation2 + $0x2b8] sm:$0xf] %vm2577_vm4, %v8931_v49  ;;  %v8937_v3 = vpack.c.bf16 %v2492_v4, %v2492_v4  ;;  %v7760_v4 = vld [vmem:[%s11416_s0 + $0x1a0] sm:$0xff] }
 0x338   :  { %2726 = vst.msk [vmem:[#allocation2 + $0x2c0] sm:$0xf] %vm2577_vm4, %v8931_v49 }
 0x339   :  { %11560 = vst [vmem:[#allocation114_spill] sm:$0xff] %v8937_v3 }
 0x33a   :  { %v8925_v61 = vpop.f32.mrf.mxu0  ;;  %3585 = vst.msk [vmem:[#allocation2 + $0x490] sm:$0xf] %vm2577_vm4, %v8931_v49 }
 0x33b   :  { %11558 = vst [vmem:[#allocation112_spill] sm:$0xff] %v8925_v61 }
 0x33c   :  { %2589 = vst.msk [vmem:[#allocation2 + $0x2bc] sm:$0xf] %vm2577_vm4, %v8937_v3 }
 0x33d   :  { %6815 = vmatmul.msk.bf16.gmra.mxu0 %vm939_vm2, %v7759_v56  ;;  %3357 = vst.msk [vmem:[#allocation2 + $0x2b4] sm:$0xf] %vm2577_vm4, %v8937_v3  ;;  %v1730_v56 = vpop.f32.mrf.mxu1  ;;  %v8961_v3 = vpop.f32.mrf.mxu3 }
 0x33e   :  { %v2040_v48 = vmax.f32 %v1730_v56, %v8323_v18 }
 0x340   :  { %v2168_v6 = vmax.f32 %v2040_v48, %v2104_v58 }
 0x342   :  { %v8945_v26 = vpop.f32.mrf.mxu0  ;;  %v2236_v12 = vadd.f32 %v8780_v63, %v2168_v6 }
 0x343   :  { %11561 = vst [vmem:[#allocation115_spill] sm:$0xff] %v8945_v26 }
 0x344   :  { %v8957_v32 = vmax.f32 %v2236_v12, 0.0 }
 0x345   :  { %v8959_v26 = vpop.f32.mrf.mxu1  ;;  %v1975_v50 = vpop.f32.mrf.mxu3 }
 0x346   :  { %v8965_v18 = vpack.c.bf16 %v8957_v32, %v8957_v32  ;;  %v2106_v58 = vmax.f32 %v8595_v20, %v1975_v50  ;;  %v7762_v20 = vld [vmem:[%s11416_s0 + $0x1b0] sm:$0xff]  ;;  %v7763_v50 = vld [vmem:[%s11416_s0 + $0x1b8] sm:$0xff] }
 0x348   :  { %11563 = vst [vmem:[#allocation117_spill] sm:$0xff] %v8965_v18 }
 0x349   :  { %3531 = vst.msk [vmem:[#allocation2 + $0x2e0] sm:$0xf] %vm2577_vm4, %v8965_v18 }
 0x34a   :  { %v8955_v49 = vpop.f32.mrf.mxu0  ;;  %2728 = vst.msk [vmem:[#allocation2 + $0x2e8] sm:$0xf] %vm2577_vm4, %v8965_v18 }
 0x34b   :  { %11562 = vst [vmem:[#allocation116_spill] sm:$0xff] %v8955_v49 }
 0x34c   :  { %3587 = vst.msk [vmem:[#allocation2 + $0x4b8] sm:$0xf] %vm2577_vm4, %v8965_v18 }
 0x34d   :  { %6816 = vmatmul.msk.bf16.gmra.mxu0 %vm939_vm2, %v7760_v4  ;;  %v1735_v56 = vpop.f32.mrf.mxu1  ;;  %v7761_v4 = vld [vmem:[%s11416_s0 + $0x1a8] sm:$0xff] }
 0x34e   :  { %v2042_v48 = vmax.f32 %v1735_v56, %v8339_v28 }
 0x350   :  { %v2170_v6 = vmax.f32 %v2042_v48, %v2106_v58 }
 0x352   :  { %v8974_v47 = vpop.f32.mrf.mxu0  ;;  %v2238_v12 = vadd.f32 %v8780_v63, %v2170_v6 }
 0x353   :  { %11564 = vst [vmem:[#allocation118_spill] sm:$0xff] %v8974_v47 }
 0x354   :  { %v8984_v61 = vmax.f32 %v2238_v12, 0.0  ;;  %v7764_v12 = vld [vmem:[%s11416_s0 + $0x1c0] sm:$0xff] }
 0x356   :  { %v8988_v18 = vpack.c.bf16 %v8984_v61, %v8984_v61 }
 0x358   :  { %11566 = vst [vmem:[#allocation120_spill] sm:$0xff] %v8988_v18 }
 0x359   :  { %3533 = vst.msk [vmem:[#allocation2 + $0x308] sm:$0xf] %vm2577_vm4, %v8988_v18 }
 0x35a   :  { %v8982_v49 = vpop.f32.mrf.mxu0  ;;  %2730 = vst.msk [vmem:[#allocation2 + $0x310] sm:$0xf] %vm2577_vm4, %v8988_v18 }
 0x35b   :  { %11565 = vst [vmem:[#allocation119_spill] sm:$0xff] %v8982_v49 }
 0x35c   :  { %3589 = vst.msk [vmem:[#allocation2 + $0x4e0] sm:$0xf] %vm2577_vm4, %v8988_v18 }
 0x35d   :  { %6817 = vmatmul.msk.bf16.gmra.mxu0 %vm939_vm2, %v7761_v4 }
 0x362   :  { %v8997_v28 = vpop.f32.mrf.mxu0 }
 0x363   :  { %11567 = vst [vmem:[#allocation121_spill] sm:$0xff] %v8997_v28 }
 0x36a   :  { %v9002_v56 = vpop.f32.mrf.mxu0 }
 0x36b   :  { %11568 = vst [vmem:[#allocation122_spill] sm:$0xff] %v9002_v56 }
 0x36d   :  { %6818 = vmatmul.msk.bf16.gmra.mxu0 %vm939_vm2, %v7762_v20  ;;  %v1980_v20 = vmax.f32 %v8154_v21, %v8392_v19 }
 0x372   :  { %v9005_v48 = vpop.f32.mrf.mxu0 }
 0x373   :  { %11569 = vst [vmem:[#allocation123_spill] sm:$0xff] %v9005_v48 }
 0x37a   :  { %v9010_v58 = vpop.f32.mrf.mxu0 }
 0x37b   :  { %11570 = vst [vmem:[#allocation124_spill] sm:$0xff] %v9010_v58 }
 0x37d   :  { %6819 = vmatmul.msk.bf16.gmra.mxu0 %vm939_vm2, %v7763_v50  ;;  %v1981_v50 = vmax.f32 %v8161_v23, %v8401_v36  ;;  %v7765_v36 = vld [vmem:[%s11416_s0 + $0x1c8] sm:$0xff] }
 0x382   :  { %v9013_v6 = vpop.f32.mrf.mxu0 }
 0x383   :  { %11571 = vst [vmem:[#allocation125_spill] sm:$0xff] %v9013_v6 }
 0x38a   :  { %v1580_v4 = vpop.f32.mrf.mxu0 }
 0x38b   :  { %v2044_v18 = vmax.f32 %v8656_v57, %v1580_v4 }
 0x38d   :  { %v2108_v48 = vmax.f32 %v1980_v20, %v2044_v18  ;;  %6820 = vmatmul.msk.bf16.gmra.mxu0 %vm939_vm2, %v7764_v12 }
 0x38f   :  { %v2176_v56 = vadd.f32 %v8780_v63, %v2108_v48 }
 0x391   :  { %v2240_v58 = vmax.f32 %v2176_v56, 0.0 }
 0x392   :  { %v1582_v28 = vpop.f32.mrf.mxu0 }
 0x393   :  { %v2385_v6 = vrot.slane %v2240_v58, 1  ;;  %v2045_v49 = vmax.f32 %v8665_v24, %v1582_v28  ;;  %v9026_v47 = vpack.c.bf16 %v2240_v58, %v2240_v58 }
 0x395   :  { %v2109_v45 = vmax.f32 %v1981_v50, %v2045_v49  ;;  %2961 = vst.msk [vmem:[#allocation2 + $0x8] sm:$0xf] %vm2577_vm4, %v9026_v47  ;;  %v2418_v21 = vsel %vm2417_vm3, %v2385_v6, 0.0  ;;  %v1982_v49 = vmax.f32 %v8166_v25, %v8408_v62  ;;  %v1983_v6 = vmax.f32 %v8173_v27, %v8417_v30 }
 0x396   :  { %3073 = vst.msk [vmem:[#allocation2 + $0x1e0] sm:$0xf] %vm2577_vm4, %v9026_v47  ;;  %v9033_v57 = vpack.c.bf16 %v2418_v21, %v2418_v21 }
 0x397   :  { %v2177_v19 = vadd.f32 %v8780_v63, %v2109_v45 }
 0x398   :  { %3329 = vst.msk [vmem:[#allocation2 + $0x1e4] sm:$0xf] %vm2577_vm4, %v9033_v57 }
 0x399   :  { %v2241_v23 = vmax.f32 %v2177_v19, 0.0 }
 0x39a   :  { %v1585_v24 = vpop.f32.mrf.mxu0 }
 0x39b   :  { %v2386_v18 = vrot.slane %v2241_v23, 1  ;;  %v2046_v28 = vmax.f32 %v8676_v14, %v1585_v24  ;;  %v9044_v56 = vpack.c.bf16 %v2241_v23, %v2241_v23 }
 0x39d   :  { %v2419_v48 = vsel %vm2417_vm3, %v2386_v18, 0.0  ;;  %v2110_v45 = vmax.f32 %v1982_v49, %v2046_v28  ;;  %6821 = vmatmul.msk.bf16.gmra.mxu0 %vm939_vm2, %v7765_v36  ;;  %2962 = vst.msk [vmem:[#allocation2 + $0x1c] sm:$0xf] %vm2577_vm4, %v9044_v56  ;;  %v1984_v36 = vmax.f32 %v8178_v29, %v8424_v43 }
 0x39e   :  { %3074 = vst.msk [vmem:[#allocation2 + $0x1f4] sm:$0xf] %vm2577_vm4, %v9044_v56  ;;  %v9052_v58 = vpack.c.bf16 %v2419_v48, %v2419_v48 }
 0x39f   :  { %v2178_v25 = vadd.f32 %v8780_v63, %v2110_v45  ;;  %3721 = vst.msk [vmem:[#allocation2 + $0x1ec] sm:$0xf] %vm2577_vm4, %v9044_v56 }
 0x3a0   :  { %3330 = vst.msk [vmem:[#allocation2 + $0x1f8] sm:$0xf] %vm2577_vm4, %v9052_v58 }
 0x3a1   :  { %v2242_v14 = vmax.f32 %v2178_v25, 0.0  ;;  %3769 = vst.msk [vmem:[#allocation2 + $0x1f0] sm:$0xf] %vm2577_vm4, %v9052_v58  ;;  %v8052_v25 = vmov 0.0|0.0  }
 0x3a2   :  { %v1587_v62 = vpop.f32.mrf.mxu0  ;;  %2623 = vrot.lane.b32.xlu1 %v8052_v25, %s8053_s30  ;;  %2578 = vst.msk [vmem:[#allocation2] sm:$0xf] %vm2577_vm4, %v8052_v25 }
 0x3a3   :  { %v2387_v12 = vrot.slane %v2242_v14, 1  ;;  %v9063_v4 = vpack.c.bf16 %v2242_v14, %v2242_v14  ;;  %v2047_v20 = vmax.f32 %v8685_v17, %v1587_v62  ;;  %v7766_v17 = vld [vmem:[%s11416_s0 + $0x1d0] sm:$0xff]  ;;  %2586 = vst.msk [vmem:[#allocation2 + $0x280] sm:$0xf] %vm2577_vm4, %v8052_v25 }
 0x3a4   :  { %2685 = vst.msk [vmem:[#allocation2 + $0xa0] sm:$0xf] %vm2577_vm4, %v8052_v25 }
 0x3a5   :  { %v2420_v50 = vsel %vm2417_vm3, %v2387_v12, 0.0  ;;  %2963 = vst.msk [vmem:[#allocation2 + $0x30] sm:$0xf] %vm2577_vm4, %v9063_v4  ;;  %v2111_v21 = vmax.f32 %v1983_v6, %v2047_v20 }
 0x3a6   :  { %v9069_v19 = vpack.c.bf16 %v2420_v50, %v2420_v50  ;;  %3075 = vst.msk [vmem:[#allocation2 + $0x208] sm:$0xf] %vm2577_vm4, %v9063_v4  ;;  %v1985_v50 = vmax.f32 %v8185_v31, %v8433_v16  ;;  %v1987_v16 = vmax.f32 %v8197_v35, %v8449_v53 }
 0x3a7   :  { %3722 = vst.msk [vmem:[#allocation2 + $0x200] sm:$0xf] %vm2577_vm4, %v9063_v4  ;;  %v2179_v27 = vadd.f32 %v8780_v63, %v2111_v21  ;;  %v7767_v21 = vld [vmem:[%s11416_s0 + $0x1d8] sm:$0xff] }
 0x3a8   :  { %3770 = vst.msk [vmem:[#allocation2 + $0x204] sm:$0xf] %vm2577_vm4, %v9069_v19 }
 0x3a9   :  { %3331 = vst.msk [vmem:[#allocation2 + $0x20c] sm:$0xf] %vm2577_vm4, %v9069_v19  ;;  %v2243_v30 = vmax.f32 %v2179_v27, 0.0 }
 0x3aa   :  { %v1590_v23 = vpop.f32.mrf.mxu0  ;;  %2693 = vst.msk [vmem:[#allocation2 + $0x320] sm:$0xf] %vm2577_vm4, %v8052_v25 }
 0x3ab   :  { %v2388_v24 = vrot.slane %v2243_v30, 1  ;;  %v2048_v49 = vmax.f32 %v8696_v40, %v1590_v23  ;;  %v9086_v18 = vpack.c.bf16 %v2243_v30, %v2243_v30  ;;  %2715 = vst.msk [vmem:[#allocation2 + $0x4] sm:$0xf] %vm2577_vm4, %v8052_v25 }
 0x3ac   :  { %2723 = vst.msk [vmem:[#allocation2 + $0x284] sm:$0xf] %vm2577_vm4, %v8052_v25 }
 0x3ad   :  { %v2421_v28 = vsel %vm2417_vm3, %v2388_v24, 0.0  ;;  %v2112_v48 = vmax.f32 %v1984_v36, %v2048_v49  ;;  %6822 = vmatmul.msk.bf16.gmra.mxu0 %vm939_vm2, %v7766_v17  ;;  %2964 = vst.msk [vmem:[#allocation2 + $0x44] sm:$0xf] %vm2577_vm4, %v9086_v18 }
 0x3ae   :  { %3076 = vst.msk [vmem:[#allocation2 + $0x21c] sm:$0xf] %vm2577_vm4, %v9086_v18  ;;  %v9094_v45 = vpack.c.bf16 %v2421_v28, %v2421_v28 }
 0x3af   :  { %v2180_v29 = vadd.f32 %v8780_v63, %v2112_v48  ;;  %3723 = vst.msk [vmem:[#allocation2 + $0x214] sm:$0xf] %vm2577_vm4, %v9086_v18 }
 0x3b0   :  { %3332 = vst.msk [vmem:[#allocation2 + $0x220] sm:$0xf] %vm2577_vm4, %v9094_v45 }
 0x3b1   :  { %v2244_v43 = vmax.f32 %v2180_v29, 0.0  ;;  %3771 = vst.msk [vmem:[#allocation2 + $0x218] sm:$0xf] %vm2577_vm4, %v9094_v45 }
 0x3b2   :  { %v1592_v40 = vpop.f32.mrf.mxu0  ;;  %2817 = vst.msk [vmem:[#allocation2 + $0xa4] sm:$0xf] %vm2577_vm4, %v8052_v25 }
 0x3b3   :  { %v2389_v14 = vrot.slane %v2244_v43, 1  ;;  %v9107_v62 = vpack.c.bf16 %v2244_v43, %v2244_v43  ;;  %v2049_v20 = vmax.f32 %v8705_v54, %v1592_v40  ;;  %v1986_v54 = vmax.f32 %v8190_v33, %v8440_v44  ;;  %2825 = vst.msk [vmem:[#allocation2 + $0x324] sm:$0xf] %vm2577_vm4, %v8052_v25 }
 0x3b4   :  { %3696 = vst.msk [vmem:[#allocation2 + $0x1d8] sm:$0xf] %vm2577_vm4, %v8052_v25 }
 0x3b5   :  { %v2422_v6 = vsel %vm2417_vm3, %v2389_v14, 0.0  ;;  %2965 = vst.msk [vmem:[#allocation2 + $0x58] sm:$0xf] %vm2577_vm4, %v9107_v62  ;;  %v2113_v30 = vmax.f32 %v1985_v50, %v2049_v20  ;;  %v7768_v14 = vld [vmem:[%s11416_s0 + $0x1e0] sm:$0xff]  ;;  %v2101_v20 = vmax.f32 %v8554_v2, %v8894_v55 }
 0x3b6   :  { %v9116_v12 = vpack.c.bf16 %v2422_v6, %v2422_v6  ;;  %3077 = vst.msk [vmem:[#allocation2 + $0x230] sm:$0xf] %vm2577_vm4, %v9107_v62  ;;  %v2037_v6 = vmax.f32 %v8892_v42, %v8298_v9 }
 0x3b7   :  { %3724 = vst.msk [vmem:[#allocation2 + $0x228] sm:$0xf] %vm2577_vm4, %v9107_v62  ;;  %v2181_v33 = vadd.f32 %v8780_v63, %v2113_v30  ;;  %v1989_v30 = vmax.f32 %v8209_v39, %v8465_v46 }
 0x3b8   :  { %3772 = vst.msk [vmem:[#allocation2 + $0x22c] sm:$0xf] %vm2577_vm4, %v9116_v12 }
 0x3b9   :  { %3333 = vst.msk [vmem:[#allocation2 + $0x234] sm:$0xf] %vm2577_vm4, %v9116_v12  ;;  %v2245_v36 = vmax.f32 %v2181_v33, 0.0 }
 0x3ba   :  { %v1595_v27 = vpop.f32.mrf.mxu0  ;;  %3704 = vst.msk [vmem:[#allocation2 + $0x458] sm:$0xf] %vm2577_vm4, %v8052_v25 }
 0x3bb   :  { %v2050_v17 = vmax.f32 %v8716_v1, %v1595_v27  ;;  %3728 = vst.msk [vmem:[#allocation2 + $0x278] sm:$0xf] %vm2577_vm4, %v8052_v25  ;;  %v2390_v29 = vrot.slane %v2245_v36, 1  ;;  %v9177_v43 = vpack.c.bf16 %v2245_v36, %v2245_v36 }
 0x3bc   :  { %3736 = vst.msk [vmem:[#allocation2 + $0x4f8] sm:$0xf] %vm2577_vm4, %v8052_v25 }
 0x3bd   :  { %v2114_v31 = vmax.f32 %v1986_v54, %v2050_v17  ;;  %6823 = vmatmul.msk.bf16.gmra.mxu0 %vm939_vm2, %v7767_v21  ;;  %3744 = vst.msk [vmem:[#allocation2 + $0x1dc] sm:$0xf] %vm2577_vm4, %v8052_v25  ;;  %v1988_v21 = vmax.f32 %v8202_v37, %v8456_v13  ;;  %v2423_v27 = vsel %vm2417_vm3, %v2390_v29, 0.0  ;;  %v2165_v37 = vmax.f32 %v2037_v6, %v2101_v20  ;;  %v11574_v6 = vld [vmem:[#allocation49_spill] sm:$0xff] }
 0x3be   :  { %3752 = vst.msk [vmem:[#allocation2 + $0x45c] sm:$0xf] %vm2577_vm4, %v8052_v25  ;;  %v11575_v20 = vld [vmem:[#allocation5_spill] sm:$0xff] }
 0x3bf   :  { %v2182_v44 = vadd.f32 %v8780_v63, %v2114_v31  ;;  %3776 = vst.msk [vmem:[#allocation2 + $0x27c] sm:$0xf] %vm2577_vm4, %v8052_v25  ;;  %v2233_v55 = vadd.f32 %v8780_v63, %v2165_v37 }
 0x3c0   :  { %3784 = vst.msk [vmem:[#allocation2 + $0x4fc] sm:$0xf] %vm2577_vm4, %v8052_v25 }
 0x3c1   :  { %v2246_v1 = vmax.f32 %v2182_v44, 0.0  ;;  %2966 = vst.msk [vmem:[#allocation2 + $0x6c] sm:$0xf] %vm2577_vm4, %v9177_v43 }
 0x3c2   :  { %v1597_v23 = vpop.f32.mrf.mxu0  ;;  %3078 = vst.msk [vmem:[#allocation2 + $0x244] sm:$0xf] %vm2577_vm4, %v9177_v43 }
 0x3c3   :  { %v2391_v24 = vrot.slane %v2246_v1, 1  ;;  %v9158_v49 = vpack.c.bf16 %v2246_v1, %v2246_v1  ;;  %v2051_v28 = vmax.f32 %v8725_v60, %v1597_v23  ;;  %3725 = vst.msk [vmem:[#allocation2 + $0x23c] sm:$0xf] %vm2577_vm4, %v9177_v43 }
 0x3c5   :  { %v2424_v48 = vsel %vm2417_vm3, %v2391_v24, 0.0  ;;  %2967 = vst.msk [vmem:[#allocation2 + $0x80] sm:$0xf] %vm2577_vm4, %v9158_v49  ;;  %v2115_v35 = vmax.f32 %v1987_v16, %v2051_v28  ;;  %v2297_v16 = vmax.f32 %v2233_v55, 0.0  ;;  %v7769_v24 = vld [vmem:[%s11416_s0 + $0x1e8] sm:$0xff]  ;;  %v11573_v28 = vld [vmem:[#allocation66_spill] sm:$0xff] }
 0x3c6   :  { %v9168_v53 = vpack.c.bf16 %v2424_v48, %v2424_v48  ;;  %3079 = vst.msk [vmem:[#allocation2 + $0x258] sm:$0xf] %vm2577_vm4, %v9158_v49  ;;  %v2103_v48 = vmax.f32 %v11573_v28, %v8929_v52 }
 0x3c7   :  { %3726 = vst.msk [vmem:[#allocation2 + $0x250] sm:$0xf] %vm2577_vm4, %v9158_v49  ;;  %v2183_v60 = vadd.f32 %v8780_v63, %v2115_v35  ;;  %v2459_v29 = vrot.slane %v2297_v16, 7 }
 0x3c8   :  { %3774 = vst.msk [vmem:[#allocation2 + $0x254] sm:$0xf] %vm2577_vm4, %v9168_v53 }
 0x3c9   :  { %3335 = vst.msk [vmem:[#allocation2 + $0x25c] sm:$0xf] %vm2577_vm4, %v9168_v53  ;;  %v9181_v40 = vmax.f32 %v2183_v60, 0.0  ;;  %v2458_v60 = vrot.slane %v8890_v11, 7 }
 0x3ca   :  { %v1600_v50 = vpop.f32.mrf.mxu0 }
 0x3cb   :  { %v2052_v54 = vmax.f32 %v8736_v34, %v1600_v50  ;;  %v9200_v9 = vpack.c.bf16 %v9181_v40, %v9181_v40  ;;  %v9209_v34 = vpack.c.bf16 %v2423_v27, %v2423_v27  ;;  %v1990_v50 = vmax.f32 %v11575_v20, %v11574_v6  ;;  %v8021_v6 = vld [vmem:[%s11418_s3 + $0xb8] sm:$0xff] }
 0x3cc   :  { %v2490_v37 = vsel %vm2352_vm5, 0.0, %v2458_v60  ;;  %5500 = vmatpush.bf16.msrb.mxu3 %v8021_v6 }
 0x3cd   :  { %v2116_v2 = vmax.f32 %v1988_v21, %v2052_v54  ;;  %6824 = vmatmul.msk.bf16.gmra.mxu0 %vm939_vm2, %v7768_v14  ;;  %2968 = vst.msk [vmem:[#allocation2 + $0x94] sm:$0xf] %vm2577_vm4, %v9200_v9  ;;  %v9244_v14 = vpack.c.bf16 %v2297_v16, %v2297_v16  ;;  %v11576_v21 = vld [vmem:[#allocation93_spill] sm:$0xff]  ;;  %v11577_v16 = vld [vmem:[#allocation51_spill] sm:$0xff] }
 0x3ce   :  { %3080 = vst.msk [vmem:[#allocation2 + $0x26c] sm:$0xf] %vm2577_vm4, %v9200_v9 }
 0x3cf   :  { %v2184_v13 = vadd.f32 %v8780_v63, %v2116_v2  ;;  %3727 = vst.msk [vmem:[#allocation2 + $0x264] sm:$0xf] %vm2577_vm4, %v9200_v9  ;;  %v2491_v2 = vsel %vm2352_vm5, 0.0, %v2459_v29 }
 0x3d0   :  { %3334 = vst.msk [vmem:[#allocation2 + $0x248] sm:$0xf] %vm2577_vm4, %v9209_v34  ;;  %v9261_v55 = vpack.c.bf16 %v2491_v2, %v2491_v2 }
 0x3d1   :  { %v2248_v42 = vmax.f32 %v2184_v13, 0.0  ;;  %3773 = vst.msk [vmem:[#allocation2 + $0x240] sm:$0xf] %vm2577_vm4, %v9209_v34 }
 0x3d2   :  { %v1602_v25 = vpop.f32.mrf.mxu0  ;;  %3528 = vst.msk [vmem:[#allocation2 + $0x2a4] sm:$0xf] %vm2577_vm4, %v9244_v14 }
 0x3d3   :  { %v2053_v17 = vmax.f32 %v8745_v51, %v1602_v25  ;;  %v2320_v31 = vrot.slane %v2248_v42, 7  ;;  %v9226_v33 = vpack.c.bf16 %v2248_v42, %v2248_v42  ;;  %v11572_v51 = vld [vmem:[#allocation22_spill] sm:$0xff]  ;;  %2588 = vst.msk [vmem:[#allocation2 + $0x2a8] sm:$0xf] %vm2577_vm4, %v9261_v55 }
 0x3d4   :  { %v2039_v46 = vmax.f32 %v8927_v7, %v11572_v51  ;;  %3356 = vst.msk [vmem:[#allocation2 + $0x2a0] sm:$0xf] %vm2577_vm4, %v9261_v55 }
 0x3d5   :  { %v2117_v44 = vmax.f32 %v1989_v30, %v2053_v17  ;;  %v2353_v1 = vsel %vm2352_vm5, 0.0, %v2320_v31  ;;  %3185 = vst.msk [vmem:[#allocation2 + $0xa8] sm:$0xf] %vm2577_vm4, %v9226_v33  ;;  %v7789_v30 = vld [vmem:[%s11416_s0 + $0x288] sm:$0xff]  ;;  %v9271_v17 = vpack.c.bf16 %v2490_v37, %v2490_v37 }
 0x3d6   :  { %v2833_v23 = vpack.c.bf16 %v2353_v1, %v2353_v1  ;;  %3201 = vst.msk [vmem:[#allocation2 + $0x144] sm:$0xf] %vm2577_vm4, %v9226_v33  ;;  %v2167_v13 = vmax.f32 %v2039_v46, %v2103_v48  ;;  %6845 = vmatmul.msk.bf16.vlgmr.msra.gmra.mxu2 %vm939_vm2, %v7789_v30  ;;  %v11579_v46 = vld [vmem:[#allocation95_spill] sm:$0xff]  ;;  %v11582_v37 = vld [vmem:[#allocation53_spill] sm:$0xff] }
 0x3d7   :  { %v2185_v39 = vadd.f32 %v8780_v63, %v2117_v44  ;;  %2587 = vst.msk [vmem:[#allocation2 + $0x294] sm:$0xf] %vm2577_vm4, %v9271_v17 }
 0x3d8   :  { %2865 = vrot.lane.b32.xlu0 %v2833_v23, %s8053_s30  ;;  %2929 = vst.msk [vmem:[#allocation2 + $0x140] sm:$0xf] %vm2577_vm4, %v2833_v23  ;;  %v2235_v44 = vadd.f32 %v8780_v63, %v2167_v13  ;;  %v11578_v23 = vld [vmem:[#allocation7_spill] sm:$0xff]  ;;  %v11583_v13 = vld [vmem:[#allocation9_spill] sm:$0xff] }
 0x3d9   :  { %v2249_v36 = vmax.f32 %v2185_v39, 0.0  ;;  %v1991_v39 = vmax.f32 %v11578_v23, %v11577_v16  ;;  %3355 = vst.msk [vmem:[#allocation2 + $0x28c] sm:$0xf] %vm2577_vm4, %v9271_v17 }
 0x3da   :  { %v1605_v35 = vpop.f32.mrf.mxu0  ;;  %2725 = vst.msk [vmem:[#allocation2 + $0x2ac] sm:$0xf] %vm2577_vm4, %v9244_v14 }
 0x3db   :  { %v2054_v27 = vmax.f32 %v11576_v21, %v1605_v35  ;;  %v2321_v7 = vrot.slane %v2249_v36, 7  ;;  %v9249_v54 = vpack.c.bf16 %v2249_v36, %v2249_v36  ;;  %v2299_v35 = vmax.f32 %v2235_v44, 0.0  ;;  %v11580_v21 = vld [vmem:[#allocation25_spill] sm:$0xff]  ;;  %3584 = vst.msk [vmem:[#allocation2 + $0x47c] sm:$0xf] %vm2577_vm4, %v9244_v14 }
 0x3dd   :  { %v2118_v52 = vmax.f32 %v1990_v50, %v2054_v27  ;;  %6825 = vmatmul.msk.bf16.gmra.mxu0 %vm939_vm2, %v7769_v24  ;;  %v2354_v11 = vsel %vm2352_vm5, 0.0, %v2321_v7  ;;  %3737 = vst.msk [vmem:[#allocation2 + $0x150] sm:$0xf] %vm2577_vm4, %v9249_v54  ;;  %v7770_v50 = vld [vmem:[%s11416_s0 + $0x1f0] sm:$0xff]  ;;  %v2041_v27 = vmax.f32 %v8959_v26, %v11580_v21  ;;  %v11581_v7 = vld [vmem:[#allocation69_spill] sm:$0xff] }
 0x3de   :  { %v2834_v42 = vpack.c.bf16 %v2354_v11, %v2354_v11  ;;  %3186 = vst.msk [vmem:[#allocation2 + $0xbc] sm:$0xf] %vm2577_vm4, %v9249_v54  ;;  %v2105_v2 = vmax.f32 %v11581_v7, %v8961_v3  ;;  %v9308_v11 = vpack.c.bf16 %v2299_v35, %v2299_v35 }
 0x3df   :  { %v2186_v25 = vadd.f32 %v8780_v63, %v2118_v52  ;;  %3202 = vst.msk [vmem:[#allocation2 + $0x158] sm:$0xf] %vm2577_vm4, %v9249_v54 }
 0x3e0   :  { %2867 = vrot.lane.b32.xlu0 %v2834_v42, %s8053_s30  ;;  %2930 = vst.msk [vmem:[#allocation2 + $0x154] sm:$0xf] %vm2577_vm4, %v2834_v42  ;;  %v2169_v16 = vmax.f32 %v2041_v27, %v2105_v2 }
 0x3e1   :  { %v2250_v31 = vmax.f32 %v2186_v25, 0.0  ;;  %3689 = vst.msk [vmem:[#allocation2 + $0x14c] sm:$0xf] %vm2577_vm4, %v2834_v42  ;;  %v1992_v42 = vmax.f32 %v11583_v13, %v11582_v37  ;;  %v11584_v25 = vld [vmem:[#allocation97_spill] sm:$0xff] }
 0x3e2   :  { %v1607_v1 = vpop.f32.mrf.mxu0  ;;  %3530 = vst.msk [vmem:[#allocation2 + $0x2cc] sm:$0xf] %vm2577_vm4, %v9308_v11 }
 0x3e3   :  { %v9280_v51 = vpack.c.bf16 %v2250_v31, %v2250_v31  ;;  %v2055_v36 = vmax.f32 %v11579_v46, %v1607_v1  ;;  %v2322_v24 = vrot.slane %v2250_v31, 7  ;;  %v7788_v1 = vld [vmem:[%s11416_s0 + $0x280] sm:$0xff]  ;;  %v2461_v46 = vrot.slane %v2299_v35, 7  ;;  %2727 = vst.msk [vmem:[#allocation2 + $0x2d4] sm:$0xf] %vm2577_vm4, %v9308_v11 }
 0x3e4   :  { %6844 = vmatmul.msk.bf16.gmra.mxu1 %vm939_vm2, %v7788_v1  ;;  %3586 = vst.msk [vmem:[#allocation2 + $0x4a4] sm:$0xf] %vm2577_vm4, %v9308_v11 }
 0x3e5   :  { %3738 = vst.msk [vmem:[#allocation2 + $0x164] sm:$0xf] %vm2577_vm4, %v9280_v51  ;;  %v2119_v28 = vmax.f32 %v1991_v39, %v2055_v36  ;;  %v2355_v48 = vsel %vm2352_vm5, 0.0, %v2322_v24  ;;  %v7790_v36 = vld [vmem:[%s11416_s0 + $0x290] sm:$0xff]  ;;  %v2493_v27 = vsel %vm2352_vm5, 0.0, %v2461_v46 }
 0x3e6   :  { %3187 = vst.msk [vmem:[#allocation2 + $0xd0] sm:$0xf] %vm2577_vm4, %v9280_v51  ;;  %v2835_v29 = vpack.c.bf16 %v2355_v48, %v2355_v48  ;;  %v11586_v48 = vld [vmem:[#allocation11_spill] sm:$0xff]  ;;  %6846 = vmatmul.msk.bf16.gmra.mxu2 %vm939_vm2, %v7790_v36  ;;  %v9359_v13 = vpack.c.bf16 %v2493_v27, %v2493_v27  ;;  %v2462_v36 = vrot.slane %v8957_v32, 7 }
 0x3e7   :  { %3203 = vst.msk [vmem:[#allocation2 + $0x16c] sm:$0xf] %vm2577_vm4, %v9280_v51  ;;  %v2187_v60 = vadd.f32 %v8780_v63, %v2119_v28  ;;  %v11585_v28 = vld [vmem:[#allocation55_spill] sm:$0xff] }
 0x3e8   :  { %2869 = vrot.lane.b32.xlu2 %v2835_v29, %s8053_s30  ;;  %2931 = vst.msk [vmem:[#allocation2 + $0x168] sm:$0xf] %vm2577_vm4, %v2835_v29  ;;  %v8005_v32 = vld [vmem:[%s11418_s3 + $0x38] sm:$0xff]  ;;  %v2494_v27 = vsel %vm2352_vm5, 0.0, %v2462_v36 }
 0x3e9   :  { %v2251_v20 = vmax.f32 %v2187_v60, 0.0  ;;  %3690 = vst.msk [vmem:[#allocation2 + $0x160] sm:$0xf] %vm2577_vm4, %v2835_v29  ;;  %v1993_v29 = vmax.f32 %v11586_v48, %v11585_v28  ;;  %v2237_v60 = vadd.f32 %v8780_v63, %v2169_v16  ;;  %v11589_v16 = vld [vmem:[#allocation72_spill] sm:$0xff]  ;;  %5162 = vmatpush.bf16.msrb.mxu1 %v8005_v32  ;;  %v11595_v36 = vld [vmem:[#allocation103_spill] sm:$0xff] }
 0x3ea   :  { %v1610_v52 = vpop.f32.mrf.mxu0  ;;  %2590 = vst.msk [vmem:[#allocation2 + $0x2d0] sm:$0xf] %vm2577_vm4, %v9359_v13  ;;  %v11591_v28 = vld [vmem:[#allocation12_spill] sm:$0xff] }
 0x3eb   :  { %v2056_v30 = vmax.f32 %v11584_v25, %v1610_v52  ;;  %v2323_v31 = vrot.slane %v2251_v20, 7  ;;  %v9315_v44 = vpack.c.bf16 %v2251_v20, %v2251_v20  ;;  %v11587_v20 = vld [vmem:[#allocation99_spill] sm:$0xff]  ;;  %v2301_v52 = vmax.f32 %v2237_v60, 0.0  ;;  %v1977_v25 = vpop.f32.mrf.mxu3  ;;  %3358 = vst.msk [vmem:[#allocation2 + $0x2c8] sm:$0xf] %vm2577_vm4, %v9359_v13 }
 0x3ed   :  { %v2120_v3 = vmax.f32 %v1992_v42, %v2056_v30  ;;  %6826 = vmatmul.msk.bf16.gmra.mxu0 %vm939_vm2, %v7770_v50  ;;  %v2356_v26 = vsel %vm2352_vm5, 0.0, %v2323_v31  ;;  %3739 = vst.msk [vmem:[#allocation2 + $0x178] sm:$0xf] %vm2577_vm4, %v9315_v44  ;;  %v1737_v42 = vpop.f32.mrf.mxu1  ;;  %v9372_v46 = vpack.c.bf16 %v2301_v52, %v2301_v52 }
 0x3ee   :  { %v2836_v23 = vpack.c.bf16 %v2356_v26, %v2356_v26  ;;  %3188 = vst.msk [vmem:[#allocation2 + $0xe4] sm:$0xf] %vm2577_vm4, %v9315_v44  ;;  %v11588_v26 = vld [vmem:[#allocation28_spill] sm:$0xff] }
 0x3ef   :  { %v2188_v39 = vadd.f32 %v8780_v63, %v2120_v3  ;;  %3204 = vst.msk [vmem:[#allocation2 + $0x180] sm:$0xf] %vm2577_vm4, %v9315_v44  ;;  %v7771_v3 = vld [vmem:[%s11416_s0 + $0x1f8] sm:$0xff]  ;;  %v2043_v1 = vmax.f32 %v1737_v42, %v11588_v26 }
 0x3f0   :  { %2871 = vrot.lane.b32.xlu2 %v2836_v23, %s8053_s30  ;;  %2932 = vst.msk [vmem:[#allocation2 + $0x17c] sm:$0xf] %vm2577_vm4, %v2836_v23  ;;  %v7791_v42 = vld [vmem:[%s11416_s0 + $0x298] sm:$0xff] }
 0x3f1   :  { %v2252_v24 = vmax.f32 %v2188_v39, 0.0  ;;  %3691 = vst.msk [vmem:[#allocation2 + $0x174] sm:$0xf] %vm2577_vm4, %v2836_v23  ;;  %v2107_v23 = vmax.f32 %v11589_v16, %v1977_v25  ;;  %v9406_v25 = vpack.c.bf16 %v2494_v27, %v2494_v27  ;;  %v11594_v16 = vld [vmem:[#allocation13_spill] sm:$0xff] }
 0x3f2   :  { %v1612_v6 = vpop.f32.mrf.mxu0  ;;  %3532 = vst.msk [vmem:[#allocation2 + $0x2f4] sm:$0xf] %vm2577_vm4, %v9372_v46 }
 0x3f3   :  { %v9346_v35 = vpack.c.bf16 %v2252_v24, %v2252_v24  ;;  %v2057_v50 = vmax.f32 %v11587_v20, %v1612_v6  ;;  %v2324_v21 = vrot.slane %v2252_v24, 7  ;;  %v11590_v24 = vld [vmem:[#allocation56_spill] sm:$0xff]  ;;  %2729 = vst.msk [vmem:[#allocation2 + $0x2fc] sm:$0xf] %vm2577_vm4, %v9372_v46 }
 0x3f4   :  { %v1994_v48 = vmax.f32 %v11591_v28, %v11590_v24  ;;  %3588 = vst.msk [vmem:[#allocation2 + $0x4cc] sm:$0xf] %vm2577_vm4, %v9372_v46 }
 0x3f5   :  { %3740 = vst.msk [vmem:[#allocation2 + $0x18c] sm:$0xf] %vm2577_vm4, %v9346_v35  ;;  %v2121_v7 = vmax.f32 %v1993_v29, %v2057_v50  ;;  %v2357_v2 = vsel %vm2352_vm5, 0.0, %v2324_v21  ;;  %v11592_v29 = vld [vmem:[#allocation100_spill] sm:$0xff] }
 0x3f6   :  { %3189 = vst.msk [vmem:[#allocation2 + $0xf8] sm:$0xf] %vm2577_vm4, %v9346_v35  ;;  %v2837_v37 = vpack.c.bf16 %v2357_v2, %v2357_v2  ;;  %6847 = vmatmul.msk.bf16.gmra.mxu2 %vm939_vm2, %v7791_v42 }
 0x3f7   :  { %3205 = vst.msk [vmem:[#allocation2 + $0x194] sm:$0xf] %vm2577_vm4, %v9346_v35  ;;  %v2189_v30 = vadd.f32 %v8780_v63, %v2121_v7  ;;  %v2171_v7 = vmax.f32 %v2043_v1, %v2107_v23  ;;  %v11593_v1 = vld [vmem:[#allocation57_spill] sm:$0xff] }
 0x3f8   :  { %2873 = vrot.lane.b32.xlu2 %v2837_v37, %s8053_s30  ;;  %2933 = vst.msk [vmem:[#allocation2 + $0x190] sm:$0xf] %vm2577_vm4, %v2837_v37  ;;  %v1995_v23 = vmax.f32 %v11594_v16, %v11593_v1 }
 0x3f9   :  { %v2253_v31 = vmax.f32 %v2189_v30, 0.0  ;;  %3692 = vst.msk [vmem:[#allocation2 + $0x188] sm:$0xf] %vm2577_vm4, %v2837_v37  ;;  %v2463_v30 = vrot.slane %v2301_v52, 7 }
 0x3fa   :  { %v1615_v39 = vpop.f32.mrf.mxu0  ;;  %2591 = vst.msk [vmem:[#allocation2 + $0x2e4] sm:$0xf] %vm2577_vm4, %v9406_v25 }
 0x3fb   :  { %v2058_v60 = vmax.f32 %v11592_v29, %v1615_v39  ;;  %v2325_v6 = vrot.slane %v2253_v31, 7  ;;  %v9380_v20 = vpack.c.bf16 %v2253_v31, %v2253_v31  ;;  %v2495_v28 = vsel %vm2352_vm5, 0.0, %v2463_v30  ;;  %3359 = vst.msk [vmem:[#allocation2 + $0x2dc] sm:$0xf] %vm2577_vm4, %v9406_v25 }
 0x3fd   :  { %v2122_v50 = vmax.f32 %v1994_v48, %v2058_v60  ;;  %6827 = vmatmul.msk.bf16.gmra.mxu0 %vm939_vm2, %v7771_v3  ;;  %v2358_v21 = vsel %vm2352_vm5, 0.0, %v2325_v6  ;;  %3741 = vst.msk [vmem:[#allocation2 + $0x1a0] sm:$0xf] %vm2577_vm4, %v9380_v20  ;;  %v2239_v3 = vadd.f32 %v8780_v63, %v2171_v7  ;;  %v11596_v60 = vld [vmem:[#allocation17_spill] sm:$0xff] }
 0x3fe   :  { %v9394_v2 = vpack.c.bf16 %v2358_v21, %v2358_v21  ;;  %3190 = vst.msk [vmem:[#allocation2 + $0x10c] sm:$0xf] %vm2577_vm4, %v9380_v20  ;;  %v2035_v6 = vmax.f32 %v8843_v38, %v11596_v60 }
 0x3ff   :  { %v2190_v37 = vadd.f32 %v8780_v63, %v2122_v50  ;;  %3206 = vst.msk [vmem:[#allocation2 + $0x1a8] sm:$0xf] %vm2577_vm4, %v9380_v20  ;;  %v11597_v50 = vld [vmem:[#allocation61_spill] sm:$0xff]  ;;  %v9431_v21 = vmax.f32 %v2239_v3, 0.0  ;;  %v11598_v3 = vld [vmem:[#allocation58_spill] sm:$0xff] }
 0x400   :  { %2934 = vst.msk [vmem:[#allocation2 + $0x1a4] sm:$0xf] %vm2577_vm4, %v9394_v2  ;;  %v2099_v32 = vmax.f32 %v11597_v50, %v8847_v0  ;;  %v7772_v0 = vld [vmem:[%s11416_s0 + $0x200] sm:$0xff] }
 0x401   :  { %v2254_v31 = vmax.f32 %v2190_v37, 0.0  ;;  %3693 = vst.msk [vmem:[#allocation2 + $0x19c] sm:$0xf] %vm2577_vm4, %v9394_v2  ;;  %v9440_v37 = vpack.c.bf16 %v2495_v28, %v2495_v28 }
 0x402   :  { %v1617_v26 = vpop.f32.mrf.mxu0  ;;  %v2163_v42 = vmax.f32 %v2035_v6, %v2099_v32 }
 0x403   :  { %v9416_v39 = vpack.c.bf16 %v2254_v31, %v2254_v31  ;;  %v2059_v24 = vmax.f32 %v11595_v36, %v1617_v26  ;;  %v2326_v52 = vrot.slane %v2254_v31, 7  ;;  %v2464_v31 = vrot.slane %v8984_v61, 7  ;;  %v11599_v26 = vld [vmem:[#allocation14_spill] sm:$0xff]  ;;  %2592 = vst.msk [vmem:[#allocation2 + $0x2f8] sm:$0xf] %vm2577_vm4, %v9440_v37 }
 0x404   :  { %v1996_v1 = vmax.f32 %v11599_v26, %v11598_v3  ;;  %3360 = vst.msk [vmem:[#allocation2 + $0x2f0] sm:$0xf] %vm2577_vm4, %v9440_v37 }
 0x405   :  { %3742 = vst.msk [vmem:[#allocation2 + $0x1b4] sm:$0xf] %vm2577_vm4, %v9416_v39  ;;  %v2123_v48 = vmax.f32 %v1995_v23, %v2059_v24  ;;  %v2359_v29 = vsel %vm2352_vm5, 0.0, %v2326_v52  ;;  %v2496_v52 = vsel %vm2352_vm5, 0.0, %v2464_v31  ;;  %v11601_v31 = vld [vmem:[#allocation15_spill] sm:$0xff] }
 0x406   :  { %3191 = vst.msk [vmem:[#allocation2 + $0x120] sm:$0xf] %vm2577_vm4, %v9416_v39  ;;  %v9435_v27 = vpack.c.bf16 %v2359_v29, %v2359_v29  ;;  %v9486_v32 = vpack.c.bf16 %v2496_v52, %v2496_v52 }
 0x407   :  { %3207 = vst.msk [vmem:[#allocation2 + $0x1bc] sm:$0xf] %vm2577_vm4, %v9416_v39  ;;  %v2191_v7 = vadd.f32 %v8780_v63, %v2123_v48  ;;  %v2465_v63 = vrot.slane %v9431_v21, 7  ;;  %v9474_v48 = vld [vmem:[%s11417_s2] ss:$0 sm:$0xff] }
 0x408   :  { %2935 = vst.msk [vmem:[#allocation2 + $0x1b8] sm:$0xf] %vm2577_vm4, %v9435_v27  ;;  %v2231_v29 = vadd.f32 %v9474_v48, %v2163_v42 }
 0x409   :  { %v2255_v38 = vmax.f32 %v2191_v7, 0.0  ;;  %3694 = vst.msk [vmem:[#allocation2 + $0x1b0] sm:$0xf] %vm2577_vm4, %v9435_v27  ;;  %v2497_v24 = vsel %vm2352_vm5, 0.0, %v2465_v63  ;;  %v7792_v7 = vld [vmem:[%s11416_s0 + $0x2a0] sm:$0xff]  ;;  %v11600_v63 = vld [vmem:[#allocation59_spill] sm:$0xff] }
 0x40a   :  { %v1620_v30 = vpop.f32.mrf.mxu0  ;;  %v9481_v6 = vpack.c.bf16 %v2497_v24, %v2497_v24  ;;  %6848 = vmatmul.msk.bf16.gmra.mxu2 %vm939_vm2, %v7792_v7  ;;  %v1997_v3 = vmax.f32 %v11601_v31, %v11600_v63  ;;  %2593 = vst.msk [vmem:[#allocation2 + $0x30c] sm:$0xf] %vm2577_vm4, %v9486_v32  ;;  %v8013_v7 = vld [vmem:[%s11418_s3 + $0x78] sm:$0xff] }
 0x40b   :  { %v2060_v16 = vmax.f32 %v8812_v8, %v1620_v30  ;;  %v2327_v23 = vrot.slane %v2255_v38, 7  ;;  %v9456_v36 = vpack.c.bf16 %v2255_v38, %v2255_v38  ;;  %v8004_v8 = vld [vmem:[%s11418_s3 + $0x30] sm:$0xff]  ;;  %v2525_v38 = vrot.slane %v8845_v10, 1  ;;  %3361 = vst.msk [vmem:[#allocation2 + $0x304] sm:$0xf] %vm2577_vm4, %v9486_v32  ;;  %5331 = vmatpush.bf16.msrb.mxu2 %v8013_v7 }
 0x40c   :  { %5163 = vmatpush.bf16.msrb.mxu1 %v8004_v8  ;;  %3362 = vst.msk [vmem:[#allocation2 + $0x318] sm:$0xf] %vm2577_vm4, %v9481_v6  ;;  %v2295_v30 = vmax.f32 %v2231_v29, 0.0  ;;  %v2527_v8 = vrot.slane %v8883_v22, 1  ;;  %v11604_v22 = vld [vmem:[#allocation60_spill] sm:$0xff]  ;;  %v11608_v7 = vld [vmem:[#allocation18_spill] sm:$0xff] }
 0x40d   :  { %v2124_v28 = vmax.f32 %v1996_v1, %v2060_v16  ;;  %6828 = vmatmul.msk.bf16.gmra.mxu0 %vm939_vm2, %v7772_v0  ;;  %v2360_v61 = vsel %vm2352_vm5, 0.0, %v2327_v23  ;;  %3743 = vst.msk [vmem:[#allocation2 + $0x1c8] sm:$0xf] %vm2577_vm4, %v9456_v36  ;;  %v2557_v10 = vsel %vm2417_vm3, %v2525_v38, 0.0 }
 0x40e   :  { %v9477_v60 = vpack.c.bf16 %v2360_v61, %v2360_v61  ;;  %3192 = vst.msk [vmem:[#allocation2 + $0x134] sm:$0xf] %vm2577_vm4, %v9456_v36  ;;  %v9520_v61 = vpack.c.bf16 %v2557_v10, %v2557_v10 }
 0x40f   :  { %v2192_v50 = vadd.f32 %v9474_v48, %v2124_v28  ;;  %3208 = vst.msk [vmem:[#allocation2 + $0x1d0] sm:$0xf] %vm2577_vm4, %v9456_v36 }
 0x410   :  { %2936 = vst.msk [vmem:[#allocation2 + $0x1cc] sm:$0xf] %vm2577_vm4, %v9477_v60 }
 0x411   :  { %v2256_v0 = vmax.f32 %v2192_v50, 0.0  ;;  %3695 = vst.msk [vmem:[#allocation2 + $0x1c4] sm:$0xf] %vm2577_vm4, %v9477_v60  ;;  %v7773_v50 = vld [vmem:[%s11416_s0 + $0x208] sm:$0xff] }
 0x412   :  { %v1622_v42 = vpop.f32.mrf.mxu0  ;;  %11603 = vst [vmem:[#allocation66_spill] sm:$0xff] %v9520_v61 }
 0x413   :  { %v2514_v26 = vrot.slane %v2256_v0, 1  ;;  %v2594_v1 = vpack.c.bf16 %v2256_v0, %v2256_v0  ;;  %v2061_v16 = vmax.f32 %v8830_v59, %v1622_v42  ;;  %v9513_v59 = vpack.c.bf16 %v2295_v30, %v2295_v30  ;;  %v11605_v0 = vld [vmem:[#allocation16_spill] sm:$0xff]  ;;  %2829 = vst.msk [vmem:[#allocation2 + $0x374] sm:$0xf] %vm2577_vm4, %v9520_v61 }
 0x414   :  { %v1998_v42 = vmax.f32 %v11605_v0, %v11604_v22  ;;  %3604 = vst.msk [vmem:[#allocation2 + $0x36c] sm:$0xf] %vm2577_vm4, %v9520_v61 }
 0x415   :  { %v2546_v23 = vsel %vm2417_vm3, %v2514_v26, 0.0  ;;  %2686 = vst.msk [vmem:[#allocation2 + $0xb4] sm:$0xf] %vm2577_vm4, %v2594_v1  ;;  %v2125_v24 = vmax.f32 %v1997_v3, %v2061_v16  ;;  %2625 = vrot.lane.b32.xlu1 %v2594_v1, %s8053_s30  ;;  %v2559_v26 = vsel %vm2417_vm3, %v2527_v8, 0.0  ;;  %v7793_v8 = vld [vmem:[%s11416_s0 + $0x2a8] sm:$0xff] }
 0x416   :  { %v9510_v52 = vpack.c.bf16 %v2546_v23, %v2546_v23  ;;  %3469 = vst.msk [vmem:[#allocation2 + $0xac] sm:$0xf] %vm2577_vm4, %v2594_v1 }
 0x417   :  { %3485 = vst.msk [vmem:[#allocation2 + $0x148] sm:$0xf] %vm2577_vm4, %v2594_v1  ;;  %v2193_v28 = vadd.f32 %v9474_v48, %v2125_v24  ;;  %v9552_v24 = vpack.c.bf16 %v2559_v26, %v2559_v26 }
 0x418   :  { %11602 = vst [vmem:[#allocation22_spill] sm:$0xff] %v9510_v52 }
 0x419   :  { %3593 = vst.msk [vmem:[#allocation2 + $0xb0] sm:$0xf] %vm2577_vm4, %v9510_v52  ;;  %v2257_v29 = vmax.f32 %v2193_v28, 0.0  ;;  %v2529_v28 = vrot.slane %v2295_v30, 1 }
 0x41a   :  { %2818 = vst.msk [vmem:[#allocation2 + $0xb8] sm:$0xf] %vm2577_vm4, %v9510_v52  ;;  %v1625_v38 = vpop.f32.mrf.mxu0  ;;  %6849 = vmatmul.msk.bf16.gmra.mxu2 %vm939_vm2, %v7793_v8 }
 0x41b   :  { %3484 = vst.msk [vmem:[#allocation2 + $0x3b8] sm:$0xf] %vm2577_vm4, %v9513_v59  ;;  %v2515_v63 = vrot.slane %v2257_v29, 1  ;;  %v2062_v31 = vmax.f32 %v8841_v41, %v1625_v38  ;;  %v2595_v3 = vpack.c.bf16 %v2257_v29, %v2257_v29  ;;  %v8003_v41 = vld [vmem:[%s11418_s3 + $0x28] sm:$0xff] }
 0x41c   :  { %3500 = vst.msk [vmem:[#allocation2 + $0x454] sm:$0xf] %vm2577_vm4, %v9513_v59  ;;  %5164 = vmatpush.bf16.msrb.mxu1 %v8003_v41  ;;  %v7774_v41 = vld [vmem:[%s11416_s0 + $0x210] sm:$0xff] }
 0x41d   :  { %v2547_v1 = vsel %vm2417_vm3, %v2515_v63, 0.0  ;;  %v2126_v16 = vmax.f32 %v1998_v42, %v2062_v31  ;;  %6829 = vmatmul.msk.bf16.gmra.mxu0 %vm939_vm2, %v7773_v50  ;;  %2627 = vrot.lane.b32.xlu0 %v2595_v3, %s8053_s30  ;;  %2687 = vst.msk [vmem:[#allocation2 + $0xc8] sm:$0xf] %vm2577_vm4, %v2595_v3  ;;  %v11607_v50 = vld [vmem:[#allocation62_spill] sm:$0xff]  ;;  %v2561_v63 = vsel %vm2417_vm3, %v2529_v28, 0.0  ;;  %v8011_v28 = vld [vmem:[%s11418_s3 + $0x68] sm:$0xff] }
 0x41e   :  { %3470 = vst.msk [vmem:[#allocation2 + $0xc0] sm:$0xf] %vm2577_vm4, %v2595_v3  ;;  %v9548_v10 = vpack.c.bf16 %v2547_v1, %v2547_v1  ;;  %v1999_v38 = vmax.f32 %v11608_v7, %v11607_v50  ;;  %v9583_v1 = vpack.c.bf16 %v2561_v63, %v2561_v63  ;;  %v11611_v50 = vld [vmem:[#allocation19_spill] sm:$0xff] }
 0x41f   :  { %v2194_v23 = vadd.f32 %v9474_v48, %v2126_v16  ;;  %3486 = vst.msk [vmem:[#allocation2 + $0x15c] sm:$0xf] %vm2577_vm4, %v2595_v3 }
 0x420   :  { %11606 = vst [vmem:[#allocation49_spill] sm:$0xff] %v9552_v24 }
 0x421   :  { %2819 = vst.msk [vmem:[#allocation2 + $0xcc] sm:$0xf] %vm2577_vm4, %v9548_v10  ;;  %v2258_v29 = vmax.f32 %v2194_v23, 0.0  ;;  %v8002_v23 = vld [vmem:[%s11418_s3 + $0x20] sm:$0xff] }
 0x422   :  { %3594 = vst.msk [vmem:[#allocation2 + $0xc4] sm:$0xf] %vm2577_vm4, %v9548_v10  ;;  %v1627_v22 = vpop.f32.mrf.mxu0  ;;  %5165 = vmatpush.bf16.msrb.mxu1 %v8002_v23 }
 0x423   :  { %v2516_v30 = vrot.slane %v2258_v29, 1  ;;  %v2596_v0 = vpack.c.bf16 %v2258_v29, %v2258_v29  ;;  %v2063_v42 = vmax.f32 %v8869_v5, %v1627_v22  ;;  %2831 = vst.msk [vmem:[#allocation2 + $0x39c] sm:$0xf] %vm2577_vm4, %v9552_v24  ;;  %v8012_v5 = vld [vmem:[%s11418_s3 + $0x70] sm:$0xff]  ;;  %v11610_v29 = vld [vmem:[#allocation63_spill] sm:$0xff] }
 0x424   :  { %3606 = vst.msk [vmem:[#allocation2 + $0x394] sm:$0xf] %vm2577_vm4, %v9552_v24  ;;  %5332 = vmatpush.bf16.msrb.mxu2 %v8012_v5  ;;  %v2000_v7 = vmax.f32 %v11611_v50, %v11610_v29  ;;  %v11615_v29 = vld [vmem:[#allocation111_spill] sm:$0xff] }
 0x425   :  { %v2548_v31 = vsel %vm2417_vm3, %v2516_v30, 0.0  ;;  %2688 = vst.msk [vmem:[#allocation2 + $0xdc] sm:$0xf] %vm2577_vm4, %v2596_v0  ;;  %v2127_v3 = vmax.f32 %v1999_v38, %v2063_v42  ;;  %2875 = vrot.lane.b32.xlu0 %v9394_v2, %s8053_s30  ;;  %2629 = vrot.lane.b32.xlu1 %v2596_v0, %s8053_s30 }
 0x426   :  { %v9580_v26 = vpack.c.bf16 %v2548_v31, %v2548_v31  ;;  %3471 = vst.msk [vmem:[#allocation2 + $0xd4] sm:$0xf] %vm2577_vm4, %v2596_v0 }
 0x427   :  { %11609 = vst [vmem:[#allocation5_spill] sm:$0xff] %v9583_v1  ;;  %v2195_v16 = vadd.f32 %v9474_v48, %v2127_v3  ;;  %v7794_v3 = vld [vmem:[%s11416_s0 + $0x2b0] sm:$0xff] }
 0x428   :  { %3487 = vst.msk [vmem:[#allocation2 + $0x170] sm:$0xf] %vm2577_vm4, %v2596_v0  ;;  %5333 = vmatpush.bf16.msrb.mxu2 %v8011_v28 }
 0x429   :  { %3595 = vst.msk [vmem:[#allocation2 + $0xd8] sm:$0xf] %vm2577_vm4, %v9580_v26  ;;  %v2259_v2 = vmax.f32 %v2195_v16, 0.0  ;;  %v8009_v16 = vld [vmem:[%s11418_s3 + $0x58] sm:$0xff] }
 0x42a   :  { %2820 = vst.msk [vmem:[#allocation2 + $0xe0] sm:$0xf] %vm2577_vm4, %v9580_v26  ;;  %v1630_v8 = vpop.f32.mrf.mxu0  ;;  %6850 = vmatmul.msk.bf16.gmra.mxu2 %vm939_vm2, %v7794_v3  ;;  %v8007_v3 = vld [vmem:[%s11418_s3 + $0x48] sm:$0xff] }
 0x42b   :  { %3608 = vst.msk [vmem:[#allocation2 + $0x3bc] sm:$0xf] %vm2577_vm4, %v9583_v1  ;;  %v2517_v38 = vrot.slane %v2259_v2, 1  ;;  %v2064_v22 = vmax.f32 %v8888_v15, %v1630_v8  ;;  %v2597_v30 = vpack.c.bf16 %v2259_v2, %v2259_v2  ;;  %v8010_v15 = vld [vmem:[%s11418_s3 + $0x60] sm:$0xff] }
 0x42c   :  { %5334 = vmatpush.bf16.msrb.mxu2 %v8010_v15  ;;  %v11613_v2 = vld [vmem:[#allocation64_spill] sm:$0xff]  ;;  %v8001_v15 = vld [vmem:[%s11418_s3 + $0x18] sm:$0xff] }
 0x42d   :  { %v2549_v0 = vsel %vm2417_vm3, %v2517_v38, 0.0  ;;  %v2128_v42 = vmax.f32 %v2000_v7, %v2064_v22  ;;  %6830 = vmatmul.msk.bf16.gmra.mxu0 %vm939_vm2, %v7774_v41  ;;  %2877 = vrot.lane.b32.xlu0 %v9435_v27, %s8053_s30  ;;  %2689 = vst.msk [vmem:[#allocation2 + $0xf0] sm:$0xf] %vm2577_vm4, %v2597_v30  ;;  %v11614_v41 = vld [vmem:[#allocation20_spill] sm:$0xff] }
 0x42e   :  { %2631 = vrot.lane.b32.xlu1 %v2597_v30, %s8053_s30  ;;  %3472 = vst.msk [vmem:[#allocation2 + $0xe8] sm:$0xf] %vm2577_vm4, %v2597_v30  ;;  %v9615_v63 = vpack.c.bf16 %v2549_v0, %v2549_v0  ;;  %v2001_v23 = vmax.f32 %v11614_v41, %v11613_v2  ;;  %5166 = vmatpush.bf16.msrb.mxu1 %v8001_v15  ;;  %v11620_v15 = vld [vmem:[#allocation23_spill] sm:$0xff] }
 0x42f   :  { %v2196_v31 = vadd.f32 %v9474_v48, %v2128_v42  ;;  %3488 = vst.msk [vmem:[#allocation2 + $0x184] sm:$0xf] %vm2577_vm4, %v2597_v30  ;;  %v8008_v30 = vld [vmem:[%s11418_s3 + $0x50] sm:$0xff] }
 0x430   :  { %11612 = vst [vmem:[#allocation93_spill] sm:$0xff] %v9615_v63  ;;  %5335 = vmatpush.bf16.msrb.mxu2 %v8009_v16  ;;  %v8020_v42 = vld [vmem:[%s11418_s3 + $0xb0] sm:$0xff]  ;;  %v11617_v16 = vld [vmem:[#allocation21_spill] sm:$0xff] }
 0x431   :  { %2821 = vst.msk [vmem:[#allocation2 + $0xf4] sm:$0xf] %vm2577_vm4, %v9615_v63  ;;  %v2260_v27 = vmax.f32 %v2196_v31, 0.0  ;;  %v7775_v31 = vld [vmem:[%s11416_s0 + $0x218] sm:$0xff]  ;;  %5501 = vmatpush.bf16.msrb.mxu3 %v8020_v42 }
 0x432   :  { %3596 = vst.msk [vmem:[#allocation2 + $0xec] sm:$0xf] %vm2577_vm4, %v9615_v63  ;;  %v1632_v5 = vpop.f32.mrf.mxu0  ;;  %v11619_v42 = vld [vmem:[#allocation67_spill] sm:$0xff] }
 0x433   :  { %v2518_v28 = vrot.slane %v2260_v27, 1  ;;  %v2598_v8 = vpack.c.bf16 %v2260_v27, %v2260_v27  ;;  %v2065_v50 = vmax.f32 %v11615_v29, %v1632_v5  ;;  %v11616_v5 = vld [vmem:[#allocation65_spill] sm:$0xff] }
 0x434   :  { %5336 = vmatpush.bf16.msrb.mxu2 %v8008_v30  ;;  %v2002_v2 = vmax.f32 %v11617_v16, %v11616_v5  ;;  %v8006_v30 = vld [vmem:[%s11418_s3 + $0x40] sm:$0xff] }
 0x435   :  { %v2550_v7 = vsel %vm2417_vm3, %v2518_v28, 0.0  ;;  %2690 = vst.msk [vmem:[#allocation2 + $0x104] sm:$0xf] %vm2577_vm4, %v2598_v8  ;;  %v2129_v38 = vmax.f32 %v2001_v23, %v2065_v50  ;;  %2633 = vrot.lane.b32.xlu2 %v2598_v8, %s8053_s30  ;;  %v11618_v23 = vld [vmem:[#allocation112_spill] sm:$0xff] }
 0x436   :  { %v9636_v22 = vpack.c.bf16 %v2550_v7, %v2550_v7  ;;  %3473 = vst.msk [vmem:[#allocation2 + $0xfc] sm:$0xf] %vm2577_vm4, %v2598_v8  ;;  %2879 = vrot.lane.b32.xlu1 %v9477_v60, %s8053_s30 }
 0x437   :  { %3489 = vst.msk [vmem:[#allocation2 + $0x198] sm:$0xf] %vm2577_vm4, %v2598_v8  ;;  %v2197_v0 = vadd.f32 %v9474_v48, %v2129_v38 }
 0x438   :  { %3597 = vst.msk [vmem:[#allocation2 + $0x100] sm:$0xf] %vm2577_vm4, %v9636_v22  ;;  %5337 = vmatpush.bf16.msrb.mxu2 %v8007_v3  ;;  %v11621_v3 = vld [vmem:[#allocation115_spill] sm:$0xff] }
 0x439   :  { %2822 = vst.msk [vmem:[#allocation2 + $0x108] sm:$0xf] %vm2577_vm4, %v9636_v22  ;;  %v2261_v60 = vmax.f32 %v2197_v0, 0.0 }
 0x43a   :  { %v1635_v27 = vpop.f32.mrf.mxu0 }
 0x43b   :  { %v2519_v41 = vrot.slane %v2261_v60, 1  ;;  %v2066_v28 = vmax.f32 %v11618_v23, %v1635_v27  ;;  %v2599_v8 = vpack.c.bf16 %v2261_v60, %v2261_v60  ;;  %v2003_v60 = vmax.f32 %v11620_v15, %v11619_v42 }
 0x43c   :  { %5338 = vmatpush.bf16.msrb.mxu2 %v8006_v30 }
 0x43d   :  { %v2551_v29 = vsel %vm2417_vm3, %v2519_v41, 0.0  ;;  %v2130_v50 = vmax.f32 %v2002_v2, %v2066_v28  ;;  %6831 = vmatmul.msk.bf16.gmra.mxu0 %vm939_vm2, %v7775_v31  ;;  %2635 = vrot.lane.b32.xlu2 %v2599_v8, %s8053_s30  ;;  %2691 = vst.msk [vmem:[#allocation2 + $0x118] sm:$0xf] %vm2577_vm4, %v2599_v8 }
 0x43e   :  { %2993 = vrot.lane.b32.xlu1 %v9026_v47, %s8053_s30  ;;  %3474 = vst.msk [vmem:[#allocation2 + $0x110] sm:$0xf] %vm2577_vm4, %v2599_v8  ;;  %v9672_v7 = vpack.c.bf16 %v2551_v29, %v2551_v29 }
 0x43f   :  { %v2198_v38 = vadd.f32 %v9474_v48, %v2130_v50  ;;  %3490 = vst.msk [vmem:[#allocation2 + $0x1ac] sm:$0xf] %vm2577_vm4, %v2599_v8  ;;  %v11623_v50 = vld [vmem:[#allocation68_spill] sm:$0xff] }
 0x440   :  { %2823 = vst.msk [vmem:[#allocation2 + $0x11c] sm:$0xf] %vm2577_vm4, %v9672_v7 }
 0x441   :  { %v2262_v0 = vmax.f32 %v2198_v38, 0.0  ;;  %3598 = vst.msk [vmem:[#allocation2 + $0x114] sm:$0xf] %vm2577_vm4, %v9672_v7  ;;  %v11624_v38 = vld [vmem:[#allocation24_spill] sm:$0xff] }
 0x442   :  { %v1637_v47 = vpop.f32.mrf.mxu0  ;;  %v2004_v30 = vmax.f32 %v11624_v38, %v11623_v50 }
 0x443   :  { %v2520_v31 = vrot.slane %v2262_v0, 1  ;;  %v2600_v27 = vpack.c.bf16 %v2262_v0, %v2262_v0  ;;  %v2067_v5 = vmax.f32 %v11621_v3, %v1637_v47  ;;  %v11625_v0 = vld [vmem:[#allocation116_spill] sm:$0xff] }
 0x445   :  { %v2552_v16 = vsel %vm2417_vm3, %v2520_v31, 0.0  ;;  %2692 = vst.msk [vmem:[#allocation2 + $0x12c] sm:$0xf] %vm2577_vm4, %v2600_v27  ;;  %v2131_v2 = vmax.f32 %v2003_v60, %v2067_v5  ;;  %2995 = vrot.lane.b32.xlu2 %v9044_v56, %s8053_s30  ;;  %2637 = vrot.lane.b32.xlu0 %v2600_v27, %s8053_s30  ;;  %v7776_v56 = vld [vmem:[%s11416_s0 + $0x220] sm:$0xff]  ;;  %v2392_v60 = vrot.slane %v9181_v40, 1  ;;  %v8000_v31 = vld [vmem:[%s11418_s3 + $0x10] sm:$0xff] }
 0x446   :  { %v9691_v41 = vpack.c.bf16 %v2552_v16, %v2552_v16  ;;  %3475 = vst.msk [vmem:[#allocation2 + $0x124] sm:$0xf] %vm2577_vm4, %v2600_v27  ;;  %2997 = vrot.lane.b32.xlu1 %v9063_v4, %s8053_s30  ;;  %5167 = vmatpush.bf16.msrb.mxu1 %v8000_v31  ;;  %v11626_v5 = vld [vmem:[#allocation70_spill] sm:$0xff]  ;;  %v11629_v31 = vld [vmem:[#allocation71_spill] sm:$0xff] }
 0x447   :  { %3491 = vst.msk [vmem:[#allocation2 + $0x1c0] sm:$0xf] %vm2577_vm4, %v2600_v27  ;;  %v2199_v23 = vadd.f32 %v9474_v48, %v2131_v2 }
 0x448   :  { %11622 = vst [vmem:[#allocation51_spill] sm:$0xff] %v9691_v41 }
 0x449   :  { %3599 = vst.msk [vmem:[#allocation2 + $0x128] sm:$0xf] %vm2577_vm4, %v9691_v41  ;;  %v9705_v28 = vmax.f32 %v2199_v23, 0.0  ;;  %v11628_v23 = vld [vmem:[#allocation118_spill] sm:$0xff] }
 0x44a   :  { %2824 = vst.msk [vmem:[#allocation2 + $0x130] sm:$0xf] %vm2577_vm4, %v9691_v41  ;;  %v2866_v8 = vpop.permute.xlu0 %2865  ;;  %v1640_v4 = vpop.f32.mrf.mxu0 }
 0x44b   :  { %2913 = vst.msk [vmem:[#allocation2 + $0x4] sm:$0xf] %vm2668_vm6, %v2866_v8  ;;  %v9710_v29 = vpack.c.bf16 %v9705_v28, %v9705_v28  ;;  %v2068_v47 = vmax.f32 %v11625_v0, %v1640_v4  ;;  %v2425_v4 = vsel %vm2417_vm3, %v2392_v60, 0.0 }
 0x44d   :  { %6832 = vmatmul.msk.bf16.gmra.mxu0 %vm939_vm2, %v7776_v56  ;;  %2999 = vrot.lane.b32.xlu2 %v9086_v18, %s8053_s30  ;;  %3476 = vst.msk [vmem:[#allocation2 + $0x138] sm:$0xf] %vm2577_vm4, %v9710_v29  ;;  %v2132_v42 = vmax.f32 %v2004_v30, %v2068_v47  ;;  %v11627_v18 = vld [vmem:[#allocation26_spill] sm:$0xff]  ;;  %v9741_v47 = vpack.c.bf16 %v2425_v4, %v2425_v4 }
 0x44e   :  { %3492 = vst.msk [vmem:[#allocation2 + $0x1d4] sm:$0xf] %vm2577_vm4, %v9710_v29  ;;  %v2005_v16 = vmax.f32 %v11627_v18, %v11626_v5  ;;  %v11631_v5 = vld [vmem:[#allocation119_spill] sm:$0xff] }
 0x44f   :  { %v2200_v15 = vadd.f32 %v9474_v48, %v2132_v42  ;;  %v2870_v42 = vpop.permute.xlu2 %2869  ;;  %3336 = vst.msk [vmem:[#allocation2 + $0x270] sm:$0xf] %vm2577_vm4, %v9741_v47 }
 0x450   :  { %3775 = vst.msk [vmem:[#allocation2 + $0x268] sm:$0xf] %vm2577_vm4, %v9741_v47 }
 0x451   :  { %v2264_v27 = vmax.f32 %v2200_v15, 0.0 }
 0x452   :  { %v1642_v3 = vpop.f32.mrf.mxu0  ;;  %v2868_v30 = vpop.permute.xlu0 %2867 }
 0x453   :  { %v2701_v2 = vpack.c.bf16 %v2264_v27, %v2264_v27  ;;  %v2069_v56 = vmax.f32 %v11628_v23, %v1642_v3  ;;  %v2450_v8 = vrot.slane %v2264_v27, 7  ;;  %v11630_v27 = vld [vmem:[#allocation27_spill] sm:$0xff] }
 0x454   :  { %v2006_v3 = vmax.f32 %v11630_v27, %v11629_v31  ;;  %v11634_v31 = vld [vmem:[#allocation29_spill] sm:$0xff] }
 0x455   :  { %3001 = vrot.lane.b32.xlu2 %v9107_v62, %s8053_s30  ;;  %3519 = vst.msk [vmem:[#allocation2 + $0x10] sm:$0xf] %vm2577_vm4, %v2701_v2  ;;  %v2133_v40 = vmax.f32 %v2005_v16, %v2069_v56  ;;  %2745 = vrot.lane.b32.xlu0 %v2701_v2, %s8053_s30  ;;  %v2482_v50 = vsel %vm2352_vm5, 0.0, %v2450_v8  ;;  %v7777_v62 = vld [vmem:[%s11416_s0 + $0x228] sm:$0xff]  ;;  %v7838_v8 = vld [vmem:[#allocation2 + $0x4] sm:$0xf] }
 0x456   :  { %2716 = vst.msk [vmem:[#allocation2 + $0x18] sm:$0xf] %vm2577_vm4, %v2701_v2  ;;  %v9737_v38 = vpack.c.bf16 %v2482_v50, %v2482_v50 }
 0x457   :  { %3575 = vst.msk [vmem:[#allocation2 + $0x1e8] sm:$0xf] %vm2577_vm4, %v2701_v2  ;;  %v2201_v0 = vadd.f32 %v9474_v48, %v2133_v40 }
 0x458   :  { %2914 = vst.msk [vmem:[#allocation2 + $0x18] sm:$0xf] %vm2668_vm6, %v2868_v30  ;;  %v7999_v30 = vld [vmem:[%s11418_s3 + $0x8] sm:$0xff] }
 0x459   :  { %v2265_v15 = vmax.f32 %v2201_v0, 0.0  ;;  %2579 = vst.msk [vmem:[#allocation2 + $0x14] sm:$0xf] %vm2577_vm4, %v9737_v38  ;;  %v9772_v0 = vpack.c.bf16 %v9431_v21, %v9431_v21  ;;  %5168 = vmatpush.bf16.msrb.mxu1 %v7999_v30  ;;  %v11637_v30 = vld [vmem:[#allocation31_spill] sm:$0xff] }
 0x45a   :  { %v1645_v60 = vpop.f32.mrf.mxu0  ;;  %3347 = vst.msk [vmem:[#allocation2 + $0xc] sm:$0xf] %vm2577_vm4, %v9737_v38 }
 0x45b   :  { %v2070_v18 = vmax.f32 %v11631_v5, %v1645_v60  ;;  %v2702_v16 = vpack.c.bf16 %v2265_v15, %v2265_v15  ;;  %v2451_v2 = vrot.slane %v2265_v15, 7  ;;  %11632 = vst [vmem:[#allocation7_spill] sm:$0xff] %v9772_v0  ;;  %v11633_v60 = vld [vmem:[#allocation73_spill] sm:$0xff] }
 0x45c   :  { %v2007_v27 = vmax.f32 %v11634_v31, %v11633_v60  ;;  %v11635_v5 = vld [vmem:[#allocation121_spill] sm:$0xff]  ;;  %3534 = vst.msk [vmem:[#allocation2 + $0x31c] sm:$0xf] %vm2577_vm4, %v9772_v0  ;;  %v11638_v60 = vld [vmem:[#allocation122_spill] sm:$0xff] }
 0x45d   :  { %6833 = vmatmul.msk.bf16.gmra.mxu0 %vm939_vm2, %v7777_v62  ;;  %v2134_v23 = vmax.f32 %v2006_v3, %v2070_v18  ;;  %2747 = vrot.lane.b32.xlu0 %v2702_v16, %s8053_s30  ;;  %2717 = vst.msk [vmem:[#allocation2 + $0x2c] sm:$0xf] %vm2577_vm4, %v2702_v16  ;;  %v2483_v56 = vsel %vm2352_vm5, 0.0, %v2451_v2  ;;  %v2872_v3 = vpop.permute.xlu2 %2871 }
 0x45e   :  { %2915 = vst.msk [vmem:[#allocation2 + $0x2c] sm:$0xf] %vm2668_vm6, %v2870_v42  ;;  %v9763_v4 = vpack.c.bf16 %v2483_v56, %v2483_v56  ;;  %v7778_v56 = vld [vmem:[%s11416_s0 + $0x230] sm:$0xff] }
 0x45f   :  { %v2202_v40 = vadd.f32 %v9474_v48, %v2134_v23  ;;  %3520 = vst.msk [vmem:[#allocation2 + $0x24] sm:$0xf] %vm2577_vm4, %v2702_v16  ;;  %v6896_v50 = vld [vmem:[#allocation2 + $0x14] sm:$0xf0]  ;;  %v2624_v23 = vpop.permute.xlu1 %2623 }
 0x460   :  { %3576 = vst.msk [vmem:[#allocation2 + $0x1fc] sm:$0xf] %vm2577_vm4, %v2702_v16  ;;  %v6899_v62 = vor.u32 %v7838_v8, %v6896_v50  ;;  %v11636_v50 = vld [vmem:[#allocation75_spill] sm:$0xff] }
 0x461   :  { %v9775_v42 = vmax.f32 %v2202_v40, 0.0  ;;  %2580 = vst.msk [vmem:[#allocation2 + $0x28] sm:$0xf] %vm2577_vm4, %v9763_v4 }
 0x462   :  { %5339 = vmatmul.bf16.vlgmr.msrb.gmra.mxu2 %v6899_v62  ;;  %v1647_v15 = vpop.f32.mrf.mxu0  ;;  %3348 = vst.msk [vmem:[#allocation2 + $0x20] sm:$0xf] %vm2577_vm4, %v9763_v4  ;;  %v2008_v62 = vmax.f32 %v11637_v30, %v11636_v50  ;;  %v11640_v50 = vld [vmem:[#allocation33_spill] sm:$0xff] }
 0x463   :  { %v2703_v21 = vpack.c.bf16 %v9775_v42, %v9775_v42  ;;  %v2071_v18 = vmax.f32 %v11635_v5, %v1647_v15  ;;  %3590 = vst.msk [vmem:[#allocation2 + $0x4f4] sm:$0xf] %vm2577_vm4, %v9772_v0 }
 0x464   :  { %2669 = vst.msk [vmem:[#allocation2] sm:$0xf] %vm2668_vm6, %v2624_v23 }
 0x465   :  { %2718 = vst.msk [vmem:[#allocation2 + $0x40] sm:$0xf] %vm2577_vm4, %v2703_v21  ;;  %v2135_v16 = vmax.f32 %v2007_v27, %v2071_v18  ;;  %3003 = vrot.lane.b32.xlu0 %v9177_v43, %s8053_s30  ;;  %2749 = vrot.lane.b32.xlu1 %v2703_v21, %s8053_s30  ;;  %v7998_v43 = vld [vmem:[%s11418_s3] sm:$0xff]  ;;  %v7843_v27 = vld [vmem:[#allocation2 + $0x2c] sm:$0xf] }
 0x466   :  { %2916 = vst.msk [vmem:[#allocation2 + $0x40] sm:$0xf] %vm2668_vm6, %v2872_v3  ;;  %5169 = vmatpush.bf16.msrb.mxu1 %v7998_v43  ;;  %v2874_v3 = vpop.permute.xlu2 %2873 }
 0x467   :  { %3521 = vst.msk [vmem:[#allocation2 + $0x38] sm:$0xf] %vm2577_vm4, %v2703_v21  ;;  %v2203_v2 = vadd.f32 %v9474_v48, %v2135_v16 }
 0x468   :  { %3577 = vst.msk [vmem:[#allocation2 + $0x210] sm:$0xf] %vm2577_vm4, %v2703_v21 }
 0x469   :  { %v2267_v8 = vmax.f32 %v2203_v2, 0.0  ;;  %2677 = vst.msk [vmem:[#allocation2 + $0x280] sm:$0xf] %vm2668_vm6, %v2624_v23 }
 0x46a   :  { %v1650_v40 = vpop.f32.mrf.mxu0  ;;  %2787 = vst.msk [vmem:[#allocation2 + $0xa0] sm:$0xf] %vm2668_vm6, %v2624_v23 }
 0x46b   :  { %v2704_v15 = vpack.c.bf16 %v2267_v8, %v2267_v8  ;;  %v2072_v31 = vmax.f32 %v11638_v60, %v1650_v40  ;;  %2795 = vst.msk [vmem:[#allocation2 + $0x320] sm:$0xf] %vm2668_vm6, %v2624_v23  ;;  %v2453_v18 = vrot.slane %v2267_v8, 7  ;;  %v11639_v8 = vld [vmem:[#allocation77_spill] sm:$0xff]  ;;  %v11641_v60 = vld [vmem:[#allocation123_spill] sm:$0xff] }
 0x46c   :  { %3712 = vst.msk [vmem:[#allocation2 + $0x1d8] sm:$0xf] %vm2668_vm6, %v2624_v23  ;;  %v2009_v30 = vmax.f32 %v11640_v50, %v11639_v8  ;;  %v11644_v50 = vld [vmem:[#allocation124_spill] sm:$0xff] }
 0x46d   :  { %6834 = vmatmul.msk.bf16.gmra.mxu0 %vm939_vm2, %v7778_v56  ;;  %2719 = vst.msk [vmem:[#allocation2 + $0x54] sm:$0xf] %vm2577_vm4, %v2704_v15  ;;  %v2136_v21 = vmax.f32 %v2008_v62, %v2072_v31  ;;  %3005 = vrot.lane.b32.xlu0 %v9158_v49, %s8053_s30  ;;  %v6916_v5 = vld [vmem:[#allocation2 + $0x3c] sm:$0xf0]  ;;  %v2485_v43 = vsel %vm2352_vm5, 0.0, %v2453_v18  ;;  %v2452_v49 = vrot.slane %v9775_v42, 7 }
 0x46e   :  { %2751 = vrot.lane.b32.xlu1 %v2704_v15, %s8053_s30  ;;  %2917 = vst.msk [vmem:[#allocation2 + $0x54] sm:$0xf] %vm2668_vm6, %v2874_v3  ;;  %v6919_v16 = vor.u32 %v7843_v27, %v6916_v5  ;;  %v8033_v27 = vld [vmem:[%s11418_s3 + $0x118] sm:$0xff]  ;;  %v2566_v42 = vpack.c.bf16 %v2485_v43, %v2485_v43 }
 0x46f   :  { %3522 = vst.msk [vmem:[#allocation2 + $0x4c] sm:$0xf] %vm2577_vm4, %v2704_v15  ;;  %v2204_v2 = vadd.f32 %v9474_v48, %v2136_v21  ;;  %v2484_v5 = vsel %vm2352_vm5, 0.0, %v2452_v49  ;;  %5842 = vmatpush.bf16.msra.mxu2 %v8033_v27  ;;  %v11642_v43 = vld [vmem:[#allocation79_spill] sm:$0xff] }
 0x470   :  { %3578 = vst.msk [vmem:[#allocation2 + $0x224] sm:$0xf] %vm2577_vm4, %v2704_v15  ;;  %v11643_v49 = vld [vmem:[#allocation35_spill] sm:$0xff] }
 0x471   :  { %v2268_v56 = vmax.f32 %v2204_v2, 0.0  ;;  %3720 = vst.msk [vmem:[#allocation2 + $0x458] sm:$0xf] %vm2668_vm6, %v2624_v23 }
 0x472   :  { %5344 = vmatmul.bf16.gmra.mxu2 %v6919_v16  ;;  %v1652_v40 = vpop.f32.mrf.mxu0  ;;  %3760 = vst.msk [vmem:[#allocation2 + $0x278] sm:$0xf] %vm2668_vm6, %v2624_v23  ;;  %v7779_v16 = vld [vmem:[%s11416_s0 + $0x238] sm:$0xff] }
 0x473   :  { %v2705_v62 = vpack.c.bf16 %v2268_v56, %v2268_v56  ;;  %v2073_v31 = vmax.f32 %v11641_v60, %v1652_v40  ;;  %v2454_v15 = vrot.slane %v2268_v56, 7  ;;  %3768 = vst.msk [vmem:[#allocation2 + $0x4f8] sm:$0xf] %vm2668_vm6, %v2624_v23  ;;  %v2010_v40 = vmax.f32 %v11643_v49, %v11642_v43  ;;  %v9878_v49 = vpop.f32.mrf.mxu2 }
 0x474   :  { %2582 = vst.msk [vmem:[#allocation2 + $0x50] sm:$0xf] %vm2577_vm4, %v2566_v42 }
 0x475   :  { %3523 = vst.msk [vmem:[#allocation2 + $0x60] sm:$0xf] %vm2577_vm4, %v2705_v62  ;;  %v2137_v3 = vmax.f32 %v2009_v30, %v2073_v31  ;;  %2753 = vrot.lane.b32.xlu2 %v2705_v62, %s8053_s30  ;;  %v2486_v21 = vsel %vm2352_vm5, 0.0, %v2454_v15  ;;  %v8029_v31 = vld [vmem:[%s11418_s3 + $0xf8] sm:$0xff] }
 0x476   :  { %3007 = vrot.lane.b32.xlu1 %v9200_v9, %s8053_s30  ;;  %2720 = vst.msk [vmem:[#allocation2 + $0x68] sm:$0xf] %vm2577_vm4, %v2705_v62  ;;  %v9839_v18 = vpack.c.bf16 %v2486_v21, %v2486_v21  ;;  %v2565_v9 = vpack.c.bf16 %v2484_v5, %v2484_v5  ;;  %5669 = vmatpush.bf16.msra.mxu1 %v8029_v31  ;;  %v11645_v5 = vld [vmem:[#allocation81_spill] sm:$0xff] }
 0x477   :  { %3579 = vst.msk [vmem:[#allocation2 + $0x238] sm:$0xf] %vm2577_vm4, %v2705_v62  ;;  %v2205_v23 = vadd.f32 %v9474_v48, %v2137_v3 }
 0x478   :  { %3350 = vst.msk [vmem:[#allocation2 + $0x48] sm:$0xf] %vm2577_vm4, %v2566_v42 }
 0x479   :  { %v2269_v2 = vmax.f32 %v2205_v23, 0.0  ;;  %2583 = vst.msk [vmem:[#allocation2 + $0x64] sm:$0xf] %vm2577_vm4, %v9839_v18  ;;  %v11646_v23 = vld [vmem:[#allocation37_spill] sm:$0xff] }
 0x47a   :  { %v1655_v56 = vpop.f32.mrf.mxu0  ;;  %3351 = vst.msk [vmem:[#allocation2 + $0x5c] sm:$0xf] %vm2577_vm4, %v9839_v18 }
 0x47b   :  { %v2706_v8 = vpack.c.bf16 %v2269_v2, %v2269_v2  ;;  %v2074_v30 = vmax.f32 %v11644_v50, %v1655_v56  ;;  %v2455_v62 = vrot.slane %v2269_v2, 7  ;;  %2581 = vst.msk [vmem:[#allocation2 + $0x3c] sm:$0xf] %vm2577_vm4, %v2565_v9  ;;  %v11647_v56 = vld [vmem:[#allocation125_spill] sm:$0xff] }
 0x47c   :  { %3349 = vst.msk [vmem:[#allocation2 + $0x34] sm:$0xf] %vm2577_vm4, %v2565_v9 }
 0x47d   :  { %6835 = vmatmul.msk.bf16.gmra.mxu0 %vm939_vm2, %v7779_v16  ;;  %3524 = vst.msk [vmem:[#allocation2 + $0x74] sm:$0xf] %vm2577_vm4, %v2706_v8  ;;  %v2138_v60 = vmax.f32 %v2010_v40, %v2074_v30  ;;  %2755 = vrot.lane.b32.xlu2 %v2706_v8, %s8053_s30  ;;  %v2487_v15 = vsel %vm2352_vm5, 0.0, %v2455_v62  ;;  %v2011_v16 = vmax.f32 %v11646_v23, %v11645_v5  ;;  %v1740_v62 = vpop.f32.mrf.mxu1 }
 0x47e   :  { %3379 = vrot.lane.b32.xlu1 %v9737_v38, %s8053_s30  ;;  %2721 = vst.msk [vmem:[#allocation2 + $0x7c] sm:$0xf] %vm2577_vm4, %v2706_v8  ;;  %v9866_v27 = vpack.c.bf16 %v2487_v15, %v2487_v15  ;;  %v8019_v15 = vld [vmem:[%s11418_s3 + $0xa8] sm:$0xff] }
 0x47f   :  { %3580 = vst.msk [vmem:[#allocation2 + $0x24c] sm:$0xf] %vm2577_vm4, %v2706_v8  ;;  %v2206_v3 = vadd.f32 %v9474_v48, %v2138_v60  ;;  %5502 = vmatpush.bf16.msrb.mxu3 %v8019_v15 }
 0x480   :  { %2584 = vst.msk [vmem:[#allocation2 + $0x78] sm:$0xf] %vm2577_vm4, %v9866_v27 }
 0x481   :  { %v2270_v38 = vmax.f32 %v2206_v3, 0.0  ;;  %3352 = vst.msk [vmem:[#allocation2 + $0x70] sm:$0xf] %vm2577_vm4, %v9866_v27 }
 0x482   :  { %v1657_v21 = vpop.f32.mrf.mxu0 }
 0x483   :  { %v2707_v2 = vpack.c.bf16 %v2270_v38, %v2270_v38  ;;  %v2075_v43 = vmax.f32 %v11647_v56, %v1657_v21  ;;  %v2456_v40 = vrot.slane %v2270_v38, 7  ;;  %v11648_v38 = vld [vmem:[#allocation74_spill] sm:$0xff]  ;;  %v9908_v56 = vpop.f32.mrf.mxu2 }
 0x484   :  { %v11649_v21 = vld [vmem:[#allocation30_spill] sm:$0xff] }
 0x485   :  { %3525 = vst.msk [vmem:[#allocation2 + $0x88] sm:$0xf] %vm2577_vm4, %v2707_v2  ;;  %v2139_v8 = vmax.f32 %v2011_v16, %v2075_v43  ;;  %3381 = vrot.lane.b32.xlu2 %v9763_v4, %s8053_s30  ;;  %v2488_v50 = vsel %vm2352_vm5, 0.0, %v2456_v40  ;;  %2757 = vrot.lane.b32.xlu0 %v2707_v2, %s8053_s30  ;;  %v2076_v5 = vmax.f32 %v11649_v21, %v11648_v38 }
 0x486   :  { %3385 = vrot.lane.b32.xlu1 %v2566_v42, %s8053_s30  ;;  %2722 = vst.msk [vmem:[#allocation2 + $0x90] sm:$0xf] %vm2577_vm4, %v2707_v2  ;;  %v2569_v31 = vpack.c.bf16 %v2488_v50, %v2488_v50  ;;  %v7780_v42 = vld [vmem:[%s11416_s0 + $0x240] sm:$0xff] }
 0x487   :  { %v2626_v30 = vpop.permute.xlu1 %2625  ;;  %3581 = vst.msk [vmem:[#allocation2 + $0x260] sm:$0xf] %vm2577_vm4, %v2707_v2  ;;  %v2207_v60 = vadd.f32 %v9474_v48, %v2139_v8  ;;  %v6894_v50 = vld [vmem:[#allocation2] sm:$0xf] }
 0x488   :  { %2670 = vst.msk [vmem:[#allocation2 + $0x14] sm:$0xf] %vm2668_vm6, %v2626_v30 }
 0x489   :  { %v9893_v4 = vmax.f32 %v2207_v60, 0.0  ;;  %3453 = vst.msk [vmem:[#allocation2 + $0xc] sm:$0xf] %vm2668_vm6, %v2626_v30 }
 0x48a   :  { %3501 = vst.msk [vmem:[#allocation2 + $0x1e4] sm:$0xf] %vm2668_vm6, %v2626_v30  ;;  %v1660_v3 = vpop.f32.mrf.mxu0 }
 0x48b   :  { %v2012_v23 = vmax.f32 %v1660_v3, %v1740_v62  ;;  %2585 = vst.msk [vmem:[#allocation2 + $0x8c] sm:$0xf] %vm2577_vm4, %v2569_v31  ;;  %v2457_v16 = vrot.slane %v9893_v4, 7  ;;  %v1742_v62 = vpop.f32.mrf.mxu1 }
 0x48c   :  { %3353 = vst.msk [vmem:[#allocation2 + $0x84] sm:$0xf] %vm2577_vm4, %v2569_v31 }
 0x48d   :  { %6836 = vmatmul.msk.bf16.gmra.mxu0 %vm939_vm2, %v7780_v42  ;;  %v9906_v2 = vmax.f32 %v2012_v23, %v2076_v5  ;;  %3387 = vrot.lane.b32.xlu2 %v9839_v18, %s8053_s30  ;;  %v2489_v8 = vsel %vm2352_vm5, 0.0, %v2457_v16 }
 0x48e   :  { %3391 = vrot.lane.b32.xlu1 %v2569_v31, %s8053_s30  ;;  %3383 = vrot.lane.b32.xlu0 %v2565_v9, %s8053_s30  ;;  %v3345_v42 = vpack.c.bf16 %v2489_v8, %v2489_v8  ;;  %v11650_v9 = vld [vmem:[#allocation76_spill] sm:$0xff]  ;;  %v11652_v8 = vld [vmem:[#allocation78_spill] sm:$0xff] }
 0x48f   :  { %v2628_v43 = vpop.permute.xlu0 %2627  ;;  %v2634_v40 = vpop.permute.xlu2 %2633  ;;  %v7840_v30 = vld [vmem:[#allocation2 + $0x10] sm:$0xf0]  ;;  %v11651_v31 = vld [vmem:[#allocation32_spill] sm:$0xff] }
 0x490   :  { %2671 = vst.msk [vmem:[#allocation2 + $0x28] sm:$0xf] %vm2668_vm6, %v2628_v43  ;;  %v6895_v60 = vor.u32 %v7840_v30, %v6894_v50  ;;  %v2077_v15 = vmax.f32 %v11651_v31, %v11650_v9 }
 0x491   :  { %3454 = vst.msk [vmem:[#allocation2 + $0x20] sm:$0xf] %vm2668_vm6, %v2628_v43 }
 0x492   :  { %3502 = vst.msk [vmem:[#allocation2 + $0x1f8] sm:$0xf] %vm2668_vm6, %v2628_v43  ;;  %v1662_v18 = vpop.f32.mrf.mxu0  ;;  %5170 = vmatmul.bf16.vlgmr.msrb.gmra.mxu1 %v6895_v60  ;;  %v9931_v43 = vpop.f32.mrf.mxu2 }
 0x493   :  { %2674 = vst.msk [vmem:[#allocation2 + $0x64] sm:$0xf] %vm2668_vm6, %v2634_v40  ;;  %v2013_v3 = vmax.f32 %v1662_v18, %v1742_v62 }
 0x494   :  { %3457 = vst.msk [vmem:[#allocation2 + $0x5c] sm:$0xf] %vm2668_vm6, %v2634_v40 }
 0x495   :  { %3505 = vst.msk [vmem:[#allocation2 + $0x234] sm:$0xf] %vm2668_vm6, %v2634_v40  ;;  %v2141_v38 = vmax.f32 %v2013_v3, %v2077_v15  ;;  %3393 = vrot.lane.b32.xlu2 %v3345_v42, %s8053_s30 }
 0x496   :  { %3123 = vrot.lane.b32.xlu1 %v9249_v54, %s8053_s30  ;;  %3354 = vst.msk [vmem:[#allocation2 + $0x98] sm:$0xf] %vm2577_vm4, %v3345_v42  ;;  %3389 = vrot.lane.b32.xlu0 %v9866_v27, %s8053_s30  ;;  %v11653_v27 = vld [vmem:[#allocation34_spill] sm:$0xff] }
 0x497   :  { %v2876_v21 = vpop.permute.xlu0 %2875  ;;  %v2630_v5 = vpop.permute.xlu1 %2629  ;;  %v2209_v23 = vadd.f32 %v9474_v48, %v2141_v38  ;;  %v2078_v50 = vmax.f32 %v11653_v27, %v11652_v8  ;;  %v6914_v3 = vld [vmem:[#allocation2 + $0x28] sm:$0xf] }
 0x498   :  { %2918 = vst.msk [vmem:[#allocation2 + $0x68] sm:$0xf] %vm2668_vm6, %v2876_v21  ;;  %v2636_v16 = vpop.permute.xlu2 %2635 }
 0x499   :  { %2672 = vst.msk [vmem:[#allocation2 + $0x3c] sm:$0xf] %vm2668_vm6, %v2630_v5  ;;  %v9934_v40 = vmax.f32 %v2209_v23, 0.0  ;;  %v11654_v23 = vld [vmem:[#allocation80_spill] sm:$0xff] }
 0x49a   :  { %3455 = vst.msk [vmem:[#allocation2 + $0x34] sm:$0xf] %vm2668_vm6, %v2630_v5  ;;  %v1665_v54 = vpop.f32.mrf.mxu0 }
 0x49b   :  { %3503 = vst.msk [vmem:[#allocation2 + $0x20c] sm:$0xf] %vm2668_vm6, %v2630_v5  ;;  %v2014_v30 = vmax.f32 %v1665_v54, %v9878_v49  ;;  %v9944_v62 = vpack.c.bf16 %v9934_v40, %v9934_v40  ;;  %v7848_v49 = vld [vmem:[#allocation2 + $0x54] sm:$0xf] }
 0x49c   :  { %2675 = vst.msk [vmem:[#allocation2 + $0x78] sm:$0xf] %vm2668_vm6, %v2636_v16 }
 0x49d   :  { %3458 = vst.msk [vmem:[#allocation2 + $0x70] sm:$0xf] %vm2668_vm6, %v2636_v16  ;;  %v2142_v60 = vmax.f32 %v2014_v30, %v2078_v50  ;;  %3125 = vrot.lane.b32.xlu2 %v9280_v51, %s8053_s30 }
 0x49e   :  { %3506 = vst.msk [vmem:[#allocation2 + $0x248] sm:$0xf] %vm2668_vm6, %v2636_v16  ;;  %3129 = vrot.lane.b32.xlu1 %v9346_v35, %s8053_s30  ;;  %3121 = vrot.lane.b32.xlu0 %v9226_v33, %s8053_s30  ;;  %v9960_v33 = vpop.f32.mrf.mxu2  ;;  %v11655_v16 = vld [vmem:[#allocation36_spill] sm:$0xff] }
 0x49f   :  { %v2878_v42 = vpop.permute.xlu0 %2877  ;;  %v6936_v18 = vld [vmem:[#allocation2 + $0x64] sm:$0xf0]  ;;  %2970 = vst.msk [vmem:[#allocation2 + $0x29c] sm:$0xf] %vm2577_vm4, %v9944_v62  ;;  %v2210_v9 = vadd.f32 %v9474_v48, %v2142_v60  ;;  %v2079_v54 = vmax.f32 %v11655_v16, %v11654_v23  ;;  %v7850_v16 = vld [vmem:[#allocation2 + $0x60] sm:$0xf0] }
 0x4a0   :  { %2919 = vst.msk [vmem:[#allocation2 + $0x7c] sm:$0xf] %vm2668_vm6, %v2878_v42  ;;  %v2632_v31 = vpop.permute.xlu1 %2631  ;;  %v2996_v15 = vpop.permute.xlu2 %2995  ;;  %v7845_v35 = vld [vmem:[#allocation2 + $0x38] sm:$0xf0]  ;;  %v6939_v38 = vor.u32 %v7848_v49, %v6936_v18 }
 0x4a1   :  { %2673 = vst.msk [vmem:[#allocation2 + $0x50] sm:$0xf] %vm2668_vm6, %v2632_v31  ;;  %v6915_v51 = vor.u32 %v7845_v35, %v6914_v3  ;;  %v2274_v21 = vmax.f32 %v2210_v9, 0.0  ;;  %v11657_v9 = vld [vmem:[#allocation82_spill] sm:$0xff] }
 0x4a2   :  { %3456 = vst.msk [vmem:[#allocation2 + $0x48] sm:$0xf] %vm2668_vm6, %v2632_v31  ;;  %5349 = vmatmul.bf16.gmra.mxu2 %v6939_v38  ;;  %v1667_v5 = vpop.f32.mrf.mxu0 }
 0x4a3   :  { %3504 = vst.msk [vmem:[#allocation2 + $0x220] sm:$0xf] %vm2668_vm6, %v2632_v31  ;;  %5175 = vmatmul.bf16.gmra.mxu1 %v6915_v51  ;;  %v2395_v8 = vrot.slane %v2274_v21, 1  ;;  %v9965_v27 = vpack.c.bf16 %v2274_v21, %v2274_v21  ;;  %v2015_v50 = vmax.f32 %v1667_v5, %v9908_v56  ;;  %v11658_v31 = vld [vmem:[#allocation38_spill] sm:$0xff] }
 0x4a4   :  { %3042 = vst.msk [vmem:[#allocation2 + $0xb8] sm:$0xf] %vm2668_vm6, %v2996_v15 }
 0x4a5   :  { %3058 = vst.msk [vmem:[#allocation2 + $0x154] sm:$0xf] %vm2668_vm6, %v2996_v15  ;;  %v2428_v30 = vsel %vm2417_vm3, %v2395_v8, 0.0  ;;  %v2143_v60 = vmax.f32 %v2015_v50, %v2079_v54  ;;  %3131 = vrot.lane.b32.xlu2 %v9380_v20, %s8053_s30  ;;  %v11659_v50 = vld [vmem:[#allocation83_spill] sm:$0xff] }
 0x4a6   :  { %2971 = vst.msk [vmem:[#allocation2 + $0x2b0] sm:$0xf] %vm2577_vm4, %v9965_v27  ;;  %3133 = vrot.lane.b32.xlu1 %v9416_v39, %s8053_s30  ;;  %v9977_v42 = vpack.c.bf16 %v2428_v30, %v2428_v30  ;;  %3127 = vrot.lane.b32.xlu0 %v9315_v44, %s8053_s30  ;;  %v2080_v44 = vmax.f32 %v11658_v31, %v11657_v9  ;;  %v1755_v51 = vpop.f32.mrf.mxu2  ;;  %v11660_v30 = vld [vmem:[#allocation39_spill] sm:$0xff] }
 0x4a7   :  { %3083 = vst.msk [vmem:[#allocation2 + $0x488] sm:$0xf] %vm2577_vm4, %v9965_v27  ;;  %v2211_v56 = vadd.f32 %v9474_v48, %v2143_v60  ;;  %v2081_v60 = vmax.f32 %v11660_v30, %v11659_v50 }
 0x4a8   :  { %11656 = vst [vmem:[#allocation95_spill] sm:$0xff] %v9977_v42  ;;  %v2880_v49 = vpop.permute.xlu1 %2879  ;;  %v3000_v39 = vpop.permute.xlu2 %2999  ;;  %v6934_v5 = vld [vmem:[#allocation2 + $0x50] sm:$0xf] }
 0x4a9   :  { %3730 = vst.msk [vmem:[#allocation2 + $0x480] sm:$0xf] %vm2577_vm4, %v9965_v27  ;;  %v2275_v20 = vmax.f32 %v2211_v56, 0.0  ;;  %v6935_v54 = vor.u32 %v7850_v16, %v6934_v5  ;;  %v7853_v56 = vld [vmem:[#allocation2 + $0x7c] sm:$0xf]  ;;  %v11663_v16 = vld [vmem:[#allocation40_spill] sm:$0xff] }
 0x4aa   :  { %3778 = vst.msk [vmem:[#allocation2 + $0x484] sm:$0xf] %vm2577_vm4, %v9977_v42  ;;  %v1670_v18 = vpop.f32.mrf.mxu0 }
 0x4ab   :  { %3339 = vst.msk [vmem:[#allocation2 + $0x48c] sm:$0xf] %vm2577_vm4, %v9977_v42  ;;  %v2396_v3 = vrot.slane %v2275_v20, 1  ;;  %v9993_v35 = vpack.c.bf16 %v2275_v20, %v2275_v20  ;;  %v2016_v38 = vmax.f32 %v1670_v18, %v9931_v43 }
 0x4ac   :  { %3705 = vst.msk [vmem:[#allocation2 + $0x14c] sm:$0xf] %vm2668_vm6, %v2996_v15 }
 0x4ad   :  { %2920 = vst.msk [vmem:[#allocation2 + $0x90] sm:$0xf] %vm2668_vm6, %v2880_v49  ;;  %v2429_v21 = vsel %vm2417_vm3, %v2396_v3, 0.0  ;;  %v2144_v15 = vmax.f32 %v2016_v38, %v2080_v44  ;;  %3135 = vrot.lane.b32.xlu2 %v9456_v36, %s8053_s30 }
 0x4ae   :  { %3044 = vst.msk [vmem:[#allocation2 + $0xe0] sm:$0xf] %vm2668_vm6, %v3000_v39  ;;  %v10003_v23 = vpack.c.bf16 %v2429_v21, %v2429_v21  ;;  %3447 = vrot.lane.b32.xlu0 %v9710_v29, %s8053_s30 }
 0x4af   :  { %2972 = vst.msk [vmem:[#allocation2 + $0x2c4] sm:$0xf] %vm2577_vm4, %v9993_v35  ;;  %v2212_v43 = vadd.f32 %v9474_v48, %v2144_v15 }
 0x4b0   :  { %3084 = vst.msk [vmem:[#allocation2 + $0x49c] sm:$0xf] %vm2577_vm4, %v9993_v35  ;;  %v2994_v8 = vpop.permute.xlu1 %2993  ;;  %v3002_v21 = vpop.permute.xlu2 %3001 }
 0x4b1   :  { %3731 = vst.msk [vmem:[#allocation2 + $0x494] sm:$0xf] %vm2577_vm4, %v9993_v35  ;;  %v2276_v36 = vmax.f32 %v2212_v43, 0.0  ;;  %v11662_v43 = vld [vmem:[#allocation84_spill] sm:$0xff] }
 0x4b2   :  { %3779 = vst.msk [vmem:[#allocation2 + $0x498] sm:$0xf] %vm2577_vm4, %v10003_v23  ;;  %v1672_v29 = vpop.f32.mrf.mxu0 }
 0x4b3   :  { %3340 = vst.msk [vmem:[#allocation2 + $0x4a0] sm:$0xf] %vm2577_vm4, %v10003_v23  ;;  %5180 = vmatmul.bf16.gmra.mxu1 %v6935_v54  ;;  %v2397_v48 = vrot.slane %v2276_v36, 1  ;;  %v10020_v20 = vpack.c.bf16 %v2276_v36, %v2276_v36  ;;  %v2017_v18 = vmax.f32 %v1672_v29, %v9960_v33  ;;  %v10036_v33 = vld [vmem:[%s11417_s2] ss:$0 sm:$0xff]  ;;  %v2082_v54 = vmax.f32 %v11663_v16, %v11662_v43 }
 0x4b4   :  { %3060 = vst.msk [vmem:[#allocation2 + $0x17c] sm:$0xf] %vm2668_vm6, %v3000_v39  ;;  %v6956_v49 = vld [vmem:[#allocation2 + $0x8c] sm:$0xf0] }
 0x4b5   :  { %3707 = vst.msk [vmem:[#allocation2 + $0x174] sm:$0xf] %vm2668_vm6, %v3000_v39  ;;  %v6959_v9 = vor.u32 %v7853_v56, %v6956_v49  ;;  %v2430_v31 = vsel %vm2417_vm3, %v2397_v48, 0.0  ;;  %v2145_v44 = vmax.f32 %v2017_v18, %v2081_v60  ;;  %v1757_v39 = vpop.f32.mrf.mxu2 }
 0x4b6   :  { %3041 = vst.msk [vmem:[#allocation2 + $0xa4] sm:$0xf] %vm2668_vm6, %v2994_v8  ;;  %v10027_v3 = vpack.c.bf16 %v2430_v31, %v2430_v31 }
 0x4b7   :  { %2973 = vst.msk [vmem:[#allocation2 + $0x2d8] sm:$0xf] %vm2577_vm4, %v10020_v20  ;;  %5354 = vmatmul.bf16.gmra.mxu2 %v6959_v9  ;;  %v2213_v38 = vadd.f32 %v10036_v33, %v2145_v44  ;;  %v8028_v9 = vld [vmem:[%s11418_s3 + $0xf0] sm:$0xff] }
 0x4b8   :  { %11661 = vst [vmem:[#allocation25_spill] sm:$0xff] %v10027_v3  ;;  %v2998_v48 = vpop.permute.xlu1 %2997  ;;  %5670 = vmatpush.bf16.msra.mxu1 %v8028_v9 }
 0x4b9   :  { %3085 = vst.msk [vmem:[#allocation2 + $0x4b0] sm:$0xf] %vm2577_vm4, %v10020_v20  ;;  %v2277_v15 = vmax.f32 %v2213_v38, 0.0  ;;  %v6976_v38 = vld [vmem:[#allocation2 + $0xb4] sm:$0xf0] }
 0x4ba   :  { %3732 = vst.msk [vmem:[#allocation2 + $0x4a8] sm:$0xf] %vm2577_vm4, %v10020_v20  ;;  %v1675_v5 = vpop.f32.mrf.mxu0 }
 0x4bb   :  { %3780 = vst.msk [vmem:[#allocation2 + $0x4ac] sm:$0xf] %vm2577_vm4, %v10027_v3  ;;  %v2398_v36 = vrot.slane %v2277_v15, 1  ;;  %v10047_v50 = vpack.c.bf16 %v2277_v15, %v2277_v15  ;;  %v2018_v30 = vmax.f32 %v1675_v5, %v1755_v51  ;;  %v11666_v15 = vld [vmem:[#allocation41_spill] sm:$0xff] }
 0x4bc   :  { %3341 = vst.msk [vmem:[#allocation2 + $0x4b4] sm:$0xf] %vm2577_vm4, %v10027_v3 }
 0x4bd   :  { %3057 = vst.msk [vmem:[#allocation2 + $0x140] sm:$0xf] %vm2668_vm6, %v2994_v8  ;;  %v2431_v60 = vsel %vm2417_vm3, %v2398_v36, 0.0  ;;  %v2146_v29 = vmax.f32 %v2018_v30, %v2082_v54  ;;  %v2638_v8 = vpop.permute.xlu0 %2637  ;;  %v1760_v51 = vpop.f32.mrf.mxu2  ;;  %v7858_v18 = vld [vmem:[#allocation2 + $0xa4] sm:$0xf] }
 0x4be   :  { %3045 = vst.msk [vmem:[#allocation2 + $0xf4] sm:$0xf] %vm2668_vm6, %v3002_v21  ;;  %v10052_v56 = vpack.c.bf16 %v2431_v60, %v2431_v60  ;;  %v6979_v54 = vor.u32 %v7858_v18, %v6976_v38 }
 0x4bf   :  { %3061 = vst.msk [vmem:[#allocation2 + $0x190] sm:$0xf] %vm2668_vm6, %v3002_v21  ;;  %v2214_v49 = vadd.f32 %v10036_v33, %v2146_v29 }
 0x4c0   :  { %3708 = vst.msk [vmem:[#allocation2 + $0x188] sm:$0xf] %vm2668_vm6, %v3002_v21  ;;  %v11665_v21 = vld [vmem:[#allocation85_spill] sm:$0xff] }
 0x4c1   :  { %11664 = vst [vmem:[#allocation69_spill] sm:$0xff] %v10052_v56  ;;  %v2278_v31 = vmax.f32 %v2214_v49, 0.0  ;;  %v2083_v5 = vmax.f32 %v11666_v15, %v11665_v21  ;;  %v6954_v15 = vld [vmem:[#allocation2 + $0x78] sm:$0xf] }
 0x4c2   :  { %2974 = vst.msk [vmem:[#allocation2 + $0x2ec] sm:$0xf] %vm2577_vm4, %v10047_v50  ;;  %v1677_v44 = vpop.f32.mrf.mxu0 }
 0x4c3   :  { %3086 = vst.msk [vmem:[#allocation2 + $0x4c4] sm:$0xf] %vm2577_vm4, %v10047_v50  ;;  %v2399_v43 = vrot.slane %v2278_v31, 1  ;;  %v2019_v16 = vmax.f32 %v1677_v44, %v1757_v39  ;;  %v10075_v60 = vpack.c.bf16 %v2278_v31, %v2278_v31  ;;  %v11669_v31 = vld [vmem:[#allocation86_spill] sm:$0xff] }
 0x4c4   :  { %3781 = vst.msk [vmem:[#allocation2 + $0x4c0] sm:$0xf] %vm2577_vm4, %v10052_v56  ;;  %v11670_v44 = vld [vmem:[#allocation42_spill] sm:$0xff] }
 0x4c5   :  { %3342 = vst.msk [vmem:[#allocation2 + $0x4c8] sm:$0xf] %vm2577_vm4, %v10052_v56  ;;  %v2432_v36 = vsel %vm2417_vm3, %v2399_v43, 0.0  ;;  %v2147_v30 = vmax.f32 %v2019_v16, %v2083_v5  ;;  %v1762_v18 = vpop.f32.mrf.mxu2  ;;  %v2084_v38 = vmax.f32 %v11670_v44, %v11669_v31  ;;  %v11671_v31 = vld [vmem:[#allocation87_spill] sm:$0xff] }
 0x4c6   :  { %3733 = vst.msk [vmem:[#allocation2 + $0x4bc] sm:$0xf] %vm2577_vm4, %v10047_v50  ;;  %v10077_v29 = vpack.c.bf16 %v2432_v36, %v2432_v36  ;;  %v11672_v44 = vld [vmem:[#allocation43_spill] sm:$0xff] }
 0x4c7   :  { %3043 = vst.msk [vmem:[#allocation2 + $0xcc] sm:$0xf] %vm2668_vm6, %v2998_v48  ;;  %5359 = vmatmul.bf16.gmra.mxu2 %v6979_v54  ;;  %v2215_v49 = vadd.f32 %v10036_v33, %v2147_v30  ;;  %v2746_v39 = vpop.permute.xlu0 %2745 }
 0x4c8   :  { %3059 = vst.msk [vmem:[#allocation2 + $0x168] sm:$0xf] %vm2668_vm6, %v2998_v48 }
 0x4c9   :  { %3706 = vst.msk [vmem:[#allocation2 + $0x160] sm:$0xf] %vm2668_vm6, %v2998_v48  ;;  %v10084_v48 = vmax.f32 %v2215_v49, 0.0 }
 0x4ca   :  { %2676 = vst.msk [vmem:[#allocation2 + $0x8c] sm:$0xf] %vm2668_vm6, %v2638_v8  ;;  %v1680_v9 = vpop.f32.mrf.mxu0 }
 0x4cb   :  { %11667 = vst [vmem:[#allocation53_spill] sm:$0xff] %v10077_v29  ;;  %v10094_v21 = vpack.c.bf16 %v10084_v48, %v10084_v48 }
 0x4cc   :  { %3459 = vst.msk [vmem:[#allocation2 + $0x84] sm:$0xf] %vm2668_vm6, %v2638_v8 }
 0x4cd   :  { %3507 = vst.msk [vmem:[#allocation2 + $0x25c] sm:$0xf] %vm2668_vm6, %v2638_v8  ;;  %v2020_v8 = vmax.f32 %v1680_v9, %v1760_v51  ;;  %v6996_v9 = vld [vmem:[#allocation2 + $0xdc] sm:$0xf0] }
 0x4ce   :  { %3782 = vst.msk [vmem:[#allocation2 + $0x4d4] sm:$0xf] %vm2577_vm4, %v10077_v29  ;;  %v7863_v51 = vld [vmem:[#allocation2 + $0xcc] sm:$0xf] }
 0x4cf   :  { %11668 = vst [vmem:[#allocation9_spill] sm:$0xff] %v10084_v48  ;;  %v2148_v43 = vmax.f32 %v2020_v8, %v2084_v38  ;;  %v2748_v36 = vpop.permute.xlu0 %2747  ;;  %v2085_v38 = vmax.f32 %v11672_v44, %v11671_v31  ;;  %v11673_v31 = vld [vmem:[#allocation88_spill] sm:$0xff] }
 0x4d0   :  { %2975 = vst.msk [vmem:[#allocation2 + $0x300] sm:$0xf] %vm2577_vm4, %v10075_v60  ;;  %v11674_v44 = vld [vmem:[#allocation44_spill] sm:$0xff] }
 0x4d1   :  { %3087 = vst.msk [vmem:[#allocation2 + $0x4d8] sm:$0xf] %vm2577_vm4, %v10075_v60  ;;  %v7855_v5 = vld [vmem:[#allocation2 + $0x88] sm:$0xf0]  ;;  %v2216_v54 = vadd.f32 %v10036_v33, %v2148_v43  ;;  %v1765_v43 = vpop.f32.mrf.mxu2 }
 0x4d2   :  { %3343 = vst.msk [vmem:[#allocation2 + $0x4dc] sm:$0xf] %vm2577_vm4, %v10077_v29  ;;  %v6955_v16 = vor.u32 %v7855_v5, %v6954_v15  ;;  %v1682_v49 = vpop.f32.mrf.mxu0  ;;  %v6999_v15 = vor.u32 %v7863_v51, %v6996_v9 }
 0x4d3   :  { %3734 = vst.msk [vmem:[#allocation2 + $0x4d0] sm:$0xf] %vm2577_vm4, %v10075_v60  ;;  %v10108_v30 = vmax.f32 %v2216_v54, 0.0  ;;  %v2021_v8 = vmax.f32 %v1682_v49, %v1762_v18 }
 0x4d4   :  { %2976 = vst.msk [vmem:[#allocation2 + $0x314] sm:$0xf] %vm2577_vm4, %v10094_v21  ;;  %5185 = vmatmul.bf16.gmra.mxu1 %v6955_v16  ;;  %v2754_v16 = vpop.permute.xlu2 %2753 }
 0x4d5   :  { %3088 = vst.msk [vmem:[#allocation2 + $0x4ec] sm:$0xf] %vm2577_vm4, %v10094_v21  ;;  %v2328_v5 = vrot.slane %v10108_v30, 7  ;;  %v2149_v54 = vmax.f32 %v2021_v8, %v2085_v38  ;;  %v6974_v38 = vld [vmem:[#allocation2 + $0xa0] sm:$0xf] }
 0x4d6   :  { %3735 = vst.msk [vmem:[#allocation2 + $0x4e4] sm:$0xf] %vm2577_vm4, %v10094_v21 }
 0x4d7   :  { %2788 = vst.msk [vmem:[#allocation2 + $0xb4] sm:$0xf] %vm2668_vm6, %v2746_v39  ;;  %5364 = vmatmul.bf16.gmra.mxu2 %v6999_v15  ;;  %v2361_v1 = vsel %vm2352_vm5, 0.0, %v2328_v5  ;;  %v3004_v18 = vpop.permute.xlu0 %3003  ;;  %v2750_v8 = vpop.permute.xlu1 %2749 }
 0x4d8   :  { %3543 = vst.msk [vmem:[#allocation2 + $0xac] sm:$0xf] %vm2668_vm6, %v2746_v39  ;;  %v2841_v3 = vpack.c.bf16 %v2361_v1, %v2361_v1 }
 0x4d9   :  { %3559 = vst.msk [vmem:[#allocation2 + $0x148] sm:$0xf] %vm2668_vm6, %v2746_v39  ;;  %v2217_v39 = vadd.f32 %v10036_v33, %v2149_v54  ;;  %v1767_v24 = vpop.f32.mrf.mxu2 }
 0x4da   :  { %2789 = vst.msk [vmem:[#allocation2 + $0xc8] sm:$0xf] %vm2668_vm6, %v2748_v36  ;;  %2881 = vrot.lane.b32.xlu0 %v2841_v3, %s8053_s30  ;;  %v1685_v9 = vpop.f32.mrf.mxu0 }
 0x4db   :  { %3544 = vst.msk [vmem:[#allocation2 + $0xc0] sm:$0xf] %vm2668_vm6, %v2748_v36  ;;  %v2281_v51 = vmax.f32 %v2217_v39, 0.0  ;;  %v2022_v15 = vmax.f32 %v1685_v9, %v1765_v43 }
 0x4dc   :  { %3560 = vst.msk [vmem:[#allocation2 + $0x15c] sm:$0xf] %vm2668_vm6, %v2748_v36  ;;  %v2086_v36 = vmax.f32 %v11674_v44, %v11673_v31  ;;  %v2756_v43 = vpop.permute.xlu2 %2755 }
 0x4dd   :  { %2792 = vst.msk [vmem:[#allocation2 + $0x104] sm:$0xf] %vm2668_vm6, %v2754_v16  ;;  %v10127_v1 = vpack.c.bf16 %v2281_v51, %v2281_v51  ;;  %v2329_v5 = vrot.slane %v2281_v51, 7 }
 0x4de   :  { %3547 = vst.msk [vmem:[#allocation2 + $0xfc] sm:$0xf] %vm2668_vm6, %v2754_v16  ;;  %v7860_v49 = vld [vmem:[#allocation2 + $0xb0] sm:$0xf0] }
 0x4df   :  { %3563 = vst.msk [vmem:[#allocation2 + $0x198] sm:$0xf] %vm2668_vm6, %v2754_v16  ;;  %v6975_v54 = vor.u32 %v7860_v49, %v6974_v38  ;;  %v2150_v16 = vmax.f32 %v2022_v15, %v2086_v36  ;;  %v2362_v39 = vsel %vm2352_vm5, 0.0, %v2329_v5  ;;  %v8018_v49 = vld [vmem:[%s11418_s3 + $0xa0] sm:$0xff]  ;;  %v11675_v15 = vld [vmem:[#allocation89_spill] sm:$0xff] }
 0x4e0   :  { %3046 = vst.msk [vmem:[#allocation2 + $0x108] sm:$0xf] %vm2668_vm6, %v3004_v18  ;;  %v10136_v31 = vpack.c.bf16 %v2362_v39, %v2362_v39  ;;  %5503 = vmatpush.bf16.msrb.mxu3 %v8018_v49  ;;  %v11676_v5 = vld [vmem:[#allocation45_spill] sm:$0xff]  ;;  %v3006_v49 = vpop.permute.xlu0 %3005 }
 0x4e1   :  { %3062 = vst.msk [vmem:[#allocation2 + $0x1a4] sm:$0xf] %vm2668_vm6, %v3004_v18  ;;  %v2218_v51 = vadd.f32 %v10036_v33, %v2150_v16 }
 0x4e2   :  { %3709 = vst.msk [vmem:[#allocation2 + $0x19c] sm:$0xf] %vm2668_vm6, %v3004_v18  ;;  %2883 = vrot.lane.b32.xlu1 %v10136_v31, %s8053_s30  ;;  %v7868_v18 = vld [vmem:[#allocation2 + $0xf4] sm:$0xf]  ;;  %v1687_v36 = vpop.f32.mrf.mxu0 }
 0x4e3   :  { %3745 = vst.msk [vmem:[#allocation2 + $0x3d0] sm:$0xf] %vm2577_vm4, %v10127_v1  ;;  %v2282_v9 = vmax.f32 %v2218_v51, 0.0  ;;  %v2023_v39 = vmax.f32 %v1687_v36, %v1767_v24  ;;  %v2752_v51 = vpop.permute.xlu1 %2751  ;;  %v1770_v24 = vpop.f32.mrf.mxu2  ;;  %v11677_v36 = vld [vmem:[#allocation90_spill] sm:$0xff] }
 0x4e4   :  { %3194 = vst.msk [vmem:[#allocation2 + $0x33c] sm:$0xf] %vm2577_vm4, %v10127_v1  ;;  %5190 = vmatmul.bf16.gmra.mxu1 %v6975_v54  ;;  %v2087_v54 = vmax.f32 %v11676_v5, %v11675_v15 }
 0x4e5   :  { %3210 = vst.msk [vmem:[#allocation2 + $0x3d8] sm:$0xf] %vm2577_vm4, %v10127_v1  ;;  %v10152_v16 = vpack.c.bf16 %v2282_v9, %v2282_v9  ;;  %v2330_v41 = vrot.slane %v2282_v9, 7 }
 0x4e6   :  { %2790 = vst.msk [vmem:[#allocation2 + $0xdc] sm:$0xf] %vm2668_vm6, %v2750_v8  ;;  %v2151_v0 = vmax.f32 %v2023_v39, %v2087_v54 }
 0x4e7   :  { %3545 = vst.msk [vmem:[#allocation2 + $0xd4] sm:$0xf] %vm2668_vm6, %v2750_v8  ;;  %v7016_v44 = vld [vmem:[#allocation2 + $0x104] sm:$0xf0] }
 0x4e8   :  { %3561 = vst.msk [vmem:[#allocation2 + $0x170] sm:$0xf] %vm2668_vm6, %v2750_v8  ;;  %v7019_v38 = vor.u32 %v7868_v18, %v7016_v44  ;;  %v2363_v8 = vsel %vm2352_vm5, 0.0, %v2330_v41  ;;  %v2219_v44 = vadd.f32 %v10036_v33, %v2151_v0  ;;  %v6994_v0 = vld [vmem:[#allocation2 + $0xc8] sm:$0xf] }
 0x4e9   :  { %2793 = vst.msk [vmem:[#allocation2 + $0x118] sm:$0xf] %vm2668_vm6, %v2756_v43  ;;  %v2843_v18 = vpack.c.bf16 %v2363_v8, %v2363_v8 }
 0x4ea   :  { %3548 = vst.msk [vmem:[#allocation2 + $0x110] sm:$0xf] %vm2668_vm6, %v2756_v43  ;;  %5369 = vmatmul.bf16.gmra.mxu2 %v7019_v38  ;;  %v2283_v41 = vmax.f32 %v2219_v44, 0.0  ;;  %v11678_v38 = vld [vmem:[#allocation46_spill] sm:$0xff] }
 0x4eb   :  { %3564 = vst.msk [vmem:[#allocation2 + $0x1ac] sm:$0xf] %vm2668_vm6, %v2756_v43  ;;  %2885 = vrot.lane.b32.xlu0 %v2843_v18, %s8053_s30  ;;  %v3382_v43 = vpop.permute.xlu2 %3381  ;;  %v2088_v15 = vmax.f32 %v11678_v38, %v11677_v36  ;;  %v3008_v36 = vpop.permute.xlu1 %3007 }
 0x4ec   :  { %2937 = vst.msk [vmem:[#allocation2 + $0x3c0] sm:$0xf] %vm2577_vm4, %v2841_v3  ;;  %v1690_v3 = vpop.f32.mrf.mxu0  ;;  %v2331_v54 = vrot.slane %v2283_v41, 7  ;;  %v10175_v48 = vpack.c.bf16 %v2283_v41, %v2283_v41  ;;  %v11680_v41 = vld [vmem:[#allocation91_spill] sm:$0xff] }
 0x4ed   :  { %3746 = vst.msk [vmem:[#allocation2 + $0x3e4] sm:$0xf] %vm2577_vm4, %v10152_v16  ;;  %v7865_v9 = vld [vmem:[#allocation2 + $0xd8] sm:$0xf0]  ;;  %v2024_v5 = vmax.f32 %v1690_v3, %v1770_v24 }
 0x4ee   :  { %3195 = vst.msk [vmem:[#allocation2 + $0x350] sm:$0xf] %vm2577_vm4, %v10152_v16  ;;  %v6995_v39 = vor.u32 %v7865_v9, %v6994_v0  ;;  %v2364_v44 = vsel %vm2352_vm5, 0.0, %v2331_v54  ;;  %v1772_v9 = vpop.f32.mrf.mxu2  ;;  %v11681_v3 = vld [vmem:[#allocation47_spill] sm:$0xff] }
 0x4ef   :  { %3211 = vst.msk [vmem:[#allocation2 + $0x3ec] sm:$0xf] %vm2577_vm4, %v10152_v16  ;;  %v2152_v8 = vmax.f32 %v2024_v5, %v2088_v15  ;;  %v2844_v61 = vpack.c.bf16 %v2364_v44, %v2364_v44  ;;  %v2089_v15 = vmax.f32 %v11681_v3, %v11680_v41  ;;  %v7870_v3 = vld [vmem:[#allocation2 + $0x100] sm:$0xf0] }
 0x4f0   :  { %3047 = vst.msk [vmem:[#allocation2 + $0x11c] sm:$0xf] %vm2668_vm6, %v3006_v49 }
 0x4f1   :  { %3063 = vst.msk [vmem:[#allocation2 + $0x1b8] sm:$0xf] %vm2668_vm6, %v3006_v49  ;;  %v2220_v38 = vadd.f32 %v10036_v33, %v2152_v8  ;;  %2887 = vrot.lane.b32.xlu1 %v2844_v61, %s8053_s30 }
 0x4f2   :  { %3710 = vst.msk [vmem:[#allocation2 + $0x1b0] sm:$0xf] %vm2668_vm6, %v3006_v49  ;;  %v11679_v49 = vld [vmem:[#allocation101_spill] sm:$0xff] }
 0x4f3   :  { %2791 = vst.msk [vmem:[#allocation2 + $0xf0] sm:$0xf] %vm2668_vm6, %v2752_v51  ;;  %2643 = vrot.lane.b32.xlu0 %v11679_v49, %s8053_s30  ;;  %v2284_v24 = vmax.f32 %v2220_v38, 0.0  ;;  %v11682_v38 = vld [vmem:[#allocation108_spill] sm:$0xff]  ;;  %v3380_v49 = vpop.permute.xlu1 %3379 }
 0x4f4   :  { %3546 = vst.msk [vmem:[#allocation2 + $0xe8] sm:$0xf] %vm2668_vm6, %v2752_v51  ;;  %5195 = vmatmul.bf16.gmra.mxu1 %v6995_v39 }
 0x4f5   :  { %3562 = vst.msk [vmem:[#allocation2 + $0x184] sm:$0xf] %vm2668_vm6, %v2752_v51  ;;  %v1692_v51 = vpop.f32.mrf.mxu0  ;;  %v2332_v5 = vrot.slane %v2284_v24, 7  ;;  %v10201_v44 = vpack.c.bf16 %v2284_v24, %v2284_v24 }
 0x4f6   :  { %3428 = vst.msk [vmem:[#allocation2 + $0x158] sm:$0xf] %vm2668_vm6, %v3382_v43  ;;  %v3388_v43 = vpop.permute.xlu2 %3387  ;;  %v2025_v0 = vmax.f32 %v1692_v51, %v1772_v9 }
 0x4f7   :  { %2938 = vst.msk [vmem:[#allocation2 + $0x3d4] sm:$0xf] %vm2577_vm4, %v10136_v31  ;;  %v2365_v39 = vsel %vm2352_vm5, 0.0, %v2332_v5 }
 0x4f8   :  { %3697 = vst.msk [vmem:[#allocation2 + $0x3cc] sm:$0xf] %vm2577_vm4, %v10136_v31  ;;  %v2153_v54 = vmax.f32 %v2025_v0, %v2089_v15  ;;  %v10196_v31 = vpack.c.bf16 %v2365_v39, %v2365_v39  ;;  %v11684_v15 = vld [vmem:[#allocation92_spill] sm:$0xff] }
 0x4f9   :  { %3747 = vst.msk [vmem:[#allocation2 + $0x3f8] sm:$0xf] %vm2577_vm4, %v10175_v48 }
 0x4fa   :  { %3196 = vst.msk [vmem:[#allocation2 + $0x364] sm:$0xf] %vm2577_vm4, %v10175_v48  ;;  %v2221_v8 = vadd.f32 %v10036_v33, %v2153_v54  ;;  %2889 = vrot.lane.b32.xlu1 %v10196_v31, %s8053_s30  ;;  %v7014_v41 = vld [vmem:[#allocation2 + $0xf0] sm:$0xf]  ;;  %v7873_v54 = vld [vmem:[#allocation2 + $0x11c] sm:$0xf] }
 0x4fb   :  { %3212 = vst.msk [vmem:[#allocation2 + $0x400] sm:$0xf] %vm2577_vm4, %v10175_v48  ;;  %2645 = vrot.lane.b32.xlu0 %v11682_v38, %s8053_s30  ;;  %v10219_v38 = vpop.f32.mrf.mxu2 }
 0x4fc   :  { %3048 = vst.msk [vmem:[#allocation2 + $0x130] sm:$0xf] %vm2668_vm6, %v3008_v36  ;;  %v10210_v51 = vmax.f32 %v2221_v8, 0.0 }
 0x4fd   :  { %3064 = vst.msk [vmem:[#allocation2 + $0x1cc] sm:$0xf] %vm2668_vm6, %v3008_v36  ;;  %v1695_v9 = vpop.f32.mrf.mxu0  ;;  %v7056_v63 = vld [vmem:[#allocation2 + $0x154] sm:$0xf0] }
 0x4fe   :  { %3711 = vst.msk [vmem:[#allocation2 + $0x1c4] sm:$0xf] %vm2668_vm6, %v3008_v36  ;;  %v11683_v36 = vld [vmem:[#allocation4_spill] sm:$0xff]  ;;  %v3394_v5 = vpop.permute.xlu2 %3393 }
 0x4ff   :  { %3431 = vst.msk [vmem:[#allocation2 + $0x194] sm:$0xf] %vm2668_vm6, %v3388_v43  ;;  %v2026_v24 = vmax.f32 %v1695_v9, %v11683_v36  ;;  %v11685_v43 = vld [vmem:[#allocation48_spill] sm:$0xff]  ;;  %v10226_v9 = vpack.c.bf16 %v10210_v51, %v10210_v51 }
 0x500   :  { %2939 = vst.msk [vmem:[#allocation2 + $0x3e8] sm:$0xf] %vm2577_vm4, %v2843_v18  ;;  %v2090_v0 = vmax.f32 %v11685_v43, %v11684_v15  ;;  %v11686_v15 = vld [vmem:[#allocation104_spill] sm:$0xff]  ;;  %v11688_v43 = vld [vmem:[#allocation50_spill] sm:$0xff] }
 0x501   :  { %3698 = vst.msk [vmem:[#allocation2 + $0x3e0] sm:$0xf] %vm2577_vm4, %v2843_v18  ;;  %v7015_v18 = vor.u32 %v7870_v3, %v7014_v41  ;;  %v8017_v41 = vld [vmem:[%s11418_s3 + $0x98] sm:$0xff]  ;;  %v11687_v3 = vld [vmem:[#allocation94_spill] sm:$0xff] }
 0x502   :  { %3748 = vst.msk [vmem:[#allocation2 + $0x40c] sm:$0xf] %vm2577_vm4, %v10201_v44  ;;  %v2154_v36 = vmax.f32 %v2026_v24, %v2090_v0  ;;  %2647 = vrot.lane.b32.xlu1 %v11686_v15, %s8053_s30  ;;  %v3386_v24 = vpop.permute.xlu1 %3385  ;;  %v2758_v0 = vpop.permute.xlu0 %2757  ;;  %5504 = vmatpush.bf16.msrb.mxu3 %v8017_v41  ;;  %v8016_v15 = vld [vmem:[%s11418_s3 + $0x90] sm:$0xff] }
 0x503   :  { %3197 = vst.msk [vmem:[#allocation2 + $0x378] sm:$0xf] %vm2577_vm4, %v10201_v44  ;;  %v7036_v39 = vld [vmem:[#allocation2 + $0x12c] sm:$0xf0] }
 0x504   :  { %3213 = vst.msk [vmem:[#allocation2 + $0x414] sm:$0xf] %vm2577_vm4, %v10201_v44  ;;  %v7039_v8 = vor.u32 %v7873_v54, %v7036_v39  ;;  %5200 = vmatmul.bf16.gmra.mxu1 %v7015_v18  ;;  %v2091_v54 = vmax.f32 %v11688_v43, %v11687_v3  ;;  %v11689_v39 = vld [vmem:[#allocation6_spill] sm:$0xff]  ;;  %v10257_v3 = vpop.f32.mrf.mxu2 }
 0x505   :  { %3427 = vst.msk [vmem:[#allocation2 + $0x144] sm:$0xf] %vm2668_vm6, %v3380_v49  ;;  %v1697_v49 = vpop.f32.mrf.mxu0 }
 0x506   :  { %3434 = vst.msk [vmem:[#allocation2 + $0x1d0] sm:$0xf] %vm2668_vm6, %v3394_v5  ;;  %5374 = vmatmul.bf16.gmra.mxu2 %v7039_v8  ;;  %v2222_v5 = vadd.f32 %v10036_v33, %v2154_v36  ;;  %v2027_v18 = vmax.f32 %v1697_v49, %v11689_v39  ;;  %v8032_v8 = vld [vmem:[%s11418_s3 + $0x110] sm:$0xff]  ;;  %v3126_v36 = vpop.permute.xlu2 %3125  ;;  %5505 = vmatpush.bf16.msrb.mxu3 %v8016_v15  ;;  %v11692_v39 = vld [vmem:[#allocation96_spill] sm:$0xff] }
 0x507   :  { %2940 = vst.msk [vmem:[#allocation2 + $0x3fc] sm:$0xf] %vm2577_vm4, %v2844_v61  ;;  %5843 = vmatpush.bf16.msra.mxu2 %v8032_v8  ;;  %v11694_v15 = vld [vmem:[#allocation8_spill] sm:$0xff] }
 0x508   :  { %3699 = vst.msk [vmem:[#allocation2 + $0x3f4] sm:$0xf] %vm2577_vm4, %v2844_v61  ;;  %v2155_v61 = vmax.f32 %v2027_v18, %v2091_v54  ;;  %v10254_v41 = vmax.f32 %v2222_v5, 0.0  ;;  %v11691_v54 = vld [vmem:[#allocation110_spill] sm:$0xff]  ;;  %v11693_v5 = vld [vmem:[#allocation52_spill] sm:$0xff] }
 0x509   :  { %3749 = vst.msk [vmem:[#allocation2 + $0x420] sm:$0xf] %vm2577_vm4, %v10226_v9  ;;  %v2092_v18 = vmax.f32 %v11693_v5, %v11692_v39 }
 0x50a   :  { %3198 = vst.msk [vmem:[#allocation2 + $0x38c] sm:$0xf] %vm2577_vm4, %v10226_v9  ;;  %v2223_v49 = vadd.f32 %v10036_v33, %v2155_v61  ;;  %2649 = vrot.lane.b32.xlu1 %v11691_v54, %s8053_s30  ;;  %v10269_v61 = vpack.c.bf16 %v10254_v41, %v10254_v41  ;;  %v7034_v54 = vld [vmem:[#allocation2 + $0x118] sm:$0xf]  ;;  %v3392_v39 = vpop.permute.xlu1 %3391 }
 0x50b   :  { %3214 = vst.msk [vmem:[#allocation2 + $0x428] sm:$0xf] %vm2577_vm4, %v10226_v9 }
 0x50c   :  { %3430 = vst.msk [vmem:[#allocation2 + $0x180] sm:$0xf] %vm2668_vm6, %v3386_v24  ;;  %v2287_v43 = vmax.f32 %v2223_v49, 0.0  ;;  %v7878_v8 = vld [vmem:[#allocation2 + $0x144] sm:$0xf]  ;;  %v3384_v49 = vpop.permute.xlu0 %3383 }
 0x50d   :  { %2794 = vst.msk [vmem:[#allocation2 + $0x12c] sm:$0xf] %vm2668_vm6, %v2758_v0  ;;  %v1700_v24 = vpop.f32.mrf.mxu0  ;;  %v7059_v52 = vor.u32 %v7878_v8, %v7056_v63 }
 0x50e   :  { %11690 = vst [vmem:[#allocation97_spill] sm:$0xff] %v10257_v3  ;;  %v2028_v3 = vmax.f32 %v1700_v24, %v11694_v15  ;;  %v10300_v8 = vpack.c.bf16 %v2287_v43, %v2287_v43 }
 0x50f   :  { %3549 = vst.msk [vmem:[#allocation2 + $0x124] sm:$0xf] %vm2668_vm6, %v2758_v0  ;;  %v5171_v15 = vpop.f32.mrf.mxu1 }
 0x510   :  { %3565 = vst.msk [vmem:[#allocation2 + $0x1c0] sm:$0xf] %vm2668_vm6, %v2758_v0  ;;  %v2335_v0 = vrot.slane %v2287_v43, 7  ;;  %v2156_v56 = vmax.f32 %v2028_v3, %v2092_v18  ;;  %v2208_v3 = vadd.f32 %v10036_v33, %v9906_v2  ;;  %v10288_v63 = vadd.f32 %v10219_v38, %v5171_v15  ;;  %v8015_v43 = vld [vmem:[%s11418_s3 + $0x88] sm:$0xff] }
 0x511   :  { %3171 = vst.msk [vmem:[#allocation2 + $0x30] sm:$0xf] %vm2668_vm6, %v3126_v36  ;;  %5506 = vmatpush.bf16.msrb.mxu3 %v8015_v43 }
 0x512   :  { %3219 = vst.msk [vmem:[#allocation2 + $0x208] sm:$0xf] %vm2668_vm6, %v3126_v36  ;;  %v2368_v42 = vsel %vm2352_vm5, 0.0, %v2335_v0  ;;  %v2224_v24 = vadd.f32 %v10036_v33, %v2156_v56  ;;  %3011 = vrot.lane.b32.xlu1 %v9944_v62, %s8053_s30  ;;  %v11696_v56 = vld [vmem:[#allocation54_spill] sm:$0xff] }
 0x513   :  { %3754 = vst.msk [vmem:[#allocation2 + $0x200] sm:$0xf] %vm2668_vm6, %v3126_v36  ;;  %v10281_v29 = vpack.c.bf16 %v2368_v42, %v2368_v42  ;;  %v5345_v42 = vpop.f32.mrf.mxu2  ;;  %v7076_v43 = vld [vmem:[#allocation2 + $0x17c] sm:$0xf0] }
 0x514   :  { %2941 = vst.msk [vmem:[#allocation2 + $0x410] sm:$0xf] %vm2577_vm4, %v10196_v31  ;;  %v7875_v5 = vld [vmem:[#allocation2 + $0x128] sm:$0xf0]  ;;  %v2288_v18 = vmax.f32 %v2224_v24, 0.0  ;;  %v10306_v24 = vmax.f32 %v2208_v3, 0.0  ;;  %v3390_v15 = vpop.permute.xlu0 %3389 }
 0x515   :  { %3700 = vst.msk [vmem:[#allocation2 + $0x408] sm:$0xf] %vm2577_vm4, %v10196_v31  ;;  %v7035_v36 = vor.u32 %v7875_v5, %v7034_v54  ;;  %v3132_v31 = vpop.permute.xlu2 %3131  ;;  %2895 = vrot.lane.b32.xlu0 %v10281_v29, %s8053_s30  ;;  %v1702_v2 = vpop.f32.mrf.mxu0  ;;  %v11697_v54 = vld [vmem:[#allocation10_spill] sm:$0xff] }
 0x516   :  { %3750 = vst.msk [vmem:[#allocation2 + $0x434] sm:$0xf] %vm2577_vm4, %v10269_v61  ;;  %5379 = vmatmul.bf16.gmra.mxu2 %v7059_v52  ;;  %v11695_v52 = vld [vmem:[#allocation98_spill] sm:$0xff]  ;;  %v2601_v0 = vpack.c.bf16 %v2288_v18, %v2288_v18  ;;  %v2029_v5 = vmax.f32 %v1702_v2, %v11697_v54 }
 0x517   :  { %3199 = vst.msk [vmem:[#allocation2 + $0x3a0] sm:$0xf] %vm2577_vm4, %v10269_v61  ;;  %5205 = vmatmul.bf16.gmra.mxu1 %v7035_v36  ;;  %v2093_v38 = vmax.f32 %v11696_v56, %v11695_v52  ;;  %v8027_v36 = vld [vmem:[%s11418_s3 + $0xe8] sm:$0xff]  ;;  %v10318_v2 = vpop.f32.mrf.mxu1  ;;  %v8014_v52 = vld [vmem:[%s11418_s3 + $0x80] sm:$0xff]  ;;  %v3124_v56 = vpop.permute.xlu1 %3123 }
 0x518   :  { %3215 = vst.msk [vmem:[#allocation2 + $0x43c] sm:$0xf] %vm2577_vm4, %v10269_v61  ;;  %5671 = vmatpush.bf16.msra.mxu1 %v8027_v36  ;;  %2639 = vrot.lane.b32.xlu2 %v2601_v0, %s8053_s30 }
 0x519   :  { %3429 = vst.msk [vmem:[#allocation2 + $0x16c] sm:$0xf] %vm2668_vm6, %v3384_v49  ;;  %v2157_v49 = vmax.f32 %v2029_v5, %v2093_v38  ;;  %5507 = vmatpush.bf16.msrb.mxu3 %v8014_v52 }
 0x51a   :  { %3433 = vst.msk [vmem:[#allocation2 + $0x1bc] sm:$0xf] %vm2668_vm6, %v3392_v39  ;;  %v2522_v39 = vrot.slane %v2288_v18, 1  ;;  %3015 = vrot.lane.b32.xlu1 %v9993_v35, %s8053_s30 }
 0x51b   :  { %3174 = vst.msk [vmem:[#allocation2 + $0x6c] sm:$0xf] %vm2668_vm6, %v3132_v31  ;;  %v2225_v3 = vadd.f32 %v10036_v33, %v2157_v49  ;;  %v10340_v36 = vpop.f32.mrf.mxu2  ;;  %v7054_v49 = vld [vmem:[#allocation2 + $0x140] sm:$0xf] }
 0x51c   :  { %3222 = vst.msk [vmem:[#allocation2 + $0x244] sm:$0xf] %vm2668_vm6, %v3132_v31  ;;  %v2554_v33 = vsel %vm2417_vm3, %v2522_v39, 0.0  ;;  %v2333_v39 = vrot.slane %v10210_v51, 7  ;;  %v3122_v51 = vpop.permute.xlu0 %3121 }
 0x51d   :  { %3757 = vst.msk [vmem:[#allocation2 + $0x23c] sm:$0xf] %vm2668_vm6, %v3132_v31  ;;  %v10327_v31 = vpack.c.bf16 %v10306_v24, %v10306_v24  ;;  %v2289_v18 = vmax.f32 %v2225_v3, 0.0  ;;  %v3136_v38 = vpop.permute.xlu2 %3135  ;;  %v10344_v35 = vpack.c.bf16 %v2554_v33, %v2554_v33 }
 0x51e   :  { %3751 = vst.msk [vmem:[#allocation2 + $0x448] sm:$0xf] %vm2577_vm4, %v10300_v8  ;;  %v2366_v33 = vsel %vm2352_vm5, 0.0, %v2333_v39 }
 0x51f   :  { %3200 = vst.msk [vmem:[#allocation2 + $0x3b4] sm:$0xf] %vm2577_vm4, %v10300_v8  ;;  %3009 = vrot.lane.b32.xlu0 %v10327_v31, %s8053_s30  ;;  %v10338_v54 = vpack.c.bf16 %v2289_v18, %v2289_v18 }
 0x520   :  { %3216 = vst.msk [vmem:[#allocation2 + $0x450] sm:$0xf] %vm2577_vm4, %v10300_v8  ;;  %v7883_v5 = vld [vmem:[#allocation2 + $0x16c] sm:$0xf] }
 0x521   :  { %3432 = vst.msk [vmem:[#allocation2 + $0x1a8] sm:$0xf] %vm2668_vm6, %v3390_v15  ;;  %2641 = vrot.lane.b32.xlu2 %v10338_v54, %s8053_s30  ;;  %v7880_v15 = vld [vmem:[#allocation2 + $0x150] sm:$0xf0]  ;;  %v7079_v3 = vor.u32 %v7883_v5, %v7076_v43 }
 0x522   :  { %3170 = vst.msk [vmem:[#allocation2 + $0x1c] sm:$0xf] %vm2668_vm6, %v3124_v56  ;;  %v7055_v52 = vor.u32 %v7880_v15, %v7054_v49  ;;  %3017 = vrot.lane.b32.xlu1 %v10020_v20, %s8053_s30  ;;  %v3130_v20 = vpop.permute.xlu1 %3129 }
 0x523   :  { %11698 = vst [vmem:[#allocation55_spill] sm:$0xff] %v10340_v36  ;;  %v5176_v36 = vpop.f32.mrf.mxu1 }
 0x524   :  { %3218 = vst.msk [vmem:[#allocation2 + $0x1f4] sm:$0xf] %vm2668_vm6, %v3124_v56 }
 0x525   :  { %3753 = vst.msk [vmem:[#allocation2 + $0x1ec] sm:$0xf] %vm2668_vm6, %v3124_v56  ;;  %v10352_v56 = vadd.f32 %v5345_v42, %v5176_v36  ;;  %v10364_v42 = vpack.c.bf16 %v2366_v33, %v2366_v33  ;;  %v5350_v5 = vpop.f32.mrf.mxu2  ;;  %v2334_v36 = vrot.slane %v10254_v41, 7  ;;  %v11699_v41 = vld [vmem:[#allocation117_spill] sm:$0xff] }
 0x526   :  { %3176 = vst.msk [vmem:[#allocation2 + $0x94] sm:$0xf] %vm2668_vm6, %v3136_v38  ;;  %5384 = vmatmul.bf16.gmra.mxu2 %v7079_v3  ;;  %v7074_v3 = vld [vmem:[#allocation2 + $0x168] sm:$0xf] }
 0x527   :  { %3224 = vst.msk [vmem:[#allocation2 + $0x26c] sm:$0xf] %vm2668_vm6, %v3136_v38  ;;  %5210 = vmatmul.bf16.gmra.mxu1 %v7055_v52  ;;  %3013 = vrot.lane.b32.xlu0 %v9965_v27, %s8053_s30  ;;  %v7888_v52 = vld [vmem:[#allocation2 + $0x194] sm:$0xf] }
 0x528   :  { %3759 = vst.msk [vmem:[#allocation2 + $0x264] sm:$0xf] %vm2668_vm6, %v3136_v38  ;;  %v2523_v38 = vrot.slane %v2289_v18, 1  ;;  %v2367_v18 = vsel %vm2352_vm5, 0.0, %v2334_v36  ;;  %v7096_v39 = vld [vmem:[#allocation2 + $0x1a4] sm:$0xf0] }
 0x529   :  { %3601 = vst.msk [vmem:[#allocation2 + $0x330] sm:$0xf] %vm2577_vm4, %v10344_v35  ;;  %2891 = vrot.lane.b32.xlu2 %v10364_v42, %s8053_s30  ;;  %v10388_v15 = vpack.c.bf16 %v2367_v18, %v2367_v18  ;;  %v7885_v36 = vld [vmem:[#allocation2 + $0x178] sm:$0xf0] }
 0x52a   :  { %2694 = vst.msk [vmem:[#allocation2 + $0x334] sm:$0xf] %vm2577_vm4, %v2601_v0  ;;  %v2555_v49 = vsel %vm2417_vm3, %v2523_v38, 0.0  ;;  %2767 = vrot.lane.b32.xlu1 %v11699_v41, %s8053_s30  ;;  %v7075_v18 = vor.u32 %v7885_v36, %v7074_v3  ;;  %v7893_v3 = vld [vmem:[#allocation2 + $0x1bc] sm:$0xf] }
 0x52b   :  { %2826 = vst.msk [vmem:[#allocation2 + $0x338] sm:$0xf] %vm2577_vm4, %v10344_v35  ;;  %v10373_v27 = vpop.f32.mrf.mxu1  ;;  %v10386_v43 = vpack.c.bf16 %v2555_v49, %v2555_v49  ;;  %v7094_v36 = vld [vmem:[#allocation2 + $0x190] sm:$0xf] }
 0x52c   :  { %3477 = vst.msk [vmem:[#allocation2 + $0x32c] sm:$0xf] %vm2577_vm4, %v2601_v0 }
 0x52d   :  { %3493 = vst.msk [vmem:[#allocation2 + $0x3c8] sm:$0xf] %vm2577_vm4, %v2601_v0  ;;  %v11700_v0 = vld [vmem:[#allocation113_spill] sm:$0xff]  ;;  %v10398_v49 = vpop.f32.mrf.mxu2 }
 0x52e   :  { %3169 = vst.msk [vmem:[#allocation2 + $0x8] sm:$0xf] %vm2668_vm6, %v3122_v51 }
 0x52f   :  { %3217 = vst.msk [vmem:[#allocation2 + $0x1e0] sm:$0xf] %vm2668_vm6, %v3122_v51  ;;  %2763 = vrot.lane.b32.xlu0 %v11700_v0, %s8053_s30  ;;  %v7841_v51 = vld [vmem:[#allocation2 + $0x18] sm:$0xf0] }
 0x530   :  { %3173 = vst.msk [vmem:[#allocation2 + $0x58] sm:$0xf] %vm2668_vm6, %v3130_v20 }
 0x531   :  { %3221 = vst.msk [vmem:[#allocation2 + $0x230] sm:$0xf] %vm2668_vm6, %v3130_v20  ;;  %2893 = vrot.lane.b32.xlu2 %v10388_v15, %s8053_s30 }
 0x532   :  { %3756 = vst.msk [vmem:[#allocation2 + $0x228] sm:$0xf] %vm2668_vm6, %v3130_v20  ;;  %v7099_v20 = vor.u32 %v7888_v52, %v7096_v39  ;;  %2769 = vrot.lane.b32.xlu1 %v9372_v46, %s8053_s30  ;;  %v2393_v39 = vrot.slane %v10306_v24, 1  ;;  %v2394_v46 = vrot.slane %v9934_v40, 1 }
 0x533   :  { %3082 = vst.msk [vmem:[#allocation2 + $0x474] sm:$0xf] %vm2577_vm4, %v9944_v62  ;;  %v5181_v41 = vpop.f32.mrf.mxu1 }
 0x534   :  { %3729 = vst.msk [vmem:[#allocation2 + $0x46c] sm:$0xf] %vm2577_vm4, %v9944_v62  ;;  %v3128_v62 = vpop.permute.xlu0 %3127  ;;  %v10404_v0 = vadd.f32 %v5350_v5, %v5181_v41  ;;  %v11701_v5 = vld [vmem:[#allocation106_spill] sm:$0xff]  ;;  %v2426_v24 = vsel %vm2417_vm3, %v2393_v39, 0.0  ;;  %v2427_v52 = vsel %vm2417_vm3, %v2394_v46, 0.0 }
 0x535   :  { %2944 = vst.msk [vmem:[#allocation2 + $0x44c] sm:$0xf] %vm2577_vm4, %v10281_v29  ;;  %v6902_v33 = vld [vmem:[#allocation2 + $0x8] sm:$0xf]  ;;  %v7136_v46 = vld [vmem:[#allocation2 + $0x1f4] sm:$0xf0] }
 0x536   :  { %3703 = vst.msk [vmem:[#allocation2 + $0x444] sm:$0xf] %vm2577_vm4, %v10281_v29  ;;  %v6903_v38 = vor.u32 %v7841_v51, %v6902_v33  ;;  %5389 = vmatmul.bf16.gmra.mxu2 %v7099_v20  ;;  %v3134_v29 = vpop.permute.xlu1 %3133  ;;  %v7890_v33 = vld [vmem:[#allocation2 + $0x1a0] sm:$0xf0]  ;;  %v6922_v51 = vld [vmem:[#allocation2 + $0x30] sm:$0xf] }
 0x537   :  { %3602 = vst.msk [vmem:[#allocation2 + $0x344] sm:$0xf] %vm2577_vm4, %v10386_v43  ;;  %5215 = vmatmul.bf16.gmra.mxu1 %v7075_v18  ;;  %2765 = vrot.lane.b32.xlu0 %v9308_v11, %s8053_s30  ;;  %v7095_v18 = vor.u32 %v7890_v33, %v7094_v36  ;;  %v7114_v33 = vld [vmem:[#allocation2 + $0x1b8] sm:$0xf]  ;;  %v7856_v36 = vld [vmem:[#allocation2 + $0x90] sm:$0xf0] }
 0x538   :  { %2695 = vst.msk [vmem:[#allocation2 + $0x348] sm:$0xf] %vm2577_vm4, %v10338_v54  ;;  %5508 = vmatmul.bf16.vlgmr.msrb.gmra.mxu3 %v6903_v38  ;;  %v7116_v38 = vld [vmem:[#allocation2 + $0x1cc] sm:$0xf0] }
 0x539   :  { %2827 = vst.msk [vmem:[#allocation2 + $0x34c] sm:$0xf] %vm2577_vm4, %v10386_v43  ;;  %2651 = vrot.lane.b32.xlu2 %v11701_v5, %s8053_s30  ;;  %v7119_v20 = vor.u32 %v7893_v3, %v7116_v38  ;;  %v10461_v5 = vpack.c.bf16 %v9893_v4, %v9893_v4 }
 0x53a   :  { %3478 = vst.msk [vmem:[#allocation2 + $0x340] sm:$0xf] %vm2577_vm4, %v10338_v54  ;;  %v5355_v11 = vpop.f32.mrf.mxu2  ;;  %3397 = vrot.lane.b32.xlu1 %v9261_v55, %s8053_s30  ;;  %v2521_v55 = vrot.slane %v9705_v28, 1  ;;  %v10447_v28 = vpack.c.bf16 %v2427_v52, %v2427_v52 }
 0x53b   :  { %3494 = vst.msk [vmem:[#allocation2 + $0x3dc] sm:$0xf] %vm2577_vm4, %v10338_v54  ;;  %v10467_v39 = vpop.f32.mrf.mxu1 }
 0x53c   :  { %3172 = vst.msk [vmem:[#allocation2 + $0x44] sm:$0xf] %vm2668_vm6, %v3128_v62  ;;  %v3448_v54 = vpop.permute.xlu0 %3447 }
 0x53d   :  { %3220 = vst.msk [vmem:[#allocation2 + $0x21c] sm:$0xf] %vm2668_vm6, %v3128_v62 }
 0x53e   :  { %3755 = vst.msk [vmem:[#allocation2 + $0x214] sm:$0xf] %vm2668_vm6, %v3128_v62  ;;  %v10443_v62 = vpack.c.bf16 %v2426_v24, %v2426_v24 }
 0x53f   :  { %3175 = vst.msk [vmem:[#allocation2 + $0x80] sm:$0xf] %vm2668_vm6, %v3134_v29  ;;  %3023 = vrot.lane.b32.xlu0 %v10094_v21, %s8053_s30  ;;  %v11702_v21 = vld [vmem:[#allocation109_spill] sm:$0xff] }
 0x540   :  { %3223 = vst.msk [vmem:[#allocation2 + $0x258] sm:$0xf] %vm2668_vm6, %v3134_v29 }
 0x541   :  { %3758 = vst.msk [vmem:[#allocation2 + $0x250] sm:$0xf] %vm2668_vm6, %v3134_v29  ;;  %2759 = vrot.lane.b32.xlu2 %v11702_v21, %s8053_s30  ;;  %v2553_v29 = vsel %vm2417_vm3, %v2521_v55, 0.0  ;;  %v7156_v21 = vld [vmem:[#allocation2 + $0x21c] sm:$0xf0] }
 0x542   :  { %2969 = vst.msk [vmem:[#allocation2 + $0x288] sm:$0xf] %vm2577_vm4, %v10327_v31  ;;  %v5357_v41 = vpop.f32.mrf.mxu2  ;;  %3403 = vrot.lane.b32.xlu1 %v9406_v25, %s8053_s30  ;;  %v10471_v25 = vpack.c.bf16 %v2553_v29, %v2553_v29 }
 0x543   :  { %3081 = vst.msk [vmem:[#allocation2 + $0x460] sm:$0xf] %vm2577_vm4, %v10327_v31  ;;  %v7846_v40 = vld [vmem:[#allocation2 + $0x40] sm:$0xf0] }
 0x544   :  { %3460 = vst.msk [vmem:[#allocation2 + $0x98] sm:$0xf] %vm2668_vm6, %v3448_v54  ;;  %v6923_v31 = vor.u32 %v7846_v40, %v6922_v51  ;;  %v7898_v40 = vld [vmem:[#allocation2 + $0x1e4] sm:$0xf] }
 0x545   :  { %3508 = vst.msk [vmem:[#allocation2 + $0x270] sm:$0xf] %vm2668_vm6, %v3448_v54  ;;  %v7851_v54 = vld [vmem:[#allocation2 + $0x68] sm:$0xf0] }
 0x546   :  { %2942 = vst.msk [vmem:[#allocation2 + $0x424] sm:$0xf] %vm2577_vm4, %v10364_v42  ;;  %5394 = vmatmul.bf16.gmra.mxu2 %v7119_v20 }
 0x547   :  { %3701 = vst.msk [vmem:[#allocation2 + $0x41c] sm:$0xf] %vm2577_vm4, %v10364_v42  ;;  %5220 = vmatmul.bf16.gmra.mxu1 %v7095_v18  ;;  %v8026_v42 = vld [vmem:[%s11418_s3 + $0xe0] sm:$0xff]  ;;  %3395 = vrot.lane.b32.xlu0 %v9271_v17, %s8053_s30  ;;  %v7903_v18 = vld [vmem:[#allocation2 + $0x20c] sm:$0xf] }
 0x548   :  { %5513 = vmatmul.bf16.gmra.mxu3 %v6923_v31  ;;  %2943 = vst.msk [vmem:[#allocation2 + $0x438] sm:$0xf] %vm2577_vm4, %v10388_v15  ;;  %5672 = vmatpush.bf16.msra.mxu1 %v8026_v42  ;;  %v7159_v42 = vor.u32 %v7903_v18, %v7156_v21 }
 0x549   :  { %3702 = vst.msk [vmem:[#allocation2 + $0x430] sm:$0xf] %vm2577_vm4, %v10388_v15  ;;  %2761 = vrot.lane.b32.xlu2 %v9244_v14, %s8053_s30  ;;  %v6942_v15 = vld [vmem:[#allocation2 + $0x58] sm:$0xf]  ;;  %v7895_v14 = vld [vmem:[#allocation2 + $0x1c8] sm:$0xf0] }
 0x54a   :  { %3337 = vst.msk [vmem:[#allocation2 + $0x464] sm:$0xf] %vm2577_vm4, %v10443_v62  ;;  %v5360_v17 = vpop.f32.mrf.mxu2  ;;  %3409 = vrot.lane.b32.xlu1 %v9481_v6, %s8053_s30  ;;  %v6943_v3 = vor.u32 %v7851_v54, %v6942_v15  ;;  %v7139_v6 = vor.u32 %v7898_v40, %v7136_v46  ;;  %v7115_v55 = vor.u32 %v7895_v14, %v7114_v33  ;;  %v11704_v14 = vld [vmem:[#allocation114_spill] sm:$0xff]  ;;  %v7905_v40 = vld [vmem:[#allocation2 + $0x218] sm:$0xf0] }
 0x54b   :  { %3338 = vst.msk [vmem:[#allocation2 + $0x478] sm:$0xf] %vm2577_vm4, %v10447_v28  ;;  %v7908_v33 = vld [vmem:[#allocation2 + $0x234] sm:$0xf] }
 0x54c   :  { %3777 = vst.msk [vmem:[#allocation2 + $0x470] sm:$0xf] %vm2577_vm4, %v10447_v28  ;;  %v2882_v4 = vpop.permute.xlu0 %2881 }
 0x54d   :  { %3526 = vst.msk [vmem:[#allocation2 + $0x9c] sm:$0xf] %vm2577_vm4, %v10461_v5 }
 0x54e   :  { %3582 = vst.msk [vmem:[#allocation2 + $0x274] sm:$0xf] %vm2577_vm4, %v10461_v5 }
 0x54f   :  { %3600 = vst.msk [vmem:[#allocation2 + $0x13c] sm:$0xf] %vm2577_vm4, %v10471_v25  ;;  %3401 = vrot.lane.b32.xlu0 %v9359_v13, %s8053_s30 }
 0x550   :  { %2921 = vst.msk [vmem:[#allocation2 + $0x284] sm:$0xf] %vm2668_vm6, %v2882_v4 }
 0x551   :  { %v5186_v24 = vpop.f32.mrf.mxu1  ;;  %3019 = vrot.lane.b32.xlu2 %v10047_v50, %s8053_s30 }
 0x552   :  { %v10490_v52 = vadd.f32 %v5355_v11, %v5186_v24  ;;  %v5362_v13 = vpop.f32.mrf.mxu2  ;;  %3141 = vrot.lane.b32.xlu1 %v10152_v16, %s8053_s30  ;;  %v6962_v16 = vld [vmem:[#allocation2 + $0x80] sm:$0xf] }
 0x554   :  { %v2884_v51 = vpop.permute.xlu1 %2883 }
 0x555   :  { %2922 = vst.msk [vmem:[#allocation2 + $0x298] sm:$0xf] %vm2668_vm6, %v2884_v51 }
 0x556   :  { %5399 = vmatmul.bf16.gmra.mxu2 %v7139_v6 }
 0x557   :  { %5225 = vmatmul.bf16.gmra.mxu1 %v7115_v55  ;;  %3407 = vrot.lane.b32.xlu0 %v9486_v32, %s8053_s30  ;;  %v7134_v32 = vld [vmem:[#allocation2 + $0x1e0] sm:$0xf] }
 0x558   :  { %5518 = vmatmul.bf16.gmra.mxu3 %v6943_v3 }
 0x559   :  { %v5188_v50 = vpop.f32.mrf.mxu1  ;;  %3021 = vrot.lane.b32.xlu2 %v10075_v60, %s8053_s30  ;;  %v11703_v60 = vld [vmem:[#allocation120_spill] sm:$0xff] }
 0x55a   :  { %v10499_v11 = vadd.f32 %v5357_v41, %v5188_v50  ;;  %3147 = vrot.lane.b32.xlu1 %v10226_v9, %s8053_s30  ;;  %v5365_v31 = vpop.f32.mrf.mxu2  ;;  %v3097_v41 = vpack.c.bf16 %v10108_v30, %v10108_v30  ;;  %v6963_v9 = vor.u32 %v7856_v36, %v6962_v16 }
 0x55c   :  { %3193 = vst.msk [vmem:[#allocation2 + $0x328] sm:$0xf] %vm2577_vm4, %v3097_v41 }
 0x55d   :  { %v2886_v38 = vpop.permute.xlu0 %2885  ;;  %3209 = vst.msk [vmem:[#allocation2 + $0x3c4] sm:$0xf] %vm2577_vm4, %v3097_v41 }
 0x55e   :  { %2923 = vst.msk [vmem:[#allocation2 + $0x2ac] sm:$0xf] %vm2668_vm6, %v2886_v38 }
 0x55f   :  { %3139 = vrot.lane.b32.xlu0 %v10127_v1, %s8053_s30  ;;  %v7900_v1 = vld [vmem:[#allocation2 + $0x1f0] sm:$0xf0] }
 0x560   :  { %v7135_v4 = vor.u32 %v7900_v1, %v7134_v32  ;;  %v7174_v32 = vld [vmem:[#allocation2 + $0x230] sm:$0xf] }
 0x561   :  { %v5191_v20 = vpop.f32.mrf.mxu1  ;;  %2771 = vrot.lane.b32.xlu2 %v11703_v60, %s8053_s30 }
 0x562   :  { %v10510_v29 = vadd.f32 %v5360_v17, %v5191_v20  ;;  %3151 = vrot.lane.b32.xlu1 %v10300_v8, %s8053_s30  ;;  %v5367_v46 = vpop.f32.mrf.mxu2  ;;  %v7176_v8 = vld [vmem:[#allocation2 + $0x244] sm:$0xf0]  ;;  %v7913_v20 = vld [vmem:[#allocation2 + $0x25c] sm:$0xf] }
 0x563   :  { %v2888_v17 = vpop.permute.xlu1 %2887  ;;  %v7179_v55 = vor.u32 %v7908_v33, %v7176_v8  ;;  %v7915_v8 = vld [vmem:[#allocation2 + $0x268] sm:$0xf0] }
 0x564   :  { %2924 = vst.msk [vmem:[#allocation2 + $0x2c0] sm:$0xf] %vm2668_vm6, %v2888_v17  ;;  %v7216_v17 = vld [vmem:[#allocation2 + $0x294] sm:$0xf0] }
 0x565   :  { %v2644_v30 = vpop.permute.xlu0 %2643 }
 0x566   :  { %5404 = vmatmul.bf16.gmra.mxu2 %v7159_v42  ;;  %2680 = vst.msk [vmem:[#allocation2 + $0x2bc] sm:$0xf] %vm2668_vm6, %v2644_v30 }
 0x567   :  { %5230 = vmatmul.bf16.gmra.mxu1 %v7135_v4  ;;  %3145 = vrot.lane.b32.xlu0 %v10201_v44, %s8053_s30  ;;  %3463 = vst.msk [vmem:[#allocation2 + $0x2b4] sm:$0xf] %vm2668_vm6, %v2644_v30 }
 0x568   :  { %5523 = vmatmul.bf16.gmra.mxu3 %v6963_v9  ;;  %3511 = vst.msk [vmem:[#allocation2 + $0x48c] sm:$0xf] %vm2668_vm6, %v2644_v30  ;;  %v8025_v9 = vld [vmem:[%s11418_s3 + $0xd8] sm:$0xff] }
 0x569   :  { %v5193_v15 = vpop.f32.mrf.mxu1  ;;  %3399 = vrot.lane.b32.xlu2 %v11704_v14, %s8053_s30  ;;  %5673 = vmatpush.bf16.msra.mxu1 %v8025_v9  ;;  %v7918_v14 = vld [vmem:[#allocation2 + $0x284] sm:$0xf] }
 0x56a   :  { %v10523_v54 = vadd.f32 %v5362_v13, %v5193_v15  ;;  %3269 = vrot.lane.b32.xlu1 %v9069_v19, %s8053_s30  ;;  %v7154_v19 = vld [vmem:[#allocation2 + $0x208] sm:$0xf] }
 0x56c   :  { %v2890_v24 = vpop.permute.xlu1 %2889 }
 0x56d   :  { %v2646_v44 = vpop.permute.xlu0 %2645  ;;  %2925 = vst.msk [vmem:[#allocation2 + $0x2d4] sm:$0xf] %vm2668_vm6, %v2890_v24  ;;  %v5370_v13 = vpop.f32.mrf.mxu2  ;;  %v7219_v24 = vor.u32 %v7918_v14, %v7216_v17  ;;  %v7925_v17 = vld [vmem:[#allocation2 + $0x2b8] sm:$0xf0] }
 0x56e   :  { %2681 = vst.msk [vmem:[#allocation2 + $0x2d0] sm:$0xf] %vm2668_vm6, %v2646_v44 }
 0x56f   :  { %3149 = vrot.lane.b32.xlu0 %v10269_v61, %s8053_s30  ;;  %3464 = vst.msk [vmem:[#allocation2 + $0x2c8] sm:$0xf] %vm2668_vm6, %v2646_v44  ;;  %v7155_v61 = vor.u32 %v7905_v40, %v7154_v19 }
 0x570   :  { %3512 = vst.msk [vmem:[#allocation2 + $0x4a0] sm:$0xf] %vm2668_vm6, %v2646_v44 }
 0x571   :  { %v5196_v3 = vpop.f32.mrf.mxu1  ;;  %3405 = vrot.lane.b32.xlu2 %v9440_v37, %s8053_s30 }
 0x572   :  { %v10535_v6 = vadd.f32 %v5365_v31, %v5196_v3  ;;  %v2640_v51 = vpop.permute.xlu2 %2639  ;;  %3275 = vrot.lane.b32.xlu1 %v9209_v34, %s8053_s30  ;;  %v8031_v31 = vld [vmem:[%s11418_s3 + $0x108] sm:$0xff] }
 0x573   :  { %2678 = vst.msk [vmem:[#allocation2 + $0x294] sm:$0xf] %vm2668_vm6, %v2640_v51  ;;  %5844 = vmatpush.bf16.msra.mxu2 %v8031_v31 }
 0x574   :  { %3461 = vst.msk [vmem:[#allocation2 + $0x28c] sm:$0xf] %vm2668_vm6, %v2640_v51  ;;  %v2648_v37 = vpop.permute.xlu1 %2647 }
 0x575   :  { %3509 = vst.msk [vmem:[#allocation2 + $0x464] sm:$0xf] %vm2668_vm6, %v2640_v51  ;;  %v5372_v34 = vpop.f32.mrf.mxu2 }
 0x576   :  { %5409 = vmatmul.bf16.gmra.mxu2 %v7179_v55  ;;  %2682 = vst.msk [vmem:[#allocation2 + $0x2e4] sm:$0xf] %vm2668_vm6, %v2648_v37  ;;  %v7236_v55 = vld [vmem:[#allocation2 + $0x2bc] sm:$0xf0] }
 0x577   :  { %5235 = vmatmul.bf16.gmra.mxu1 %v7155_v61  ;;  %3267 = vrot.lane.b32.xlu0 %v9052_v58, %s8053_s30  ;;  %3465 = vst.msk [vmem:[#allocation2 + $0x2dc] sm:$0xf] %vm2668_vm6, %v2648_v37  ;;  %v7196_v58 = vld [vmem:[#allocation2 + $0x26c] sm:$0xf0] }
 0x578   :  { %3513 = vst.msk [vmem:[#allocation2 + $0x4b4] sm:$0xf] %vm2668_vm6, %v2648_v37  ;;  %v7199_v18 = vor.u32 %v7913_v20, %v7196_v58  ;;  %v7923_v37 = vld [vmem:[#allocation2 + $0x2ac] sm:$0xf]  ;;  %v11707_v20 = vld [vmem:[#allocation22_spill] sm:$0xff] }
 0x579   :  { %v5198_v50 = vpop.f32.mrf.mxu1  ;;  %3137 = vrot.lane.b32.xlu2 %v3097_v41, %s8053_s30 }
 0x57a   :  { %v10548_v38 = vadd.f32 %v5367_v46, %v5198_v50  ;;  %3537 = vrot.lane.b32.xlu1 %v10461_v5, %s8053_s30  ;;  %v7194_v46 = vld [vmem:[#allocation2 + $0x258] sm:$0xf]  ;;  %v7239_v50 = vor.u32 %v7923_v37, %v7236_v55  ;;  %v11715_v37 = vld [vmem:[#allocation102_spill] sm:$0xff] }
 0x57b   :  { %v2642_v16 = vpop.permute.xlu2 %2641 }
 0x57c   :  { %2679 = vst.msk [vmem:[#allocation2 + $0x2a8] sm:$0xf] %vm2668_vm6, %v2642_v16  ;;  %v2650_v21 = vpop.permute.xlu1 %2649 }
 0x57d   :  { %3462 = vst.msk [vmem:[#allocation2 + $0x2a0] sm:$0xf] %vm2668_vm6, %v2642_v16 }
 0x57e   :  { %3510 = vst.msk [vmem:[#allocation2 + $0x478] sm:$0xf] %vm2668_vm6, %v2642_v16  ;;  %v7214_v16 = vld [vmem:[#allocation2 + $0x280] sm:$0xf] }
 0x57f   :  { %3273 = vrot.lane.b32.xlu0 %v9116_v12, %s8053_s30  ;;  %2683 = vst.msk [vmem:[#allocation2 + $0x2f8] sm:$0xf] %vm2668_vm6, %v2650_v21  ;;  %v7910_v12 = vld [vmem:[#allocation2 + $0x240] sm:$0xf0] }
 0x580   :  { %3466 = vst.msk [vmem:[#allocation2 + $0x2f0] sm:$0xf] %vm2668_vm6, %v2650_v21  ;;  %v7175_v60 = vor.u32 %v7910_v12, %v7174_v32 }
 0x581   :  { %v5201_v36 = vpop.f32.mrf.mxu1  ;;  %3143 = vrot.lane.b32.xlu2 %v10175_v48, %s8053_s30  ;;  %3514 = vst.msk [vmem:[#allocation2 + $0x4c8] sm:$0xf] %vm2668_vm6, %v2650_v21  ;;  %v11705_v21 = vld [vmem:[#allocation53_spill] sm:$0xff] }
 0x582   :  { %v10565_v5 = vadd.f32 %v5370_v13, %v5201_v36  ;;  %3629 = vrot.lane.b32.xlu1 %v9580_v26, %s8053_s30  ;;  %v7920_v13 = vld [vmem:[#allocation2 + $0x290] sm:$0xf0] }
 0x583   :  { %v2892_v41 = vpop.permute.xlu2 %2891 }
 0x584   :  { %2926 = vst.msk [vmem:[#allocation2 + $0x2e8] sm:$0xf] %vm2668_vm6, %v2892_v41  ;;  %v3012_v1 = vpop.permute.xlu1 %3011  ;;  %v11708_v41 = vld [vmem:[#allocation69_spill] sm:$0xff] }
 0x585   :  { %3050 = vst.msk [vmem:[#allocation2 + $0x338] sm:$0xf] %vm2668_vm6, %v3012_v1 }
 0x586   :  { %5414 = vmatmul.bf16.gmra.mxu2 %v7199_v18  ;;  %3066 = vst.msk [vmem:[#allocation2 + $0x3d4] sm:$0xf] %vm2668_vm6, %v3012_v1 }
 0x587   :  { %5240 = vmatmul.bf16.gmra.mxu1 %v7175_v60  ;;  %3279 = vrot.lane.b32.xlu0 %v9741_v47, %s8053_s30  ;;  %v2896_v42 = vpop.permute.xlu0 %2895  ;;  %3713 = vst.msk [vmem:[#allocation2 + $0x3cc] sm:$0xf] %vm2668_vm6, %v3012_v1 }
 0x588   :  { %2928 = vst.msk [vmem:[#allocation2 + $0x310] sm:$0xf] %vm2668_vm6, %v2896_v42  ;;  %v7234_v42 = vld [vmem:[#allocation2 + $0x2a8] sm:$0xf] }
 0x589   :  { %v5375_v48 = vpop.f32.mrf.mxu2  ;;  %v5203_v4 = vpop.f32.mrf.mxu1  ;;  %3449 = vrot.lane.b32.xlu2 %v9513_v59, %s8053_s30 }
 0x58a   :  { %v10580_v30 = vadd.f32 %v5372_v34, %v5203_v4  ;;  %3635 = vrot.lane.b32.xlu1 %v9672_v7, %s8053_s30  ;;  %v7215_v34 = vor.u32 %v7920_v13, %v7214_v16 }
 0x58b   :  { %v2894_v26 = vpop.permute.xlu2 %2893 }
 0x58c   :  { %2927 = vst.msk [vmem:[#allocation2 + $0x2fc] sm:$0xf] %vm2668_vm6, %v2894_v26  ;;  %v3016_v15 = vpop.permute.xlu1 %3015  ;;  %v7928_v26 = vld [vmem:[#allocation2 + $0x2d4] sm:$0xf] }
 0x58d   :  { %3052 = vst.msk [vmem:[#allocation2 + $0x360] sm:$0xf] %vm2668_vm6, %v3016_v15 }
 0x58e   :  { %3068 = vst.msk [vmem:[#allocation2 + $0x3fc] sm:$0xf] %vm2668_vm6, %v3016_v15 }
 0x58f   :  { %3627 = vrot.lane.b32.xlu0 %v9548_v10, %s8053_s30  ;;  %3715 = vst.msk [vmem:[#allocation2 + $0x3f4] sm:$0xf] %vm2668_vm6, %v3016_v15  ;;  %v7195_v10 = vor.u32 %v7915_v8, %v7194_v46 }
 0x591   :  { %v5377_v47 = vpop.f32.mrf.mxu2  ;;  %v3010_v59 = vpop.permute.xlu0 %3009  ;;  %3265 = vrot.lane.b32.xlu2 %v9033_v57, %s8053_s30 }
 0x592   :  { %3049 = vst.msk [vmem:[#allocation2 + $0x324] sm:$0xf] %vm2668_vm6, %v3010_v59  ;;  %3281 = vrot.lane.b32.xlu1 %v10443_v62, %s8053_s30 }
 0x593   :  { %v2652_v40 = vpop.permute.xlu2 %2651  ;;  %3065 = vst.msk [vmem:[#allocation2 + $0x3c0] sm:$0xf] %vm2668_vm6, %v3010_v59  ;;  %v7235_v59 = vor.u32 %v7925_v17, %v7234_v42  ;;  %v7933_v16 = vld [vmem:[#allocation2 + $0x2fc] sm:$0xf] }
 0x594   :  { %v5206_v44 = vpop.f32.mrf.mxu1  ;;  %2684 = vst.msk [vmem:[#allocation2 + $0x30c] sm:$0xf] %vm2668_vm6, %v2652_v40  ;;  %v3018_v3 = vpop.permute.xlu1 %3017 }
 0x595   :  { %v10594_v7 = vadd.f32 %v5375_v48, %v5206_v44  ;;  %3467 = vst.msk [vmem:[#allocation2 + $0x304] sm:$0xf] %vm2668_vm6, %v2652_v40  ;;  %v7256_v48 = vld [vmem:[#allocation2 + $0x2e4] sm:$0xf0] }
 0x596   :  { %5419 = vmatmul.bf16.gmra.mxu2 %v7219_v24  ;;  %3515 = vst.msk [vmem:[#allocation2 + $0x4dc] sm:$0xf] %vm2668_vm6, %v2652_v40  ;;  %v7259_v15 = vor.u32 %v7928_v26, %v7256_v48  ;;  %v11710_v44 = vld [vmem:[#allocation9_spill] sm:$0xff]  ;;  %v11711_v24 = vld [vmem:[#allocation66_spill] sm:$0xff] }
 0x597   :  { %5245 = vmatmul.bf16.gmra.mxu1 %v7195_v10  ;;  %3633 = vrot.lane.b32.xlu0 %v9636_v22, %s8053_s30  ;;  %3053 = vst.msk [vmem:[#allocation2 + $0x374] sm:$0xf] %vm2668_vm6, %v3018_v3  ;;  %v2400_v8 = vrot.slane %v11710_v44, 1  ;;  %v11712_v10 = vld [vmem:[#allocation7_spill] sm:$0xff]  ;;  %v11717_v26 = vld [vmem:[#allocation25_spill] sm:$0xff] }
 0x598   :  { %3069 = vst.msk [vmem:[#allocation2 + $0x410] sm:$0xf] %vm2668_vm6, %v3018_v3 }
 0x599   :  { %v5380_v57 = vpop.f32.mrf.mxu2  ;;  %v3014_v33 = vpop.permute.xlu0 %3013  ;;  %3271 = vrot.lane.b32.xlu2 %v9094_v45, %s8053_s30  ;;  %3716 = vst.msk [vmem:[#allocation2 + $0x408] sm:$0xf] %vm2668_vm6, %v3018_v3 }
 0x59a   :  { %3051 = vst.msk [vmem:[#allocation2 + $0x34c] sm:$0xf] %vm2668_vm6, %v3014_v33  ;;  %3287 = vrot.lane.b32.xlu1 %v10003_v23, %s8053_s30 }
 0x59b   :  { %v2760_v22 = vpop.permute.xlu2 %2759  ;;  %3067 = vst.msk [vmem:[#allocation2 + $0x3e8] sm:$0xf] %vm2668_vm6, %v3014_v33 }
 0x59c   :  { %v5208_v19 = vpop.f32.mrf.mxu1  ;;  %3714 = vst.msk [vmem:[#allocation2 + $0x3e0] sm:$0xf] %vm2668_vm6, %v3014_v33  ;;  %v2768_v61 = vpop.permute.xlu1 %2767 }
 0x59d   :  { %v10610_v62 = vadd.f32 %v5377_v47, %v5208_v19  ;;  %2796 = vst.msk [vmem:[#allocation2 + $0x334] sm:$0xf] %vm2668_vm6, %v2760_v22  ;;  %v11709_v47 = vld [vmem:[#allocation93_spill] sm:$0xff] }
 0x59e   :  { %3551 = vst.msk [vmem:[#allocation2 + $0x32c] sm:$0xf] %vm2668_vm6, %v2760_v22 }
 0x59f   :  { %3639 = vrot.lane.b32.xlu0 %v10471_v25, %s8053_s30  ;;  %3567 = vst.msk [vmem:[#allocation2 + $0x3c8] sm:$0xf] %vm2668_vm6, %v2760_v22  ;;  %v2433_v22 = vsel %vm2417_vm3, %v2400_v8, 0.0  ;;  %vm6238_vm3 = vcmask 1024  }
 0x5a0   :  { %2800 = vst.msk [vmem:[#allocation2 + $0x384] sm:$0xf] %vm2668_vm6, %v2768_v61  ;;  %v3248_v13 = vpack.c.bf16 %v2433_v22, %v2433_v22 }
 0x5a1   :  { %v5382_v45 = vpop.f32.mrf.mxu2  ;;  %v2764_v51 = vpop.permute.xlu0 %2763  ;;  %3277 = vrot.lane.b32.xlu2 %v9168_v53, %s8053_s30  ;;  %3555 = vst.msk [vmem:[#allocation2 + $0x37c] sm:$0xf] %vm2668_vm6, %v2768_v61  ;;  %v11706_v53 = vld [vmem:[#allocation95_spill] sm:$0xff] }
 0x5a2   :  { %3571 = vst.msk [vmem:[#allocation2 + $0x418] sm:$0xf] %vm2668_vm6, %v2768_v61  ;;  %3293 = vrot.lane.b32.xlu1 %v11705_v21, %s8053_s30 }
 0x5a3   :  { %v2762_v58 = vpop.permute.xlu2 %2761  ;;  %2798 = vst.msk [vmem:[#allocation2 + $0x35c] sm:$0xf] %vm2668_vm6, %v2764_v51 }
 0x5a4   :  { %v5211_v23 = vpop.f32.mrf.mxu1  ;;  %3553 = vst.msk [vmem:[#allocation2 + $0x354] sm:$0xf] %vm2668_vm6, %v2764_v51  ;;  %v2770_v32 = vpop.permute.xlu1 %2769 }
 0x5a5   :  { %v10626_v25 = vadd.f32 %v5380_v57, %v5211_v23  ;;  %3569 = vst.msk [vmem:[#allocation2 + $0x3f0] sm:$0xf] %vm2668_vm6, %v2764_v51  ;;  %v11714_v51 = vld [vmem:[#allocation107_spill] sm:$0xff] }
 0x5a6   :  { %5424 = vmatmul.bf16.gmra.mxu2 %v7239_v50  ;;  %2797 = vst.msk [vmem:[#allocation2 + $0x348] sm:$0xf] %vm2668_vm6, %v2762_v58 }
 0x5a7   :  { %5250 = vmatmul.bf16.gmra.mxu1 %v7215_v34  ;;  %3285 = vrot.lane.b32.xlu0 %v11706_v53, %s8053_s30  ;;  %3552 = vst.msk [vmem:[#allocation2 + $0x340] sm:$0xf] %vm2668_vm6, %v2762_v58  ;;  %v7930_v34 = vld [vmem:[#allocation2 + $0x2e0] sm:$0xf0]  ;;  %v7276_v53 = vld [vmem:[#allocation2 + $0x30c] sm:$0xf0] }
 0x5a8   :  { %3568 = vst.msk [vmem:[#allocation2 + $0x3dc] sm:$0xf] %vm2668_vm6, %v2762_v58 }
 0x5a9   :  { %v5385_v31 = vpop.f32.mrf.mxu2  ;;  %v2766_v36 = vpop.permute.xlu0 %2765  ;;  %3625 = vrot.lane.b32.xlu2 %v11707_v20, %s8053_s30  ;;  %2801 = vst.msk [vmem:[#allocation2 + $0x398] sm:$0xf] %vm2668_vm6, %v2770_v32 }
 0x5aa   :  { %3556 = vst.msk [vmem:[#allocation2 + $0x390] sm:$0xf] %vm2668_vm6, %v2770_v32  ;;  %3641 = vrot.lane.b32.xlu1 %v10344_v35, %s8053_s30 }
 0x5ab   :  { %v3020_v60 = vpop.permute.xlu2 %3019  ;;  %3572 = vst.msk [vmem:[#allocation2 + $0x42c] sm:$0xf] %vm2668_vm6, %v2770_v32  ;;  %v7254_v32 = vld [vmem:[#allocation2 + $0x2d0] sm:$0xf] }
 0x5ac   :  { %v5213_v12 = vpop.f32.mrf.mxu1  ;;  %2799 = vst.msk [vmem:[#allocation2 + $0x370] sm:$0xf] %vm2668_vm6, %v2766_v36  ;;  %v3398_v1 = vpop.permute.xlu1 %3397 }
 0x5ad   :  { %v10642_v18 = vadd.f32 %v5382_v45, %v5213_v12  ;;  %3554 = vst.msk [vmem:[#allocation2 + $0x368] sm:$0xf] %vm2668_vm6, %v2766_v36  ;;  %v11713_v45 = vld [vmem:[#allocation51_spill] sm:$0xff]  ;;  %v7255_v12 = vor.u32 %v7930_v34, %v7254_v32  ;;  %v11718_v32 = vld [vmem:[#allocation105_spill] sm:$0xff] }
 0x5ae   :  { %3570 = vst.msk [vmem:[#allocation2 + $0x404] sm:$0xf] %vm2668_vm6, %v2766_v36  ;;  %v7279_v36 = vor.u32 %v7933_v16, %v7276_v53 }
 0x5af   :  { %3291 = vrot.lane.b32.xlu0 %v11708_v41, %s8053_s30  ;;  %3054 = vst.msk [vmem:[#allocation2 + $0x388] sm:$0xf] %vm2668_vm6, %v3020_v60  ;;  %v11716_v41 = vld [vmem:[#allocation49_spill] sm:$0xff] }
 0x5b0   :  { %3070 = vst.msk [vmem:[#allocation2 + $0x424] sm:$0xf] %vm2668_vm6, %v3020_v60 }
 0x5b1   :  { %v5387_v9 = vpop.f32.mrf.mxu2  ;;  %v3024_v4 = vpop.permute.xlu0 %3023  ;;  %3631 = vrot.lane.b32.xlu2 %v11709_v47, %s8053_s30  ;;  %3717 = vst.msk [vmem:[#allocation2 + $0x41c] sm:$0xf] %vm2668_vm6, %v3020_v60 }
 0x5b2   :  { %3436 = vst.msk [vmem:[#allocation2 + $0x3d8] sm:$0xf] %vm2668_vm6, %v3398_v1  ;;  %3647 = vrot.lane.b32.xlu1 %v11711_v24, %s8053_s30  ;;  %v7296_v24 = vld [vmem:[#allocation2 + $0x334] sm:$0xf0] }
 0x5b3   :  { %v3022_v14 = vpop.permute.xlu2 %3021  ;;  %3056 = vst.msk [vmem:[#allocation2 + $0x3b0] sm:$0xf] %vm2668_vm6, %v3024_v4 }
 0x5b4   :  { %v5216_v35 = vpop.f32.mrf.mxu1  ;;  %3072 = vst.msk [vmem:[#allocation2 + $0x44c] sm:$0xf] %vm2668_vm6, %v3024_v4  ;;  %v3404_v33 = vpop.permute.xlu1 %3403 }
 0x5b5   :  { %v10658_v46 = vadd.f32 %v5385_v31, %v5216_v35  ;;  %3719 = vst.msk [vmem:[#allocation2 + $0x444] sm:$0xf] %vm2668_vm6, %v3024_v4  ;;  %v8024_v4 = vld [vmem:[%s11418_s3 + $0xd0] sm:$0xff] }
 0x5b6   :  { %5429 = vmatmul.bf16.gmra.mxu2 %v7259_v15  ;;  %3055 = vst.msk [vmem:[#allocation2 + $0x39c] sm:$0xf] %vm2668_vm6, %v3022_v14  ;;  %5674 = vmatpush.bf16.msra.mxu1 %v8024_v4 }
 0x5b7   :  { %5255 = vmatmul.bf16.gmra.mxu1 %v7235_v59  ;;  %3539 = vrot.lane.b32.xlu0 %v11712_v10, %s8053_s30  ;;  %3071 = vst.msk [vmem:[#allocation2 + $0x438] sm:$0xf] %vm2668_vm6, %v3022_v14  ;;  %v7938_v59 = vld [vmem:[#allocation2 + $0x324] sm:$0xf] }
 0x5b8   :  { %3718 = vst.msk [vmem:[#allocation2 + $0x430] sm:$0xf] %vm2668_vm6, %v3022_v14  ;;  %v7935_v14 = vld [vmem:[#allocation2 + $0x308] sm:$0xf0] }
 0x5b9   :  { %v5390_v57 = vpop.f32.mrf.mxu2  ;;  %v3396_v19 = vpop.permute.xlu0 %3395  ;;  %3637 = vrot.lane.b32.xlu2 %v11713_v45, %s8053_s30  ;;  %3439 = vst.msk [vmem:[#allocation2 + $0x414] sm:$0xf] %vm2668_vm6, %v3404_v33 }
 0x5ba   :  { %3435 = vst.msk [vmem:[#allocation2 + $0x3c4] sm:$0xf] %vm2668_vm6, %v3396_v19  ;;  %3653 = vrot.lane.b32.xlu1 %v11714_v51, %s8053_s30 }
 0x5bb   :  { %v5509_v40 = vpop.f32.mrf.mxu3  ;;  %3783 = vst.msk [vmem:[#allocation2 + $0x4e8] sm:$0xf] %vm2577_vm4, %v3248_v13 }
 0x5bc   :  { %v10671_v3 = vadd.f32 %v5509_v40, %v10288_v63  ;;  %v5218_v55 = vpop.f32.mrf.mxu1  ;;  %v2772_v63 = vpop.permute.xlu2 %2771  ;;  %3344 = vst.msk [vmem:[#allocation2 + $0x4f0] sm:$0xf] %vm2577_vm4, %v3248_v13  ;;  %v7274_v40 = vld [vmem:[#allocation2 + $0x2f8] sm:$0xf] }
 0x5bd   :  { %v10679_v61 = vadd.f32 %v5387_v9, %v5218_v55  ;;  %2802 = vst.msk [vmem:[#allocation2 + $0x3ac] sm:$0xf] %vm2668_vm6, %v2772_v63  ;;  %v3410_v58 = vpop.permute.xlu1 %3409  ;;  %v7275_v19 = vor.u32 %v7935_v14, %v7274_v40  ;;  %v7948_v40 = vld [vmem:[#allocation2 + $0x374] sm:$0xf] }
 0x5be   :  { %3557 = vst.msk [vmem:[#allocation2 + $0x3a4] sm:$0xf] %vm2668_vm6, %v2772_v63 }
 0x5bf   :  { %3573 = vst.msk [vmem:[#allocation2 + $0x440] sm:$0xf] %vm2668_vm6, %v2772_v63  ;;  %3645 = vrot.lane.b32.xlu0 %v11715_v37, %s8053_s30 }
 0x5c0   :  { %3442 = vst.msk [vmem:[#allocation2 + $0x450] sm:$0xf] %vm2668_vm6, %v3410_v58  ;;  %v7943_v58 = vld [vmem:[#allocation2 + $0x34c] sm:$0xf] }
 0x5c1   :  { %v5392_v50 = vpop.f32.mrf.mxu2  ;;  %v3402_v21 = vpop.permute.xlu0 %3401  ;;  %3283 = vrot.lane.b32.xlu2 %v10447_v28, %s8053_s30 }
 0x5c2   :  { %3438 = vst.msk [vmem:[#allocation2 + $0x400] sm:$0xf] %vm2668_vm6, %v3402_v21 }
 0x5c3   :  { %v10689_v23 = vpop.f32.mrf.mxu3 }
 0x5c4   :  { %v5221_v31 = vpop.f32.mrf.mxu1  ;;  %v3400_v60 = vpop.permute.xlu2 %3399 }
 0x5c5   :  { %v10697_v20 = vadd.f32 %v5390_v57, %v5221_v31  ;;  %3437 = vst.msk [vmem:[#allocation2 + $0x3ec] sm:$0xf] %vm2668_vm6, %v3400_v60  ;;  %v3142_v1 = vpop.permute.xlu1 %3141  ;;  %v7299_v57 = vor.u32 %v7938_v59, %v7296_v24  ;;  %v7316_v31 = vld [vmem:[#allocation2 + $0x35c] sm:$0xf0]  ;;  %v7314_v24 = vld [vmem:[#allocation2 + $0x348] sm:$0xf] }
 0x5c6   :  { %5434 = vmatmul.bf16.gmra.mxu2 %v7279_v36  ;;  %3179 = vst.msk [vmem:[#allocation2 + $0x2b0] sm:$0xf] %vm2668_vm6, %v3142_v1  ;;  %v7319_v60 = vor.u32 %v7943_v58, %v7316_v31 }
 0x5c7   :  { %5260 = vmatmul.bf16.gmra.mxu1 %v7255_v12  ;;  %3651 = vrot.lane.b32.xlu0 %v11716_v41, %s8053_s30  ;;  %3227 = vst.msk [vmem:[#allocation2 + $0x488] sm:$0xf] %vm2668_vm6, %v3142_v1  ;;  %v7294_v12 = vld [vmem:[#allocation2 + $0x320] sm:$0xf] }
 0x5c8   :  { %3762 = vst.msk [vmem:[#allocation2 + $0x480] sm:$0xf] %vm2668_vm6, %v3142_v1 }
 0x5c9   :  { %v5395_v48 = vpop.f32.mrf.mxu2  ;;  %v3408_v42 = vpop.permute.xlu0 %3407  ;;  %3289 = vrot.lane.b32.xlu2 %v11717_v26, %s8053_s30 }
 0x5ca   :  { %3441 = vst.msk [vmem:[#allocation2 + $0x43c] sm:$0xf] %vm2668_vm6, %v3408_v42 }
 0x5cb   :  { %v5514_v9 = vpop.f32.mrf.mxu3 }
 0x5cc   :  { %v10703_v28 = vadd.f32 %v5514_v9, %v10352_v56  ;;  %v5223_v47 = vpop.f32.mrf.mxu1  ;;  %v3406_v56 = vpop.permute.xlu2 %3405 }
 0x5cd   :  { %v10712_v35 = vadd.f32 %v5392_v50, %v5223_v47  ;;  %3440 = vst.msk [vmem:[#allocation2 + $0x428] sm:$0xf] %vm2668_vm6, %v3406_v56  ;;  %v3148_v44 = vpop.permute.xlu1 %3147  ;;  %v11719_v56 = vld [vmem:[#allocation5_spill] sm:$0xff] }
 0x5ce   :  { %3182 = vst.msk [vmem:[#allocation2 + $0x2ec] sm:$0xf] %vm2668_vm6, %v3148_v44 }
 0x5cf   :  { %3230 = vst.msk [vmem:[#allocation2 + $0x4c4] sm:$0xf] %vm2668_vm6, %v3148_v44 }
 0x5d0   :  { %3765 = vst.msk [vmem:[#allocation2 + $0x4bc] sm:$0xf] %vm2668_vm6, %v3148_v44 }
 0x5d1   :  { %v5397_v15 = vpop.f32.mrf.mxu2  ;;  %v3140_v8 = vpop.permute.xlu0 %3139  ;;  %3295 = vrot.lane.b32.xlu2 %v3248_v13, %s8053_s30 }
 0x5d2   :  { %3178 = vst.msk [vmem:[#allocation2 + $0x29c] sm:$0xf] %vm2668_vm6, %v3140_v8 }
 0x5d3   :  { %v10717_v17 = vpop.f32.mrf.mxu3  ;;  %3226 = vst.msk [vmem:[#allocation2 + $0x474] sm:$0xf] %vm2668_vm6, %v3140_v8 }
 0x5d4   :  { %v5226_v10 = vpop.f32.mrf.mxu1  ;;  %v3138_v22 = vpop.permute.xlu2 %3137  ;;  %3761 = vst.msk [vmem:[#allocation2 + $0x46c] sm:$0xf] %vm2668_vm6, %v3140_v8  ;;  %v7336_v8 = vld [vmem:[#allocation2 + $0x384] sm:$0xf0] }
 0x5d5   :  { %v10722_v33 = vadd.f32 %v5395_v48, %v5226_v10  ;;  %3177 = vst.msk [vmem:[#allocation2 + $0x288] sm:$0xf] %vm2668_vm6, %v3138_v22  ;;  %v3152_v13 = vpop.permute.xlu1 %3151 }
 0x5d6   :  { %5439 = vmatmul.bf16.gmra.mxu2 %v7299_v57  ;;  %3225 = vst.msk [vmem:[#allocation2 + $0x460] sm:$0xf] %vm2668_vm6, %v3138_v22  ;;  %v7339_v22 = vor.u32 %v7948_v40, %v7336_v8 }
 0x5d7   :  { %5265 = vmatmul.bf16.gmra.mxu1 %v7275_v19  ;;  %3184 = vst.msk [vmem:[#allocation2 + $0x314] sm:$0xf] %vm2668_vm6, %v3152_v13  ;;  %v7945_v19 = vld [vmem:[#allocation2 + $0x358] sm:$0xf0] }
 0x5d8   :  { %3232 = vst.msk [vmem:[#allocation2 + $0x4ec] sm:$0xf] %vm2668_vm6, %v3152_v13 }
 0x5d9   :  { %v5400_v55 = vpop.f32.mrf.mxu2  ;;  %v3146_v51 = vpop.permute.xlu0 %3145  ;;  %3643 = vrot.lane.b32.xlu2 %v10386_v43, %s8053_s30  ;;  %3767 = vst.msk [vmem:[#allocation2 + $0x4e4] sm:$0xf] %vm2668_vm6, %v3152_v13  ;;  %v7940_v43 = vld [vmem:[#allocation2 + $0x330] sm:$0xf0] }
 0x5da   :  { %3181 = vst.msk [vmem:[#allocation2 + $0x2d8] sm:$0xf] %vm2668_vm6, %v3146_v51  ;;  %v7295_v9 = vor.u32 %v7940_v43, %v7294_v12  ;;  %v8030_v12 = vld [vmem:[%s11418_s3 + $0x100] sm:$0xff] }
 0x5db   :  { %v5519_v45 = vpop.f32.mrf.mxu3  ;;  %3229 = vst.msk [vmem:[#allocation2 + $0x4b0] sm:$0xf] %vm2668_vm6, %v3146_v51  ;;  %5845 = vmatpush.bf16.msra.mxu2 %v8030_v12 }
 0x5dc   :  { %v10730_v63 = vadd.f32 %v5519_v45, %v10404_v0  ;;  %v5228_v37 = vpop.f32.mrf.mxu1  ;;  %v3144_v16 = vpop.permute.xlu2 %3143  ;;  %3764 = vst.msk [vmem:[#allocation2 + $0x4a8] sm:$0xf] %vm2668_vm6, %v3146_v51 }
 0x5dd   :  { %v10737_v50 = vadd.f32 %v5397_v15, %v5228_v37  ;;  %3180 = vst.msk [vmem:[#allocation2 + $0x2c4] sm:$0xf] %vm2668_vm6, %v3144_v16  ;;  %v3270_v21 = vpop.permute.xlu1 %3269 }
 0x5de   :  { %3228 = vst.msk [vmem:[#allocation2 + $0x49c] sm:$0xf] %vm2668_vm6, %v3144_v16 }
 0x5df   :  { %3763 = vst.msk [vmem:[#allocation2 + $0x494] sm:$0xf] %vm2668_vm6, %v3144_v16 }
 0x5e0   :  { %3315 = vst.msk [vmem:[#allocation2 + $0xd0] sm:$0xf] %vm2668_vm6, %v3270_v21 }
 0x5e1   :  { %v5402_v34 = vpop.f32.mrf.mxu2  ;;  %v3150_v53 = vpop.permute.xlu0 %3149  ;;  %3649 = vrot.lane.b32.xlu2 %v11718_v32, %s8053_s30 }
 0x5e2   :  { %3183 = vst.msk [vmem:[#allocation2 + $0x300] sm:$0xf] %vm2668_vm6, %v3150_v53 }
 0x5e3   :  { %v10743_v0 = vpop.f32.mrf.mxu3  ;;  %3231 = vst.msk [vmem:[#allocation2 + $0x4d8] sm:$0xf] %vm2668_vm6, %v3150_v53 }
 0x5e4   :  { %v5231_v36 = vpop.f32.mrf.mxu1  ;;  %v3450_v48 = vpop.permute.xlu2 %3449  ;;  %3766 = vst.msk [vmem:[#allocation2 + $0x4d0] sm:$0xf] %vm2668_vm6, %v3150_v53 }
 0x5e5   :  { %v10751_v41 = vadd.f32 %v5400_v55, %v5231_v36  ;;  %3468 = vst.msk [vmem:[#allocation2 + $0x318] sm:$0xf] %vm2668_vm6, %v3450_v48  ;;  %v3276_v26 = vpop.permute.xlu1 %3275  ;;  %v7315_v55 = vor.u32 %v7945_v19, %v7314_v24  ;;  %v7953_v36 = vld [vmem:[#allocation2 + $0x39c] sm:$0xf]  ;;  %v8023_v24 = vld [vmem:[%s11418_s3 + $0xc8] sm:$0xff] }
 0x5e6   :  { %5444 = vmatmul.bf16.gmra.mxu2 %v7319_v60  ;;  %3516 = vst.msk [vmem:[#allocation2 + $0x4f0] sm:$0xf] %vm2668_vm6, %v3450_v48  ;;  %v7334_v60 = vld [vmem:[#allocation2 + $0x370] sm:$0xf]  ;;  %5675 = vmatpush.bf16.msra.mxu1 %v8023_v24  ;;  %v7374_v24 = vld [vmem:[#allocation2 + $0x3c0] sm:$0xf] }
 0x5e7   :  { %5270 = vmatmul.bf16.gmra.mxu1 %v7295_v9  ;;  %3318 = vst.msk [vmem:[#allocation2 + $0x10c] sm:$0xf] %vm2668_vm6, %v3276_v26  ;;  %v7002_v8 = vld [vmem:[#allocation2 + $0xd0] sm:$0xf] }
 0x5e9   :  { %v5405_v42 = vpop.f32.mrf.mxu2  ;;  %v3268_v47 = vpop.permute.xlu0 %3267  ;;  %3655 = vrot.lane.b32.xlu2 %v11719_v56, %s8053_s30 }
 0x5ea   :  { %3314 = vst.msk [vmem:[#allocation2 + $0xbc] sm:$0xf] %vm2668_vm6, %v3268_v47  ;;  %v7950_v47 = vld [vmem:[#allocation2 + $0x380] sm:$0xf0] }
 0x5eb   :  { %v5524_v1 = vpop.f32.mrf.mxu3 }
 0x5ec   :  { %v10759_v4 = vadd.f32 %v5524_v1, %v10490_v52  ;;  %v5233_v15 = vpop.f32.mrf.mxu1  ;;  %v3266_v14 = vpop.permute.xlu2 %3265  ;;  %v7356_v1 = vld [vmem:[#allocation2 + $0x3ac] sm:$0xf0] }
 0x5ed   :  { %v10765_v59 = vadd.f32 %v5402_v34, %v5233_v15  ;;  %3313 = vst.msk [vmem:[#allocation2 + $0xa8] sm:$0xf] %vm2668_vm6, %v3266_v14  ;;  %v3538_v52 = vpop.permute.xlu1 %3537  ;;  %v7359_v56 = vor.u32 %v7953_v36, %v7356_v1  ;;  %v7335_v14 = vor.u32 %v7950_v47, %v7334_v60 }
 0x5ee   :  { %3550 = vst.msk [vmem:[#allocation2 + $0x138] sm:$0xf] %vm2668_vm6, %v3538_v52 }
 0x5ef   :  { %3566 = vst.msk [vmem:[#allocation2 + $0x1d4] sm:$0xf] %vm2668_vm6, %v3538_v52 }
 0x5f1   :  { %v5407_v44 = vpop.f32.mrf.mxu2  ;;  %v3274_v10 = vpop.permute.xlu0 %3273  ;;  %v7861_v37 = vld [vmem:[#allocation2 + $0xb8] sm:$0xf0] }
 0x5f2   :  { %3317 = vst.msk [vmem:[#allocation2 + $0xf8] sm:$0xf] %vm2668_vm6, %v3274_v10 }
 0x5f4   :  { %v5236_v57 = vpop.f32.mrf.mxu1  ;;  %v3272_v13 = vpop.permute.xlu2 %3271  ;;  %v6982_v51 = vld [vmem:[#allocation2 + $0xa8] sm:$0xf] }
 0x5f5   :  { %v10770_v45 = vadd.f32 %v5405_v42, %v5236_v57  ;;  %3316 = vst.msk [vmem:[#allocation2 + $0xe4] sm:$0xf] %vm2668_vm6, %v3272_v13  ;;  %v6983_v16 = vor.u32 %v7861_v37, %v6982_v51  ;;  %v3630_v58 = vpop.permute.xlu1 %3629  ;;  %v7958_v51 = vld [vmem:[#allocation2 + $0x3c4] sm:$0xf]  ;;  %v7955_v37 = vld [vmem:[#allocation2 + $0x3a8] sm:$0xf0] }
 0x5f6   :  { %5449 = vmatmul.bf16.gmra.mxu2 %v7339_v22  ;;  %3675 = vst.msk [vmem:[#allocation2 + $0x210] sm:$0xf] %vm2668_vm6, %v3630_v58  ;;  %v7376_v58 = vld [vmem:[#allocation2 + $0x3d4] sm:$0xf0] }
 0x5f7   :  { %5275 = vmatmul.bf16.gmra.mxu1 %v7315_v55  ;;  %5528 = vmatmul.bf16.gmra.mxu3 %v6983_v16  ;;  %v7379_v36 = vor.u32 %v7958_v51, %v7376_v58 }
 0x5f9   :  { %v5410_v34 = vpop.f32.mrf.mxu2  ;;  %v3280_v43 = vpop.permute.xlu0 %3279 }
 0x5fa   :  { %3320 = vst.msk [vmem:[#allocation2 + $0x134] sm:$0xf] %vm2668_vm6, %v3280_v43  ;;  %v7022_v43 = vld [vmem:[#allocation2 + $0xf8] sm:$0xf] }
 0x5fc   :  { %v5238_v21 = vpop.f32.mrf.mxu1  ;;  %v3278_v31 = vpop.permute.xlu2 %3277  ;;  %v7866_v42 = vld [vmem:[#allocation2 + $0xe0] sm:$0xf0] }
 0x5fd   :  { %v10776_v53 = vadd.f32 %v5407_v44, %v5238_v21  ;;  %3319 = vst.msk [vmem:[#allocation2 + $0x120] sm:$0xf] %vm2668_vm6, %v3278_v31  ;;  %v3636_v9 = vpop.permute.xlu1 %3635  ;;  %v7003_v52 = vor.u32 %v7866_v42, %v7002_v8  ;;  %v7354_v31 = vld [vmem:[#allocation2 + $0x398] sm:$0xf]  ;;  %v7963_v8 = vld [vmem:[#allocation2 + $0x3ec] sm:$0xf] }
 0x5fe   :  { %3678 = vst.msk [vmem:[#allocation2 + $0x24c] sm:$0xf] %vm2668_vm6, %v3636_v9  ;;  %v7871_v9 = vld [vmem:[#allocation2 + $0x108] sm:$0xf0] }
 0x601   :  { %v5412_v32 = vpop.f32.mrf.mxu2  ;;  %v3628_v48 = vpop.permute.xlu0 %3627 }
 0x602   :  { %3674 = vst.msk [vmem:[#allocation2 + $0x1fc] sm:$0xf] %vm2668_vm6, %v3628_v48  ;;  %v7023_v48 = vor.u32 %v7871_v9, %v7022_v43 }
 0x604   :  { %v5241_v26 = vpop.f32.mrf.mxu1  ;;  %v3626_v44 = vpop.permute.xlu2 %3625 }
 0x605   :  { %v10784_v15 = vadd.f32 %v5410_v34, %v5241_v26  ;;  %3673 = vst.msk [vmem:[#allocation2 + $0x1e8] sm:$0xf] %vm2668_vm6, %v3626_v44  ;;  %v3282_v40 = vpop.permute.xlu1 %3281 }
 0x606   :  { %5454 = vmatmul.bf16.gmra.mxu2 %v7359_v56  ;;  %3321 = vst.msk [vmem:[#allocation2 + $0x328] sm:$0xf] %vm2668_vm6, %v3282_v40  ;;  %v7396_v40 = vld [vmem:[#allocation2 + $0x3fc] sm:$0xf0] }
 0x607   :  { %5280 = vmatmul.bf16.gmra.mxu1 %v7335_v14  ;;  %5533 = vmatmul.bf16.gmra.mxu3 %v7003_v52  ;;  %v7399_v51 = vor.u32 %v7963_v8, %v7396_v40 }
 0x609   :  { %v5415_v10 = vpop.f32.mrf.mxu2  ;;  %v3634_v57 = vpop.permute.xlu0 %3633 }
 0x60a   :  { %3677 = vst.msk [vmem:[#allocation2 + $0x238] sm:$0xf] %vm2668_vm6, %v3634_v57  ;;  %v7042_v57 = vld [vmem:[#allocation2 + $0x120] sm:$0xf] }
 0x60c   :  { %v5243_v19 = vpop.f32.mrf.mxu1  ;;  %v3632_v55 = vpop.permute.xlu2 %3631 }
 0x60d   :  { %v10792_v22 = vadd.f32 %v5412_v32, %v5243_v19  ;;  %3676 = vst.msk [vmem:[#allocation2 + $0x224] sm:$0xf] %vm2668_vm6, %v3632_v55  ;;  %v3288_v16 = vpop.permute.xlu1 %3287  ;;  %v7355_v32 = vor.u32 %v7955_v37, %v7354_v31  ;;  %v7960_v55 = vld [vmem:[#allocation2 + $0x3d0] sm:$0xf0] }
 0x60e   :  { %3324 = vst.msk [vmem:[#allocation2 + $0x364] sm:$0xf] %vm2668_vm6, %v3288_v16 }
 0x611   :  { %v5417_v13 = vpop.f32.mrf.mxu2  ;;  %v3640_v34 = vpop.permute.xlu0 %3639 }
 0x612   :  { %3680 = vst.msk [vmem:[#allocation2 + $0x274] sm:$0xf] %vm2668_vm6, %v3640_v34  ;;  %v7876_v34 = vld [vmem:[#allocation2 + $0x130] sm:$0xf0] }
 0x613   :  { %v7043_v58 = vor.u32 %v7876_v34, %v7042_v57  ;;  %v7062_v57 = vld [vmem:[#allocation2 + $0x148] sm:$0xf] }
 0x614   :  { %v5246_v21 = vpop.f32.mrf.mxu1  ;;  %v3638_v60 = vpop.permute.xlu2 %3637 }
 0x615   :  { %v10797_v12 = vadd.f32 %v5415_v10, %v5246_v21  ;;  %3679 = vst.msk [vmem:[#allocation2 + $0x260] sm:$0xf] %vm2668_vm6, %v3638_v60  ;;  %v3294_v42 = vpop.permute.xlu1 %3293 }
 0x616   :  { %5459 = vmatmul.bf16.gmra.mxu2 %v7379_v36  ;;  %3327 = vst.msk [vmem:[#allocation2 + $0x3a0] sm:$0xf] %vm2668_vm6, %v3294_v42 }
 0x617   :  { %5285 = vmatmul.bf16.gmra.mxu1 %v7355_v32  ;;  %5538 = vmatmul.bf16.gmra.mxu3 %v7023_v48  ;;  %v7416_v48 = vld [vmem:[#allocation2 + $0x424] sm:$0xf0] }
 0x619   :  { %v5420_v1 = vpop.f32.mrf.mxu2  ;;  %v3286_v26 = vpop.permute.xlu0 %3285 }
 0x61a   :  { %3323 = vst.msk [vmem:[#allocation2 + $0x350] sm:$0xf] %vm2668_vm6, %v3286_v26 }
 0x61c   :  { %v5248_v47 = vpop.f32.mrf.mxu1  ;;  %v3284_v14 = vpop.permute.xlu2 %3283 }
 0x61d   :  { %v10802_v56 = vadd.f32 %v5417_v13, %v5248_v47  ;;  %3322 = vst.msk [vmem:[#allocation2 + $0x33c] sm:$0xf] %vm2668_vm6, %v3284_v14  ;;  %v3642_v10 = vpop.permute.xlu1 %3641  ;;  %v7375_v13 = vor.u32 %v7960_v55, %v7374_v24  ;;  %v7968_v47 = vld [vmem:[#allocation2 + $0x414] sm:$0xf]  ;;  %v7881_v14 = vld [vmem:[#allocation2 + $0x158] sm:$0xf0] }
 0x61e   :  { %3681 = vst.msk [vmem:[#allocation2 + $0x468] sm:$0xf] %vm2668_vm6, %v3642_v10  ;;  %v7965_v24 = vld [vmem:[#allocation2 + $0x3f8] sm:$0xf0] }
 0x621   :  { %v5422_v44 = vpop.f32.mrf.mxu2  ;;  %v3292_v52 = vpop.permute.xlu0 %3291 }
 0x622   :  { %3326 = vst.msk [vmem:[#allocation2 + $0x38c] sm:$0xf] %vm2668_vm6, %v3292_v52  ;;  %v7419_v52 = vor.u32 %v7968_v47, %v7416_v48  ;;  %v7414_v48 = vld [vmem:[#allocation2 + $0x410] sm:$0xf] }
 0x624   :  { %v5251_v19 = vpop.f32.mrf.mxu1  ;;  %v3290_v16 = vpop.permute.xlu2 %3289 }
 0x625   :  { %v10807_v37 = vadd.f32 %v5420_v1, %v5251_v19  ;;  %3325 = vst.msk [vmem:[#allocation2 + $0x378] sm:$0xf] %vm2668_vm6, %v3290_v16  ;;  %v3648_v31 = vpop.permute.xlu1 %3647  ;;  %v7394_v1 = vld [vmem:[#allocation2 + $0x3e8] sm:$0xf]  ;;  %v7063_v19 = vor.u32 %v7881_v14, %v7062_v57  ;;  %v7082_v14 = vld [vmem:[#allocation2 + $0x170] sm:$0xf] }
 0x626   :  { %5464 = vmatmul.bf16.gmra.mxu2 %v7399_v51  ;;  %3684 = vst.msk [vmem:[#allocation2 + $0x4a4] sm:$0xf] %vm2668_vm6, %v3648_v31  ;;  %v7395_v10 = vor.u32 %v7965_v24, %v7394_v1  ;;  %v7436_v31 = vld [vmem:[#allocation2 + $0x44c] sm:$0xf0]  ;;  %v7456_v57 = vld [vmem:[#allocation2 + $0x474] sm:$0xf0] }
 0x627   :  { %5290 = vmatmul.bf16.gmra.mxu1 %v7375_v13  ;;  %5543 = vmatmul.bf16.gmra.mxu3 %v7043_v58 }
 0x629   :  { %v5425_v43 = vpop.f32.mrf.mxu2  ;;  %v3540_v21 = vpop.permute.xlu0 %3539 }
 0x62a   :  { %3558 = vst.msk [vmem:[#allocation2 + $0x3b8] sm:$0xf] %vm2668_vm6, %v3540_v21 }
 0x62b   :  { %3574 = vst.msk [vmem:[#allocation2 + $0x454] sm:$0xf] %vm2668_vm6, %v3540_v21  ;;  %v7970_v21 = vld [vmem:[#allocation2 + $0x420] sm:$0xf0] }
 0x62c   :  { %v5253_v36 = vpop.f32.mrf.mxu1  ;;  %v3296_v60 = vpop.permute.xlu2 %3295 }
 0x62d   :  { %v10812_v32 = vadd.f32 %v5422_v44, %v5253_v36  ;;  %3328 = vst.msk [vmem:[#allocation2 + $0x3b4] sm:$0xf] %vm2668_vm6, %v3296_v60  ;;  %v3654_v26 = vpop.permute.xlu1 %3653  ;;  %v7886_v36 = vld [vmem:[#allocation2 + $0x180] sm:$0xf0] }
 0x62e   :  { %3687 = vst.msk [vmem:[#allocation2 + $0x4e0] sm:$0xf] %vm2668_vm6, %v3654_v26  ;;  %v7415_v26 = vor.u32 %v7970_v21, %v7414_v48 }
 0x631   :  { %v5427_v9 = vpop.f32.mrf.mxu2  ;;  %v3646_v42 = vpop.permute.xlu0 %3645 }
 0x632   :  { %3683 = vst.msk [vmem:[#allocation2 + $0x490] sm:$0xf] %vm2668_vm6, %v3646_v42 }
 0x634   :  { %v5256_v8 = vpop.f32.mrf.mxu1  ;;  %v3644_v40 = vpop.permute.xlu2 %3643 }
 0x635   :  { %v10818_v44 = vadd.f32 %v5425_v43, %v5256_v8  ;;  %3682 = vst.msk [vmem:[#allocation2 + $0x47c] sm:$0xf] %vm2668_vm6, %v3644_v40  ;;  %v7973_v43 = vld [vmem:[#allocation2 + $0x43c] sm:$0xf]  ;;  %v8022_v8 = vld [vmem:[%s11418_s3 + $0xc0] sm:$0xff] }
 0x636   :  { %5469 = vmatmul.bf16.gmra.mxu2 %v7419_v52  ;;  %v7439_v1 = vor.u32 %v7973_v43, %v7436_v31  ;;  %5676 = vmatpush.bf16.msra.mxu1 %v8022_v8  ;;  %v7896_v8 = vld [vmem:[#allocation2 + $0x1d0] sm:$0xf0] }
 0x637   :  { %5295 = vmatmul.bf16.gmra.mxu1 %v7395_v10  ;;  %5548 = vmatmul.bf16.gmra.mxu3 %v7063_v19  ;;  %v7434_v19 = vld [vmem:[#allocation2 + $0x438] sm:$0xf] }
 0x639   :  { %v5430_v55 = vpop.f32.mrf.mxu2  ;;  %v3652_v51 = vpop.permute.xlu0 %3651 }
 0x63a   :  { %3686 = vst.msk [vmem:[#allocation2 + $0x4cc] sm:$0xf] %vm2668_vm6, %v3652_v51  ;;  %v7891_v51 = vld [vmem:[#allocation2 + $0x1a8] sm:$0xf0] }
 0x63c   :  { %v5258_v13 = vpop.f32.mrf.mxu1  ;;  %v3650_v34 = vpop.permute.xlu2 %3649 }
 0x63d   :  { %v10822_v16 = vadd.f32 %v5427_v9, %v5258_v13  ;;  %3685 = vst.msk [vmem:[#allocation2 + $0x4b8] sm:$0xf] %vm2668_vm6, %v3650_v34  ;;  %v7083_v9 = vor.u32 %v7886_v36, %v7082_v14  ;;  %v7975_v34 = vld [vmem:[#allocation2 + $0x448] sm:$0xf0]  ;;  %v7102_v36 = vld [vmem:[#allocation2 + $0x198] sm:$0xf] }
 0x63e   :  { %v7435_v31 = vor.u32 %v7975_v34, %v7434_v19  ;;  %v7454_v14 = vld [vmem:[#allocation2 + $0x460] sm:$0xf] }
 0x641   :  { %v5432_v58 = vpop.f32.mrf.mxu2 }
 0x644   :  { %v5261_v60 = vpop.f32.mrf.mxu1  ;;  %v3656_v47 = vpop.permute.xlu2 %3655 }
 0x645   :  { %v10825_v42 = vadd.f32 %v5430_v55, %v5261_v60  ;;  %3688 = vst.msk [vmem:[#allocation2 + $0x4f4] sm:$0xf] %vm2668_vm6, %v3656_v47  ;;  %v7978_v55 = vld [vmem:[#allocation2 + $0x464] sm:$0xf]  ;;  %v7103_v60 = vor.u32 %v7891_v51, %v7102_v36  ;;  %v7476_v47 = vld [vmem:[#allocation2 + $0x49c] sm:$0xf0] }
 0x646   :  { %5474 = vmatmul.bf16.gmra.mxu2 %v7439_v1  ;;  %v7459_v43 = vor.u32 %v7978_v55, %v7456_v57  ;;  %v7122_v55 = vld [vmem:[#allocation2 + $0x1c0] sm:$0xf]  ;;  %v7985_v36 = vld [vmem:[#allocation2 + $0x498] sm:$0xf0] }
 0x647   :  { %5300 = vmatmul.bf16.gmra.mxu1 %v7415_v26  ;;  %5553 = vmatmul.bf16.gmra.mxu3 %v7083_v9  ;;  %v7983_v9 = vld [vmem:[#allocation2 + $0x48c] sm:$0xf]  ;;  %v7123_v51 = vor.u32 %v7896_v8, %v7122_v55  ;;  %v7901_v8 = vld [vmem:[#allocation2 + $0x1f8] sm:$0xf0] }
 0x648   :  { %v7479_v57 = vor.u32 %v7983_v9, %v7476_v47 }
 0x649   :  { %v5435_v24 = vpop.f32.mrf.mxu2 }
 0x64c   :  { %v5263_v52 = vpop.f32.mrf.mxu1 }
 0x64d   :  { %v10831_v10 = vadd.f32 %v5432_v58, %v5263_v52 }
 0x64f   :  { %11720 = vst [vmem:[#allocation11_spill] sm:$0xff] %v10831_v10  ;;  %v7980_v10 = vld [vmem:[#allocation2 + $0x470] sm:$0xf0] }
 0x650   :  { %v7455_v19 = vor.u32 %v7980_v10, %v7454_v14 }
 0x651   :  { %v5437_v40 = vpop.f32.mrf.mxu2 }
 0x654   :  { %v5266_v13 = vpop.f32.mrf.mxu1 }
 0x655   :  { %v10833_v21 = vadd.f32 %v5435_v24, %v5266_v13 }
 0x656   :  { %5479 = vmatmul.bf16.gmra.mxu2 %v7459_v43 }
 0x657   :  { %5305 = vmatmul.bf16.gmra.mxu1 %v7435_v31  ;;  %5558 = vmatmul.bf16.gmra.mxu3 %v7103_v60  ;;  %v7496_v31 = vld [vmem:[#allocation2 + $0x4c4] sm:$0xf0]  ;;  %v10841_v60 = vpop.f32.mrf.mxu3 }
 0x659   :  { %v5440_v48 = vpop.f32.mrf.mxu2 }
 0x65c   :  { %v5268_v1 = vpop.f32.mrf.mxu1 }
 0x65d   :  { %v10835_v58 = vadd.f32 %v5437_v40, %v5268_v1  ;;  %v7988_v1 = vld [vmem:[#allocation2 + $0x4b4] sm:$0xf] }
 0x65e   :  { %v7499_v9 = vor.u32 %v7988_v1, %v7496_v31  ;;  %v7993_v31 = vld [vmem:[#allocation2 + $0x4dc] sm:$0xf]  ;;  %v7906_v1 = vld [vmem:[#allocation2 + $0x220] sm:$0xf0] }
 0x65f   :  { %11721 = vst [vmem:[#allocation99_spill] sm:$0xff] %v10835_v58  ;;  %v7142_v58 = vld [vmem:[#allocation2 + $0x1e8] sm:$0xf] }
 0x661   :  { %v5442_v26 = vpop.f32.mrf.mxu2 }
 0x664   :  { %v5271_v52 = vpop.f32.mrf.mxu1 }
 0x665   :  { %v10837_v24 = vadd.f32 %v5440_v48, %v5271_v52  ;;  %v7474_v48 = vld [vmem:[#allocation2 + $0x488] sm:$0xf]  ;;  %v7143_v52 = vor.u32 %v7901_v8, %v7142_v58  ;;  %v7162_v8 = vld [vmem:[#allocation2 + $0x210] sm:$0xf] }
 0x666   :  { %5484 = vmatmul.bf16.gmra.mxu2 %v7479_v57  ;;  %v7475_v14 = vor.u32 %v7985_v36, %v7474_v48 }
 0x667   :  { %11722 = vst [vmem:[#allocation28_spill] sm:$0xff] %v10837_v24  ;;  %5310 = vmatmul.bf16.gmra.mxu1 %v7455_v19  ;;  %5563 = vmatmul.bf16.gmra.mxu3 %v7123_v51  ;;  %v7494_v24 = vld [vmem:[#allocation2 + $0x4b0] sm:$0xf] }
 0x669   :  { %v5445_v13 = vpop.f32.mrf.mxu2 }
 0x66c   :  { %v5273_v34 = vpop.f32.mrf.mxu1 }
 0x66d   :  { %v10839_v40 = vadd.f32 %v5442_v26, %v5273_v34 }
 0x66f   :  { %11723 = vst [vmem:[#allocation72_spill] sm:$0xff] %v10839_v40  ;;  %v7516_v40 = vld [vmem:[#allocation2 + $0x4ec] sm:$0xf0] }
 0x670   :  { %v7519_v48 = vor.u32 %v7993_v31, %v7516_v40  ;;  %v7842_v31 = vld [vmem:[#allocation2 + $0x20] sm:$0xf0] }
 0x671   :  { %v5447_v43 = vpop.f32.mrf.mxu2 }
 0x674   :  { %v5276_v47 = vpop.f32.mrf.mxu1 }
 0x675   :  { %v10843_v10 = vadd.f32 %v5445_v13, %v5276_v47  ;;  %v7990_v47 = vld [vmem:[#allocation2 + $0x4c0] sm:$0xf0] }
 0x676   :  { %5489 = vmatmul.bf16.gmra.mxu2 %v7499_v9 }
 0x677   :  { %5315 = vmatmul.bf16.gmra.mxu1 %v7475_v14  ;;  %5568 = vmatmul.bf16.gmra.mxu3 %v7143_v52  ;;  %v7495_v14 = vor.u32 %v7990_v47, %v7494_v24  ;;  %v7182_v24 = vld [vmem:[#allocation2 + $0x238] sm:$0xf]  ;;  %v7995_v47 = vld [vmem:[#allocation2 + $0x4e8] sm:$0xf0] }
 0x679   :  { %v5450_v26 = vpop.f32.mrf.mxu2 }
 0x67a   :  { %v5529_v57 = vpop.f32.mrf.mxu3 }
 0x67b   :  { %v10846_v55 = vadd.f32 %v5529_v57, %v10510_v29  ;;  %v7163_v29 = vor.u32 %v7906_v1, %v7162_v8 }
 0x67c   :  { %v5278_v19 = vpop.f32.mrf.mxu1 }
 0x67d   :  { %v10848_v51 = vadd.f32 %v5447_v43, %v5278_v19 }
 0x67f   :  { %11724 = vst [vmem:[#allocation56_spill] sm:$0xff] %v10848_v51 }
 0x681   :  { %v5452_v34 = vpop.f32.mrf.mxu2 }
 0x682   :  { %v5531_v13 = vpop.f32.mrf.mxu3 }
 0x683   :  { %v10851_v58 = vadd.f32 %v5531_v13, %v10523_v54  ;;  %v7514_v54 = vld [vmem:[#allocation2 + $0x4d8] sm:$0xf]  ;;  %v6910_v13 = vld [vmem:[#allocation2 + $0x10] sm:$0xf] }
 0x684   :  { %v5281_v36 = vpop.f32.mrf.mxu1  ;;  %v6911_v1 = vor.u32 %v7842_v31, %v6910_v13  ;;  %v7515_v8 = vor.u32 %v7995_v47, %v7514_v54  ;;  %v6904_v13 = vld [vmem:[#allocation2 + $0x1c] sm:$0xf0]  ;;  %v7839_v47 = vld [vmem:[#allocation2 + $0xc] sm:$0xf] }
 0x685   :  { %v10853_v9 = vadd.f32 %v5450_v26, %v5281_v36  ;;  %v7202_v54 = vld [vmem:[#allocation2 + $0x260] sm:$0xf] }
 0x686   :  { %5494 = vmatmul.bf16.gmra.mxu2 %v7519_v48 }
 0x687   :  { %11725 = vst [vmem:[#allocation12_spill] sm:$0xff] %v10853_v9  ;;  %5320 = vmatmul.bf16.gmra.mxu1 %v7495_v14  ;;  %5573 = vmatmul.bf16.gmra.mxu3 %v7163_v29 }
 0x689   :  { %v5455_v43 = vpop.f32.mrf.mxu2 }
 0x68a   :  { %v5534_v52 = vpop.f32.mrf.mxu3 }
 0x68b   :  { %v10856_v19 = vadd.f32 %v5534_v52, %v10535_v6  ;;  %v7911_v6 = vld [vmem:[#allocation2 + $0x248] sm:$0xf0] }
 0x68c   :  { %v5283_v57 = vpop.f32.mrf.mxu1 }
 0x68d   :  { %v10858_v51 = vadd.f32 %v5452_v34, %v5283_v57  ;;  %v7183_v34 = vor.u32 %v7911_v6, %v7182_v24  ;;  %v6907_v6 = vor.u32 %v7839_v47, %v6904_v13  ;;  %v7222_v13 = vld [vmem:[#allocation2 + $0x288] sm:$0xf]  ;;  %v7844_v47 = vld [vmem:[#allocation2 + $0x34] sm:$0xf] }
 0x68f   :  { %11726 = vst [vmem:[#allocation100_spill] sm:$0xff] %v10858_v51 }
 0x691   :  { %v5457_v40 = vpop.f32.mrf.mxu2 }
 0x692   :  { %v5536_v26 = vpop.f32.mrf.mxu3 }
 0x693   :  { %v10861_v48 = vadd.f32 %v5536_v26, %v10548_v38  ;;  %v7847_v38 = vld [vmem:[#allocation2 + $0x48] sm:$0xf0] }
 0x694   :  { %v5286_v36 = vpop.f32.mrf.mxu1 }
 0x695   :  { %v10863_v14 = vadd.f32 %v5455_v43, %v5286_v36  ;;  %v6930_v43 = vld [vmem:[#allocation2 + $0x38] sm:$0xf] }
 0x696   :  { %7676 = vmatmul.msk.bf16.vlgmr.msra.gmra.mxu2 %vm5065_vm7, %v6911_v1  ;;  %v6931_v1 = vor.u32 %v7847_v38, %v6930_v43  ;;  %v6924_v43 = vld [vmem:[#allocation2 + $0x44] sm:$0xf0] }
 0x697   :  { %11727 = vst [vmem:[#allocation57_spill] sm:$0xff] %v10863_v14  ;;  %5325 = vmatmul.bf16.gmra.mxu1 %v7515_v8  ;;  %5578 = vmatmul.bf16.gmra.mxu3 %v7183_v34  ;;  %v7916_v34 = vld [vmem:[#allocation2 + $0x270] sm:$0xf0] }
 0x699   :  { %v5460_v29 = vpop.f32.mrf.mxu2 }
 0x69a   :  { %v5539_v52 = vpop.f32.mrf.mxu3 }
 0x69b   :  { %v10867_v51 = vadd.f32 %v5539_v52, %v10565_v5  ;;  %v7203_v5 = vor.u32 %v7916_v34, %v7202_v54  ;;  %v6927_v34 = vor.u32 %v7844_v47, %v6924_v43  ;;  %v7926_v43 = vld [vmem:[#allocation2 + $0x2c0] sm:$0xf0]  ;;  %v7849_v47 = vld [vmem:[#allocation2 + $0x5c] sm:$0xf] }
 0x69c   :  { %v5288_v57 = vpop.f32.mrf.mxu1 }
 0x69d   :  { %v10869_v9 = vadd.f32 %v5457_v40, %v5288_v57 }
 0x69f   :  { %11728 = vst [vmem:[#allocation13_spill] sm:$0xff] %v10869_v9 }
 0x6a1   :  { %v5462_v31 = vpop.f32.mrf.mxu2 }
 0x6a2   :  { %v5541_v26 = vpop.f32.mrf.mxu3 }
 0x6a3   :  { %v10872_v24 = vadd.f32 %v5541_v26, %v10580_v30  ;;  %v7852_v30 = vld [vmem:[#allocation2 + $0x70] sm:$0xf0] }
 0x6a4   :  { %v5291_v36 = vpop.f32.mrf.mxu1 }
 0x6a5   :  { %v10874_v8 = vadd.f32 %v5460_v29, %v5291_v36  ;;  %v6950_v29 = vld [vmem:[#allocation2 + $0x60] sm:$0xf] }
 0x6a6   :  { %7677 = vmatmul.msk.bf16.gmra.mxu2 %vm5065_vm7, %v6931_v1  ;;  %v6951_v1 = vor.u32 %v7852_v30, %v6950_v29  ;;  %v6944_v29 = vld [vmem:[#allocation2 + $0x6c] sm:$0xf0] }
 0x6a7   :  { %11729 = vst [vmem:[#allocation103_spill] sm:$0xff] %v10874_v8  ;;  %5677 = vmatmul.bf16.vlgmr.msra.gmra.mxu1 %v6907_v6  ;;  %5583 = vmatmul.bf16.gmra.mxu3 %v7203_v5  ;;  %v7921_v5 = vld [vmem:[#allocation2 + $0x298] sm:$0xf0] }
 0x6a9   :  { %v5465_v40 = vpop.f32.mrf.mxu2 }
 0x6aa   :  { %v5544_v52 = vpop.f32.mrf.mxu3 }
 0x6ab   :  { %v10878_v9 = vadd.f32 %v5544_v52, %v10594_v7  ;;  %v7223_v7 = vor.u32 %v7921_v5, %v7222_v13  ;;  %v6947_v5 = vor.u32 %v7849_v47, %v6944_v29  ;;  %v7262_v29 = vld [vmem:[#allocation2 + $0x2d8] sm:$0xf]  ;;  %v7854_v47 = vld [vmem:[#allocation2 + $0x84] sm:$0xf] }
 0x6ac   :  { %v5293_v57 = vpop.f32.mrf.mxu1 }
 0x6ad   :  { %v10880_v14 = vadd.f32 %v5462_v31, %v5293_v57 }
 0x6af   :  { %11730 = vst [vmem:[#allocation17_spill] sm:$0xff] %v10880_v14 }
 0x6b1   :  { %v5467_v38 = vpop.f32.mrf.mxu2 }
 0x6b2   :  { %v5546_v26 = vpop.f32.mrf.mxu3 }
 0x6b3   :  { %v10883_v54 = vadd.f32 %v5546_v26, %v10610_v62  ;;  %v7857_v62 = vld [vmem:[#allocation2 + $0x98] sm:$0xf0] }
 0x6b4   :  { %v5296_v36 = vpop.f32.mrf.mxu1 }
 0x6b5   :  { %v10885_v6 = vadd.f32 %v5465_v40, %v5296_v36  ;;  %v6970_v40 = vld [vmem:[#allocation2 + $0x88] sm:$0xf] }
 0x6b6   :  { %7678 = vmatmul.msk.bf16.gmra.mxu2 %vm5065_vm7, %v6951_v1  ;;  %v6971_v1 = vor.u32 %v7857_v62, %v6970_v40  ;;  %v6964_v40 = vld [vmem:[#allocation2 + $0x94] sm:$0xf0] }
 0x6b7   :  { %11731 = vst [vmem:[#allocation61_spill] sm:$0xff] %v10885_v6  ;;  %5682 = vmatmul.bf16.gmra.mxu1 %v6927_v34  ;;  %5588 = vmatmul.bf16.gmra.mxu3 %v7223_v7  ;;  %v7242_v7 = vld [vmem:[#allocation2 + $0x2b0] sm:$0xf] }
 0x6b9   :  { %v5470_v31 = vpop.f32.mrf.mxu2 }
 0x6ba   :  { %v5549_v52 = vpop.f32.mrf.mxu3 }
 0x6bb   :  { %v10889_v14 = vadd.f32 %v5549_v52, %v10626_v25  ;;  %v7243_v25 = vor.u32 %v7926_v43, %v7242_v7  ;;  %v6967_v7 = vor.u32 %v7854_v47, %v6964_v40  ;;  %v7282_v40 = vld [vmem:[#allocation2 + $0x300] sm:$0xf]  ;;  %v7859_v47 = vld [vmem:[#allocation2 + $0xac] sm:$0xf] }
 0x6bc   :  { %v5298_v57 = vpop.f32.mrf.mxu1 }
 0x6bd   :  { %v10891_v8 = vadd.f32 %v5467_v38, %v5298_v57 }
 0x6bf   :  { %11732 = vst [vmem:[#allocation58_spill] sm:$0xff] %v10891_v8 }
 0x6c1   :  { %v5472_v30 = vpop.f32.mrf.mxu2 }
 0x6c2   :  { %v5551_v26 = vpop.f32.mrf.mxu3 }
 0x6c3   :  { %v10894_v13 = vadd.f32 %v5551_v26, %v10642_v18  ;;  %v7862_v18 = vld [vmem:[#allocation2 + $0xc0] sm:$0xf0] }
 0x6c4   :  { %v5301_v36 = vpop.f32.mrf.mxu1 }
 0x6c5   :  { %v10896_v34 = vadd.f32 %v5470_v31, %v5301_v36  ;;  %v6990_v31 = vld [vmem:[#allocation2 + $0xb0] sm:$0xf] }
 0x6c6   :  { %7679 = vmatmul.msk.bf16.gmra.mxu2 %vm5065_vm7, %v6971_v1  ;;  %v6991_v1 = vor.u32 %v7862_v18, %v6990_v31  ;;  %v6984_v31 = vld [vmem:[#allocation2 + $0xbc] sm:$0xf0] }
 0x6c7   :  { %11733 = vst [vmem:[#allocation14_spill] sm:$0xff] %v10896_v34  ;;  %5687 = vmatmul.bf16.gmra.mxu1 %v6947_v5  ;;  %5593 = vmatmul.bf16.gmra.mxu3 %v7243_v25  ;;  %v7931_v25 = vld [vmem:[#allocation2 + $0x2e8] sm:$0xf0] }
 0x6c9   :  { %v5475_v38 = vpop.f32.mrf.mxu2 }
 0x6ca   :  { %v5554_v52 = vpop.f32.mrf.mxu3 }
 0x6cb   :  { %v10900_v8 = vadd.f32 %v5554_v52, %v10658_v46  ;;  %v7263_v46 = vor.u32 %v7931_v25, %v7262_v29  ;;  %v6987_v25 = vor.u32 %v7859_v47, %v6984_v31  ;;  %v7941_v31 = vld [vmem:[#allocation2 + $0x338] sm:$0xf0]  ;;  %v7864_v47 = vld [vmem:[#allocation2 + $0xd4] sm:$0xf] }
 0x6cc   :  { %v5303_v57 = vpop.f32.mrf.mxu1 }
 0x6cd   :  { %v10902_v6 = vadd.f32 %v5472_v30, %v5303_v57 }
 0x6cf   :  { %11734 = vst [vmem:[#allocation59_spill] sm:$0xff] %v10902_v6 }
 0x6d1   :  { %v5477_v62 = vpop.f32.mrf.mxu2 }
 0x6d2   :  { %v5556_v26 = vpop.f32.mrf.mxu3 }
 0x6d3   :  { %v10905_v43 = vadd.f32 %v5556_v26, %v10679_v61  ;;  %v7867_v61 = vld [vmem:[#allocation2 + $0xe8] sm:$0xf0] }
 0x6d4   :  { %v5306_v36 = vpop.f32.mrf.mxu1 }
 0x6d5   :  { %v10907_v5 = vadd.f32 %v5475_v38, %v5306_v36  ;;  %v7010_v38 = vld [vmem:[#allocation2 + $0xd8] sm:$0xf] }
 0x6d6   :  { %7680 = vmatmul.msk.bf16.gmra.mxu2 %vm5065_vm7, %v6991_v1  ;;  %v7011_v1 = vor.u32 %v7867_v61, %v7010_v38  ;;  %v7004_v38 = vld [vmem:[#allocation2 + $0xe4] sm:$0xf0] }
 0x6d7   :  { %11735 = vst [vmem:[#allocation15_spill] sm:$0xff] %v10907_v5  ;;  %5692 = vmatmul.bf16.gmra.mxu1 %v6967_v7  ;;  %5598 = vmatmul.bf16.gmra.mxu3 %v7263_v46  ;;  %v7936_v46 = vld [vmem:[#allocation2 + $0x310] sm:$0xf0] }
 0x6d9   :  { %v5480_v30 = vpop.f32.mrf.mxu2 }
 0x6da   :  { %v5559_v52 = vpop.f32.mrf.mxu3 }
 0x6db   :  { %v10911_v6 = vadd.f32 %v5559_v52, %v10697_v20  ;;  %v7283_v20 = vor.u32 %v7936_v46, %v7282_v40  ;;  %v7007_v46 = vor.u32 %v7864_v47, %v7004_v38  ;;  %v7322_v38 = vld [vmem:[#allocation2 + $0x350] sm:$0xf]  ;;  %v7869_v47 = vld [vmem:[#allocation2 + $0xfc] sm:$0xf] }
 0x6dc   :  { %v5308_v57 = vpop.f32.mrf.mxu1 }
 0x6dd   :  { %v10913_v34 = vadd.f32 %v5477_v62, %v5308_v57 }
 0x6df   :  { %11736 = vst [vmem:[#allocation60_spill] sm:$0xff] %v10913_v34 }
 0x6e1   :  { %v5482_v18 = vpop.f32.mrf.mxu2 }
 0x6e2   :  { %v5561_v26 = vpop.f32.mrf.mxu3 }
 0x6e3   :  { %v10916_v29 = vadd.f32 %v5561_v26, %v10712_v35  ;;  %v7872_v35 = vld [vmem:[#allocation2 + $0x110] sm:$0xf0] }
 0x6e4   :  { %v5311_v36 = vpop.f32.mrf.mxu1 }
 0x6e5   :  { %v10918_v7 = vadd.f32 %v5480_v30, %v5311_v36  ;;  %v7030_v30 = vld [vmem:[#allocation2 + $0x100] sm:$0xf] }
 0x6e6   :  { %7681 = vmatmul.msk.bf16.gmra.mxu2 %vm5065_vm7, %v7011_v1  ;;  %v7031_v1 = vor.u32 %v7872_v35, %v7030_v30  ;;  %v7024_v30 = vld [vmem:[#allocation2 + $0x10c] sm:$0xf0] }
 0x6e7   :  { %11737 = vst [vmem:[#allocation16_spill] sm:$0xff] %v10918_v7  ;;  %5697 = vmatmul.bf16.gmra.mxu1 %v6987_v25  ;;  %5603 = vmatmul.bf16.gmra.mxu3 %v7283_v20  ;;  %v7302_v20 = vld [vmem:[#allocation2 + $0x328] sm:$0xf] }
 0x6e9   :  { %v5485_v62 = vpop.f32.mrf.mxu2 }
 0x6ea   :  { %v5564_v52 = vpop.f32.mrf.mxu3 }
 0x6eb   :  { %v10922_v34 = vadd.f32 %v5564_v52, %v10722_v33  ;;  %v7303_v33 = vor.u32 %v7941_v31, %v7302_v20  ;;  %v7027_v20 = vor.u32 %v7869_v47, %v7024_v30  ;;  %v7342_v30 = vld [vmem:[#allocation2 + $0x378] sm:$0xf]  ;;  %v7874_v47 = vld [vmem:[#allocation2 + $0x124] sm:$0xf] }
 0x6ec   :  { %v5313_v57 = vpop.f32.mrf.mxu1 }
 0x6ed   :  { %v10924_v5 = vadd.f32 %v5482_v18, %v5313_v57 }
 0x6ef   :  { %11738 = vst [vmem:[#allocation62_spill] sm:$0xff] %v10924_v5 }
 0x6f1   :  { %v5487_v61 = vpop.f32.mrf.mxu2 }
 0x6f2   :  { %v5566_v26 = vpop.f32.mrf.mxu3 }
 0x6f3   :  { %v10927_v40 = vadd.f32 %v5566_v26, %v10737_v50  ;;  %v7877_v50 = vld [vmem:[#allocation2 + $0x138] sm:$0xf0] }
 0x6f4   :  { %v5316_v36 = vpop.f32.mrf.mxu1 }
 0x6f5   :  { %v10929_v25 = vadd.f32 %v5485_v62, %v5316_v36  ;;  %v7050_v62 = vld [vmem:[#allocation2 + $0x128] sm:$0xf] }
 0x6f6   :  { %7682 = vmatmul.msk.bf16.gmra.mxu2 %vm5065_vm7, %v7031_v1  ;;  %v7051_v1 = vor.u32 %v7877_v50, %v7050_v62  ;;  %v7044_v62 = vld [vmem:[#allocation2 + $0x134] sm:$0xf0] }
 0x6f7   :  { %11739 = vst [vmem:[#allocation18_spill] sm:$0xff] %v10929_v25  ;;  %5702 = vmatmul.bf16.gmra.mxu1 %v7007_v46  ;;  %5608 = vmatmul.bf16.gmra.mxu3 %v7303_v33  ;;  %v7946_v33 = vld [vmem:[#allocation2 + $0x360] sm:$0xf0] }
 0x6f9   :  { %v5490_v18 = vpop.f32.mrf.mxu2 }
 0x6fa   :  { %v5569_v52 = vpop.f32.mrf.mxu3 }
 0x6fb   :  { %v10933_v5 = vadd.f32 %v5569_v52, %v10751_v41  ;;  %v7323_v41 = vor.u32 %v7946_v33, %v7322_v38  ;;  %v7047_v33 = vor.u32 %v7874_v47, %v7044_v62  ;;  %v7956_v62 = vld [vmem:[#allocation2 + $0x3b0] sm:$0xf0]  ;;  %v7879_v47 = vld [vmem:[#allocation2 + $0x14c] sm:$0xf] }
 0x6fc   :  { %v5318_v57 = vpop.f32.mrf.mxu1 }
 0x6fd   :  { %v10935_v7 = vadd.f32 %v5487_v61, %v5318_v57 }
 0x6ff   :  { %11740 = vst [vmem:[#allocation63_spill] sm:$0xff] %v10935_v7 }
 0x701   :  { %v5492_v35 = vpop.f32.mrf.mxu2 }
 0x702   :  { %v5571_v26 = vpop.f32.mrf.mxu3 }
 0x703   :  { %v10938_v31 = vadd.f32 %v5571_v26, %v10765_v59  ;;  %v7882_v59 = vld [vmem:[#allocation2 + $0x160] sm:$0xf0] }
 0x704   :  { %v5321_v36 = vpop.f32.mrf.mxu1 }
 0x705   :  { %v10940_v46 = vadd.f32 %v5490_v18, %v5321_v36  ;;  %v7070_v18 = vld [vmem:[#allocation2 + $0x150] sm:$0xf] }
 0x706   :  { %7683 = vmatmul.msk.bf16.gmra.mxu2 %vm5065_vm7, %v7051_v1  ;;  %v7071_v1 = vor.u32 %v7882_v59, %v7070_v18  ;;  %v7064_v18 = vld [vmem:[#allocation2 + $0x15c] sm:$0xf0] }
 0x707   :  { %11741 = vst [vmem:[#allocation19_spill] sm:$0xff] %v10940_v46  ;;  %5707 = vmatmul.bf16.gmra.mxu1 %v7027_v20  ;;  %5613 = vmatmul.bf16.gmra.mxu3 %v7323_v41  ;;  %v7951_v41 = vld [vmem:[#allocation2 + $0x388] sm:$0xf0] }
 0x709   :  { %v5495_v61 = vpop.f32.mrf.mxu2 }
 0x70a   :  { %v5574_v52 = vpop.f32.mrf.mxu3 }
 0x70b   :  { %v10944_v7 = vadd.f32 %v5574_v52, %v10770_v45  ;;  %v7343_v45 = vor.u32 %v7951_v41, %v7342_v30  ;;  %v7067_v41 = vor.u32 %v7879_v47, %v7064_v18  ;;  %v7110_v47 = vld [vmem:[#allocation2 + $0x1a0] sm:$0xf] }
 0x70c   :  { %v5323_v57 = vpop.f32.mrf.mxu1 }
 0x70d   :  { %v10946_v25 = vadd.f32 %v5492_v35, %v5323_v57 }
 0x70f   :  { %11742 = vst [vmem:[#allocation64_spill] sm:$0xff] %v10946_v25 }
 0x711   :  { %v5497_v50 = vpop.f32.mrf.mxu2 }
 0x712   :  { %v5576_v26 = vpop.f32.mrf.mxu3 }
 0x713   :  { %v10949_v38 = vadd.f32 %v5576_v26, %v10776_v53  ;;  %v7887_v53 = vld [vmem:[#allocation2 + $0x188] sm:$0xf0] }
 0x714   :  { %v5326_v36 = vpop.f32.mrf.mxu1 }
 0x715   :  { %v10951_v20 = vadd.f32 %v5495_v61, %v5326_v36  ;;  %v7090_v61 = vld [vmem:[#allocation2 + $0x178] sm:$0xf] }
 0x716   :  { %7684 = vmatmul.msk.bf16.gmra.mxu2 %vm5065_vm7, %v7071_v1  ;;  %v7091_v1 = vor.u32 %v7887_v53, %v7090_v61 }
 0x717   :  { %11743 = vst [vmem:[#allocation20_spill] sm:$0xff] %v10951_v20  ;;  %5712 = vmatmul.bf16.gmra.mxu1 %v7047_v33  ;;  %5618 = vmatmul.bf16.gmra.mxu3 %v7343_v45  ;;  %v7362_v45 = vld [vmem:[#allocation2 + $0x3a0] sm:$0xf] }
 0x719   :  { %v5847_v35 = vpop.f32.mrf.mxu2 }
 0x71a   :  { %v5579_v52 = vpop.f32.mrf.mxu3 }
 0x71b   :  { %v10955_v25 = vadd.f32 %v5579_v52, %v10784_v15  ;;  %v7363_v15 = vor.u32 %v7956_v62, %v7362_v45  ;;  %v11745_v52 = vld [vmem:[#allocation97_spill] sm:$0xff]  ;;  %v7892_v62 = vld [vmem:[#allocation2 + $0x1b0] sm:$0xf0] }
 0x71c   :  { %v5328_v57 = vpop.f32.mrf.mxu1  ;;  %v7884_v45 = vld [vmem:[#allocation2 + $0x174] sm:$0xf] }
 0x71d   :  { %v10957_v46 = vadd.f32 %v5497_v50, %v5328_v57  ;;  %v5343_v57 = vadd.f32 %v11745_v52, %v10318_v2  ;;  %v7111_v2 = vor.u32 %v7892_v62, %v7110_v47 }
 0x71f   :  { %11744 = vst [vmem:[#allocation111_spill] sm:$0xff] %v10957_v46  ;;  %v5512_v53 = vadd.f32 %v10689_v23, %v5343_v57 }
 0x721   :  { %v5849_v59 = vpop.f32.mrf.mxu2 }
 0x722   :  { %v5581_v26 = vpop.f32.mrf.mxu3 }
 0x723   :  { %v10960_v30 = vadd.f32 %v5581_v26, %v10792_v22 }
 0x724   :  { %v5678_v36 = vpop.f32.mrf.mxu1 }
 0x725   :  { %v5679_v33 = vadd.f32 %v5678_v36, %v10671_v3 }
 0x726   :  { %7685 = vmatmul.msk.bf16.gmra.mxu2 %vm5065_vm7, %v7091_v1 }
 0x727   :  { %v10964_v50 = vadd.f32 %v5847_v35, %v5679_v33  ;;  %5717 = vmatmul.bf16.gmra.mxu1 %v7067_v41  ;;  %5623 = vmatmul.bf16.gmra.mxu3 %v7363_v15  ;;  %v7084_v35 = vld [vmem:[#allocation2 + $0x184] sm:$0xf0]  ;;  %v7961_v33 = vld [vmem:[#allocation2 + $0x3d8] sm:$0xf0] }
 0x728   :  { %v7087_v52 = vor.u32 %v7884_v45, %v7084_v35 }
 0x729   :  { %v5852_v46 = vpop.f32.mrf.mxu2 }
 0x72a   :  { %v5584_v61 = vpop.f32.mrf.mxu3 }
 0x72b   :  { %v10970_v26 = vadd.f32 %v5584_v61, %v10797_v12  ;;  %v7382_v12 = vld [vmem:[#allocation2 + $0x3c8] sm:$0xf] }
 0x72c   :  { %v5680_v22 = vpop.f32.mrf.mxu1 }
 0x72d   :  { %v5681_v3 = vadd.f32 %v5680_v22, %v5512_v53  ;;  %v11746_v53 = vld [vmem:[#allocation55_spill] sm:$0xff] }
 0x72e   :  { %v5348_v61 = vadd.f32 %v11746_v53, %v10373_v27 }
 0x72f   :  { %v10972_v18 = vadd.f32 %v5849_v59, %v5681_v3  ;;  %v7383_v59 = vor.u32 %v7961_v33, %v7382_v12  ;;  %v7130_v33 = vld [vmem:[#allocation2 + $0x1c8] sm:$0xf] }
 0x730   :  { %v5517_v3 = vadd.f32 %v10717_v17, %v5348_v61  ;;  %v5353_v61 = vadd.f32 %v10398_v49, %v10467_v39 }
 0x731   :  { %v5854_v36 = vpop.f32.mrf.mxu2 }
 0x732   :  { %v5586_v1 = vpop.f32.mrf.mxu3 }
 0x733   :  { %v10975_v15 = vadd.f32 %v5586_v1, %v10802_v56 }
 0x734   :  { %v5683_v41 = vpop.f32.mrf.mxu1 }
 0x735   :  { %v5684_v23 = vadd.f32 %v5683_v41, %v10703_v28  ;;  %v7104_v41 = vld [vmem:[#allocation2 + $0x1ac] sm:$0xf0] }
 0x736   :  { %7686 = vmatmul.msk.bf16.gmra.mxu2 %vm5065_vm7, %v7111_v2  ;;  %v7966_v2 = vld [vmem:[#allocation2 + $0x400] sm:$0xf0] }
 0x737   :  { %v10979_v57 = vadd.f32 %v5852_v46, %v5684_v23  ;;  %5722 = vmatmul.bf16.gmra.mxu1 %v7087_v52  ;;  %5628 = vmatmul.bf16.gmra.mxu3 %v7383_v59  ;;  %v7897_v46 = vld [vmem:[#allocation2 + $0x1d8] sm:$0xf0] }
 0x738   :  { %v7889_v52 = vld [vmem:[#allocation2 + $0x19c] sm:$0xf]  ;;  %v7131_v27 = vor.u32 %v7897_v46, %v7130_v33 }
 0x739   :  { %v5857_v22 = vpop.f32.mrf.mxu2  ;;  %v7107_v59 = vor.u32 %v7889_v52, %v7104_v41  ;;  %v7902_v41 = vld [vmem:[#allocation2 + $0x200] sm:$0xf0] }
 0x73a   :  { %v5589_v62 = vpop.f32.mrf.mxu3 }
 0x73b   :  { %v10985_v47 = vadd.f32 %v5589_v62, %v10807_v37  ;;  %v7402_v37 = vld [vmem:[#allocation2 + $0x3f0] sm:$0xf]  ;;  %v5522_v62 = vadd.f32 %v10743_v0, %v5353_v61 }
 0x73c   :  { %v5685_v56 = vpop.f32.mrf.mxu1 }
 0x73d   :  { %v5686_v28 = vadd.f32 %v5685_v56, %v5517_v3 }
 0x73f   :  { %v10987_v35 = vadd.f32 %v5854_v36, %v5686_v28  ;;  %v7403_v36 = vor.u32 %v7966_v2, %v7402_v37 }
 0x741   :  { %v5859_v1 = vpop.f32.mrf.mxu2 }
 0x742   :  { %v5591_v45 = vpop.f32.mrf.mxu3 }
 0x743   :  { %v10990_v12 = vadd.f32 %v5591_v45, %v10812_v32  ;;  %v7150_v45 = vld [vmem:[#allocation2 + $0x1f0] sm:$0xf] }
 0x744   :  { %v5688_v23 = vpop.f32.mrf.mxu1  ;;  %v7151_v49 = vor.u32 %v7902_v41, %v7150_v45  ;;  %v7899_v41 = vld [vmem:[#allocation2 + $0x1ec] sm:$0xf]  ;;  %v7976_v45 = vld [vmem:[#allocation2 + $0x450] sm:$0xf0] }
 0x745   :  { %v5689_v17 = vadd.f32 %v5688_v23, %v10730_v63  ;;  %v7971_v23 = vld [vmem:[#allocation2 + $0x428] sm:$0xf0] }
 0x746   :  { %7687 = vmatmul.msk.bf16.gmra.mxu2 %vm5065_vm7, %v7131_v27  ;;  %v7124_v27 = vld [vmem:[#allocation2 + $0x1d4] sm:$0xf0] }
 0x747   :  { %v10994_v53 = vadd.f32 %v5857_v22, %v5689_v17  ;;  %5727 = vmatmul.bf16.gmra.mxu1 %v7107_v59  ;;  %5633 = vmatmul.bf16.gmra.mxu3 %v7403_v36  ;;  %v7894_v22 = vld [vmem:[#allocation2 + $0x1c4] sm:$0xf]  ;;  %v5527_v36 = vadd.f32 %v10841_v60, %v10499_v11 }
 0x748   :  { %v7127_v17 = vor.u32 %v7894_v22, %v7124_v27  ;;  %v7170_v22 = vld [vmem:[#allocation2 + $0x218] sm:$0xf] }
 0x749   :  { %v5862_v3 = vpop.f32.mrf.mxu2  ;;  %v11748_v27 = vld [vmem:[#allocation11_spill] sm:$0xff] }
 0x74a   :  { %v5594_v56 = vpop.f32.mrf.mxu3 }
 0x74b   :  { %v11000_v28 = vadd.f32 %v5594_v56, %v10818_v44  ;;  %v7422_v44 = vld [vmem:[#allocation2 + $0x418] sm:$0xf] }
 0x74c   :  { %v5690_v32 = vpop.f32.mrf.mxu1 }
 0x74d   :  { %v5691_v63 = vadd.f32 %v5690_v32, %v5522_v62 }
 0x74f   :  { %v11002_v33 = vadd.f32 %v5859_v1, %v5691_v63  ;;  %v7423_v1 = vor.u32 %v7971_v23, %v7422_v44  ;;  %v7907_v63 = vld [vmem:[#allocation2 + $0x228] sm:$0xf0]  ;;  %v7144_v23 = vld [vmem:[#allocation2 + $0x1fc] sm:$0xf0] }
 0x750   :  { %v7147_v60 = vor.u32 %v7899_v41, %v7144_v23  ;;  %v7904_v41 = vld [vmem:[#allocation2 + $0x214] sm:$0xf]  ;;  %v7164_v23 = vld [vmem:[#allocation2 + $0x224] sm:$0xf0] }
 0x751   :  { %v5864_v46 = vpop.f32.mrf.mxu2 }
 0x752   :  { %v5596_v2 = vpop.f32.mrf.mxu3 }
 0x753   :  { %v11005_v39 = vadd.f32 %v5596_v2, %v10822_v16 }
 0x754   :  { %v5693_v52 = vpop.f32.mrf.mxu1 }
 0x755   :  { %v5694_v0 = vadd.f32 %v5693_v52, %v10759_v4  ;;  %v7171_v52 = vor.u32 %v7907_v63, %v7170_v22  ;;  %v7912_v63 = vld [vmem:[#allocation2 + $0x250] sm:$0xf0]  ;;  %v7190_v22 = vld [vmem:[#allocation2 + $0x240] sm:$0xf] }
 0x756   :  { %7688 = vmatmul.msk.bf16.gmra.mxu2 %vm5065_vm7, %v7151_v49 }
 0x757   :  { %v11009_v59 = vadd.f32 %v5862_v3, %v5694_v0  ;;  %5732 = vmatmul.bf16.gmra.mxu1 %v7127_v17  ;;  %5638 = vmatmul.bf16.gmra.mxu3 %v7423_v1 }
 0x759   :  { %v5867_v37 = vpop.f32.mrf.mxu2 }
 0x75a   :  { %v5599_v61 = vpop.f32.mrf.mxu3 }
 0x75b   :  { %v11014_v16 = vadd.f32 %v5599_v61, %v10825_v42  ;;  %v7442_v42 = vld [vmem:[#allocation2 + $0x440] sm:$0xf] }
 0x75c   :  { %v5695_v62 = vpop.f32.mrf.mxu1 }
 0x75d   :  { %v5696_v56 = vadd.f32 %v5695_v62, %v5527_v36 }
 0x75f   :  { %v11016_v4 = vadd.f32 %v5864_v46, %v5696_v56  ;;  %v7443_v46 = vor.u32 %v7976_v45, %v7442_v42  ;;  %v7981_v45 = vld [vmem:[#allocation2 + $0x478] sm:$0xf0] }
 0x761   :  { %11747 = vst [vmem:[#allocation65_spill] sm:$0xff] %v11016_v4  ;;  %v5869_v32 = vpop.f32.mrf.mxu2  ;;  %v11757_v4 = vld [vmem:[#allocation57_spill] sm:$0xff] }
 0x762   :  { %v5601_v3 = vpop.f32.mrf.mxu3 }
 0x763   :  { %v11019_v49 = vadd.f32 %v5601_v3, %v11748_v27  ;;  %v11749_v27 = vld [vmem:[#allocation99_spill] sm:$0xff] }
 0x764   :  { %v5698_v2 = vpop.f32.mrf.mxu1 }
 0x765   :  { %v5699_v11 = vadd.f32 %v5698_v2, %v10846_v55 }
 0x766   :  { %7689 = vmatmul.msk.bf16.gmra.mxu2 %vm5065_vm7, %v7171_v52  ;;  %v7191_v52 = vor.u32 %v7912_v63, %v7190_v22  ;;  %v11750_v63 = vld [vmem:[#allocation28_spill] sm:$0xff] }
 0x767   :  { %v11023_v0 = vadd.f32 %v5867_v37, %v5699_v11  ;;  %5737 = vmatmul.bf16.gmra.mxu1 %v7147_v60  ;;  %5643 = vmatmul.bf16.gmra.mxu3 %v7443_v46 }
 0x769   :  { %v5872_v44 = vpop.f32.mrf.mxu2 }
 0x76a   :  { %v5604_v1 = vpop.f32.mrf.mxu3 }
 0x76b   :  { %v11028_v61 = vadd.f32 %v5604_v1, %v10833_v21 }
 0x76c   :  { %v5700_v36 = vpop.f32.mrf.mxu1 }
 0x76d   :  { %v5701_v55 = vadd.f32 %v5700_v36, %v10851_v58  ;;  %v7167_v58 = vor.u32 %v7904_v41, %v7164_v23  ;;  %v7184_v23 = vld [vmem:[#allocation2 + $0x24c] sm:$0xf0] }
 0x76f   :  { %v11031_v62 = vadd.f32 %v5869_v32, %v5701_v55  ;;  %v7462_v32 = vld [vmem:[#allocation2 + $0x468] sm:$0xf] }
 0x770   :  { %v7463_v60 = vor.u32 %v7981_v45, %v7462_v32  ;;  %v7210_v45 = vld [vmem:[#allocation2 + $0x268] sm:$0xf] }
 0x771   :  { %v5874_v37 = vpop.f32.mrf.mxu2 }
 0x772   :  { %v5606_v3 = vpop.f32.mrf.mxu3 }
 0x773   :  { %v11036_v11 = vadd.f32 %v5606_v3, %v11749_v27  ;;  %v7482_v27 = vld [vmem:[#allocation2 + $0x490] sm:$0xf] }
 0x774   :  { %v5703_v2 = vpop.f32.mrf.mxu1 }
 0x775   :  { %v5704_v21 = vadd.f32 %v5703_v2, %v10856_v19  ;;  %v7917_v2 = vld [vmem:[#allocation2 + $0x278] sm:$0xf0] }
 0x776   :  { %7690 = vmatmul.msk.bf16.gmra.mxu2 %vm5065_vm7, %v7191_v52  ;;  %v7211_v32 = vor.u32 %v7917_v2, %v7210_v45 }
 0x777   :  { %v11040_v42 = vadd.f32 %v5872_v44, %v5704_v21  ;;  %5742 = vmatmul.bf16.gmra.mxu1 %v7167_v58  ;;  %5648 = vmatmul.bf16.gmra.mxu3 %v7463_v60  ;;  %v7909_v58 = vld [vmem:[#allocation2 + $0x23c] sm:$0xf]  ;;  %v11751_v60 = vld [vmem:[#allocation72_spill] sm:$0xff] }
 0x779   :  { %v5877_v1 = vpop.f32.mrf.mxu2 }
 0x77a   :  { %v5609_v36 = vpop.f32.mrf.mxu3 }
 0x77b   :  { %v11045_v22 = vadd.f32 %v5609_v36, %v11750_v63 }
 0x77c   :  { %v5705_v55 = vpop.f32.mrf.mxu1 }
 0x77d   :  { %v5706_v19 = vadd.f32 %v5705_v55, %v10861_v48  ;;  %v7187_v48 = vor.u32 %v7909_v58, %v7184_v23  ;;  %v7914_v58 = vld [vmem:[#allocation2 + $0x264] sm:$0xf] }
 0x77f   :  { %v11048_v41 = vadd.f32 %v5874_v37, %v5706_v19  ;;  %v7986_v37 = vld [vmem:[#allocation2 + $0x4a0] sm:$0xf0] }
 0x780   :  { %v7483_v55 = vor.u32 %v7986_v37, %v7482_v27  ;;  %v7230_v27 = vld [vmem:[#allocation2 + $0x290] sm:$0xf] }
 0x781   :  { %v5879_v44 = vpop.f32.mrf.mxu2 }
 0x782   :  { %v5611_v52 = vpop.f32.mrf.mxu3 }
 0x783   :  { %v11053_v46 = vadd.f32 %v5611_v52, %v11751_v60  ;;  %v7502_v60 = vld [vmem:[#allocation2 + $0x4b8] sm:$0xf] }
 0x784   :  { %v5708_v21 = vpop.f32.mrf.mxu1 }
 0x785   :  { %v5709_v36 = vadd.f32 %v5708_v21, %v10867_v51  ;;  %v7922_v21 = vld [vmem:[#allocation2 + $0x2a0] sm:$0xf0] }
 0x786   :  { %7691 = vmatmul.msk.bf16.gmra.mxu2 %vm5065_vm7, %v7211_v32  ;;  %v7231_v37 = vor.u32 %v7922_v21, %v7230_v27  ;;  %v11753_v21 = vld [vmem:[#allocation12_spill] sm:$0xff] }
 0x787   :  { %v11057_v63 = vadd.f32 %v5877_v1, %v5709_v36  ;;  %5747 = vmatmul.bf16.gmra.mxu1 %v7187_v48  ;;  %5653 = vmatmul.bf16.gmra.mxu3 %v7483_v55  ;;  %v7204_v48 = vld [vmem:[#allocation2 + $0x274] sm:$0xf0]  ;;  %v11752_v55 = vld [vmem:[#allocation56_spill] sm:$0xff] }
 0x789   :  { %v5882_v3 = vpop.f32.mrf.mxu2 }
 0x78a   :  { %v5614_v56 = vpop.f32.mrf.mxu3 }
 0x78b   :  { %v11062_v2 = vadd.f32 %v5614_v56, %v10843_v10  ;;  %v7991_v56 = vld [vmem:[#allocation2 + $0x4c8] sm:$0xf0] }
 0x78c   :  { %v5710_v45 = vpop.f32.mrf.mxu1 }
 0x78d   :  { %v5711_v51 = vadd.f32 %v5710_v45, %v10872_v24  ;;  %v7207_v24 = vor.u32 %v7914_v58, %v7204_v48  ;;  %v7927_v48 = vld [vmem:[#allocation2 + $0x2c8] sm:$0xf0] }
 0x78f   :  { %v11065_v23 = vadd.f32 %v5879_v44, %v5711_v51  ;;  %v7503_v44 = vor.u32 %v7991_v56, %v7502_v60  ;;  %v7919_v56 = vld [vmem:[#allocation2 + $0x28c] sm:$0xf]  ;;  %v11756_v51 = vld [vmem:[#allocation100_spill] sm:$0xff] }
 0x791   :  { %v5884_v1 = vpop.f32.mrf.mxu2 }
 0x792   :  { %v5616_v32 = vpop.f32.mrf.mxu3 }
 0x793   :  { %v11070_v19 = vadd.f32 %v5616_v32, %v11752_v55 }
 0x794   :  { %v5713_v36 = vpop.f32.mrf.mxu1 }
 0x795   :  { %v5714_v10 = vadd.f32 %v5713_v36, %v10878_v9  ;;  %v7250_v36 = vld [vmem:[#allocation2 + $0x2b8] sm:$0xf] }
 0x796   :  { %7692 = vmatmul.msk.bf16.gmra.mxu2 %vm5065_vm7, %v7231_v37  ;;  %v7224_v37 = vld [vmem:[#allocation2 + $0x29c] sm:$0xf0] }
 0x797   :  { %v11074_v45 = vadd.f32 %v5882_v3, %v5714_v10  ;;  %5752 = vmatmul.bf16.gmra.mxu1 %v7207_v24  ;;  %5658 = vmatmul.bf16.gmra.mxu3 %v7503_v44  ;;  %v7996_v10 = vld [vmem:[#allocation2 + $0x4f0] sm:$0xf0]  ;;  %v7251_v44 = vor.u32 %v7927_v48, %v7250_v36  ;;  %v7270_v48 = vld [vmem:[#allocation2 + $0x2e0] sm:$0xf] }
 0x799   :  { %v5887_v52 = vpop.f32.mrf.mxu2 }
 0x79a   :  { %v5619_v17 = vpop.f32.mrf.mxu3 }
 0x79b   :  { %v11079_v32 = vadd.f32 %v5619_v17, %v11753_v21 }
 0x79c   :  { %v5715_v27 = vpop.f32.mrf.mxu1 }
 0x79d   :  { %11754 = vst [vmem:[#allocation21_spill] sm:$0xff] %v11079_v32  ;;  %v5716_v9 = vadd.f32 %v5715_v27, %v10883_v54  ;;  %v7227_v54 = vor.u32 %v7919_v56, %v7224_v37  ;;  %v7932_v37 = vld [vmem:[#allocation2 + $0x2f0] sm:$0xf0] }
 0x79e   :  { %v7271_v56 = vor.u32 %v7932_v37, %v7270_v48 }
 0x79f   :  { %v11082_v58 = vadd.f32 %v5884_v1, %v5716_v9  ;;  %v7522_v1 = vld [vmem:[#allocation2 + $0x4e0] sm:$0xf] }
 0x7a0   :  { %v7523_v27 = vor.u32 %v7996_v10, %v7522_v1 }
 0x7a1   :  { %11755 = vst [vmem:[#allocation112_spill] sm:$0xff] %v11082_v58  ;;  %v5889_v3 = vpop.f32.mrf.mxu2 }
 0x7a2   :  { %v5621_v55 = vpop.f32.mrf.mxu3 }
 0x7a3   :  { %v11087_v20 = vadd.f32 %v5621_v55, %v11756_v51  ;;  %v7244_v55 = vld [vmem:[#allocation2 + $0x2c4] sm:$0xf0] }
 0x7a4   :  { %v5718_v24 = vpop.f32.mrf.mxu1 }
 0x7a5   :  { %v5719_v17 = vadd.f32 %v5718_v24, %v10889_v14 }
 0x7a6   :  { %7693 = vmatmul.msk.bf16.gmra.mxu2 %vm5065_vm7, %v7251_v44  ;;  %v11758_v44 = vld [vmem:[#allocation13_spill] sm:$0xff] }
 0x7a7   :  { %v11091_v21 = vadd.f32 %v5887_v52, %v5719_v17  ;;  %5757 = vmatmul.bf16.gmra.mxu1 %v7227_v54  ;;  %5663 = vmatmul.bf16.gmra.mxu3 %v7523_v27  ;;  %v7924_v52 = vld [vmem:[#allocation2 + $0x2b4] sm:$0xf] }
 0x7a8   :  { %v7247_v1 = vor.u32 %v7924_v52, %v7244_v55  ;;  %v7929_v52 = vld [vmem:[#allocation2 + $0x2dc] sm:$0xf] }
 0x7a9   :  { %v5892_v9 = vpop.f32.mrf.mxu2 }
 0x7aa   :  { %v5624_v60 = vpop.f32.mrf.mxu3 }
 0x7ab   :  { %v11094_v32 = vadd.f32 %v5624_v60, %v11757_v4 }
 0x7ac   :  { %v5720_v58 = vpop.f32.mrf.mxu1 }
 0x7ad   :  { %v5721_v51 = vadd.f32 %v5720_v58, %v10894_v13 }
 0x7af   :  { %v11097_v36 = vadd.f32 %v5889_v3, %v5721_v51  ;;  %v11760_v3 = vld [vmem:[#allocation103_spill] sm:$0xff] }
 0x7b1   :  { %v5894_v14 = vpop.f32.mrf.mxu2 }
 0x7b2   :  { %v5626_v24 = vpop.f32.mrf.mxu3 }
 0x7b3   :  { %v11100_v17 = vadd.f32 %v5626_v24, %v11758_v44  ;;  %v7290_v24 = vld [vmem:[#allocation2 + $0x308] sm:$0xf]  ;;  %v7937_v44 = vld [vmem:[#allocation2 + $0x318] sm:$0xf0] }
 0x7b4   :  { %v5723_v10 = vpop.f32.mrf.mxu1 }
 0x7b5   :  { %11759 = vst [vmem:[#allocation67_spill] sm:$0xff] %v11100_v17  ;;  %v5724_v54 = vadd.f32 %v5723_v10, %v10900_v8  ;;  %v7264_v8 = vld [vmem:[#allocation2 + $0x2ec] sm:$0xf0] }
 0x7b6   :  { %7694 = vmatmul.msk.bf16.gmra.mxu2 %vm5065_vm7, %v7271_v56  ;;  %v11762_v56 = vld [vmem:[#allocation17_spill] sm:$0xff]  ;;  %v7267_v17 = vor.u32 %v7929_v52, %v7264_v8  ;;  %v7934_v52 = vld [vmem:[#allocation2 + $0x304] sm:$0xf] }
 0x7b7   :  { %v11104_v4 = vadd.f32 %v5892_v9, %v5724_v54  ;;  %5762 = vmatmul.bf16.gmra.mxu1 %v7247_v1  ;;  %v7291_v9 = vor.u32 %v7937_v44, %v7290_v24 }
 0x7b9   :  { %v5897_v13 = vpop.f32.mrf.mxu2 }
 0x7ba   :  { %v5629_v58 = vpop.f32.mrf.mxu3 }
 0x7bb   :  { %v11107_v27 = vadd.f32 %v5629_v58, %v11760_v3  ;;  %v11764_v3 = vld [vmem:[#allocation61_spill] sm:$0xff] }
 0x7bc   :  { %v5725_v60 = vpop.f32.mrf.mxu1 }
 0x7bd   :  { %11761 = vst [vmem:[#allocation23_spill] sm:$0xff] %v11107_v27  ;;  %v5726_v51 = vadd.f32 %v5725_v60, %v10905_v43 }
 0x7bf   :  { %v11110_v48 = vadd.f32 %v5894_v14, %v5726_v51 }
 0x7c1   :  { %v5899_v37 = vpop.f32.mrf.mxu2 }
 0x7c2   :  { %v5631_v55 = vpop.f32.mrf.mxu3 }
 0x7c3   :  { %v11113_v54 = vadd.f32 %v5631_v55, %v11762_v56  ;;  %v7942_v55 = vld [vmem:[#allocation2 + $0x340] sm:$0xf0]  ;;  %v7284_v56 = vld [vmem:[#allocation2 + $0x314] sm:$0xf0] }
 0x7c4   :  { %v5728_v10 = vpop.f32.mrf.mxu1 }
 0x7c5   :  { %11763 = vst [vmem:[#allocation115_spill] sm:$0xff] %v11113_v54  ;;  %v5729_v1 = vadd.f32 %v5728_v10, %v10911_v6  ;;  %v7310_v6 = vld [vmem:[#allocation2 + $0x330] sm:$0xf]  ;;  %v7287_v54 = vor.u32 %v7934_v52, %v7284_v56  ;;  %v7939_v52 = vld [vmem:[#allocation2 + $0x32c] sm:$0xf] }
 0x7c6   :  { %7695 = vmatmul.msk.bf16.gmra.mxu2 %vm5065_vm7, %v7291_v9  ;;  %v11766_v9 = vld [vmem:[#allocation58_spill] sm:$0xff] }
 0x7c7   :  { %v11117_v58 = vadd.f32 %v5897_v13, %v5729_v1  ;;  %5767 = vmatmul.bf16.gmra.mxu1 %v7267_v17  ;;  %v7311_v13 = vor.u32 %v7942_v55, %v7310_v6 }
 0x7c9   :  { %v5902_v43 = vpop.f32.mrf.mxu2 }
 0x7ca   :  { %v5634_v14 = vpop.f32.mrf.mxu3 }
 0x7cb   :  { %v11120_v51 = vadd.f32 %v5634_v14, %v11764_v3 }
 0x7cc   :  { %v5730_v60 = vpop.f32.mrf.mxu1 }
 0x7cd   :  { %11765 = vst [vmem:[#allocation68_spill] sm:$0xff] %v11120_v51  ;;  %v5731_v27 = vadd.f32 %v5730_v60, %v10916_v29  ;;  %v11768_v60 = vld [vmem:[#allocation14_spill] sm:$0xff] }
 0x7cf   :  { %v11123_v24 = vadd.f32 %v5899_v37, %v5731_v27 }
 0x7d1   :  { %v5904_v44 = vpop.f32.mrf.mxu2 }
 0x7d2   :  { %v5636_v8 = vpop.f32.mrf.mxu3 }
 0x7d3   :  { %v11126_v17 = vadd.f32 %v5636_v8, %v11766_v9  ;;  %v7330_v8 = vld [vmem:[#allocation2 + $0x358] sm:$0xf]  ;;  %v7947_v9 = vld [vmem:[#allocation2 + $0x368] sm:$0xf0] }
 0x7d4   :  { %v5733_v10 = vpop.f32.mrf.mxu1 }
 0x7d5   :  { %11767 = vst [vmem:[#allocation24_spill] sm:$0xff] %v11126_v17  ;;  %v5734_v1 = vadd.f32 %v5733_v10, %v10922_v34  ;;  %v7304_v34 = vld [vmem:[#allocation2 + $0x33c] sm:$0xf0] }
 0x7d6   :  { %7696 = vmatmul.msk.bf16.gmra.mxu2 %vm5065_vm7, %v7311_v13  ;;  %v11769_v13 = vld [vmem:[#allocation59_spill] sm:$0xff]  ;;  %v7307_v17 = vor.u32 %v7939_v52, %v7304_v34 }
 0x7d7   :  { %v11130_v14 = vadd.f32 %v5902_v43, %v5734_v1  ;;  %5772 = vmatmul.bf16.gmra.mxu1 %v7287_v54  ;;  %v7331_v43 = vor.u32 %v7947_v9, %v7330_v8 }
 0x7d9   :  { %v5907_v29 = vpop.f32.mrf.mxu2 }
 0x7da   :  { %v5639_v27 = vpop.f32.mrf.mxu3 }
 0x7db   :  { %v11133_v3 = vadd.f32 %v5639_v27, %v11768_v60 }
 0x7dc   :  { %v5735_v37 = vpop.f32.mrf.mxu1 }
 0x7dd   :  { %v5736_v51 = vadd.f32 %v5735_v37, %v10927_v40  ;;  %v11770_v37 = vmax.f32 %v10964_v50, %v11023_v0 }
 0x7df   :  { %v11136_v55 = vadd.f32 %v5904_v44, %v5736_v51  ;;  %v11147_v44 = vld [vmem:[%s11419_s4] ss:$0 sm:$0xff] }
 0x7e1   :  { %v5909_v6 = vpop.f32.mrf.mxu2 }
 0x7e2   :  { %v5641_v56 = vpop.f32.mrf.mxu3 }
 0x7e3   :  { %v11139_v54 = vadd.f32 %v5641_v56, %v11769_v13  ;;  %v7952_v13 = vld [vmem:[#allocation2 + $0x390] sm:$0xf0] }
 0x7e4   :  { %v5738_v10 = vpop.f32.mrf.mxu1 }
 0x7e5   :  { %v5739_v1 = vadd.f32 %v5738_v10, %v10933_v5  ;;  %v11771_v5 = vld [vmem:[#allocation15_spill] sm:$0xff] }
 0x7e6   :  { %7697 = vmatmul.msk.bf16.gmra.mxu2 %vm5065_vm7, %v7331_v43  ;;  %v7350_v43 = vld [vmem:[#allocation2 + $0x380] sm:$0xf] }
 0x7e7   :  { %v5908_v27 = vadd.f32 %v5907_v29, %v5739_v1  ;;  %5777 = vmatmul.bf16.gmra.mxu1 %v7307_v17  ;;  %v7324_v1 = vld [vmem:[#allocation2 + $0x364] sm:$0xf0] }
 0x7e9   :  { %v6023_v40 = vmax.f32 %v11091_v21, %v5908_v27  ;;  %v5912_v51 = vpop.f32.mrf.mxu2  ;;  %v11160_v21 = vld [vmem:[%s11420_s5] sm:$0xff] }
 0x7ea   :  { %v5644_v8 = vpop.f32.mrf.mxu3 }
 0x7eb   :  { %v6039_v60 = vmax.f32 %v11770_v37, %v6023_v40  ;;  %v11153_v34 = vadd.f32 %v5644_v8, %v11771_v5  ;;  %v7351_v8 = vor.u32 %v7952_v13, %v7350_v43 }
 0x7ec   :  { %v5740_v9 = vpop.f32.mrf.mxu1 }
 0x7ed   :  { %v5741_v29 = vadd.f32 %v5740_v9, %v10938_v31  ;;  %v6059_v17 = vadd.f32 %v11147_v44, %v6039_v60  ;;  %v11772_v31 = vmax.f32 %v10972_v18, %v11031_v62  ;;  %v7944_v60 = vld [vmem:[#allocation2 + $0x354] sm:$0xf]  ;;  %v11773_v9 = vld [vmem:[#allocation60_spill] sm:$0xff] }
 0x7ee   :  { %v7327_v5 = vor.u32 %v7944_v60, %v7324_v1  ;;  %v7370_v60 = vld [vmem:[#allocation2 + $0x3a8] sm:$0xf] }
 0x7ef   :  { %v5910_v56 = vadd.f32 %v5909_v6, %v5741_v29  ;;  %v6075_v10 = vmax.f32 %v6059_v17, 0.0  ;;  %v11176_v17 = vld [vmem:[%s11420_s5 + $0x8] sm:$0xff] }
 0x7f1   :  { %v6024_v52 = vmax.f32 %v11097_v36, %v5910_v56  ;;  %v5914_v50 = vpop.f32.mrf.mxu2  ;;  %v6099_v0 = vmul.f32 %v11160_v21, %v6075_v10 }
 0x7f2   :  { %v5646_v40 = vpop.f32.mrf.mxu3 }
 0x7f3   :  { %6115 = vadd.xlane.f32.xlu0 %v6099_v0  ;;  %v6040_v27 = vmax.f32 %v11772_v31, %v6024_v52  ;;  %v11168_v6 = vadd.f32 %v5646_v40, %v11773_v9 }
 0x7f4   :  { %v5743_v37 = vpop.f32.mrf.mxu1 }
 0x7f5   :  { %v5744_v36 = vadd.f32 %v5743_v37, %v10944_v7  ;;  %v6060_v29 = vadd.f32 %v11147_v44, %v6040_v27  ;;  %v11774_v7 = vmax.f32 %v10979_v57, %v11040_v42  ;;  %v7957_v57 = vld [vmem:[#allocation2 + $0x3b8] sm:$0xf0]  ;;  %v7344_v42 = vld [vmem:[#allocation2 + $0x38c] sm:$0xf0] }
 0x7f6   :  { %7698 = vmatmul.msk.bf16.gmra.mxu2 %vm5065_vm7, %v7351_v8 }
 0x7f7   :  { %v5913_v18 = vadd.f32 %v5912_v51, %v5744_v36  ;;  %5782 = vmatmul.bf16.gmra.mxu1 %v7327_v5  ;;  %v6076_v62 = vmax.f32 %v6060_v29, 0.0  ;;  %v11188_v51 = vld [vmem:[%s11420_s5 + $0x10] sm:$0xff]  ;;  %v7949_v36 = vld [vmem:[#allocation2 + $0x37c] sm:$0xf]  ;;  %v7371_v5 = vor.u32 %v7957_v57, %v7370_v60 }
 0x7f9   :  { %v6025_v56 = vmax.f32 %v11104_v4, %v5913_v18  ;;  %v5917_v10 = vpop.f32.mrf.mxu2  ;;  %v6100_v52 = vmul.f32 %v11176_v17, %v6076_v62 }
 0x7fb   :  { %6117 = vadd.xlane.f32.xlu1 %v6100_v52  ;;  %v6041_v0 = vmax.f32 %v11774_v7, %v6025_v56 }
 0x7fc   :  { %v5745_v43 = vpop.f32.mrf.mxu1 }
 0x7fd   :  { %v5746_v13 = vadd.f32 %v5745_v43, %v10949_v38  ;;  %v6061_v1 = vadd.f32 %v11147_v44, %v6041_v0  ;;  %v11775_v38 = vmax.f32 %v10987_v35, %v11048_v41 }
 0x7ff   :  { %v5915_v31 = vadd.f32 %v5914_v50, %v5746_v13  ;;  %v6077_v4 = vmax.f32 %v6061_v1, 0.0  ;;  %v7347_v50 = vor.u32 %v7949_v36, %v7344_v42  ;;  %v7954_v42 = vld [vmem:[#allocation2 + $0x3a4] sm:$0xf] }
 0x801   :  { %v6026_v27 = vmax.f32 %v11110_v48, %v5915_v31  ;;  %v5919_v40 = vpop.f32.mrf.mxu2  ;;  %v6101_v37 = vmul.f32 %v11188_v51, %v6077_v4  ;;  %v11201_v48 = vld [vmem:[%s11420_s5 + $0x18] sm:$0xff] }
 0x803   :  { %6119 = vadd.xlane.f32.xlu0 %v6101_v37  ;;  %v6042_v8 = vmax.f32 %v11775_v38, %v6026_v27  ;;  %v7962_v37 = vld [vmem:[#allocation2 + $0x3e0] sm:$0xf0] }
 0x804   :  { %v5748_v9 = vpop.f32.mrf.mxu1 }
 0x805   :  { %v5749_v29 = vadd.f32 %v5748_v9, %v10955_v25  ;;  %v6062_v18 = vadd.f32 %v11147_v44, %v6042_v8  ;;  %v11776_v25 = vmax.f32 %v10994_v53, %v11057_v63  ;;  %v7364_v53 = vld [vmem:[#allocation2 + $0x3b4] sm:$0xf0]  ;;  %v7390_v63 = vld [vmem:[#allocation2 + $0x3d0] sm:$0xf] }
 0x806   :  { %7699 = vmatmul.msk.bf16.gmra.mxu2 %vm5065_vm7, %v7371_v5  ;;  %v7391_v38 = vor.u32 %v7962_v37, %v7390_v63 }
 0x807   :  { %v5918_v62 = vadd.f32 %v5917_v10, %v5749_v29  ;;  %5787 = vmatmul.bf16.gmra.mxu1 %v7347_v50  ;;  %v6078_v56 = vmax.f32 %v6062_v18, 0.0  ;;  %v11213_v10 = vld [vmem:[%s11420_s5 + $0x20] sm:$0xff] }
 0x809   :  { %v6027_v35 = vmax.f32 %v11117_v58, %v5918_v62  ;;  %v5922_v41 = vpop.f32.mrf.mxu2  ;;  %v6102_v52 = vmul.f32 %v11201_v48, %v6078_v56 }
 0x80b   :  { %6121 = vadd.xlane.f32.xlu2 %v6102_v52  ;;  %v6043_v7 = vmax.f32 %v11776_v25, %v6027_v35  ;;  %v11238_v35 = vld [vmem:[%s11420_s5 + $0x30] sm:$0xff] }
 0x80c   :  { %v5750_v0 = vpop.f32.mrf.mxu1 }
 0x80d   :  { %v5751_v43 = vadd.f32 %v5750_v0, %v10960_v30  ;;  %v6063_v13 = vadd.f32 %v11147_v44, %v6043_v7  ;;  %v11777_v30 = vmax.f32 %v11002_v33, %v11065_v23  ;;  %v7384_v7 = vld [vmem:[#allocation2 + $0x3dc] sm:$0xf0] }
 0x80f   :  { %v5920_v1 = vadd.f32 %v5919_v40, %v5751_v43  ;;  %v6079_v58 = vmax.f32 %v6063_v13, 0.0  ;;  %v7367_v40 = vor.u32 %v7954_v42, %v7364_v53  ;;  %v7959_v43 = vld [vmem:[#allocation2 + $0x3cc] sm:$0xf] }
 0x811   :  { %v6028_v31 = vmax.f32 %v11123_v24, %v5920_v1  ;;  %v5924_v4 = vpop.f32.mrf.mxu2  ;;  %v6103_v27 = vmul.f32 %v11213_v10, %v6079_v58  ;;  %v11226_v24 = vld [vmem:[%s11420_s5 + $0x28] sm:$0xff]  ;;  %v7387_v58 = vor.u32 %v7959_v43, %v7384_v7  ;;  %v7974_v43 = vld [vmem:[#allocation2 + $0x444] sm:$0xf] }
 0x813   :  { %6123 = vadd.xlane.f32.xlu1 %v6103_v27  ;;  %v6044_v60 = vmax.f32 %v11777_v30, %v6028_v31  ;;  %v7972_v30 = vld [vmem:[#allocation2 + $0x430] sm:$0xf0] }
 0x814   :  { %v5753_v57 = vpop.f32.mrf.mxu1 }
 0x815   :  { %v5754_v8 = vadd.f32 %v5753_v57, %v10970_v26  ;;  %v6064_v9 = vadd.f32 %v11147_v44, %v6044_v60  ;;  %v11778_v26 = vmax.f32 %v11009_v59, %v11074_v45  ;;  %v7967_v45 = vld [vmem:[#allocation2 + $0x408] sm:$0xf0]  ;;  %v7404_v60 = vld [vmem:[#allocation2 + $0x404] sm:$0xf0]  ;;  %v7430_v57 = vld [vmem:[#allocation2 + $0x420] sm:$0xf] }
 0x816   :  { %7700 = vmatmul.msk.bf16.gmra.mxu2 %vm5065_vm7, %v7391_v38  ;;  %v7964_v38 = vld [vmem:[#allocation2 + $0x3f4] sm:$0xf] }
 0x817   :  { %v5923_v36 = vadd.f32 %v5922_v41, %v5754_v8  ;;  %5792 = vmatmul.bf16.gmra.mxu1 %v7367_v40  ;;  %v6080_v5 = vmax.f32 %v6064_v9, 0.0  ;;  %v7431_v8 = vor.u32 %v7972_v30, %v7430_v57  ;;  %v7407_v40 = vor.u32 %v7964_v38, %v7404_v60  ;;  %v7979_v38 = vld [vmem:[#allocation2 + $0x46c] sm:$0xf] }
 0x819   :  { %v6029_v33 = vmax.f32 %v11130_v14, %v5923_v36  ;;  %v5927_v23 = vpop.f32.mrf.mxu2  ;;  %v6104_v29 = vmul.f32 %v11226_v24, %v6080_v5 }
 0x81b   :  { %6125 = vadd.xlane.f32.xlu0 %v6104_v29  ;;  %v6045_v50 = vmax.f32 %v11778_v26, %v6029_v33  ;;  %v7450_v29 = vld [vmem:[#allocation2 + $0x448] sm:$0xf]  ;;  %v7977_v26 = vld [vmem:[#allocation2 + $0x458] sm:$0xf0] }
 0x81c   :  { %v5755_v18 = vpop.f32.mrf.mxu1 }
 0x81d   :  { %v5756_v62 = vadd.f32 %v5755_v18, %v10975_v15  ;;  %v6065_v56 = vadd.f32 %v11147_v44, %v6045_v50  ;;  %v7410_v15 = vld [vmem:[#allocation2 + $0x3f8] sm:$0xf]  ;;  %v7424_v50 = vld [vmem:[#allocation2 + $0x42c] sm:$0xf0] }
 0x81e   :  { %v7411_v13 = vor.u32 %v7967_v45, %v7410_v15 }
 0x81f   :  { %v11240_v41 = vadd.f32 %v5924_v4, %v5756_v62  ;;  %v6081_v14 = vmax.f32 %v6065_v56, 0.0  ;;  %v7969_v62 = vld [vmem:[#allocation2 + $0x41c] sm:$0xf]  ;;  %v7451_v56 = vor.u32 %v7977_v26, %v7450_v29 }
 0x821   :  { %v6030_v52 = vmax.f32 %v11136_v55, %v11240_v41  ;;  %v5929_v25 = vpop.f32.mrf.mxu2  ;;  %v6105_v59 = vmul.f32 %v11238_v35, %v6081_v14  ;;  %v7427_v14 = vor.u32 %v7969_v62, %v7424_v50 }
 0x823   :  { %6127 = vadd.xlane.f32.xlu2 %v6105_v59 }
 0x824   :  { %v5758_v0 = vpop.f32.mrf.mxu1 }
 0x825   :  { %v5759_v1 = vadd.f32 %v5758_v0, %v10985_v47  ;;  %v7982_v0 = vld [vmem:[#allocation2 + $0x480] sm:$0xf0] }
 0x826   :  { %7701 = vmatmul.msk.bf16.gmra.mxu2 %vm5065_vm7, %v7411_v13  ;;  %v7470_v13 = vld [vmem:[#allocation2 + $0x470] sm:$0xf] }
 0x827   :  { %v11247_v31 = vadd.f32 %v5927_v23, %v5759_v1  ;;  %5797 = vmatmul.bf16.gmra.mxu1 %v7387_v58  ;;  %v7444_v58 = vld [vmem:[#allocation2 + $0x454] sm:$0xf0] }
 0x829   :  { %v5932_v4 = vpop.f32.mrf.mxu2 }
 0x82c   :  { %v5760_v27 = vpop.f32.mrf.mxu1 }
 0x82d   :  { %v5761_v37 = vadd.f32 %v5760_v27, %v10990_v12  ;;  %v7447_v27 = vor.u32 %v7974_v43, %v7444_v58 }
 0x82f   :  { %v11250_v53 = vadd.f32 %v5929_v25, %v5761_v37 }
 0x831   :  { %v5934_v63 = vpop.f32.mrf.mxu2 }
 0x834   :  { %v5763_v42 = vpop.f32.mrf.mxu1 }
 0x835   :  { %v5764_v47 = vadd.f32 %v5763_v42, %v11000_v28  ;;  %v7987_v42 = vld [vmem:[#allocation2 + $0x4a8] sm:$0xf0] }
 0x836   :  { %7702 = vmatmul.msk.bf16.gmra.mxu2 %vm5065_vm7, %v7431_v8  ;;  %v7490_v8 = vld [vmem:[#allocation2 + $0x498] sm:$0xf] }
 0x837   :  { %v11254_v9 = vadd.f32 %v5932_v4, %v5764_v47  ;;  %5802 = vmatmul.bf16.gmra.mxu1 %v7407_v40  ;;  %v7471_v4 = vor.u32 %v7982_v0, %v7470_v13  ;;  %v7464_v40 = vld [vmem:[#allocation2 + $0x47c] sm:$0xf0] }
 0x839   :  { %v5937_v36 = vpop.f32.mrf.mxu2 }
 0x83c   :  { %v5765_v5 = vpop.f32.mrf.mxu1 }
 0x83d   :  { %v5766_v12 = vadd.f32 %v5765_v5, %v11005_v39  ;;  %v7467_v5 = vor.u32 %v7979_v38, %v7464_v40 }
 0x83f   :  { %v11257_v33 = vadd.f32 %v5934_v63, %v5766_v12 }
 0x841   :  { %v5939_v23 = vpop.f32.mrf.mxu2 }
 0x844   :  { %v5768_v18 = vpop.f32.mrf.mxu1 }
 0x845   :  { %v5769_v28 = vadd.f32 %v5768_v18, %v11014_v16 }
 0x846   :  { %7703 = vmatmul.msk.bf16.gmra.mxu2 %vm5065_vm7, %v7451_v56  ;;  %v7984_v56 = vld [vmem:[#allocation2 + $0x494] sm:$0xf] }
 0x847   :  { %v11261_v25 = vadd.f32 %v5937_v36, %v5769_v28  ;;  %5807 = vmatmul.bf16.gmra.mxu1 %v7427_v14  ;;  %v7491_v36 = vor.u32 %v7987_v42, %v7490_v8  ;;  %v7510_v28 = vld [vmem:[#allocation2 + $0x4c0] sm:$0xf]  ;;  %v11779_v42 = vld [vmem:[#allocation21_spill] sm:$0xff] }
 0x849   :  { %v5942_v59 = vpop.f32.mrf.mxu2 }
 0x84c   :  { %v5770_v45 = vpop.f32.mrf.mxu1 }
 0x84d   :  { %v5771_v39 = vadd.f32 %v5770_v45, %v11019_v49 }
 0x84f   :  { %v11264_v7 = vadd.f32 %v5939_v23, %v5771_v39 }
 0x851   :  { %v5944_v15 = vpop.f32.mrf.mxu2 }
 0x854   :  { %v5773_v1 = vpop.f32.mrf.mxu1 }
 0x855   :  { %v5774_v16 = vadd.f32 %v5773_v1, %v11028_v61 }
 0x856   :  { %7704 = vmatmul.msk.bf16.gmra.mxu2 %vm5065_vm7, %v7471_v4 }
 0x857   :  { %v11268_v37 = vadd.f32 %v5942_v59, %v5774_v16  ;;  %5812 = vmatmul.bf16.gmra.mxu1 %v7447_v27  ;;  %v7484_v59 = vld [vmem:[#allocation2 + $0x4a4] sm:$0xf0]  ;;  %v7997_v27 = vld [vmem:[#allocation2 + $0x4f8] sm:$0xf0] }
 0x859   :  { %v5947_v63 = vpop.f32.mrf.mxu2 }
 0x85c   :  { %v5775_v30 = vpop.f32.mrf.mxu1 }
 0x85d   :  { %v5776_v49 = vadd.f32 %v5775_v30, %v11036_v11 }
 0x85f   :  { %v11271_v60 = vadd.f32 %v5944_v15, %v5776_v49  ;;  %v7487_v15 = vor.u32 %v7984_v56, %v7484_v59  ;;  %v7989_v49 = vld [vmem:[#allocation2 + $0x4bc] sm:$0xf] }
 0x861   :  { %v5949_v57 = vpop.f32.mrf.mxu2 }
 0x864   :  { %v5778_v47 = vpop.f32.mrf.mxu1 }
 0x865   :  { %v5779_v61 = vadd.f32 %v5778_v47, %v11045_v22  ;;  %v7992_v22 = vld [vmem:[#allocation2 + $0x4d0] sm:$0xf0] }
 0x866   :  { %7705 = vmatmul.msk.bf16.gmra.mxu2 %vm5065_vm7, %v7491_v36  ;;  %v7511_v45 = vor.u32 %v7992_v22, %v7510_v28  ;;  %v7524_v22 = vld [vmem:[#allocation2 + $0x4f4] sm:$0xf0] }
 0x867   :  { %v11275_v12 = vadd.f32 %v5947_v63, %v5779_v61  ;;  %5817 = vmatmul.bf16.gmra.mxu1 %v7467_v5  ;;  %v7504_v63 = vld [vmem:[#allocation2 + $0x4cc] sm:$0xf0] }
 0x868   :  { %v7507_v8 = vor.u32 %v7989_v49, %v7504_v63  ;;  %v11782_v49 = vld [vmem:[#allocation115_spill] sm:$0xff] }
 0x869   :  { %v6015_v11 = vmax.f32 %v11247_v31, %v11275_v12  ;;  %v5952_v23 = vpop.f32.mrf.mxu2  ;;  %v11790_v12 = vld [vmem:[#allocation18_spill] sm:$0xff] }
 0x86c   :  { %v5780_v29 = vpop.f32.mrf.mxu1 }
 0x86d   :  { %v5781_v26 = vadd.f32 %v5780_v29, %v11053_v46 }
 0x86f   :  { %v11280_v50 = vadd.f32 %v5949_v57, %v5781_v26  ;;  %v7994_v26 = vld [vmem:[#allocation2 + $0x4e4] sm:$0xf] }
 0x870   :  { %v7527_v28 = vor.u32 %v7994_v26, %v7524_v22 }
 0x871   :  { %v6016_v18 = vmax.f32 %v11250_v53, %v11280_v50  ;;  %v5954_v62 = vpop.f32.mrf.mxu2 }
 0x874   :  { %v5783_v14 = vpop.f32.mrf.mxu1 }
 0x875   :  { %v5784_v39 = vadd.f32 %v5783_v14, %v11062_v2  ;;  %v7530_v2 = vld [vmem:[#allocation2 + $0x4e8] sm:$0xf] }
 0x876   :  { %7706 = vmatmul.msk.bf16.gmra.mxu2 %vm5065_vm7, %v7511_v45  ;;  %v7531_v57 = vor.u32 %v7997_v27, %v7530_v2  ;;  %v11781_v2 = vld [vmem:[#allocation23_spill] sm:$0xff] }
 0x877   :  { %v11286_v0 = vadd.f32 %v5952_v23, %v5784_v39  ;;  %5822 = vmatmul.bf16.gmra.mxu1 %v7487_v15  ;;  %v11780_v39 = vld [vmem:[#allocation67_spill] sm:$0xff] }
 0x879   :  { %v6017_v46 = vmax.f32 %v11254_v9, %v11286_v0  ;;  %v5957_v43 = vpop.f32.mrf.mxu2 }
 0x87c   :  { %v5785_v13 = vpop.f32.mrf.mxu1 }
 0x87d   :  { %v5786_v1 = vadd.f32 %v5785_v13, %v11070_v19 }
 0x87f   :  { %v11291_v58 = vadd.f32 %v5954_v62, %v5786_v1 }
 0x881   :  { %v6018_v4 = vmax.f32 %v11257_v33, %v11291_v58  ;;  %v5959_v16 = vpop.f32.mrf.mxu2 }
 0x884   :  { %v5788_v30 = vpop.f32.mrf.mxu1 }
 0x885   :  { %v5789_v38 = vadd.f32 %v5788_v30, %v11779_v42 }
 0x886   :  { %7707 = vmatmul.msk.bf16.gmra.mxu2 %vm5065_vm7, %v7531_v57 }
 0x887   :  { %v11297_v47 = vadd.f32 %v5957_v43, %v5789_v38  ;;  %5827 = vmatmul.bf16.gmra.mxu1 %v7507_v8 }
 0x889   :  { %v6019_v19 = vmax.f32 %v11261_v25, %v11297_v47  ;;  %v5962_v40 = vpop.f32.mrf.mxu2 }
 0x88c   :  { %v5790_v36 = vpop.f32.mrf.mxu1 }
 0x88d   :  { %v5791_v61 = vadd.f32 %v5790_v36, %v11087_v20 }
 0x88f   :  { %v11302_v5 = vadd.f32 %v5959_v16, %v5791_v61 }
 0x891   :  { %v6020_v23 = vmax.f32 %v11264_v7, %v11302_v5  ;;  %v5964_v29 = vpop.f32.mrf.mxu2 }
 0x894   :  { %v5793_v62 = vpop.f32.mrf.mxu1 }
 0x895   :  { %v5794_v56 = vadd.f32 %v5793_v62, %v11094_v32  ;;  %v11784_v62 = vld [vmem:[#allocation24_spill] sm:$0xff] }
 0x897   :  { %v11307_v14 = vadd.f32 %v5962_v40, %v5794_v56  ;;  %5832 = vmatmul.bf16.gmra.mxu1 %v7527_v28  ;;  %v11783_v40 = vld [vmem:[#allocation68_spill] sm:$0xff] }
 0x899   :  { %v6021_v59 = vmax.f32 %v11268_v37, %v11307_v14  ;;  %v5967_v45 = vpop.f32.mrf.mxu2 }
 0x89c   :  { %v5795_v20 = vpop.f32.mrf.mxu1 }
 0x89d   :  { %v5796_v15 = vadd.f32 %v5795_v20, %v11780_v39 }
 0x89f   :  { %v11312_v43 = vadd.f32 %v5964_v29, %v5796_v15 }
 0x8a1   :  { %v6022_v13 = vmax.f32 %v11271_v60, %v11312_v43  ;;  %v5969_v1 = vpop.f32.mrf.mxu2 }
 0x8a4   :  { %v5798_v16 = vpop.f32.mrf.mxu1 }
 0x8a5   :  { %v5799_v32 = vadd.f32 %v5798_v16, %v11781_v2 }
 0x8a7   :  { %v5968_v27 = vadd.f32 %v5967_v45, %v5799_v32 }
 0x8a9   :  { %v5972_v63 = vpop.f32.mrf.mxu2 }
 0x8ac   :  { %v5800_v30 = vpop.f32.mrf.mxu1 }
 0x8ad   :  { %v5801_v57 = vadd.f32 %v5800_v30, %v11782_v49 }
 0x8af   :  { %v5970_v42 = vadd.f32 %v5969_v1, %v5801_v57 }
 0x8b1   :  { %v5974_v38 = vpop.f32.mrf.mxu2 }
 0x8b4   :  { %v5803_v8 = vpop.f32.mrf.mxu1 }
 0x8b5   :  { %v5804_v36 = vadd.f32 %v5803_v8, %v11783_v40 }
 0x8b7   :  { %v5973_v61 = vadd.f32 %v5972_v63, %v5804_v36  ;;  %v5649_v63 = vpop.f32.mrf.mxu3 }
 0x8b9   :  { %v5977_v29 = vpop.f32.mrf.mxu2 }
 0x8bc   :  { %v5805_v26 = vpop.f32.mrf.mxu1 }
 0x8bd   :  { %v5806_v22 = vadd.f32 %v5805_v26, %v11784_v62  ;;  %v11785_v26 = vld [vmem:[#allocation16_spill] sm:$0xff] }
 0x8be   :  { %v5650_v62 = vadd.f32 %v5649_v63, %v11785_v26  ;;  %v11788_v63 = vld [vmem:[#allocation112_spill] sm:$0xff] }
 0x8bf   :  { %v11320_v56 = vadd.f32 %v5974_v38, %v5806_v22  ;;  %v5651_v8 = vpop.f32.mrf.mxu3 }
 0x8c1   :  { %v5979_v28 = vpop.f32.mrf.mxu2 }
 0x8c4   :  { %v5808_v20 = vpop.f32.mrf.mxu1 }
 0x8c5   :  { %v5809_v45 = vadd.f32 %v5808_v20, %v11133_v3 }
 0x8c7   :  { %v11323_v39 = vadd.f32 %v5977_v29, %v5809_v45 }
 0x8c9   :  { %v5982_v15 = vpop.f32.mrf.mxu2 }
 0x8cc   :  { %v5810_v16 = vpop.f32.mrf.mxu1 }
 0x8cd   :  { %v5811_v1 = vadd.f32 %v5810_v16, %v11139_v54  ;;  %v11786_v16 = vld [vmem:[#allocation62_spill] sm:$0xff] }
 0x8cf   :  { %v11326_v2 = vadd.f32 %v5979_v28, %v5811_v1  ;;  %v5654_v28 = vpop.f32.mrf.mxu3  ;;  %v5652_v1 = vadd.f32 %v5651_v8, %v11786_v16  ;;  %v11791_v16 = vld [vmem:[#allocation63_spill] sm:$0xff] }
 0x8d1   :  { %v5984_v32 = vpop.f32.mrf.mxu2 }
 0x8d4   :  { %v5813_v30 = vpop.f32.mrf.mxu1 }
 0x8d5   :  { %v5814_v49 = vadd.f32 %v5813_v30, %v11153_v34 }
 0x8d7   :  { %v11329_v57 = vadd.f32 %v5982_v15, %v5814_v49  ;;  %v5656_v8 = vpop.f32.mrf.mxu3 }
 0x8d9   :  { %v5987_v38 = vpop.f32.mrf.mxu2 }
 0x8dc   :  { %v5815_v40 = vpop.f32.mrf.mxu1 }
 0x8dd   :  { %v5816_v3 = vadd.f32 %v5815_v40, %v11168_v6 }
 0x8df   :  { %v11332_v36 = vadd.f32 %v5984_v32, %v5816_v3  ;;  %v11787_v32 = vld [vmem:[#allocation65_spill] sm:$0xff] }
 0x8e0   :  { %v11789_v40 = vmax.f32 %v11787_v32, %v11788_v63 }
 0x8e1   :  { %v5989_v29 = vpop.f32.mrf.mxu2 }
 0x8e2   :  { %v11346_v3 = vmax.f32 %v11789_v40, %v6030_v52 }
 0x8e4   :  { %v5818_v54 = vpop.f32.mrf.mxu1 }
 0x8e5   :  { %v5819_v22 = vadd.f32 %v5818_v54, %v5650_v62 }
 0x8e7   :  { %v5988_v20 = vadd.f32 %v5987_v38, %v5819_v22 }
 0x8e9   :  { %v6031_v45 = vmax.f32 %v5968_v27, %v5988_v20  ;;  %v5992_v15 = vpop.f32.mrf.mxu2 }
 0x8eb   :  { %v6047_v34 = vmax.f32 %v6015_v11, %v6031_v45  ;;  %v5655_v11 = vadd.f32 %v5654_v28, %v11790_v12 }
 0x8ec   :  { %v5820_v30 = vpop.f32.mrf.mxu1 }
 0x8ed   :  { %v5821_v49 = vadd.f32 %v5820_v30, %v5652_v1  ;;  %v6067_v6 = vadd.f32 %v11147_v44, %v6047_v34 }
 0x8ef   :  { %v5990_v27 = vadd.f32 %v5989_v29, %v5821_v49  ;;  %v6083_v38 = vmax.f32 %v6067_v6, 0.0 }
 0x8f1   :  { %v6032_v26 = vmax.f32 %v5970_v42, %v5990_v27  ;;  %v6107_v31 = vmul.f32 %v11160_v21, %v6083_v38  ;;  %v5994_v22 = vpop.f32.mrf.mxu2  ;;  %v5659_v42 = vpop.f32.mrf.mxu3  ;;  %v5657_v21 = vadd.f32 %v5656_v8, %v11791_v16 }
 0x8f3   :  { %6131 = vadd.xlane.f32.xlu2 %v6107_v31  ;;  %v6048_v62 = vmax.f32 %v6016_v18, %v6032_v26 }
 0x8f4   :  { %v5823_v54 = vpop.f32.mrf.mxu1 }
 0x8f5   :  { %v5824_v55 = vadd.f32 %v5823_v54, %v5655_v11  ;;  %v6068_v41 = vadd.f32 %v11147_v44, %v6048_v62 }
 0x8f7   :  { %v5993_v52 = vadd.f32 %v5992_v15, %v5824_v55  ;;  %v6084_v20 = vmax.f32 %v6068_v41, 0.0 }
 0x8f9   :  { %v6033_v29 = vmax.f32 %v5973_v61, %v5993_v52  ;;  %v6108_v45 = vmul.f32 %v11176_v17, %v6084_v20  ;;  %v5997_v30 = vpop.f32.mrf.mxu2  ;;  %v11792_v17 = vld [vmem:[#allocation19_spill] sm:$0xff]  ;;  %v5661_v9 = vpop.f32.mrf.mxu3 }
 0x8fa   :  { %v5660_v49 = vadd.f32 %v5659_v42, %v11792_v17 }
 0x8fb   :  { %6133 = vadd.xlane.f32.xlu2 %v6108_v45  ;;  %v6049_v28 = vmax.f32 %v6017_v46, %v6033_v29  ;;  %v11795_v45 = vld [vmem:[#allocation111_spill] sm:$0xff] }
 0x8fc   :  { %v5825_v53 = vpop.f32.mrf.mxu1 }
 0x8fd   :  { %v5826_v50 = vadd.f32 %v5825_v53, %v5657_v21  ;;  %v6069_v18 = vadd.f32 %v11147_v44, %v6049_v28 }
 0x8ff   :  { %v5995_v1 = vadd.f32 %v5994_v22, %v5826_v50  ;;  %v6085_v34 = vmax.f32 %v6069_v18, 0.0 }
 0x901   :  { %v6034_v15 = vmax.f32 %v11320_v56, %v5995_v1  ;;  %v6109_v61 = vmul.f32 %v11188_v51, %v6085_v34  ;;  %v5999_v38 = vpop.f32.mrf.mxu2  ;;  %v11793_v51 = vld [vmem:[#allocation64_spill] sm:$0xff]  ;;  %v5664_v31 = vpop.f32.mrf.mxu3 }
 0x902   :  { %v5662_v8 = vadd.f32 %v5661_v9, %v11793_v51  ;;  %v6122_v34 = vpop.xlane.xlu2 %6121  ;;  %v6163_v9 = vlaneseq }
 0x903   :  { %6135 = vadd.xlane.f32.xlu1 %v6109_v61  ;;  %v6050_v6 = vmax.f32 %v6018_v4, %v6034_v15  ;;  %v6116_v15 = vpop.xlane.xlu0 %6115 }
 0x904   :  { %v5828_v0 = vpop.f32.mrf.mxu1 }
 0x905   :  { %v5829_v46 = vadd.f32 %v5828_v0, %v5660_v49  ;;  %v6070_v32 = vadd.f32 %v11147_v44, %v6050_v6 }
 0x907   :  { %v5998_v63 = vadd.f32 %v5997_v30, %v5829_v46  ;;  %v6086_v40 = vmax.f32 %v6070_v32, 0.0  ;;  %v6118_v30 = vpop.xlane.xlu1 %6117  ;;  %v6164_v46 = vand.u32 127, %v6163_v9 }
 0x909   :  { %v6035_v27 = vmax.f32 %v11323_v39, %v5998_v63  ;;  %v6110_v56 = vmul.f32 %v11201_v48, %v6086_v40  ;;  %v11794_v48 = vld [vmem:[#allocation20_spill] sm:$0xff]  ;;  %v6002_v25 = vpop.f32.mrf.mxu2  ;;  %v5666_v20 = vpop.f32.mrf.mxu3  ;;  %v6166_v43 = vadd.s32 4294967288, %v6164_v46  ;;  %v6178_v40 = vadd.s32 4294967264, %v6164_v46 }
 0x90a   :  { %v5665_v54 = vadd.f32 %v5664_v31, %v11794_v48  ;;  %v5667_v42 = vadd.f32 %v5666_v20, %v11795_v45  ;;  %v6128_v61 = vpop.xlane.xlu2 %6127  ;;  %v6165_v51 = vperm.slane %v6116_v15, %v6164_v46 }
 0x90b   :  { %6137 = vadd.xlane.f32.xlu0 %v6110_v56  ;;  %v6051_v33 = vmax.f32 %v6019_v19, %v6035_v27  ;;  %v6167_v63 = vperm.slane %v6118_v30, %v6166_v43  ;;  %v6182_v56 = vadd.s32 4294967256, %v6164_v46 }
 0x90c   :  { %v5830_v58 = vpop.f32.mrf.mxu1 }
 0x90d   :  { %v5831_v4 = vadd.f32 %v5830_v58, %v5662_v8  ;;  %v6071_v26 = vadd.f32 %v11147_v44, %v6051_v33  ;;  %v6186_v33 = vadd.s32 4294967248, %v6164_v46 }
 0x90f   :  { %v6000_v12 = vadd.f32 %v5999_v38, %v5831_v4  ;;  %v6087_v11 = vmax.f32 %v6071_v26, 0.0  ;;  %v6124_v17 = vpop.xlane.xlu1 %6123 }
 0x911   :  { %v6036_v62 = vmax.f32 %v11326_v2, %v6000_v12  ;;  %v6111_v39 = vmul.f32 %v11213_v10, %v6087_v11  ;;  %v6066_v10 = vadd.f32 %v11147_v44, %v11346_v3  ;;  %v6004_v28 = vpop.f32.mrf.mxu2  ;;  %v6190_v11 = vadd.s32 4294967240, %v6164_v46 }
 0x913   :  { %6139 = vadd.xlane.f32.xlu2 %v6111_v39  ;;  %v6052_v55 = vmax.f32 %v6020_v23, %v6036_v62  ;;  %v6082_v21 = vmax.f32 %v6066_v10, 0.0  ;;  %v6169_v62 = vsel %vm6168_vm8, %v6167_v63, %v6165_v51  ;;  %v6179_v39 = vperm.slane %v6124_v17, %v6178_v40 }
 0x914   :  { %v5833_v47 = vpop.f32.mrf.mxu1 }
 0x915   :  { %v5834_v19 = vadd.f32 %v5833_v47, %v5665_v54  ;;  %v6072_v41 = vadd.f32 %v11147_v44, %v6052_v55 }
 0x917   :  { %v6003_v22 = vadd.f32 %v6002_v25, %v5834_v19  ;;  %v6088_v52 = vmax.f32 %v6072_v41, 0.0  ;;  %v6187_v41 = vperm.slane %v6128_v61, %v6186_v33 }
 0x919   :  { %v6037_v29 = vmax.f32 %v11329_v57, %v6003_v22  ;;  %v6112_v2 = vmul.f32 %v11226_v24, %v6088_v52  ;;  %v6098_v24 = vld [vmem:[%s11420_s5 + $0x38] sm:$0xff] }
 0x91a   :  { %v6106_v18 = vmul.f32 %v6098_v24, %v6082_v21 }
 0x91b   :  { %6141 = vadd.xlane.f32.xlu1 %v6112_v2  ;;  %v6053_v7 = vmax.f32 %v6021_v59, %v6037_v29 }
 0x91c   :  { %v5835_v5 = vpop.f32.mrf.mxu1 }
 0x91d   :  { %v5836_v23 = vadd.f32 %v5835_v5, %v5667_v42  ;;  %v6073_v16 = vadd.f32 %v11147_v44, %v6053_v7 }
 0x91f   :  { %v6005_v57 = vadd.f32 %v6004_v28, %v5836_v23  ;;  %v6089_v53 = vmax.f32 %v6073_v16, 0.0 }
 0x921   :  { %v6038_v3 = vmax.f32 %v11332_v36, %v6005_v57  ;;  %v6113_v50 = vmul.f32 %v11238_v35, %v6089_v53  ;;  %v6120_v36 = vpop.xlane.xlu0 %6119 }
 0x923   :  { %6143 = vadd.xlane.f32.xlu0 %v6113_v50  ;;  %6129 = vadd.xlane.f32.xlu1 %v6106_v18  ;;  %v6054_v37 = vmax.f32 %v6022_v13, %v6038_v3  ;;  %v6170_v13 = vadd.s32 4294967280, %v6164_v46  ;;  %v6217_v3 = vstv %s11421_s6 }
 0x925   :  { %v6074_v14 = vadd.f32 %v11147_v44, %v6054_v37  ;;  %v6174_v44 = vadd.s32 4294967272, %v6164_v46  ;;  %v6171_v8 = vperm.slane %v6120_v36, %v6170_v13 }
 0x927   :  { %v6090_v59 = vmax.f32 %v6074_v14, 0.0  ;;  %v6175_v4 = vperm.slane %v6122_v34, %v6174_v44  ;;  %v6173_v19 = vsel %vm6172_vm9, %v6171_v8, %v6169_v62 }
 0x929   :  { %v6114_v1 = vmul.f32 %v6098_v24, %v6090_v59  ;;  %v6126_v6 = vpop.xlane.xlu0 %6125  ;;  %v6177_v20 = vsel %vm6176_vm10, %v6175_v4, %v6173_v19 }
 0x92a   :  { %v6183_v55 = vperm.slane %v6126_v6, %v6182_v56  ;;  %v6181_v10 = vsel %vm6180_vm11, %v6179_v39, %v6177_v20 }
 0x92b   :  { %6145 = vadd.xlane.f32.xlu2 %v6114_v1 }
 0x92c   :  { %v6185_v7 = vsel %vm6184_vm12, %v6183_v55, %v6181_v10 }
 0x92d   :  { %v6189_v16 = vsel %vm6188_vm13, %v6187_v41, %v6185_v7 }
 0x966   :  { %v6132_v49 = vpop.xlane.xlu2 %6131 }
 0x967   :  { %v6194_v26 = vperm.slane %v6132_v49, %v6164_v46 }
 0x96e   :  { %v6134_v0 = vpop.xlane.xlu2 %6133 }
 0x96f   :  { %v6195_v38 = vperm.slane %v6134_v0, %v6166_v43 }
 0x971   :  { %v6196_v25 = vsel %vm6168_vm8, %v6195_v38, %v6194_v26 }
 0x976   :  { %v6136_v35 = vpop.xlane.xlu1 %6135 }
 0x977   :  { %v6197_v58 = vperm.slane %v6136_v35, %v6170_v13 }
 0x979   :  { %v6198_v22 = vsel %vm6172_vm9, %v6197_v58, %v6196_v25 }
 0x97e   :  { %v6138_v60 = vpop.xlane.xlu0 %6137 }
 0x97f   :  { %v6199_v31 = vperm.slane %v6138_v60, %v6174_v44 }
 0x981   :  { %v6200_v29 = vsel %vm6176_vm10, %v6199_v31, %v6198_v22 }
 0x986   :  { %v6140_v27 = vpop.xlane.xlu2 %6139 }
 0x987   :  { %v6201_v48 = vperm.slane %v6140_v27, %v6178_v40 }
 0x989   :  { %v6202_v45 = vsel %vm6180_vm11, %v6201_v48, %v6200_v29 }
 0x98e   :  { %v6142_v32 = vpop.xlane.xlu1 %6141 }
 0x98f   :  { %v6203_v47 = vperm.slane %v6142_v32, %v6182_v56 }
 0x991   :  { %v6204_v5 = vsel %vm6184_vm12, %v6203_v47, %v6202_v45 }
 0x996   :  { %v6144_v12 = vpop.xlane.xlu0 %6143  ;;  %v6130_v54 = vpop.xlane.xlu1 %6129 }
 0x997   :  { %v6205_v52 = vperm.slane %v6144_v12, %v6186_v33  ;;  %v6191_v2 = vperm.slane %v6130_v54, %v6190_v11 }
 0x999   :  { %v6206_v21 = vsel %vm6188_vm13, %v6205_v52, %v6204_v5  ;;  %v6193_v28 = vsel %vm6192_vm14, %v6191_v2, %v6189_v16 }
 0x99e   :  { %v6146_v42 = vpop.xlane.xlu2 %6145 }
 0x99f   :  { %v6207_v23 = vperm.slane %v6146_v42, %v6190_v11 }
 0x9a1   :  { %v6208_v24 = vsel %vm6192_vm14, %v6207_v23, %v6206_v21 }
 0x9a2   :  { %v6210_v57 = vsel %vm6209_vm15, %v6208_v24, %v6193_v28 }
 0x9a3   :  { %v6213_v53 = vsel %vm6212_vm0, %v6210_v57, 0.0 }
 0x9a4   :  { %6214 = vadd.xlane.f32.xlu0 %v6213_v53 }
 0xa17   :  { %v6215_v50 = vpop.xlane.xlu0 %6214 }
 0xa18   :  { %v6218_v18 = vadd.f32 %v6217_v3, %v6215_v50 }
 0xa1a   :  { %v6219_v37 = vsub.f32 0.0, %v6218_v18 }
 0xa1c   :  { %v6220_v14 = vmul.f32 1.442695, %v6219_v37 }
 0xa1e   :  { %8045 = vpow2.f32 %v6220_v14 }
 0xa24   :  { %v8046_v59 = vpop.eup %8045 }
 0xa25   :  { %v6222_v1 = vadd.f32 1.0, %v8046_v59 }
 0xa27   :  { %8047 = vrcp.f32 %v6222_v1  ;;  %v6234_v61 = vand.u32 2147483648, %v6222_v1  ;;  %v6232_v36 = vand.u32 2147483647, %v6222_v1  ;;  %vm6228_vm2 = vweird.f32 %v6222_v1 }
 0xa29   :  { %v6235_v35 = vor.u32 1.1754944e-38, %v6234_v61  ;;  %vm6233_vm5 = vcmp.eq.f32.partialorder %v6232_v36, 8.507059e+37 }
 0xa2d   :  { %v8048_v34 = vpop.eup %8047 }
 0xa2e   :  { %v6224_v30 = vmul.f32 %v8048_v34, %v6222_v1  ;;  %vm6229_vm1 = vweird.f32 %v8048_v34 }
 0xa2f   :  { %vm6230_vm4 = vmor %vm6228_vm2, %vm6229_vm1 }
 0xa30   :  { %v6225_v15 = vsub.f32 1.0, %v6224_v30 }
 0xa32   :  { %v6226_v17 = vmul.f32 %v8048_v34, %v6225_v15 }
 0xa34   :  { %v6227_v49 = vadd.f32 %v8048_v34, %v6226_v17 }
 0xa36   :  { %v6231_v6 = vsel %vm6230_vm4, %v8048_v34, %v6227_v49 }
 0xa37   :  { %v6236_v9 = vsel %vm6233_vm5, %v6235_v35, %v6231_v6 }
 0xa38   :  { %6239 = vst.msk [vmem:[%s11422_s7] sm:$0x3] %vm6238_vm3, %v6236_v9 }

</bundles_post_ra>
